<compile_context>
chip_gen: v5e
topology: v5e:2x2
jax: 0.10.0
libtpu: 0.0.40
codegen_flags: <defaults>
</compile_context>

<pallas_src>
import math

import jax
import jax.numpy as jnp
import numpy as np
from jax.experimental import pallas as pl
from jax.experimental.pallas import tpu as pltpu


# ---------------------------------------------------------------------------
# Pallas kernel: one SAMPLE = all s*s output phases of a BCConv2D (+ GDN).
# ---------------------------------------------------------------------------
def _make_fused_kernel(apply_gdn, taps, img_w, p_size, cin):
    """Kernel for one sample, all phases fused into one GEMM.

    Ref shapes seen by the kernel:
      x_ref    : (1, Cin, P + 2*pad)   bf16  flattened zero-padded sample
      w_ref    : (ss*Cout, T*T*Cin)    bf16  phase-fused weight matrix
      bias_ref : (1, ss*Cout, 1)       f32   conv (+ conditional) bias
      mask_ref : (T, P)                bf16  column-border masks per column tap
      gamma_ref: (ss*Cout, ss*Cout)    f32   block-diag GDN gamma  (if GDN)
      beta_ref : (ss*Cout, 1)          f32   tiled GDN beta        (if GDN)
      o_ref    : (1, ss*Cout, P)       bf16 / f32 lane-dense output
      col_ref  : (T*T*Cin, P)          bf16  im2col VMEM scratch
    """
    t_mid = taps // 2

    def kernel(x_ref, w_ref, bias_ref, mask_ref, *rest):
        if apply_gdn:
            gamma_ref, beta_ref, o_ref, col_ref = rest
        else:
            o_ref, col_ref = rest

        # --- Build the (T*T*Cin, P) im2col block once; shared by all phases.
        # Padded-flat-row trick: x[m+dh, n+dw] for output lane p = m*W+n is
        # xflat_pad[p + ti*W + tj] (ti = dh+dmax, tj = dw+dmax); row overflow
        # lands in the zero pads, column wrap-around is killed by the mask.
        for ti in range(taps):
            for tj in range(taps):
                t = ti * taps + tj
                off = ti * img_w + tj                      # static lane offset
                sl = x_ref[0, :, off:off + p_size]         # (Cin, P) bf16
                if tj != t_mid:
                    sl = sl * mask_ref[tj:tj + 1, :]       # border-column fix
                col_ref[t * cin:(t + 1) * cin, :] = sl

        # --- Single fused GEMM over all phases: (ss*Cout, K) x (K, P).
        y = jnp.dot(w_ref[...], col_ref[...],
                    preferred_element_type=jnp.float32)
        y = y + bias_ref[0]                                # (ss*Cout, P) f32

        if apply_gdn:
            # Block-diagonal gamma keeps channel mixing within each phase.
            norm = jnp.dot(gamma_ref[...], y * y,
                           preferred_element_type=jnp.float32) + beta_ref[...]
            y = y * jax.lax.rsqrt(norm)

        o_ref[0] = y.astype(o_ref.dtype)

    return kernel


def _bcconv_fused_pallas(xflat, w_fused, bias_all, masks, gamma_bd, beta_t, *,
                         apply_gdn, per_sample_bias, taps, img_w, p_size,
                         cin, m_rows, out_dtype):
    n = xflat.shape[0]
    pw = xflat.shape[2]
    k_dim = taps * taps * cin

    kernel = _make_fused_kernel(apply_gdn, taps, img_w, p_size, cin)

    bias_map = (lambda i: (i, 0, 0)) if per_sample_bias else (lambda i: (0, 0, 0))
    in_specs = [
        pl.BlockSpec((1, cin, pw), lambda i: (i, 0, 0)),      # sample, VMEM-resident
        pl.BlockSpec((m_rows, k_dim), lambda i: (0, 0)),      # fused phase weights
        pl.BlockSpec((1, m_rows, 1), bias_map),               # bias (per-sample or shared)
        pl.BlockSpec((taps, p_size), lambda i: (0, 0)),       # column masks
    ]
    operands = [xflat, w_fused, bias_all, masks]
    if apply_gdn:
        in_specs += [pl.BlockSpec((m_rows, m_rows), lambda i: (0, 0)),
                     pl.BlockSpec((m_rows, 1), lambda i: (0, 0))]
        operands += [gamma_bd, beta_t]

    return pl.pallas_call(
        kernel,
        out_shape=jax.ShapeDtypeStruct((n, m_rows, p_size), out_dtype),
        grid=(n,),
        in_specs=in_specs,
        out_specs=pl.BlockSpec((1, m_rows, p_size), lambda i: (i, 0, 0)),
        scratch_shapes=[pltpu.VMEM((k_dim, p_size), jnp.bfloat16)],
        compiler_params=pltpu.CompilerParams(
            dimension_semantics=("parallel",)),
    )(*operands)


# ---------------------------------------------------------------------------
# One-time parameter preparation (phase-fused weights, masks, GDN constants).
# ---------------------------------------------------------------------------
def _column_masks(taps, dmax, img_w, p_size):
    col = np.arange(p_size) % img_w
    rows = []
    for tj in range(taps):
        dw = tj - dmax
        rows.append(((col + dw >= 0) & (col + dw < img_w)).astype(np.float32))
    return jnp.asarray(np.stack(rows), dtype=jnp.bfloat16)


def prepare_params(params, *, kernel, stride, input_hw):
    assert kernel % 2 == 1, "odd kernel expected"
    pad = kernel // 2
    dvals = [(py + pad - kh) // stride
             for py in range(stride) for kh in range(kernel)
             if (py + pad - kh) % stride == 0]
    dmax = max(abs(d) for d in dvals)
    taps = 2 * dmax + 1
    ss = stride * stride

    h, w = input_hw
    prepared = []
    for p in params:
        wt = p["weight"]                        # [Cin, Cout, K, K]
        cin, cout = int(wt.shape[0]), int(wt.shape[1])

        # Phase-fused weight matrix, rows = phase*Cout + c (phase-major).
        phase_rows = []
        for py in range(stride):
            for px in range(stride):
                cols = []
                for ti in range(taps):
                    kh = py + pad - stride * (ti - dmax)
                    for tj in range(taps):
                        kw = px + pad - stride * (tj - dmax)
                        if 0 <= kh < kernel and 0 <= kw < kernel:
                            blk = wt[:, :, kh, kw].T              # (Cout, Cin)
                        else:
                            blk = jnp.zeros((cout, cin), wt.dtype)
                        cols.append(blk)
                phase_rows.append(jnp.concatenate(cols, axis=1))  # (Cout, T*T*Cin)
        w_fused = jnp.concatenate(phase_rows, axis=0).astype(jnp.bfloat16)

        p_size = h * w
        pad_amt = dmax * (w + 1)
        masks = _column_masks(taps, dmax, w, p_size)

        prepared.append(dict(
            w_fused=w_fused,                                      # (ss*Cout, T*T*Cin) bf16
            bias=p["bias"].astype(jnp.float32),                   # (Cout,)
            bias_tiled=jnp.tile(p["bias"].astype(jnp.float32),
                                (ss,))[None, :, None],            # (1, ss*Cout, 1)
            w_bc=p["w_bc"].astype(jnp.float32),                   # (Bdim, Cout)
            gamma_bd=jnp.kron(jnp.eye(ss, dtype=jnp.float32),
                              p["gamma"].astype(jnp.float32)),    # (ss*Cout, ss*Cout)
            beta_t=jnp.tile(p["beta"].astype(jnp.float32),
                            (ss,))[:, None],                      # (ss*Cout, 1)
            masks=masks,                                          # (T, P) bf16
            cin=cin, cout=cout, stride=stride, dmax=dmax, taps=taps, ss=ss,
            h=h, w=w, p_size=p_size, pad_amt=pad_amt))
        h, w = stride * h, stride * w
    return prepared


# ---------------------------------------------------------------------------
# Decoder forward pass (Pallas path).  Call under jax.jit.
# ---------------------------------------------------------------------------
def decoder_forward_pallas(x, b, prepared):
    n = x.shape[0]
    num_layers = len(prepared)
    x = x.astype(jnp.bfloat16)
    for i, lp in enumerate(prepared):
        last = (i == num_layers - 1)
        s, h, w, cout = lp["stride"], lp["h"], lp["w"], lp["cout"]

        # Flattened, zero-row-padded bf16 sample stream (fused under jit).
        xflat = jnp.pad(x.reshape(n, lp["cin"], lp["p_size"]),
                        ((0, 0), (0, 0), (lp["pad_amt"], lp["pad_amt"])))

        if last:
            bias_all = lp["bias_tiled"]                           # (1, ss*Cout, 1)
        else:
            cond = lp["bias"][None, :] + b @ lp["w_bc"]           # (N, Cout)
            bias_all = jnp.tile(cond, (1, lp["ss"]))[:, :, None]  # (N, ss*Cout, 1)

        y = _bcconv_fused_pallas(
            xflat, lp["w_fused"], bias_all, lp["masks"],
            lp["gamma_bd"], lp["beta_t"],
            apply_gdn=not last, per_sample_bias=not last,
            taps=lp["taps"], img_w=w, p_size=lp["p_size"], cin=lp["cin"],
            m_rows=lp["ss"] * cout,
            out_dtype=jnp.float32 if last else jnp.bfloat16)

        # (N, ss*Cout, H*W) phase-major -> NCHW (N, Cout, s*H, s*W).
        x = (y.reshape(n, s, s, cout, h, w)
              .transpose(0, 3, 4, 1, 5, 2)
              .reshape(n, cout, s * h, s * w))
    return x


# ---------------------------------------------------------------------------
# Pure-JAX reference (independent formulation: dilate + pad + im2col GEMM).
# ---------------------------------------------------------------------------
def _dilate_and_pad(x, stride, kernel, padding, out_padding):
    n, c, h, w = x.shape
    hd = (h - 1) * stride + 1
    wd = (w - 1) * stride + 1
    xd = jnp.zeros((n, c, hd, wd), x.dtype).at[:, :, ::stride, ::stride].set(x)
    lo = kernel - 1 - padding
    hi = kernel - 1 - padding + out_padding
    return jnp.pad(xd, ((0, 0), (0, 0), (lo, hi), (lo, hi)))


def _extract_patches(xp, k):
    n, c, hp, wp = xp.shape
    oh, ow = hp - k + 1, wp - k + 1
    cols = []
    for kh in range(k):
        for kw in range(k):
            cols.append(xp[:, :, kh:kh + oh, kw:kw + ow])
    p = jnp.stack(cols, axis=0).reshape(k, k, n, c, oh, ow)
    p = p.transpose(2, 4, 5, 3, 0, 1)
    return p.reshape(n, oh * ow, c * k * k)


def _ref_layer(x, b, p, *, kernel, stride, apply_gdn):
    n, cin, h, w = x.shape
    padding = kernel // 2
    out_padding = stride - 1
    cout = p["weight"].shape[1]
    oh = (h - 1) * stride - 2 * padding + kernel + out_padding
    ow = (w - 1) * stride - 2 * padding + kernel + out_padding

    xp = _dilate_and_pad(x, stride, kernel, padding, out_padding)
    patches = _extract_patches(xp, kernel).astype(jnp.bfloat16)
    w_flip = p["weight"][:, :, ::-1, ::-1]
    w_mat = (w_flip.transpose(0, 2, 3, 1)
             .reshape(cin * kernel * kernel, cout).astype(jnp.bfloat16))

    y = jnp.einsum("npk,kc->npc", patches, w_mat,
                   preferred_element_type=jnp.float32)
    bias = p["bias"][None, None, :]
    if b is not None:
        bias = bias + (b @ p["w_bc"])[:, None, :]
    y = y + bias
    if apply_gdn:
        norm = jnp.einsum("npd,cd->npc", y * y, p["gamma"]) \
            + p["beta"][None, None, :]
        y = y * jax.lax.rsqrt(norm)
    return y.reshape(n, oh, ow, cout).transpose(0, 3, 1, 2)


def decoder_forward_ref(x, b, params, *, kernel, stride):
    num_layers = len(params)
    for i, p in enumerate(params):
        last = (i == num_layers - 1)
        x = _ref_layer(x.astype(jnp.float32), None if last else b, p,
                       kernel=kernel, stride=stride, apply_gdn=not last)
    return x


# ---------------------------------------------------------------------------
# Deterministic parameter init (mirrors the module's __init__ shapes).
# ---------------------------------------------------------------------------
def init_params(key, channels, kernel, bias_input):
    num_layers = len(channels) - 1
    params = []
    for i in range(num_layers):
        cin, cout = channels[i], channels[i + 1]
        key, k1, k2 = jax.random.split(key, 3)
        gain = math.sqrt(2 * (cin + cout) / (2 * cin))
        fan_in = cout * kernel * kernel     # torch fan calc for ConvTranspose2d
        fan_out = cin * kernel * kernel
        std = gain * math.sqrt(2.0 / (fan_in + fan_out))   # xavier_normal_
        w = std * jax.random.normal(k1, (cin, cout, kernel, kernel), jnp.float32)
        bias = jnp.full((cout,), 0.01, jnp.float32)
        w_bc = (1.0 / math.sqrt(bias_input)) * jax.random.normal(
            k2, (bias_input, cout), jnp.float32)
        gamma = 0.1 * jnp.eye(cout, dtype=jnp.float32)     # GDN gamma init
        beta = jnp.ones((cout,), jnp.float32)              # GDN beta init
        params.append(dict(weight=w, bias=bias, w_bc=w_bc,
                           gamma=gamma, beta=beta))
    return params


if __name__ == "__main__":
    # Small shapes consistent with the module: 4 layers, stride 2, kernel 5.
    channels = [4, 16, 16, 16, 8]
    kernel = 5
    stride = 2
    bias_input = 32
    hw0 = (4, 4)

    key = jax.random.PRNGKey(0)
    kx, kb, kp = jax.random.split(key, 3)
    x = jax.random.normal(kx, (2, channels[0], hw0[0], hw0[1]), jnp.float32)  # NCHW
    b = jax.random.normal(kb, (2, bias_input), jnp.float32)
    params = init_params(kp, channels, kernel, bias_input)
    prepared = prepare_params(params, kernel=kernel, stride=stride, input_hw=hw0)

    fwd = jax.jit(lambda xx, bb: decoder_forward_pallas(xx, bb, prepared))
    out = jax.block_until_ready(fwd(x, b))
    assert out.shape == (2, channels[-1], 64, 64), out.shape

    ref = decoder_forward_ref(x, b, params, kernel=kernel, stride=stride)
    np.testing.assert_allclose(np.asarray(out), np.asarray(ref),
                               rtol=2e-2, atol=2e-2)
    print("KERNEL_OK")
</pallas_src>

<mosaic_0001>
module attributes {stable_mosaic.version = 11 : i64} {
  func.func @kernel(%arg0: i32, %arg1: memref<1x4x26xbf16, #tpu.memory_space<vmem>>, %arg2: memref<64x36xbf16, #tpu.memory_space<vmem>>, %arg3: memref<1x64x1xf32, #tpu.memory_space<vmem>>, %arg4: memref<3x16xbf16, #tpu.memory_space<vmem>>, %arg5: memref<64x64xf32, #tpu.memory_space<vmem>>, %arg6: memref<64x1xf32, #tpu.memory_space<vmem>>, %arg7: memref<1x64x16xbf16, #tpu.memory_space<vmem>>, %arg8: memref<36x16xbf16, #tpu.memory_space<vmem>>) attributes {dimension_semantics = [#tpu.dimension_semantics<parallel>], iteration_bounds = array<i64: 2>, scalar_prefetch = 0 : i64, scratch_operands = 1 : i64, tpu.core_type = #tpu.core_type<tc>, window_params = [{transform_indices = @transform_0, window_bounds = array<i64: 1, 4, 26>}, {pipeline_mode = #tpu.pipeline_mode<synchronous>, transform_indices = @transform_1, window_bounds = array<i64: 64, 36>}, {transform_indices = @transform_2, window_bounds = array<i64: 1, 64, 1>}, {pipeline_mode = #tpu.pipeline_mode<synchronous>, transform_indices = @transform_3, window_bounds = array<i64: 3, 16>}, {pipeline_mode = #tpu.pipeline_mode<synchronous>, transform_indices = @transform_4, window_bounds = array<i64: 64, 64>}, {pipeline_mode = #tpu.pipeline_mode<synchronous>, transform_indices = @transform_5, window_bounds = array<i64: 64, 1>}, {transform_indices = @transform_6, window_bounds = array<i64: 1, 64, 16>}]} {
    %c0 = arith.constant 0 : index
    %c0_0 = arith.constant 0 : index
    %c0_1 = arith.constant 0 : index
    %0 = vector.load %arg1[%c0, %c0_0, %c0_1] : memref<1x4x26xbf16, #tpu.memory_space<vmem>>, vector<1x4x16xbf16>
    %1 = vector.shape_cast %0 : vector<1x4x16xbf16> to vector<4x16xbf16>
    %c0_2 = arith.constant 0 : index
    %c0_3 = arith.constant 0 : index
    %2 = vector.load %arg4[%c0_2, %c0_3] : memref<3x16xbf16, #tpu.memory_space<vmem>>, vector<1x16xbf16>
    %3 = vector.broadcast %2 : vector<1x16xbf16> to vector<4x16xbf16>
    %4 = arith.mulf %1, %3 : vector<4x16xbf16>
    %c0_4 = arith.constant 0 : index
    %c0_5 = arith.constant 0 : index
    %5 = vector.load %arg8[%c0_4, %c0_5] : memref<36x16xbf16, #tpu.memory_space<vmem>>, vector<4x16xbf16>
    tpu.vector_store %arg8[%c0_4, %c0_5], %4 {strides = array<i32>} : memref<36x16xbf16, #tpu.memory_space<vmem>>, vector<4x16xbf16>,
    %c0_6 = arith.constant 0 : index
    %c0_7 = arith.constant 0 : index
    %c1 = arith.constant 1 : index
    %6 = vector.load %arg1[%c0_6, %c0_7, %c1] : memref<1x4x26xbf16, #tpu.memory_space<vmem>>, vector<1x4x16xbf16>
    %7 = vector.shape_cast %6 : vector<1x4x16xbf16> to vector<4x16xbf16>
    %c4 = arith.constant 4 : index
    %c0_8 = arith.constant 0 : index
    %8 = vector.load %arg8[%c4, %c0_8] : memref<36x16xbf16, #tpu.memory_space<vmem>>, vector<4x16xbf16>
    tpu.vector_store %arg8[%c4, %c0_8], %7 {strides = array<i32>} : memref<36x16xbf16, #tpu.memory_space<vmem>>, vector<4x16xbf16>,
    %c0_9 = arith.constant 0 : index
    %c0_10 = arith.constant 0 : index
    %c2 = arith.constant 2 : index
    %9 = vector.load %arg1[%c0_9, %c0_10, %c2] : memref<1x4x26xbf16, #tpu.memory_space<vmem>>, vector<1x4x16xbf16>
    %10 = vector.shape_cast %9 : vector<1x4x16xbf16> to vector<4x16xbf16>
    %c2_11 = arith.constant 2 : index
    %c0_12 = arith.constant 0 : index
    %11 = vector.load %arg4[%c2_11, %c0_12] : memref<3x16xbf16, #tpu.memory_space<vmem>>, vector<1x16xbf16>
    %12 = vector.broadcast %11 : vector<1x16xbf16> to vector<4x16xbf16>
    %13 = arith.mulf %10, %12 : vector<4x16xbf16>
    %c8 = arith.constant 8 : index
    %c0_13 = arith.constant 0 : index
    %14 = vector.load %arg8[%c8, %c0_13] : memref<36x16xbf16, #tpu.memory_space<vmem>>, vector<4x16xbf16>
    tpu.vector_store %arg8[%c8, %c0_13], %13 {strides = array<i32>} : memref<36x16xbf16, #tpu.memory_space<vmem>>, vector<4x16xbf16>,
    %c0_14 = arith.constant 0 : index
    %c0_15 = arith.constant 0 : index
    %c4_16 = arith.constant 4 : index
    %15 = vector.load %arg1[%c0_14, %c0_15, %c4_16] : memref<1x4x26xbf16, #tpu.memory_space<vmem>>, vector<1x4x16xbf16>
    %16 = vector.shape_cast %15 : vector<1x4x16xbf16> to vector<4x16xbf16>
    %c0_17 = arith.constant 0 : index
    %c0_18 = arith.constant 0 : index
    %17 = vector.load %arg4[%c0_17, %c0_18] : memref<3x16xbf16, #tpu.memory_space<vmem>>, vector<1x16xbf16>
    %18 = vector.broadcast %17 : vector<1x16xbf16> to vector<4x16xbf16>
    %19 = arith.mulf %16, %18 : vector<4x16xbf16>
    %c12 = arith.constant 12 : index
    %c0_19 = arith.constant 0 : index
    %20 = vector.load %arg8[%c12, %c0_19] : memref<36x16xbf16, #tpu.memory_space<vmem>>, vector<4x16xbf16>
    tpu.vector_store %arg8[%c12, %c0_19], %19 {strides = array<i32>} : memref<36x16xbf16, #tpu.memory_space<vmem>>, vector<4x16xbf16>,
    %c0_20 = arith.constant 0 : index
    %c0_21 = arith.constant 0 : index
    %c5 = arith.constant 5 : index
    %21 = vector.load %arg1[%c0_20, %c0_21, %c5] : memref<1x4x26xbf16, #tpu.memory_space<vmem>>, vector<1x4x16xbf16>
    %22 = vector.shape_cast %21 : vector<1x4x16xbf16> to vector<4x16xbf16>
    %c16 = arith.constant 16 : index
    %c0_22 = arith.constant 0 : index
    %23 = vector.load %arg8[%c16, %c0_22] : memref<36x16xbf16, #tpu.memory_space<vmem>>, vector<4x16xbf16>
    tpu.vector_store %arg8[%c16, %c0_22], %22 {strides = array<i32>} : memref<36x16xbf16, #tpu.memory_space<vmem>>, vector<4x16xbf16>,
    %c0_23 = arith.constant 0 : index
    %c0_24 = arith.constant 0 : index
    %c6 = arith.constant 6 : index
    %24 = vector.load %arg1[%c0_23, %c0_24, %c6] : memref<1x4x26xbf16, #tpu.memory_space<vmem>>, vector<1x4x16xbf16>
    %25 = vector.shape_cast %24 : vector<1x4x16xbf16> to vector<4x16xbf16>
    %c2_25 = arith.constant 2 : index
    %c0_26 = arith.constant 0 : index
    %26 = vector.load %arg4[%c2_25, %c0_26] : memref<3x16xbf16, #tpu.memory_space<vmem>>, vector<1x16xbf16>
    %27 = vector.broadcast %26 : vector<1x16xbf16> to vector<4x16xbf16>
    %28 = arith.mulf %25, %27 : vector<4x16xbf16>
    %c20 = arith.constant 20 : index
    %c0_27 = arith.constant 0 : index
    %29 = vector.load %arg8[%c20, %c0_27] : memref<36x16xbf16, #tpu.memory_space<vmem>>, vector<4x16xbf16>
    tpu.vector_store %arg8[%c20, %c0_27], %28 {strides = array<i32>} : memref<36x16xbf16, #tpu.memory_space<vmem>>, vector<4x16xbf16>,
    %c0_28 = arith.constant 0 : index
    %c0_29 = arith.constant 0 : index
    %c8_30 = arith.constant 8 : index
    %30 = vector.load %arg1[%c0_28, %c0_29, %c8_30] : memref<1x4x26xbf16, #tpu.memory_space<vmem>>, vector<1x4x16xbf16>
    %31 = vector.shape_cast %30 : vector<1x4x16xbf16> to vector<4x16xbf16>
    %c0_31 = arith.constant 0 : index
    %c0_32 = arith.constant 0 : index
    %32 = vector.load %arg4[%c0_31, %c0_32] : memref<3x16xbf16, #tpu.memory_space<vmem>>, vector<1x16xbf16>
    %33 = vector.broadcast %32 : vector<1x16xbf16> to vector<4x16xbf16>
    %34 = arith.mulf %31, %33 : vector<4x16xbf16>
    %c24 = arith.constant 24 : index
    %c0_33 = arith.constant 0 : index
    %35 = vector.load %arg8[%c24, %c0_33] : memref<36x16xbf16, #tpu.memory_space<vmem>>, vector<4x16xbf16>
    tpu.vector_store %arg8[%c24, %c0_33], %34 {strides = array<i32>} : memref<36x16xbf16, #tpu.memory_space<vmem>>, vector<4x16xbf16>,
    %c0_34 = arith.constant 0 : index
    %c0_35 = arith.constant 0 : index
    %c9 = arith.constant 9 : index
    %36 = vector.load %arg1[%c0_34, %c0_35, %c9] : memref<1x4x26xbf16, #tpu.memory_space<vmem>>, vector<1x4x16xbf16>
    %37 = vector.shape_cast %36 : vector<1x4x16xbf16> to vector<4x16xbf16>
    %c28 = arith.constant 28 : index
    %c0_36 = arith.constant 0 : index
    %38 = vector.load %arg8[%c28, %c0_36] : memref<36x16xbf16, #tpu.memory_space<vmem>>, vector<4x16xbf16>
    tpu.vector_store %arg8[%c28, %c0_36], %37 {strides = array<i32>} : memref<36x16xbf16, #tpu.memory_space<vmem>>, vector<4x16xbf16>,
    %c0_37 = arith.constant 0 : index
    %c0_38 = arith.constant 0 : index
    %c10 = arith.constant 10 : index
    %39 = vector.load %arg1[%c0_37, %c0_38, %c10] : memref<1x4x26xbf16, #tpu.memory_space<vmem>>, vector<1x4x16xbf16>
    %40 = vector.shape_cast %39 : vector<1x4x16xbf16> to vector<4x16xbf16>
    %c2_39 = arith.constant 2 : index
    %c0_40 = arith.constant 0 : index
    %41 = vector.load %arg4[%c2_39, %c0_40] : memref<3x16xbf16, #tpu.memory_space<vmem>>, vector<1x16xbf16>
    %42 = vector.broadcast %41 : vector<1x16xbf16> to vector<4x16xbf16>
    %43 = arith.mulf %40, %42 : vector<4x16xbf16>
    %c32 = arith.constant 32 : index
    %c0_41 = arith.constant 0 : index
    %44 = vector.load %arg8[%c32, %c0_41] : memref<36x16xbf16, #tpu.memory_space<vmem>>, vector<4x16xbf16>
    tpu.vector_store %arg8[%c32, %c0_41], %43 {strides = array<i32>} : memref<36x16xbf16, #tpu.memory_space<vmem>>, vector<4x16xbf16>,
    %c0_42 = arith.constant 0 : index
    %c0_43 = arith.constant 0 : index
    %45 = vector.load %arg2[%c0_42, %c0_43] : memref<64x36xbf16, #tpu.memory_space<vmem>>, vector<64x36xbf16>
    %c0_44 = arith.constant 0 : index
    %c0_45 = arith.constant 0 : index
    %46 = vector.load %arg8[%c0_44, %c0_45] : memref<36x16xbf16, #tpu.memory_space<vmem>>, vector<36x16xbf16>
    %cst = arith.constant dense<0.000000e+00> : vector<64x16xf32>
    %47 = tpu.matmul %45, %46, %cst {dimension_numbers = #tpu.dot_dimension_numbers<[1], [0], [0], [1], [0, 0, 1, 1], [], []>} : vector<64x36xbf16>, vector<36x16xbf16>, vector<64x16xf32> -> vector<64x16xf32>
    %c0_46 = arith.constant 0 : index
    %c0_47 = arith.constant 0 : index
    %c0_48 = arith.constant 0 : index
    %48 = vector.load %arg3[%c0_46, %c0_47, %c0_48] : memref<1x64x1xf32, #tpu.memory_space<vmem>>, vector<1x64x1xf32>
    %49 = vector.shape_cast %48 : vector<1x64x1xf32> to vector<64x1xf32>
    %50 = vector.broadcast %49 : vector<64x1xf32> to vector<64x16xf32>
    %51 = arith.addf %47, %50 : vector<64x16xf32>
    %c0_49 = arith.constant 0 : index
    %c0_50 = arith.constant 0 : index
    %52 = vector.load %arg5[%c0_49, %c0_50] : memref<64x64xf32, #tpu.memory_space<vmem>>, vector<64x64xf32>
    %53 = arith.mulf %51, %51 : vector<64x16xf32>
    %cst_51 = arith.constant dense<0.000000e+00> : vector<64x16xf32>
    %54 = tpu.matmul %52, %53, %cst_51 {dimension_numbers = #tpu.dot_dimension_numbers<[1], [0], [0], [1], [0, 0, 1, 1], [], []>} : vector<64x64xf32>, vector<64x16xf32>, vector<64x16xf32> -> vector<64x16xf32>
    %c0_52 = arith.constant 0 : index
    %c0_53 = arith.constant 0 : index
    %55 = vector.load %arg6[%c0_52, %c0_53] : memref<64x1xf32, #tpu.memory_space<vmem>>, vector<64x1xf32>
    %56 = vector.broadcast %55 : vector<64x1xf32> to vector<64x16xf32>
    %57 = arith.addf %54, %56 : vector<64x16xf32>
    %58 = math.rsqrt %57 : vector<64x16xf32>
    %59 = arith.mulf %51, %58 : vector<64x16xf32>
    %60 = arith.truncf %59 : vector<64x16xf32> to vector<64x16xbf16>
    %c0_54 = arith.constant 0 : index
    %c0_55 = arith.constant 0 : index
    %c0_56 = arith.constant 0 : index
    %61 = vector.load %arg7[%c0_54, %c0_55, %c0_56] : memref<1x64x16xbf16, #tpu.memory_space<vmem>>, vector<1x64x16xbf16>
    %62 = vector.shape_cast %61 : vector<1x64x16xbf16> to vector<64x16xbf16>
    %63 = vector.shape_cast %60 : vector<64x16xbf16> to vector<1x64x16xbf16>
    tpu.vector_store %arg7[%c0_54, %c0_55, %c0_56], %63 {strides = array<i32>} : memref<1x64x16xbf16, #tpu.memory_space<vmem>>, vector<1x64x16xbf16>,
    return
  }
  func.func @transform_0(%arg0: i32) -> (i32, i32, i32) {
    %c0_i32 = arith.constant 0 : i32
    %c0_i32_0 = arith.constant 0 : i32
    %c0_i32_1 = arith.constant 0 : i32
    return %arg0, %c0_i32, %c0_i32_0 : i32, i32, i32
  }
  func.func @transform_1(%arg0: i32) -> (i32, i32) {
    %c0_i32 = arith.constant 0 : i32
    %c0_i32_0 = arith.constant 0 : i32
    %c0_i32_1 = arith.constant 0 : i32
    return %c0_i32, %c0_i32_0 : i32, i32
  }
  func.func @transform_2(%arg0: i32) -> (i32, i32, i32) {
    %c0_i32 = arith.constant 0 : i32
    %c0_i32_0 = arith.constant 0 : i32
    %c0_i32_1 = arith.constant 0 : i32
    return %arg0, %c0_i32, %c0_i32_0 : i32, i32, i32
  }
  func.func @transform_3(%arg0: i32) -> (i32, i32) {
    %c0_i32 = arith.constant 0 : i32
    %c0_i32_0 = arith.constant 0 : i32
    %c0_i32_1 = arith.constant 0 : i32
    return %c0_i32, %c0_i32_0 : i32, i32
  }
  func.func @transform_4(%arg0: i32) -> (i32, i32) {
    %c0_i32 = arith.constant 0 : i32
    %c0_i32_0 = arith.constant 0 : i32
    %c0_i32_1 = arith.constant 0 : i32
    return %c0_i32, %c0_i32_0 : i32, i32
  }
  func.func @transform_5(%arg0: i32) -> (i32, i32) {
    %c0_i32 = arith.constant 0 : i32
    %c0_i32_0 = arith.constant 0 : i32
    %c0_i32_1 = arith.constant 0 : i32
    return %c0_i32, %c0_i32_0 : i32, i32
  }
  func.func @transform_6(%arg0: i32) -> (i32, i32, i32) {
    %c0_i32 = arith.constant 0 : i32
    %c0_i32_0 = arith.constant 0 : i32
    %c0_i32_1 = arith.constant 0 : i32
    return %arg0, %c0_i32, %c0_i32_0 : i32, i32, i32
  }
}

module attributes {stable_mosaic.version = 11 : i64} {
  func.func @kernel(%arg0: i32, %arg1: memref<1x16x82xbf16, #tpu.memory_space<vmem>>, %arg2: memref<64x144xbf16, #tpu.memory_space<vmem>>, %arg3: memref<1x64x1xf32, #tpu.memory_space<vmem>>, %arg4: memref<3x64xbf16, #tpu.memory_space<vmem>>, %arg5: memref<64x64xf32, #tpu.memory_space<vmem>>, %arg6: memref<64x1xf32, #tpu.memory_space<vmem>>, %arg7: memref<1x64x64xbf16, #tpu.memory_space<vmem>>, %arg8: memref<144x64xbf16, #tpu.memory_space<vmem>>) attributes {dimension_semantics = [#tpu.dimension_semantics<parallel>], iteration_bounds = array<i64: 2>, scalar_prefetch = 0 : i64, scratch_operands = 1 : i64, tpu.core_type = #tpu.core_type<tc>, window_params = [{transform_indices = @transform_0, window_bounds = array<i64: 1, 16, 82>}, {pipeline_mode = #tpu.pipeline_mode<synchronous>, transform_indices = @transform_1, window_bounds = array<i64: 64, 144>}, {transform_indices = @transform_2, window_bounds = array<i64: 1, 64, 1>}, {pipeline_mode = #tpu.pipeline_mode<synchronous>, transform_indices = @transform_3, window_bounds = array<i64: 3, 64>}, {pipeline_mode = #tpu.pipeline_mode<synchronous>, transform_indices = @transform_4, window_bounds = array<i64: 64, 64>}, {pipeline_mode = #tpu.pipeline_mode<synchronous>, transform_indices = @transform_5, window_bounds = array<i64: 64, 1>}, {transform_indices = @transform_6, window_bounds = array<i64: 1, 64, 64>}]} {
    %c0 = arith.constant 0 : index
    %c0_0 = arith.constant 0 : index
    %c0_1 = arith.constant 0 : index
    %0 = vector.load %arg1[%c0, %c0_0, %c0_1] : memref<1x16x82xbf16, #tpu.memory_space<vmem>>, vector<1x16x64xbf16>
    %1 = vector.shape_cast %0 : vector<1x16x64xbf16> to vector<16x64xbf16>
    %c0_2 = arith.constant 0 : index
    %c0_3 = arith.constant 0 : index
    %2 = vector.load %arg4[%c0_2, %c0_3] : memref<3x64xbf16, #tpu.memory_space<vmem>>, vector<1x64xbf16>
    %3 = vector.broadcast %2 : vector<1x64xbf16> to vector<16x64xbf16>
    %4 = arith.mulf %1, %3 : vector<16x64xbf16>
    %c0_4 = arith.constant 0 : index
    %c0_5 = arith.constant 0 : index
    %5 = vector.load %arg8[%c0_4, %c0_5] : memref<144x64xbf16, #tpu.memory_space<vmem>>, vector<16x64xbf16>
    tpu.vector_store %arg8[%c0_4, %c0_5], %4 {strides = array<i32>} : memref<144x64xbf16, #tpu.memory_space<vmem>>, vector<16x64xbf16>,
    %c0_6 = arith.constant 0 : index
    %c0_7 = arith.constant 0 : index
    %c1 = arith.constant 1 : index
    %6 = vector.load %arg1[%c0_6, %c0_7, %c1] : memref<1x16x82xbf16, #tpu.memory_space<vmem>>, vector<1x16x64xbf16>
    %7 = vector.shape_cast %6 : vector<1x16x64xbf16> to vector<16x64xbf16>
    %c16 = arith.constant 16 : index
    %c0_8 = arith.constant 0 : index
    %8 = vector.load %arg8[%c16, %c0_8] : memref<144x64xbf16, #tpu.memory_space<vmem>>, vector<16x64xbf16>
    tpu.vector_store %arg8[%c16, %c0_8], %7 {strides = array<i32>} : memref<144x64xbf16, #tpu.memory_space<vmem>>, vector<16x64xbf16>,
    %c0_9 = arith.constant 0 : index
    %c0_10 = arith.constant 0 : index
    %c2 = arith.constant 2 : index
    %9 = vector.load %arg1[%c0_9, %c0_10, %c2] : memref<1x16x82xbf16, #tpu.memory_space<vmem>>, vector<1x16x64xbf16>
    %10 = vector.shape_cast %9 : vector<1x16x64xbf16> to vector<16x64xbf16>
    %c2_11 = arith.constant 2 : index
    %c0_12 = arith.constant 0 : index
    %11 = vector.load %arg4[%c2_11, %c0_12] : memref<3x64xbf16, #tpu.memory_space<vmem>>, vector<1x64xbf16>
    %12 = vector.broadcast %11 : vector<1x64xbf16> to vector<16x64xbf16>
    %13 = arith.mulf %10, %12 : vector<16x64xbf16>
    %c32 = arith.constant 32 : index
    %c0_13 = arith.constant 0 : index
    %14 = vector.load %arg8[%c32, %c0_13] : memref<144x64xbf16, #tpu.memory_space<vmem>>, vector<16x64xbf16>
    tpu.vector_store %arg8[%c32, %c0_13], %13 {strides = array<i32>} : memref<144x64xbf16, #tpu.memory_space<vmem>>, vector<16x64xbf16>,
    %c0_14 = arith.constant 0 : index
    %c0_15 = arith.constant 0 : index
    %c8 = arith.constant 8 : index
    %15 = vector.load %arg1[%c0_14, %c0_15, %c8] : memref<1x16x82xbf16, #tpu.memory_space<vmem>>, vector<1x16x64xbf16>
    %16 = vector.shape_cast %15 : vector<1x16x64xbf16> to vector<16x64xbf16>
    %c0_16 = arith.constant 0 : index
    %c0_17 = arith.constant 0 : index
    %17 = vector.load %arg4[%c0_16, %c0_17] : memref<3x64xbf16, #tpu.memory_space<vmem>>, vector<1x64xbf16>
    %18 = vector.broadcast %17 : vector<1x64xbf16> to vector<16x64xbf16>
    %19 = arith.mulf %16, %18 : vector<16x64xbf16>
    %c48 = arith.constant 48 : index
    %c0_18 = arith.constant 0 : index
    %20 = vector.load %arg8[%c48, %c0_18] : memref<144x64xbf16, #tpu.memory_space<vmem>>, vector<16x64xbf16>
    tpu.vector_store %arg8[%c48, %c0_18], %19 {strides = array<i32>} : memref<144x64xbf16, #tpu.memory_space<vmem>>, vector<16x64xbf16>,
    %c0_19 = arith.constant 0 : index
    %c0_20 = arith.constant 0 : index
    %c9 = arith.constant 9 : index
    %21 = vector.load %arg1[%c0_19, %c0_20, %c9] : memref<1x16x82xbf16, #tpu.memory_space<vmem>>, vector<1x16x64xbf16>
    %22 = vector.shape_cast %21 : vector<1x16x64xbf16> to vector<16x64xbf16>
    %c64 = arith.constant 64 : index
    %c0_21 = arith.constant 0 : index
    %23 = vector.load %arg8[%c64, %c0_21] : memref<144x64xbf16, #tpu.memory_space<vmem>>, vector<16x64xbf16>
    tpu.vector_store %arg8[%c64, %c0_21], %22 {strides = array<i32>} : memref<144x64xbf16, #tpu.memory_space<vmem>>, vector<16x64xbf16>,
    %c0_22 = arith.constant 0 : index
    %c0_23 = arith.constant 0 : index
    %c10 = arith.constant 10 : index
    %24 = vector.load %arg1[%c0_22, %c0_23, %c10] : memref<1x16x82xbf16, #tpu.memory_space<vmem>>, vector<1x16x64xbf16>
    %25 = vector.shape_cast %24 : vector<1x16x64xbf16> to vector<16x64xbf16>
    %c2_24 = arith.constant 2 : index
    %c0_25 = arith.constant 0 : index
    %26 = vector.load %arg4[%c2_24, %c0_25] : memref<3x64xbf16, #tpu.memory_space<vmem>>, vector<1x64xbf16>
    %27 = vector.broadcast %26 : vector<1x64xbf16> to vector<16x64xbf16>
    %28 = arith.mulf %25, %27 : vector<16x64xbf16>
    %c80 = arith.constant 80 : index
    %c0_26 = arith.constant 0 : index
    %29 = vector.load %arg8[%c80, %c0_26] : memref<144x64xbf16, #tpu.memory_space<vmem>>, vector<16x64xbf16>
    tpu.vector_store %arg8[%c80, %c0_26], %28 {strides = array<i32>} : memref<144x64xbf16, #tpu.memory_space<vmem>>, vector<16x64xbf16>,
    %c0_27 = arith.constant 0 : index
    %c0_28 = arith.constant 0 : index
    %c16_29 = arith.constant 16 : index
    %30 = vector.load %arg1[%c0_27, %c0_28, %c16_29] : memref<1x16x82xbf16, #tpu.memory_space<vmem>>, vector<1x16x64xbf16>
    %31 = vector.shape_cast %30 : vector<1x16x64xbf16> to vector<16x64xbf16>
    %c0_30 = arith.constant 0 : index
    %c0_31 = arith.constant 0 : index
    %32 = vector.load %arg4[%c0_30, %c0_31] : memref<3x64xbf16, #tpu.memory_space<vmem>>, vector<1x64xbf16>
    %33 = vector.broadcast %32 : vector<1x64xbf16> to vector<16x64xbf16>
    %34 = arith.mulf %31, %33 : vector<16x64xbf16>
    %c96 = arith.constant 96 : index
    %c0_32 = arith.constant 0 : index
    %35 = vector.load %arg8[%c96, %c0_32] : memref<144x64xbf16, #tpu.memory_space<vmem>>, vector<16x64xbf16>
    tpu.vector_store %arg8[%c96, %c0_32], %34 {strides = array<i32>} : memref<144x64xbf16, #tpu.memory_space<vmem>>, vector<16x64xbf16>,
    %c0_33 = arith.constant 0 : index
    %c0_34 = arith.constant 0 : index
    %c17 = arith.constant 17 : index
    %36 = vector.load %arg1[%c0_33, %c0_34, %c17] : memref<1x16x82xbf16, #tpu.memory_space<vmem>>, vector<1x16x64xbf16>
    %37 = vector.shape_cast %36 : vector<1x16x64xbf16> to vector<16x64xbf16>
    %c112 = arith.constant 112 : index
    %c0_35 = arith.constant 0 : index
    %38 = vector.load %arg8[%c112, %c0_35] : memref<144x64xbf16, #tpu.memory_space<vmem>>, vector<16x64xbf16>
    tpu.vector_store %arg8[%c112, %c0_35], %37 {strides = array<i32>} : memref<144x64xbf16, #tpu.memory_space<vmem>>, vector<16x64xbf16>,
    %c0_36 = arith.constant 0 : index
    %c0_37 = arith.constant 0 : index
    %c18 = arith.constant 18 : index
    %39 = vector.load %arg1[%c0_36, %c0_37, %c18] : memref<1x16x82xbf16, #tpu.memory_space<vmem>>, vector<1x16x64xbf16>
    %40 = vector.shape_cast %39 : vector<1x16x64xbf16> to vector<16x64xbf16>
    %c2_38 = arith.constant 2 : index
    %c0_39 = arith.constant 0 : index
    %41 = vector.load %arg4[%c2_38, %c0_39] : memref<3x64xbf16, #tpu.memory_space<vmem>>, vector<1x64xbf16>
    %42 = vector.broadcast %41 : vector<1x64xbf16> to vector<16x64xbf16>
    %43 = arith.mulf %40, %42 : vector<16x64xbf16>
    %c128 = arith.constant 128 : index
    %c0_40 = arith.constant 0 : index
    %44 = vector.load %arg8[%c128, %c0_40] : memref<144x64xbf16, #tpu.memory_space<vmem>>, vector<16x64xbf16>
    tpu.vector_store %arg8[%c128, %c0_40], %43 {strides = array<i32>} : memref<144x64xbf16, #tpu.memory_space<vmem>>, vector<16x64xbf16>,
    %c0_41 = arith.constant 0 : index
    %c0_42 = arith.constant 0 : index
    %45 = vector.load %arg2[%c0_41, %c0_42] : memref<64x144xbf16, #tpu.memory_space<vmem>>, vector<64x144xbf16>
    %c0_43 = arith.constant 0 : index
    %c0_44 = arith.constant 0 : index
    %46 = vector.load %arg8[%c0_43, %c0_44] : memref<144x64xbf16, #tpu.memory_space<vmem>>, vector<144x64xbf16>
    %cst = arith.constant dense<0.000000e+00> : vector<64x64xf32>
    %47 = tpu.matmul %45, %46, %cst {dimension_numbers = #tpu.dot_dimension_numbers<[1], [0], [0], [1], [0, 0, 1, 1], [], []>} : vector<64x144xbf16>, vector<144x64xbf16>, vector<64x64xf32> -> vector<64x64xf32>
    %c0_45 = arith.constant 0 : index
    %c0_46 = arith.constant 0 : index
    %c0_47 = arith.constant 0 : index
    %48 = vector.load %arg3[%c0_45, %c0_46, %c0_47] : memref<1x64x1xf32, #tpu.memory_space<vmem>>, vector<1x64x1xf32>
    %49 = vector.shape_cast %48 : vector<1x64x1xf32> to vector<64x1xf32>
    %50 = vector.broadcast %49 : vector<64x1xf32> to vector<64x64xf32>
    %51 = arith.addf %47, %50 : vector<64x64xf32>
    %c0_48 = arith.constant 0 : index
    %c0_49 = arith.constant 0 : index
    %52 = vector.load %arg5[%c0_48, %c0_49] : memref<64x64xf32, #tpu.memory_space<vmem>>, vector<64x64xf32>
    %53 = arith.mulf %51, %51 : vector<64x64xf32>
    %cst_50 = arith.constant dense<0.000000e+00> : vector<64x64xf32>
    %54 = tpu.matmul %52, %53, %cst_50 {dimension_numbers = #tpu.dot_dimension_numbers<[1], [0], [0], [1], [0, 0, 1, 1], [], []>} : vector<64x64xf32>, vector<64x64xf32>, vector<64x64xf32> -> vector<64x64xf32>
    %c0_51 = arith.constant 0 : index
    %c0_52 = arith.constant 0 : index
    %55 = vector.load %arg6[%c0_51, %c0_52] : memref<64x1xf32, #tpu.memory_space<vmem>>, vector<64x1xf32>
    %56 = vector.broadcast %55 : vector<64x1xf32> to vector<64x64xf32>
    %57 = arith.addf %54, %56 : vector<64x64xf32>
    %58 = math.rsqrt %57 : vector<64x64xf32>
    %59 = arith.mulf %51, %58 : vector<64x64xf32>
    %60 = arith.truncf %59 : vector<64x64xf32> to vector<64x64xbf16>
    %c0_53 = arith.constant 0 : index
    %c0_54 = arith.constant 0 : index
    %c0_55 = arith.constant 0 : index
    %61 = vector.load %arg7[%c0_53, %c0_54, %c0_55] : memref<1x64x64xbf16, #tpu.memory_space<vmem>>, vector<1x64x64xbf16>
    %62 = vector.shape_cast %61 : vector<1x64x64xbf16> to vector<64x64xbf16>
    %63 = vector.shape_cast %60 : vector<64x64xbf16> to vector<1x64x64xbf16>
    tpu.vector_store %arg7[%c0_53, %c0_54, %c0_55], %63 {strides = array<i32>} : memref<1x64x64xbf16, #tpu.memory_space<vmem>>, vector<1x64x64xbf16>,
    return
  }
  func.func @transform_0(%arg0: i32) -> (i32, i32, i32) {
    %c0_i32 = arith.constant 0 : i32
    %c0_i32_0 = arith.constant 0 : i32
    %c0_i32_1 = arith.constant 0 : i32
    return %arg0, %c0_i32, %c0_i32_0 : i32, i32, i32
  }
  func.func @transform_1(%arg0: i32) -> (i32, i32) {
    %c0_i32 = arith.constant 0 : i32
    %c0_i32_0 = arith.constant 0 : i32
    %c0_i32_1 = arith.constant 0 : i32
    return %c0_i32, %c0_i32_0 : i32, i32
  }
  func.func @transform_2(%arg0: i32) -> (i32, i32, i32) {
    %c0_i32 = arith.constant 0 : i32
    %c0_i32_0 = arith.constant 0 : i32
    %c0_i32_1 = arith.constant 0 : i32
    return %arg0, %c0_i32, %c0_i32_0 : i32, i32, i32
  }
  func.func @transform_3(%arg0: i32) -> (i32, i32) {
    %c0_i32 = arith.constant 0 : i32
    %c0_i32_0 = arith.constant 0 : i32
    %c0_i32_1 = arith.constant 0 : i32
    return %c0_i32, %c0_i32_0 : i32, i32
  }
  func.func @transform_4(%arg0: i32) -> (i32, i32) {
    %c0_i32 = arith.constant 0 : i32
    %c0_i32_0 = arith.constant 0 : i32
    %c0_i32_1 = arith.constant 0 : i32
    return %c0_i32, %c0_i32_0 : i32, i32
  }
  func.func @transform_5(%arg0: i32) -> (i32, i32) {
    %c0_i32 = arith.constant 0 : i32
    %c0_i32_0 = arith.constant 0 : i32
    %c0_i32_1 = arith.constant 0 : i32
    return %c0_i32, %c0_i32_0 : i32, i32
  }
  func.func @transform_6(%arg0: i32) -> (i32, i32, i32) {
    %c0_i32 = arith.constant 0 : i32
    %c0_i32_0 = arith.constant 0 : i32
    %c0_i32_1 = arith.constant 0 : i32
    return %arg0, %c0_i32, %c0_i32_0 : i32, i32, i32
  }
}

module attributes {stable_mosaic.version = 11 : i64} {
  func.func @kernel(%arg0: i32, %arg1: memref<1x16x290xbf16, #tpu.memory_space<vmem>>, %arg2: memref<64x144xbf16, #tpu.memory_space<vmem>>, %arg3: memref<1x64x1xf32, #tpu.memory_space<vmem>>, %arg4: memref<3x256xbf16, #tpu.memory_space<vmem>>, %arg5: memref<64x64xf32, #tpu.memory_space<vmem>>, %arg6: memref<64x1xf32, #tpu.memory_space<vmem>>, %arg7: memref<1x64x256xbf16, #tpu.memory_space<vmem>>, %arg8: memref<144x256xbf16, #tpu.memory_space<vmem>>) attributes {dimension_semantics = [#tpu.dimension_semantics<parallel>], iteration_bounds = array<i64: 2>, scalar_prefetch = 0 : i64, scratch_operands = 1 : i64, tpu.core_type = #tpu.core_type<tc>, window_params = [{transform_indices = @transform_0, window_bounds = array<i64: 1, 16, 290>}, {pipeline_mode = #tpu.pipeline_mode<synchronous>, transform_indices = @transform_1, window_bounds = array<i64: 64, 144>}, {transform_indices = @transform_2, window_bounds = array<i64: 1, 64, 1>}, {pipeline_mode = #tpu.pipeline_mode<synchronous>, transform_indices = @transform_3, window_bounds = array<i64: 3, 256>}, {pipeline_mode = #tpu.pipeline_mode<synchronous>, transform_indices = @transform_4, window_bounds = array<i64: 64, 64>}, {pipeline_mode = #tpu.pipeline_mode<synchronous>, transform_indices = @transform_5, window_bounds = array<i64: 64, 1>}, {transform_indices = @transform_6, window_bounds = array<i64: 1, 64, 256>}]} {
    %c0 = arith.constant 0 : index
    %c0_0 = arith.constant 0 : index
    %c0_1 = arith.constant 0 : index
    %0 = vector.load %arg1[%c0, %c0_0, %c0_1] : memref<1x16x290xbf16, #tpu.memory_space<vmem>>, vector<1x16x256xbf16>
    %1 = vector.shape_cast %0 : vector<1x16x256xbf16> to vector<16x256xbf16>
    %c0_2 = arith.constant 0 : index
    %c0_3 = arith.constant 0 : index
    %2 = vector.load %arg4[%c0_2, %c0_3] : memref<3x256xbf16, #tpu.memory_space<vmem>>, vector<1x256xbf16>
    %3 = vector.broadcast %2 : vector<1x256xbf16> to vector<16x256xbf16>
    %4 = arith.mulf %1, %3 : vector<16x256xbf16>
    %c0_4 = arith.constant 0 : index
    %c0_5 = arith.constant 0 : index
    %5 = vector.load %arg8[%c0_4, %c0_5] : memref<144x256xbf16, #tpu.memory_space<vmem>>, vector<16x256xbf16>
    tpu.vector_store %arg8[%c0_4, %c0_5], %4 {strides = array<i32>} : memref<144x256xbf16, #tpu.memory_space<vmem>>, vector<16x256xbf16>,
    %c0_6 = arith.constant 0 : index
    %c0_7 = arith.constant 0 : index
    %c1 = arith.constant 1 : index
    %6 = vector.load %arg1[%c0_6, %c0_7, %c1] : memref<1x16x290xbf16, #tpu.memory_space<vmem>>, vector<1x16x256xbf16>
    %7 = vector.shape_cast %6 : vector<1x16x256xbf16> to vector<16x256xbf16>
    %c16 = arith.constant 16 : index
    %c0_8 = arith.constant 0 : index
    %8 = vector.load %arg8[%c16, %c0_8] : memref<144x256xbf16, #tpu.memory_space<vmem>>, vector<16x256xbf16>
    tpu.vector_store %arg8[%c16, %c0_8], %7 {strides = array<i32>} : memref<144x256xbf16, #tpu.memory_space<vmem>>, vector<16x256xbf16>,
    %c0_9 = arith.constant 0 : index
    %c0_10 = arith.constant 0 : index
    %c2 = arith.constant 2 : index
    %9 = vector.load %arg1[%c0_9, %c0_10, %c2] : memref<1x16x290xbf16, #tpu.memory_space<vmem>>, vector<1x16x256xbf16>
    %10 = vector.shape_cast %9 : vector<1x16x256xbf16> to vector<16x256xbf16>
    %c2_11 = arith.constant 2 : index
    %c0_12 = arith.constant 0 : index
    %11 = vector.load %arg4[%c2_11, %c0_12] : memref<3x256xbf16, #tpu.memory_space<vmem>>, vector<1x256xbf16>
    %12 = vector.broadcast %11 : vector<1x256xbf16> to vector<16x256xbf16>
    %13 = arith.mulf %10, %12 : vector<16x256xbf16>
    %c32 = arith.constant 32 : index
    %c0_13 = arith.constant 0 : index
    %14 = vector.load %arg8[%c32, %c0_13] : memref<144x256xbf16, #tpu.memory_space<vmem>>, vector<16x256xbf16>
    tpu.vector_store %arg8[%c32, %c0_13], %13 {strides = array<i32>} : memref<144x256xbf16, #tpu.memory_space<vmem>>, vector<16x256xbf16>,
    %c0_14 = arith.constant 0 : index
    %c0_15 = arith.constant 0 : index
    %c16_16 = arith.constant 16 : index
    %15 = vector.load %arg1[%c0_14, %c0_15, %c16_16] : memref<1x16x290xbf16, #tpu.memory_space<vmem>>, vector<1x16x256xbf16>
    %16 = vector.shape_cast %15 : vector<1x16x256xbf16> to vector<16x256xbf16>
    %c0_17 = arith.constant 0 : index
    %c0_18 = arith.constant 0 : index
    %17 = vector.load %arg4[%c0_17, %c0_18] : memref<3x256xbf16, #tpu.memory_space<vmem>>, vector<1x256xbf16>
    %18 = vector.broadcast %17 : vector<1x256xbf16> to vector<16x256xbf16>
    %19 = arith.mulf %16, %18 : vector<16x256xbf16>
    %c48 = arith.constant 48 : index
    %c0_19 = arith.constant 0 : index
    %20 = vector.load %arg8[%c48, %c0_19] : memref<144x256xbf16, #tpu.memory_space<vmem>>, vector<16x256xbf16>
    tpu.vector_store %arg8[%c48, %c0_19], %19 {strides = array<i32>} : memref<144x256xbf16, #tpu.memory_space<vmem>>, vector<16x256xbf16>,
    %c0_20 = arith.constant 0 : index
    %c0_21 = arith.constant 0 : index
    %c17 = arith.constant 17 : index
    %21 = vector.load %arg1[%c0_20, %c0_21, %c17] : memref<1x16x290xbf16, #tpu.memory_space<vmem>>, vector<1x16x256xbf16>
    %22 = vector.shape_cast %21 : vector<1x16x256xbf16> to vector<16x256xbf16>
    %c64 = arith.constant 64 : index
    %c0_22 = arith.constant 0 : index
    %23 = vector.load %arg8[%c64, %c0_22] : memref<144x256xbf16, #tpu.memory_space<vmem>>, vector<16x256xbf16>
    tpu.vector_store %arg8[%c64, %c0_22], %22 {strides = array<i32>} : memref<144x256xbf16, #tpu.memory_space<vmem>>, vector<16x256xbf16>,
    %c0_23 = arith.constant 0 : index
    %c0_24 = arith.constant 0 : index
    %c18 = arith.constant 18 : index
    %24 = vector.load %arg1[%c0_23, %c0_24, %c18] : memref<1x16x290xbf16, #tpu.memory_space<vmem>>, vector<1x16x256xbf16>
    %25 = vector.shape_cast %24 : vector<1x16x256xbf16> to vector<16x256xbf16>
    %c2_25 = arith.constant 2 : index
    %c0_26 = arith.constant 0 : index
    %26 = vector.load %arg4[%c2_25, %c0_26] : memref<3x256xbf16, #tpu.memory_space<vmem>>, vector<1x256xbf16>
    %27 = vector.broadcast %26 : vector<1x256xbf16> to vector<16x256xbf16>
    %28 = arith.mulf %25, %27 : vector<16x256xbf16>
    %c80 = arith.constant 80 : index
    %c0_27 = arith.constant 0 : index
    %29 = vector.load %arg8[%c80, %c0_27] : memref<144x256xbf16, #tpu.memory_space<vmem>>, vector<16x256xbf16>
    tpu.vector_store %arg8[%c80, %c0_27], %28 {strides = array<i32>} : memref<144x256xbf16, #tpu.memory_space<vmem>>, vector<16x256xbf16>,
    %c0_28 = arith.constant 0 : index
    %c0_29 = arith.constant 0 : index
    %c32_30 = arith.constant 32 : index
    %30 = vector.load %arg1[%c0_28, %c0_29, %c32_30] : memref<1x16x290xbf16, #tpu.memory_space<vmem>>, vector<1x16x256xbf16>
    %31 = vector.shape_cast %30 : vector<1x16x256xbf16> to vector<16x256xbf16>
    %c0_31 = arith.constant 0 : index
    %c0_32 = arith.constant 0 : index
    %32 = vector.load %arg4[%c0_31, %c0_32] : memref<3x256xbf16, #tpu.memory_space<vmem>>, vector<1x256xbf16>
    %33 = vector.broadcast %32 : vector<1x256xbf16> to vector<16x256xbf16>
    %34 = arith.mulf %31, %33 : vector<16x256xbf16>
    %c96 = arith.constant 96 : index
    %c0_33 = arith.constant 0 : index
    %35 = vector.load %arg8[%c96, %c0_33] : memref<144x256xbf16, #tpu.memory_space<vmem>>, vector<16x256xbf16>
    tpu.vector_store %arg8[%c96, %c0_33], %34 {strides = array<i32>} : memref<144x256xbf16, #tpu.memory_space<vmem>>, vector<16x256xbf16>,
    %c0_34 = arith.constant 0 : index
    %c0_35 = arith.constant 0 : index
    %c33 = arith.constant 33 : index
    %36 = vector.load %arg1[%c0_34, %c0_35, %c33] : memref<1x16x290xbf16, #tpu.memory_space<vmem>>, vector<1x16x256xbf16>
    %37 = vector.shape_cast %36 : vector<1x16x256xbf16> to vector<16x256xbf16>
    %c112 = arith.constant 112 : index
    %c0_36 = arith.constant 0 : index
    %38 = vector.load %arg8[%c112, %c0_36] : memref<144x256xbf16, #tpu.memory_space<vmem>>, vector<16x256xbf16>
    tpu.vector_store %arg8[%c112, %c0_36], %37 {strides = array<i32>} : memref<144x256xbf16, #tpu.memory_space<vmem>>, vector<16x256xbf16>,
    %c0_37 = arith.constant 0 : index
    %c0_38 = arith.constant 0 : index
    %c34 = arith.constant 34 : index
    %39 = vector.load %arg1[%c0_37, %c0_38, %c34] : memref<1x16x290xbf16, #tpu.memory_space<vmem>>, vector<1x16x256xbf16>
    %40 = vector.shape_cast %39 : vector<1x16x256xbf16> to vector<16x256xbf16>
    %c2_39 = arith.constant 2 : index
    %c0_40 = arith.constant 0 : index
    %41 = vector.load %arg4[%c2_39, %c0_40] : memref<3x256xbf16, #tpu.memory_space<vmem>>, vector<1x256xbf16>
    %42 = vector.broadcast %41 : vector<1x256xbf16> to vector<16x256xbf16>
    %43 = arith.mulf %40, %42 : vector<16x256xbf16>
    %c128 = arith.constant 128 : index
    %c0_41 = arith.constant 0 : index
    %44 = vector.load %arg8[%c128, %c0_41] : memref<144x256xbf16, #tpu.memory_space<vmem>>, vector<16x256xbf16>
    tpu.vector_store %arg8[%c128, %c0_41], %43 {strides = array<i32>} : memref<144x256xbf16, #tpu.memory_space<vmem>>, vector<16x256xbf16>,
    %c0_42 = arith.constant 0 : index
    %c0_43 = arith.constant 0 : index
    %45 = vector.load %arg2[%c0_42, %c0_43] : memref<64x144xbf16, #tpu.memory_space<vmem>>, vector<64x144xbf16>
    %c0_44 = arith.constant 0 : index
    %c0_45 = arith.constant 0 : index
    %46 = vector.load %arg8[%c0_44, %c0_45] : memref<144x256xbf16, #tpu.memory_space<vmem>>, vector<144x256xbf16>
    %cst = arith.constant dense<0.000000e+00> : vector<64x256xf32>
    %47 = tpu.matmul %45, %46, %cst {dimension_numbers = #tpu.dot_dimension_numbers<[1], [0], [0], [1], [0, 0, 1, 1], [], []>} : vector<64x144xbf16>, vector<144x256xbf16>, vector<64x256xf32> -> vector<64x256xf32>
    %c0_46 = arith.constant 0 : index
    %c0_47 = arith.constant 0 : index
    %c0_48 = arith.constant 0 : index
    %48 = vector.load %arg3[%c0_46, %c0_47, %c0_48] : memref<1x64x1xf32, #tpu.memory_space<vmem>>, vector<1x64x1xf32>
    %49 = vector.shape_cast %48 : vector<1x64x1xf32> to vector<64x1xf32>
    %50 = vector.broadcast %49 : vector<64x1xf32> to vector<64x256xf32>
    %51 = arith.addf %47, %50 : vector<64x256xf32>
    %c0_49 = arith.constant 0 : index
    %c0_50 = arith.constant 0 : index
    %52 = vector.load %arg5[%c0_49, %c0_50] : memref<64x64xf32, #tpu.memory_space<vmem>>, vector<64x64xf32>
    %53 = arith.mulf %51, %51 : vector<64x256xf32>
    %cst_51 = arith.constant dense<0.000000e+00> : vector<64x256xf32>
    %54 = tpu.matmul %52, %53, %cst_51 {dimension_numbers = #tpu.dot_dimension_numbers<[1], [0], [0], [1], [0, 0, 1, 1], [], []>} : vector<64x64xf32>, vector<64x256xf32>, vector<64x256xf32> -> vector<64x256xf32>
    %c0_52 = arith.constant 0 : index
    %c0_53 = arith.constant 0 : index
    %55 = vector.load %arg6[%c0_52, %c0_53] : memref<64x1xf32, #tpu.memory_space<vmem>>, vector<64x1xf32>
    %56 = vector.broadcast %55 : vector<64x1xf32> to vector<64x256xf32>
    %57 = arith.addf %54, %56 : vector<64x256xf32>
    %58 = math.rsqrt %57 : vector<64x256xf32>
    %59 = arith.mulf %51, %58 : vector<64x256xf32>
    %60 = arith.truncf %59 : vector<64x256xf32> to vector<64x256xbf16>
    %c0_54 = arith.constant 0 : index
    %c0_55 = arith.constant 0 : index
    %c0_56 = arith.constant 0 : index
    %61 = vector.load %arg7[%c0_54, %c0_55, %c0_56] : memref<1x64x256xbf16, #tpu.memory_space<vmem>>, vector<1x64x256xbf16>
    %62 = vector.shape_cast %61 : vector<1x64x256xbf16> to vector<64x256xbf16>
    %63 = vector.shape_cast %60 : vector<64x256xbf16> to vector<1x64x256xbf16>
    tpu.vector_store %arg7[%c0_54, %c0_55, %c0_56], %63 {strides = array<i32>} : memref<1x64x256xbf16, #tpu.memory_space<vmem>>, vector<1x64x256xbf16>,
    return
  }
  func.func @transform_0(%arg0: i32) -> (i32, i32, i32) {
    %c0_i32 = arith.constant 0 : i32
    %c0_i32_0 = arith.constant 0 : i32
    %c0_i32_1 = arith.constant 0 : i32
    return %arg0, %c0_i32, %c0_i32_0 : i32, i32, i32
  }
  func.func @transform_1(%arg0: i32) -> (i32, i32) {
    %c0_i32 = arith.constant 0 : i32
    %c0_i32_0 = arith.constant 0 : i32
    %c0_i32_1 = arith.constant 0 : i32
    return %c0_i32, %c0_i32_0 : i32, i32
  }
  func.func @transform_2(%arg0: i32) -> (i32, i32, i32) {
    %c0_i32 = arith.constant 0 : i32
    %c0_i32_0 = arith.constant 0 : i32
    %c0_i32_1 = arith.constant 0 : i32
    return %arg0, %c0_i32, %c0_i32_0 : i32, i32, i32
  }
  func.func @transform_3(%arg0: i32) -> (i32, i32) {
    %c0_i32 = arith.constant 0 : i32
    %c0_i32_0 = arith.constant 0 : i32
    %c0_i32_1 = arith.constant 0 : i32
    return %c0_i32, %c0_i32_0 : i32, i32
  }
  func.func @transform_4(%arg0: i32) -> (i32, i32) {
    %c0_i32 = arith.constant 0 : i32
    %c0_i32_0 = arith.constant 0 : i32
    %c0_i32_1 = arith.constant 0 : i32
    return %c0_i32, %c0_i32_0 : i32, i32
  }
  func.func @transform_5(%arg0: i32) -> (i32, i32) {
    %c0_i32 = arith.constant 0 : i32
    %c0_i32_0 = arith.constant 0 : i32
    %c0_i32_1 = arith.constant 0 : i32
    return %c0_i32, %c0_i32_0 : i32, i32
  }
  func.func @transform_6(%arg0: i32) -> (i32, i32, i32) {
    %c0_i32 = arith.constant 0 : i32
    %c0_i32_0 = arith.constant 0 : i32
    %c0_i32_1 = arith.constant 0 : i32
    return %arg0, %c0_i32, %c0_i32_0 : i32, i32, i32
  }
}

module attributes {stable_mosaic.version = 11 : i64} {
  func.func @kernel(%arg0: i32, %arg1: memref<1x16x1090xbf16, #tpu.memory_space<vmem>>, %arg2: memref<32x144xbf16, #tpu.memory_space<vmem>>, %arg3: memref<1x32x1xf32, #tpu.memory_space<vmem>>, %arg4: memref<3x1024xbf16, #tpu.memory_space<vmem>>, %arg5: memref<1x32x1024xf32, #tpu.memory_space<vmem>>, %arg6: memref<144x1024xbf16, #tpu.memory_space<vmem>>) attributes {dimension_semantics = [#tpu.dimension_semantics<parallel>], iteration_bounds = array<i64: 2>, scalar_prefetch = 0 : i64, scratch_operands = 1 : i64, tpu.core_type = #tpu.core_type<tc>, window_params = [{transform_indices = @transform_0, window_bounds = array<i64: 1, 16, 1090>}, {pipeline_mode = #tpu.pipeline_mode<synchronous>, transform_indices = @transform_1, window_bounds = array<i64: 32, 144>}, {pipeline_mode = #tpu.pipeline_mode<synchronous>, transform_indices = @transform_2, window_bounds = array<i64: 1, 32, 1>}, {pipeline_mode = #tpu.pipeline_mode<synchronous>, transform_indices = @transform_3, window_bounds = array<i64: 3, 1024>}, {transform_indices = @transform_4, window_bounds = array<i64: 1, 32, 1024>}]} {
    %c0 = arith.constant 0 : index
    %c0_0 = arith.constant 0 : index
    %c0_1 = arith.constant 0 : index
    %0 = vector.load %arg1[%c0, %c0_0, %c0_1] : memref<1x16x1090xbf16, #tpu.memory_space<vmem>>, vector<1x16x1024xbf16>
    %1 = vector.shape_cast %0 : vector<1x16x1024xbf16> to vector<16x1024xbf16>
    %c0_2 = arith.constant 0 : index
    %c0_3 = arith.constant 0 : index
    %2 = vector.load %arg4[%c0_2, %c0_3] : memref<3x1024xbf16, #tpu.memory_space<vmem>>, vector<1x1024xbf16>
    %3 = vector.broadcast %2 : vector<1x1024xbf16> to vector<16x1024xbf16>
    %4 = arith.mulf %1, %3 : vector<16x1024xbf16>
    %c0_4 = arith.constant 0 : index
    %c0_5 = arith.constant 0 : index
    %5 = vector.load %arg6[%c0_4, %c0_5] : memref<144x1024xbf16, #tpu.memory_space<vmem>>, vector<16x1024xbf16>
    tpu.vector_store %arg6[%c0_4, %c0_5], %4 {strides = array<i32>} : memref<144x1024xbf16, #tpu.memory_space<vmem>>, vector<16x1024xbf16>,
    %c0_6 = arith.constant 0 : index
    %c0_7 = arith.constant 0 : index
    %c1 = arith.constant 1 : index
    %6 = vector.load %arg1[%c0_6, %c0_7, %c1] : memref<1x16x1090xbf16, #tpu.memory_space<vmem>>, vector<1x16x1024xbf16>
    %7 = vector.shape_cast %6 : vector<1x16x1024xbf16> to vector<16x1024xbf16>
    %c16 = arith.constant 16 : index
    %c0_8 = arith.constant 0 : index
    %8 = vector.load %arg6[%c16, %c0_8] : memref<144x1024xbf16, #tpu.memory_space<vmem>>, vector<16x1024xbf16>
    tpu.vector_store %arg6[%c16, %c0_8], %7 {strides = array<i32>} : memref<144x1024xbf16, #tpu.memory_space<vmem>>, vector<16x1024xbf16>,
    %c0_9 = arith.constant 0 : index
    %c0_10 = arith.constant 0 : index
    %c2 = arith.constant 2 : index
    %9 = vector.load %arg1[%c0_9, %c0_10, %c2] : memref<1x16x1090xbf16, #tpu.memory_space<vmem>>, vector<1x16x1024xbf16>
    %10 = vector.shape_cast %9 : vector<1x16x1024xbf16> to vector<16x1024xbf16>
    %c2_11 = arith.constant 2 : index
    %c0_12 = arith.constant 0 : index
    %11 = vector.load %arg4[%c2_11, %c0_12] : memref<3x1024xbf16, #tpu.memory_space<vmem>>, vector<1x1024xbf16>
    %12 = vector.broadcast %11 : vector<1x1024xbf16> to vector<16x1024xbf16>
    %13 = arith.mulf %10, %12 : vector<16x1024xbf16>
    %c32 = arith.constant 32 : index
    %c0_13 = arith.constant 0 : index
    %14 = vector.load %arg6[%c32, %c0_13] : memref<144x1024xbf16, #tpu.memory_space<vmem>>, vector<16x1024xbf16>
    tpu.vector_store %arg6[%c32, %c0_13], %13 {strides = array<i32>} : memref<144x1024xbf16, #tpu.memory_space<vmem>>, vector<16x1024xbf16>,
    %c0_14 = arith.constant 0 : index
    %c0_15 = arith.constant 0 : index
    %c32_16 = arith.constant 32 : index
    %15 = vector.load %arg1[%c0_14, %c0_15, %c32_16] : memref<1x16x1090xbf16, #tpu.memory_space<vmem>>, vector<1x16x1024xbf16>
    %16 = vector.shape_cast %15 : vector<1x16x1024xbf16> to vector<16x1024xbf16>
    %c0_17 = arith.constant 0 : index
    %c0_18 = arith.constant 0 : index
    %17 = vector.load %arg4[%c0_17, %c0_18] : memref<3x1024xbf16, #tpu.memory_space<vmem>>, vector<1x1024xbf16>
    %18 = vector.broadcast %17 : vector<1x1024xbf16> to vector<16x1024xbf16>
    %19 = arith.mulf %16, %18 : vector<16x1024xbf16>
    %c48 = arith.constant 48 : index
    %c0_19 = arith.constant 0 : index
    %20 = vector.load %arg6[%c48, %c0_19] : memref<144x1024xbf16, #tpu.memory_space<vmem>>, vector<16x1024xbf16>
    tpu.vector_store %arg6[%c48, %c0_19], %19 {strides = array<i32>} : memref<144x1024xbf16, #tpu.memory_space<vmem>>, vector<16x1024xbf16>,
    %c0_20 = arith.constant 0 : index
    %c0_21 = arith.constant 0 : index
    %c33 = arith.constant 33 : index
    %21 = vector.load %arg1[%c0_20, %c0_21, %c33] : memref<1x16x1090xbf16, #tpu.memory_space<vmem>>, vector<1x16x1024xbf16>
    %22 = vector.shape_cast %21 : vector<1x16x1024xbf16> to vector<16x1024xbf16>
    %c64 = arith.constant 64 : index
    %c0_22 = arith.constant 0 : index
    %23 = vector.load %arg6[%c64, %c0_22] : memref<144x1024xbf16, #tpu.memory_space<vmem>>, vector<16x1024xbf16>
    tpu.vector_store %arg6[%c64, %c0_22], %22 {strides = array<i32>} : memref<144x1024xbf16, #tpu.memory_space<vmem>>, vector<16x1024xbf16>,
    %c0_23 = arith.constant 0 : index
    %c0_24 = arith.constant 0 : index
    %c34 = arith.constant 34 : index
    %24 = vector.load %arg1[%c0_23, %c0_24, %c34] : memref<1x16x1090xbf16, #tpu.memory_space<vmem>>, vector<1x16x1024xbf16>
    %25 = vector.shape_cast %24 : vector<1x16x1024xbf16> to vector<16x1024xbf16>
    %c2_25 = arith.constant 2 : index
    %c0_26 = arith.constant 0 : index
    %26 = vector.load %arg4[%c2_25, %c0_26] : memref<3x1024xbf16, #tpu.memory_space<vmem>>, vector<1x1024xbf16>
    %27 = vector.broadcast %26 : vector<1x1024xbf16> to vector<16x1024xbf16>
    %28 = arith.mulf %25, %27 : vector<16x1024xbf16>
    %c80 = arith.constant 80 : index
    %c0_27 = arith.constant 0 : index
    %29 = vector.load %arg6[%c80, %c0_27] : memref<144x1024xbf16, #tpu.memory_space<vmem>>, vector<16x1024xbf16>
    tpu.vector_store %arg6[%c80, %c0_27], %28 {strides = array<i32>} : memref<144x1024xbf16, #tpu.memory_space<vmem>>, vector<16x1024xbf16>,
    %c0_28 = arith.constant 0 : index
    %c0_29 = arith.constant 0 : index
    %c64_30 = arith.constant 64 : index
    %30 = vector.load %arg1[%c0_28, %c0_29, %c64_30] : memref<1x16x1090xbf16, #tpu.memory_space<vmem>>, vector<1x16x1024xbf16>
    %31 = vector.shape_cast %30 : vector<1x16x1024xbf16> to vector<16x1024xbf16>
    %c0_31 = arith.constant 0 : index
    %c0_32 = arith.constant 0 : index
    %32 = vector.load %arg4[%c0_31, %c0_32] : memref<3x1024xbf16, #tpu.memory_space<vmem>>, vector<1x1024xbf16>
    %33 = vector.broadcast %32 : vector<1x1024xbf16> to vector<16x1024xbf16>
    %34 = arith.mulf %31, %33 : vector<16x1024xbf16>
    %c96 = arith.constant 96 : index
    %c0_33 = arith.constant 0 : index
    %35 = vector.load %arg6[%c96, %c0_33] : memref<144x1024xbf16, #tpu.memory_space<vmem>>, vector<16x1024xbf16>
    tpu.vector_store %arg6[%c96, %c0_33], %34 {strides = array<i32>} : memref<144x1024xbf16, #tpu.memory_space<vmem>>, vector<16x1024xbf16>,
    %c0_34 = arith.constant 0 : index
    %c0_35 = arith.constant 0 : index
    %c65 = arith.constant 65 : index
    %36 = vector.load %arg1[%c0_34, %c0_35, %c65] : memref<1x16x1090xbf16, #tpu.memory_space<vmem>>, vector<1x16x1024xbf16>
    %37 = vector.shape_cast %36 : vector<1x16x1024xbf16> to vector<16x1024xbf16>
    %c112 = arith.constant 112 : index
    %c0_36 = arith.constant 0 : index
    %38 = vector.load %arg6[%c112, %c0_36] : memref<144x1024xbf16, #tpu.memory_space<vmem>>, vector<16x1024xbf16>
    tpu.vector_store %arg6[%c112, %c0_36], %37 {strides = array<i32>} : memref<144x1024xbf16, #tpu.memory_space<vmem>>, vector<16x1024xbf16>,
    %c0_37 = arith.constant 0 : index
    %c0_38 = arith.constant 0 : index
    %c66 = arith.constant 66 : index
    %39 = vector.load %arg1[%c0_37, %c0_38, %c66] : memref<1x16x1090xbf16, #tpu.memory_space<vmem>>, vector<1x16x1024xbf16>
    %40 = vector.shape_cast %39 : vector<1x16x1024xbf16> to vector<16x1024xbf16>
    %c2_39 = arith.constant 2 : index
    %c0_40 = arith.constant 0 : index
    %41 = vector.load %arg4[%c2_39, %c0_40] : memref<3x1024xbf16, #tpu.memory_space<vmem>>, vector<1x1024xbf16>
    %42 = vector.broadcast %41 : vector<1x1024xbf16> to vector<16x1024xbf16>
    %43 = arith.mulf %40, %42 : vector<16x1024xbf16>
    %c128 = arith.constant 128 : index
    %c0_41 = arith.constant 0 : index
    %44 = vector.load %arg6[%c128, %c0_41] : memref<144x1024xbf16, #tpu.memory_space<vmem>>, vector<16x1024xbf16>
    tpu.vector_store %arg6[%c128, %c0_41], %43 {strides = array<i32>} : memref<144x1024xbf16, #tpu.memory_space<vmem>>, vector<16x1024xbf16>,
    %c0_42 = arith.constant 0 : index
    %c0_43 = arith.constant 0 : index
    %45 = vector.load %arg2[%c0_42, %c0_43] : memref<32x144xbf16, #tpu.memory_space<vmem>>, vector<32x144xbf16>
    %c0_44 = arith.constant 0 : index
    %c0_45 = arith.constant 0 : index
    %46 = vector.load %arg6[%c0_44, %c0_45] : memref<144x1024xbf16, #tpu.memory_space<vmem>>, vector<144x1024xbf16>
    %cst = arith.constant dense<0.000000e+00> : vector<32x1024xf32>
    %47 = tpu.matmul %45, %46, %cst {dimension_numbers = #tpu.dot_dimension_numbers<[1], [0], [0], [1], [0, 0, 1, 1], [], []>} : vector<32x144xbf16>, vector<144x1024xbf16>, vector<32x1024xf32> -> vector<32x1024xf32>
    %c0_46 = arith.constant 0 : index
    %c0_47 = arith.constant 0 : index
    %c0_48 = arith.constant 0 : index
    %48 = vector.load %arg3[%c0_46, %c0_47, %c0_48] : memref<1x32x1xf32, #tpu.memory_space<vmem>>, vector<1x32x1xf32>
    %49 = vector.shape_cast %48 : vector<1x32x1xf32> to vector<32x1xf32>
    %50 = vector.broadcast %49 : vector<32x1xf32> to vector<32x1024xf32>
    %51 = arith.addf %47, %50 : vector<32x1024xf32>
    %c0_49 = arith.constant 0 : index
    %c0_50 = arith.constant 0 : index
    %c0_51 = arith.constant 0 : index
    %52 = vector.load %arg5[%c0_49, %c0_50, %c0_51] : memref<1x32x1024xf32, #tpu.memory_space<vmem>>, vector<1x32x1024xf32>
    %53 = vector.shape_cast %52 : vector<1x32x1024xf32> to vector<32x1024xf32>
    %54 = vector.shape_cast %51 : vector<32x1024xf32> to vector<1x32x1024xf32>
    tpu.vector_store %arg5[%c0_49, %c0_50, %c0_51], %54 {strides = array<i32>} : memref<1x32x1024xf32, #tpu.memory_space<vmem>>, vector<1x32x1024xf32>,
    return
  }
  func.func @transform_0(%arg0: i32) -> (i32, i32, i32) {
    %c0_i32 = arith.constant 0 : i32
    %c0_i32_0 = arith.constant 0 : i32
    %c0_i32_1 = arith.constant 0 : i32
    return %arg0, %c0_i32, %c0_i32_0 : i32, i32, i32
  }
  func.func @transform_1(%arg0: i32) -> (i32, i32) {
    %c0_i32 = arith.constant 0 : i32
    %c0_i32_0 = arith.constant 0 : i32
    %c0_i32_1 = arith.constant 0 : i32
    return %c0_i32, %c0_i32_0 : i32, i32
  }
  func.func @transform_2(%arg0: i32) -> (i32, i32, i32) {
    %c0_i32 = arith.constant 0 : i32
    %c0_i32_0 = arith.constant 0 : i32
    %c0_i32_1 = arith.constant 0 : i32
    %c0_i32_2 = arith.constant 0 : i32
    return %c0_i32, %c0_i32_0, %c0_i32_1 : i32, i32, i32
  }
  func.func @transform_3(%arg0: i32) -> (i32, i32) {
    %c0_i32 = arith.constant 0 : i32
    %c0_i32_0 = arith.constant 0 : i32
    %c0_i32_1 = arith.constant 0 : i32
    return %c0_i32, %c0_i32_0 : i32, i32
  }
  func.func @transform_4(%arg0: i32) -> (i32, i32, i32) {
    %c0_i32 = arith.constant 0 : i32
    %c0_i32_0 = arith.constant 0 : i32
    %c0_i32_1 = arith.constant 0 : i32
    return %arg0, %c0_i32, %c0_i32_0 : i32, i32, i32
  }
}

</mosaic_0001>

<bundles_post_ra>
// kernel: _lambda_.4
= control target key start
LH: loop header
LB: loop body
LE: loop exit
PB: predicated region body
PF: predicated region fallthrough
CT: control target
= control target key end

     0   :  { %11 = vsyncpa [#allocation4], 0  ;;  %s1449_s0 = inlined_call_operand.vmem [shape: bf16[2,4,26], index: 0, kind: input, shape index: {}]   ;;  %s1450_s1 = inlined_call_operand.hbm [shape: bf16[64,36], index: 1, kind: input, shape index: {}]   ;;  %s1451_s2 = inlined_call_operand.vmem [shape: f32[2,64,1], index: 2, kind: input, shape index: {}]   ;;  %s1452_s3 = inlined_call_operand.hbm [shape: bf16[3,16], index: 3, kind: input, shape index: {}]   ;;  %s1453_s4 = inlined_call_operand.hbm [shape: f32[64,64], index: 4, kind: input, shape index: {}]   ;;  %s1454_s5 = inlined_call_operand.vmem [shape: f32[64,1], index: 5, kind: input, shape index: {}]   ;;  %s1455_s6 = inlined_call_operand.vmem [shape: bf16[2,64,16], index: 6, kind: output, shape index: {}]  }
   0x1   :  { %12 = vsyncpa [#allocation6], 0  ;;  %s1243_s21 = smov 0  }
   0x2 LB: > { %s211_s24 = sshll.u32 %s1452_s3, 4  ;;  %s1252_s25 = sadd.s32 4294967295, %s1185_s21   ;;  %s1185_s21 = sphi %s1243_s21, %s18_s21   ;;  %s212_s24 = int_to_ptr.hbm [resolvable:$true] %s211_s24 }
   0x3   : > { %p934_p0 = scmp.ge.s32.totalorder %s1185_s21, 1  ;;  %p185_p1 = scmp.lt.s32.totalorder %s1185_s21, 3 }
   0x4   : > { %p1027_p2 = scmp.eq.s32.totalorder %s1252_s25, 0  ;;  %s1187_s27 = smov [#allocation5]  }
   0x5   : > { %p1257_p3 = pnand %p934_p0, %p185_p1  ;;  %s213_s28 = sshll.u32 %s1187_s27, 4  ;;  %s214_s28 = int_to_ptr.vmem [resolvable:$true] %s213_s28 }
   0x6   : > { %s196_s7 = sshll.u32 %s1450_s1, 4  ;;  %s1188_s9 = smov [#allocation3]   ;;  %s197_s7 = int_to_ptr.hbm [resolvable:$true] %s196_s7 }
   0x7   : > { %p1017_p4 = pneg %p1257_p3  ;;  %s198_s10 = sshll.u32 %s1188_s9, 4  ;;  %s199_s10 = int_to_ptr.vmem [resolvable:$true] %s198_s10 }
   0x8   : > { %s222_s13 = sshll.u32 %s1453_s4, 4  ;;  %s1189_s14 = smov 64   ;;  %s223_s13 = int_to_ptr.hbm [resolvable:$true] %s222_s13 }
   0x9   : > { %p1268_p5 = pnand %p1027_p2, %p1017_p4  ;;  %s1190_s15 = smov 4  }
   0xa   : > { %s1191_s16 = smov [#allocation7]   ;;  %s1192_s18 = smov 128  }
   0xb   : > { %1023 = dma.hbm_to_vmem [thread:$0]  (!%p1268_p5), %s212_s24, 32, %s214_s28, [#allocation6]  }
   0xc   : > { %1020 = dma.hbm_to_vmem [thread:$0]  (!%p1268_p5), %s197_s7, 512, %s199_s10, [#allocation4], %s1189_s14, %s1189_s14, %s1190_s15  }
   0xd   : > { %s224_s17 = sshll.u32 %s1191_s16, 4  ;;  %s1193_s19 = smov 8   ;;  %s225_s17 = int_to_ptr.vmem [resolvable:$true] %s224_s17 }
   0xe   : > { %1026 = dma.hbm_to_vmem [thread:$0]  (!%p1268_p5), %s223_s13, 1024, %s225_s17, [#allocation6], %s1192_s18, %s1192_s18, %s1193_s19  }
   0xf   : > { %258 = sbr.rel (%p1257_p3) target bundleno = 665 (0x299), region = 44 }
  0x14   : > { %1176 = dma.done.wait (%p1027_p2), [#allocation4], 512  }
  0x15   : > { %1178 = vsyncadd (%p1027_p2), [#allocation4], 4294966784 }
  0x16   : > { %1180 = dma.done.wait (%p1027_p2), [#allocation6], 1056  }
  0x17   : > { %1182 = vsyncadd (%p1027_p2), [#allocation6], 4294966240  ;;  %p303_p6 = scmp.lt.s32.totalorder %s1252_s25, 1  ;;  %v439_v0 = vld [vmem:[#allocation5] sm:$0x2]  ;;  %s1194_s26 = smov 10  }
  0x18   : > { %v410_v1 = vld [vmem:[#allocation5] sm:$0x1]  ;;  %v390_v2 = vld [vmem:[#allocation5] sm:$0x2]  ;;  %v441_v3 = vpack.i.b16 %v439_v0, %v439_v0  ;;  %s1195_s27 = smov 8   ;;  %s1196_s28 = smov 2  }
  0x19   : > { %s1459_s25 = smov (!%p303_p6, %s1252_s25), 1  ;;  %v412_v4 = vpack.i.b16 %v410_v1, %v410_v1  ;;  %v361_v5 = vld [vmem:[#allocation5] sm:$0x1]  ;;  %v342_v6 = vld [vmem:[#allocation5] sm:$0x2]  ;;  %v392_v11 = vpack.i.b16 %v390_v2, %v390_v2  ;;  %s1197_s29 = smov 6  }
  0x1a   : > { %s943_s20 = sshll.u32 %s1459_s25, 1  ;;  %v344_v8 = vpack.i.b16 %v342_v6, %v342_v6  ;;  %v443_v9 = vperm.slane %v441_v3, 1  ;;  %v363_v12 = vpack.i.b16 %v361_v5, %v361_v5  ;;  %s1198_s30 = smov 4   ;;  %v319_v54 = vld [vmem:[#allocation5] sm:$0x1]  ;;  %vm328_vm0 = vcmask 123904  }
  0x1b   : > { %s1299_s24 = scalar_lea.vmem %s1449_s0, %s943_s20  ;;  %v414_v10 = vperm.slane %v412_v4, 0  ;;  %v394_v17 = vperm.slane %v392_v11, 1  ;;  %s1199_s7 = smov 123   ;;  %v321_v55 = vpack.i.b16 %v319_v54, %v319_v54  ;;  %vm339_vm1 = vcmask 125954  }
  0x1c   : > { %v330_v7 = vld [vmem:[%s1299_s24] sm:$0x3]  ;;  %v346_v13 = vperm.slane %v344_v8, 1  ;;  %v445_v14 = vunpack.c.l.bf16 %v443_v9  ;;  %v365_v18 = vperm.slane %v363_v12, 0  ;;  %s1200_s8 = smov 119   ;;  %s1201_s9 = smov 118  }
  0x1d   : > { %333 = vst [vmem:[#allocation1 + $0x1] ss:$2 sm:$0xff] %v330_v7  ;;  %v416_v15 = vunpack.c.l.bf16 %v414_v10  ;;  %v380_v19 = vld [vmem:[%s1299_s24] sm:$0x3]  ;;  %v396_v21 = vunpack.c.l.bf16 %v394_v17  ;;  %s1202_s10 = smov 120   ;;  %s1203_s11 = smov 122  }
  0x1e   : > { %v348_v16 = vunpack.c.l.bf16 %v346_v13  ;;  %447 = vrot.lane.b32.xlu0 %v445_v14, %s1194_s26  ;;  %v367_v22 = vunpack.c.l.bf16 %v365_v18  ;;  %v428_v23 = vld [vmem:[%s1299_s24] sm:$0x3]  ;;  %s1204_s12 = smov 124   ;;  %s1205_s13 = smov 126   ;;  %v323_v57 = vperm.slane %v321_v55, 0  ;;  %vm566_vm2 = vcmask 1041408  }
  0x1f   : > { %418 = vrot.lane.b32.xlu1 %v416_v15, %s1195_s27  ;;  %v438_v26 = vld [vmem:[%s1299_s24] sm:$0x3]  ;;  %s1206_s14 = smov 127   ;;  %s986_s15 = sshll.u32 %s1459_s25, 6  ;;  %v1207_v6 = vmov 0   ;;  %v989_v15 = vld [vmem:[#allocation3 + $0x8] sm:$0xff] }
  0x20   : > { %350 = vrot.lane.b32.xlu2 %v348_v16, %s1196_s28  ;;  %v444_v27 = vunpack.c.l.bf16 %v438_v26  ;;  %v409_v28 = vld [vmem:[%s1299_s24] sm:$0x3]  ;;  %v325_v59 = vunpack.c.l.bf16 %v323_v57  ;;  %s1320_s18 = scalar_lea.vmem %s1451_s2, %s986_s15  ;;  %1062 = vset.pattern.permute.xlu1 %v1207_v6  ;;  %vm553_vm3 = vcmask 293888   ;;  %v617_v26 = vld [vmem:[%s1454_s5 + $0x10] sm:$0xff]  ;;  %vm663_vm4 = vcmask 523264  }
  0x21   : > { %v415_v32 = vunpack.c.l.bf16 %v409_v28  ;;  %v389_v33 = vld [vmem:[%s1299_s24] sm:$0x3]  ;;  %1064 = vset.pattern.permute.xlu0 %v1207_v6  ;;  %1063 = vset.pattern.permute.xlu2 %v1207_v6  ;;  %v477_v7 = vld [vmem:[%s1320_s18 + $0x38] sm:$0xff]  ;;  %v472_v11 = vld [vmem:[%s1320_s18 + $0x10] sm:$0xff]  ;;  %vm825_vm8 = vcmask 125952  }
  0x22   : > { %v360_v34 = vld [vmem:[%s1299_s24] sm:$0x3]  ;;  %v395_v37 = vunpack.c.l.bf16 %v389_v33  ;;  %v476_v18 = vld [vmem:[%s1320_s18 + $0x30] sm:$0xff]  ;;  %v620_v28 = vld [vmem:[%s1454_s5 + $0x28] sm:$0xff] }
  0x23   : > { %v366_v38 = vunpack.c.l.bf16 %v360_v34  ;;  %v341_v39 = vld [vmem:[%s1299_s24] sm:$0x3]  ;;  %v602_v6 = vld [vmem:[#allocation7 + $0x18] sm:$0xff] }
  0x24   : > { %v334_v20 = vld.sshfl [vmem:[#allocation1] sm:$0xff pattern:$0x75643120]  ;;  %v347_v45 = vunpack.c.l.bf16 %v341_v39 }
  0x25   : > { %382 = vst [vmem:[#allocation1] ss:$2 sm:$0xff] %v380_v19  ;;  %v318_v53 = vld [vmem:[%s1299_s24] sm:$0x3]  ;;  %v475_v19 = vld [vmem:[%s1320_s18 + $0x28] sm:$0xff] }
  0x26   : > { %398 = vrot.lane.b32.xlu0 %v396_v21, %s1197_s29  ;;  %v324_v58 = vunpack.c.l.bf16 %v318_v53  ;;  %v474_v8 = vld [vmem:[%s1320_s18 + $0x20] sm:$0xff]  ;;  %v473_v21 = vld [vmem:[%s1320_s18 + $0x18] sm:$0xff] }
  0x27   : > { %369 = vrot.lane.b32.xlu1 %v367_v22, %s1198_s30  ;;  %v988_v16 = vld [vmem:[#allocation3] sm:$0xff] }
  0x28   : > { %v326_v60 = vmul.f32 %v325_v59, %v324_v58  ;;  %v615_v17 = vld [vmem:[%s1454_s5] sm:$0xff] }
  0x29   : > { %v470_v22 = vld [vmem:[%s1320_s18] sm:$0xff] }
  0x2a   : > { %v327_v61 = vpack.c.bf16 %v326_v60, %v326_v60 }
  0x2c   : > { %v383_v24 = vld.sshfl [vmem:[#allocation1] sm:$0xff pattern:$0x75643120]  ;;  %329 = vst.msk [vmem:[#allocation2] sm:$0x3] %vm328_vm0, %v327_v61 }
  0x2d   : > { %431 = vst [vmem:[#allocation1 + $0x1] ss:$2 sm:$0xff] %v428_v23  ;;  %v990_v23 = vld [vmem:[#allocation3 + $0x10] sm:$0xff] }
  0x2e   : > { %385 = vrot.lane.b32.xlu0 %v383_v24, %s1199_s7  ;;  %v621_v24 = vld [vmem:[%s1454_s5 + $0x30] sm:$0xff] }
  0x34   : > { %v432_v25 = vld.sshfl [vmem:[#allocation1] sm:$0xff pattern:$0x75643120] }
  0x36   : > { %434 = vrot.lane.b32.xlu0 %v432_v25, %s1200_s8  ;;  %v471_v25 = vld [vmem:[%s1320_s18 + $0x8] sm:$0xff] }
  0x7a   : > { %v351_v46 = vpop.permute.xlu2 %350 }
  0x7b   : > { %v353_v51 = vmul.f32 %v351_v46, %v347_v45 }
  0x7d   : > { %v354_v52 = vpack.c.bf16 %v353_v51, %v353_v51 }
  0x90   : > { %v448_v29 = vpop.permute.xlu0 %447 }
  0x91   : > { %v419_v30 = vpop.permute.xlu1 %418  ;;  %v450_v31 = vmul.f32 %v448_v29, %v444_v27  ;;  %v616_v27 = vld [vmem:[%s1454_s5 + $0x8] sm:$0xff]  ;;  %v991_v29 = vld [vmem:[#allocation3 + $0x18] sm:$0xff] }
  0x92   : > { %v421_v36 = vmul.f32 %v419_v30, %v415_v32  ;;  %v619_v30 = vld [vmem:[%s1454_s5 + $0x20] sm:$0xff] }
  0x93   : > { %v451_v35 = vpack.c.bf16 %v450_v31, %v450_v31  ;;  %v622_v31 = vld [vmem:[%s1454_s5 + $0x38] sm:$0xff] }
  0x94   : > { %v422_v42 = vpack.c.bf16 %v421_v36, %v421_v36 }
  0x95   : > { %453 = vrot.lane.b32.xlu2 %v451_v35, %s1201_s9 }
  0x98   : > { %v399_v40 = vpop.permute.xlu0 %398 }
  0x99   : > { %v370_v41 = vpop.permute.xlu1 %369  ;;  %v401_v43 = vmul.f32 %v399_v40, %v395_v37 }
  0x9a   : > { %v372_v44 = vmul.f32 %v370_v41, %v366_v38 }
  0x9b   : > { %v402_v47 = vpack.c.bf16 %v401_v43, %v401_v43 }
  0x9c   : > { %v373_v48 = vpack.c.bf16 %v372_v44, %v372_v44 }
  0x9d   : > { %v404_v49 = vrot.slane %v402_v47, 6  ;;  %424 = vrot.lane.b32.xlu2 %v422_v42, %s1202_s10 }
  0x9e   : > { %v375_v50 = vrot.slane %v373_v48, 6 }
  0x9f   : > { %405 = vrot.lane.b32.xlu1 %v404_v49, %s1203_s11 }
  0xa0   : > { %376 = vrot.lane.b32.xlu0 %v375_v50, %s1204_s12  ;;  %v386_v56 = vpop.permute.xlu0 %385 }
  0xa1   : > { %388 = vst.msk [vmem:[#allocation2 + $0x8] sm:$0x3] %vm328_vm0, %v386_v56 }
  0xa5   : > { %356 = vrot.lane.b32.xlu2 %v354_v52, %s1205_s13  ;;  %s987_s13 = sshll.u32 %s1459_s25, 5 }
  0xa6   : > { %s1412_s16 = scalar_lea.vmem %s1455_s6, %s987_s13 }
  0xa7   : > { %336 = vrot.lane.b32.xlu1 %v334_v20, %s1206_s14  ;;  %v618_v20 = vld [vmem:[%s1454_s5 + $0x18] sm:$0xff] }
  0xa8   : > { %v435_v62 = vpop.permute.xlu0 %434  ;;  %505 = vperm.xlu0 %1064, %v475_v19  }
  0xa9   : > { %437 = vst.msk [vmem:[#allocation2 + $0xc] sm:$0xc] %vm339_vm1, %v435_v62 }
  0xad   : > { %510 = vperm.xlu2 %1063, %v476_v18  }
  0xaf   : > { %515 = vperm.xlu1 %1062, %v477_v7   ;;  %v606_v7 = vld [vmem:[#allocation7 + $0x38] sm:$0xff] }
  0xb0   : > { %480 = vperm.xlu0 %1064, %v470_v22  }
  0xb5   : > { %495 = vperm.xlu2 %1063, %v473_v21  }
  0xb7   : > { %500 = vperm.xlu1 %1062, %v474_v8  }
  0xb8   : > { %635 = vperm.xlu0 %1064, %v617_v26  }
  0xbd   : > { %485 = vperm.xlu2 %1063, %v471_v25  }
  0xbf   : > { %490 = vperm.xlu1 %1062, %v472_v11  }
  0xc0   : > { %650 = vperm.xlu0 %1064, %v620_v28  }
  0xc5   : > { %630 = vperm.xlu2 %1063, %v616_v27  }
  0xc7   : > { %625 = vperm.xlu1 %1062, %v615_v17  }
  0xcd   : > { %645 = vperm.xlu2 %1063, %v619_v30  }
  0xcf   : > { %640 = vperm.xlu1 %1062, %v618_v20  }
  0xd5   : > { %660 = vperm.xlu2 %1063, %v622_v31  }
  0xd7   : > { %655 = vperm.xlu1 %1062, %v621_v24  }
  0xef   : > { %v454_v63 = vpop.permute.xlu2 %453 }
  0xf0   : > { %456 = vst.msk [vmem:[#allocation2 + $0x10] sm:$0x3] %vm328_vm0, %v454_v63 }
  0xf7   : > { %v425_v0 = vpop.permute.xlu2 %424  ;;  %v469_v1 = vld [vmem:[#allocation2 + $0x10] sm:$0x3] }
  0xf8   : > { %427 = vst.msk [vmem:[#allocation2 + $0xc] sm:$0x3] %vm328_vm0, %v425_v0  ;;  %v547_v2 = vunpack.c.l.b16 %v469_v1  ;;  %v599_v0 = vld [vmem:[#allocation7] sm:$0xff] }
  0xf9   : > { %v603_v1 = vld [vmem:[#allocation7 + $0x20] sm:$0xff] }
  0xfa   : > { %v550_v3 = vpack.c.b16 %v547_v2, %v547_v2  ;;  %v600_v2 = vld [vmem:[#allocation7 + $0x8] sm:$0xff] }
  0xfc   : > { %v568_v4 = vsel %vm566_vm2, %v550_v3, 0  ;;  %v604_v3 = vld [vmem:[#allocation7 + $0x28] sm:$0xff] }
  0xfd   : > { %575 = vmatpush.bf16.msra.mxu0 %v568_v4  ;;  %994 = vmatpush.bf16.msra.mxu3 %v568_v4  ;;  %v601_v4 = vld [vmem:[#allocation7 + $0x10] sm:$0xff] }
  0xff   : > { %v357_v5 = vpop.permute.xlu2 %356 }
 0x100   : > { %359 = vst.msk [vmem:[#allocation2 + $0x4] sm:$0x3] %vm328_vm0, %v357_v5  ;;  %v605_v5 = vld [vmem:[#allocation7 + $0x30] sm:$0xff] }
 0x107   : > { %v511_v37 = vpop.permute.xlu2 %510 }
 0x10f   : > { %v496_v41 = vpop.permute.xlu2 %495 }
 0x111   : > { %v406_v9 = vpop.permute.xlu1 %405 }
 0x112   : > { %v377_v10 = vpop.permute.xlu0 %376  ;;  %408 = vst.msk [vmem:[#allocation2 + $0x8] sm:$0xc] %vm339_vm1, %v406_v9 }
 0x113   : > { %379 = vst.msk [vmem:[#allocation2 + $0x4] sm:$0xc] %vm339_vm1, %v377_v10 }
 0x117   : > { %v486_v56 = vpop.permute.xlu2 %485 }
 0x119   : > { %v337_v12 = vpop.permute.xlu1 %336  ;;  %v993_v13 = vld [vmem:[#allocation2 + $0x8] sm:$0xff] }
 0x11a   : > { %340 = vst.msk [vmem:[#allocation2] sm:$0xc] %vm339_vm1, %v337_v12  ;;  %576 = vmatpush.bf16.msra.mxu0 %v993_v13  ;;  %995 = vmatpush.bf16.msra.mxu3 %v993_v13  ;;  %v506_v45 = vpop.permute.xlu0 %505 }
 0x11f   : > { %v631_v8 = vpop.permute.xlu2 %630 }
 0x121   : > { %v992_v14 = vld [vmem:[#allocation2] sm:$0xff]  ;;  %v516_v36 = vpop.permute.xlu1 %515 }
 0x122   : > { %577 = vmatpush.bf16.msra.mxu0 %v992_v14  ;;  %996 = vmatpush.bf16.msra.mxu3 %v992_v14  ;;  %v481_v59 = vpop.permute.xlu0 %480 }
 0x125   : > { %973 = vmatmul.msk.bf16.vlgmr.msra.gmra.mxu3 %vm553_vm3, %v989_v15  ;;  %972 = vmatmul.msk.bf16.vlgmr.msra.gmra.mxu0 %vm553_vm3, %v988_v16 }
 0x127   : > { %v646_v13 = vpop.permute.xlu2 %645 }
 0x129   : > { %v501_v39 = vpop.permute.xlu1 %500 }
 0x12a   : > { %v636_v12 = vpop.permute.xlu0 %635 }
 0x131   : > { %v491_v50 = vpop.permute.xlu1 %490 }
 0x132   : > { %v651_v22 = vpop.permute.xlu0 %650 }
 0x135   : > { %974 = vmatmul.msk.bf16.gmra.mxu3 %vm553_vm3, %v990_v23 }
 0x139   : > { %v626_v9 = vpop.permute.xlu1 %625 }
 0x141   : > { %v641_v20 = vpop.permute.xlu1 %640 }
 0x145   : > { %975 = vmatmul.msk.bf16.gmra.mxu3 %vm553_vm3, %v991_v29 }
 0x1a2   : > { %v579_v40 = vpop.f32.mrf.mxu0 }
 0x1a3   : > { %v1385_v60 = vadd.f32 %v579_v40, %v481_v59 }
 0x1a5   : > { %v607_v63 = vmul.f32 %v1385_v60, %v1385_v60 }
 0x1a8   : > { %v584_v32 = vpop.f32.mrf.mxu3 }
 0x1a9   : > { %v1377_v54 = vadd.f32 %v584_v32, %v491_v50 }
 0x1aa   : > { %v581_v53 = vpop.f32.mrf.mxu0 }
 0x1ab   : > { %v1381_v57 = vadd.f32 %v581_v53, %v486_v56  ;;  %v609_v61 = vmul.f32 %v1377_v54, %v1377_v54 }
 0x1ad   : > { %v608_v62 = vmul.f32 %v1381_v57, %v1381_v57 }
 0x1b0   : > { %v586_v33 = vpop.f32.mrf.mxu3 }
 0x1b1   : > { %v1373_v51 = vadd.f32 %v586_v33, %v496_v41 }
 0x1b3   : > { %v610_v58 = vmul.f32 %v1373_v51, %v1373_v51 }
 0x1b8   : > { %v589_v34 = vpop.f32.mrf.mxu3 }
 0x1b9   : > { %v1369_v48 = vadd.f32 %v589_v34, %v501_v39  ;;  %v656_v39 = vpop.permute.xlu1 %655 }
 0x1bb   : > { %v611_v55 = vmul.f32 %v1369_v48, %v1369_v48 }
 0x1c0   : > { %v591_v35 = vpop.f32.mrf.mxu3 }
 0x1c1   : > { %v1365_v46 = vadd.f32 %v591_v35, %v506_v45 }
 0x1c3   : > { %v612_v52 = vmul.f32 %v1365_v46, %v1365_v46 }
 0x1c8   : > { %v594_v38 = vpop.f32.mrf.mxu3 }
 0x1c9   : > { %v1361_v43 = vadd.f32 %v594_v38, %v511_v37 }
 0x1cb   : > { %v613_v49 = vmul.f32 %v1361_v43, %v1361_v43 }
 0x1d0   : > { %v596_v42 = vpop.f32.mrf.mxu3 }
 0x1d1   : > { %v1363_v44 = vadd.f32 %v596_v42, %v516_v36 }
 0x1d3   : > { %v614_v47 = vmul.f32 %v1363_v44, %v1363_v44 }
 0x1d5   : > { %696 = vmatpush.msra.mxu1 %v614_v47  ;;  %997 = vmatpush.msra.mxu2 %v614_v47 }
 0x1d7   : > { %697 = vmatpush.msra.mxu1 %v613_v49  ;;  %998 = vmatpush.msra.mxu2 %v613_v49 }
 0x1d9   : > { %698 = vmatpush.msra.mxu1 %v612_v52  ;;  %999 = vmatpush.msra.mxu2 %v612_v52 }
 0x1db   : > { %699 = vmatpush.msra.mxu1 %v611_v55  ;;  %1000 = vmatpush.msra.mxu2 %v611_v55 }
 0x1dd   : > { %700 = vmatpush.msra.mxu1 %v610_v58  ;;  %1001 = vmatpush.msra.mxu2 %v610_v58 }
 0x1df   : > { %701 = vmatpush.msra.mxu1 %v609_v61  ;;  %1002 = vmatpush.msra.mxu2 %v609_v61 }
 0x1e1   : > { %702 = vmatpush.msra.mxu1 %v608_v62  ;;  %1003 = vmatpush.msra.mxu2 %v608_v62 }
 0x1e3   : > { %703 = vmatpush.msra.mxu1 %v607_v63  ;;  %1004 = vmatpush.msra.mxu2 %v607_v63 }
 0x1e4   : > { %976 = vmatmul.msk.f32.vlgmr.msra.gmra.mxu1 %vm663_vm4, %v599_v0  ;;  %980 = vmatmul.msk.f32.vlgmr.msra.gmra.mxu2 %vm663_vm4, %v603_v1 }
 0x1ec   : > { %977 = vmatmul.msk.f32.gmra.mxu1 %vm663_vm4, %v600_v2  ;;  %981 = vmatmul.msk.f32.gmra.mxu2 %vm663_vm4, %v604_v3 }
 0x1f4   : > { %978 = vmatmul.msk.f32.gmra.mxu1 %vm663_vm4, %v601_v4  ;;  %982 = vmatmul.msk.f32.gmra.mxu2 %vm663_vm4, %v605_v5  ;;  %v661_v5 = vpop.permute.xlu2 %660 }
 0x1fc   : > { %979 = vmatmul.msk.f32.gmra.mxu1 %vm663_vm4, %v602_v6  ;;  %983 = vmatmul.msk.f32.gmra.mxu2 %vm663_vm4, %v606_v7 }
 0x261   : > { %v705_v10 = vpop.f32.mrf.mxu1 }
 0x262   : > { %v706_v11 = vadd.f32 %v705_v10, %v626_v9 }
 0x264   : > { %1065 = vrsqrt.f32 %v706_v11  ;;  %vm735_vm6 = vweird.f32 %v706_v11 }
 0x267   : > { %v717_v14 = vpop.f32.mrf.mxu2 }
 0x268   : > { %v718_v15 = vadd.f32 %v717_v14, %v646_v13 }
 0x269   : > { %v708_v16 = vpop.f32.mrf.mxu1 }
 0x26a   : > { %v1066_v17 = vpop.eup %1065  ;;  %1067 = vrsqrt.f32 %v718_v15  ;;  %v709_v18 = vadd.f32 %v708_v16, %v631_v8  ;;  %vm775_vm10 = vweird.f32 %v718_v15 }
 0x26b   : > { %v730_v19 = vmul.f32 %v1066_v17, %v706_v11  ;;  %vm736_vm5 = vweird.f32 %v1066_v17 }
 0x26c   : > { %1069 = vrsqrt.f32 %v709_v18  ;;  %vm737_vm7 = vmor %vm735_vm6, %vm736_vm5  ;;  %vm745_vm13 = vweird.f32 %v709_v18 }
 0x26d   : > { %v731_v21 = vmul.f32 %v1066_v17, %v730_v19 }
 0x26f   : > { %v732_v23 = vmul.f32 0.5, %v731_v21  ;;  %v720_v24 = vpop.f32.mrf.mxu2 }
 0x270   : > { %v1068_v25 = vpop.eup %1067  ;;  %v1401_v26 = vadd.f32 %v720_v24, %v651_v22 }
 0x271   : > { %v733_v27 = vsub.f32 1.5, %v732_v23  ;;  %v770_v28 = vmul.f32 %v1068_v25, %v718_v15  ;;  %v711_v29 = vpop.f32.mrf.mxu1  ;;  %vm776_vm9 = vweird.f32 %v1068_v25 }
 0x272   : > { %v1070_v30 = vpop.eup %1069  ;;  %1071 = vrsqrt.f32 %v1401_v26  ;;  %v1404_v31 = vadd.f32 %v711_v29, %v636_v12  ;;  %vm777_vm12 = vmor %vm775_vm10, %vm776_vm9  ;;  %vm785_vm0 = vweird.f32 %v1401_v26 }
 0x273   : > { %v734_v32 = vmul.f32 %v1066_v17, %v733_v27  ;;  %v771_v33 = vmul.f32 %v1068_v25, %v770_v28  ;;  %v740_v34 = vmul.f32 %v1070_v30, %v709_v18  ;;  %vm746_vm11 = vweird.f32 %v1070_v30 }
 0x274   : > { %1073 = vrsqrt.f32 %v1404_v31  ;;  %vm747_vm14 = vmor %vm745_vm13, %vm746_vm11  ;;  %vm755_vm3 = vweird.f32 %v1404_v31 }
 0x275   : > { %v738_v35 = vsel %vm737_vm7, %v1066_v17, %v734_v32  ;;  %v772_v36 = vmul.f32 0.5, %v771_v33  ;;  %v741_v37 = vmul.f32 %v1070_v30, %v740_v34 }
 0x276   : > { %v809_v38 = vmul.f32 %v738_v35, %v1385_v60 }
 0x277   : > { %v773_v40 = vsub.f32 1.5, %v772_v36  ;;  %v742_v41 = vmul.f32 0.5, %v741_v37  ;;  %v723_v42 = vpop.f32.mrf.mxu2 }
 0x278   : > { %v1072_v45 = vpop.eup %1071  ;;  %v817_v47 = vpack.c.bf16 %v809_v38, %v809_v38  ;;  %v1414_v49 = vadd.f32 %v723_v42, %v656_v39 }
 0x279   : > { %v774_v50 = vmul.f32 %v1068_v25, %v773_v40  ;;  %v743_v52 = vsub.f32 1.5, %v742_v41  ;;  %v780_v53 = vmul.f32 %v1072_v45, %v1401_v26  ;;  %v714_v55 = vpop.f32.mrf.mxu1  ;;  %vm786_vm15 = vweird.f32 %v1072_v45 }
 0x27a   : > { %v1074_v56 = vpop.eup %1073  ;;  %826 = vst.msk [vmem:[%s1412_s16] sm:$0xf] %vm825_vm8, %v817_v47  ;;  %1075 = vrsqrt.f32 %v1414_v49  ;;  %v715_v58 = vadd.f32 %v714_v55, %v641_v20  ;;  %vm787_vm2 = vmor %vm785_vm0, %vm786_vm15  ;;  %vm795_vm6 = vweird.f32 %v1414_v49 }
 0x27b   : > { %v778_v59 = vsel %vm777_vm12, %v1068_v25, %v774_v50  ;;  %v744_v60 = vmul.f32 %v1070_v30, %v743_v52  ;;  %v781_v61 = vmul.f32 %v1072_v45, %v780_v53  ;;  %v750_v62 = vmul.f32 %v1074_v56, %v1404_v31 }
 0x27c   : > { %v813_v63 = vmul.f32 %v778_v59, %v1369_v48  ;;  %1077 = vrsqrt.f32 %v715_v58  ;;  %vm756_vm1 = vweird.f32 %v1074_v56  ;;  %vm765_vm10 = vweird.f32 %v715_v58 }
 0x27d   : > { %v748_v0 = vsel %vm747_vm14, %v1070_v30, %v744_v60  ;;  %v782_v1 = vmul.f32 0.5, %v781_v61  ;;  %v751_v2 = vmul.f32 %v1074_v56, %v750_v62  ;;  %vm757_vm4 = vmor %vm755_vm3, %vm756_vm1 }
 0x27e   : > { %v821_v3 = vpack.c.bf16 %v813_v63, %v813_v63  ;;  %v810_v4 = vmul.f32 %v748_v0, %v1381_v57 }
 0x27f   : > { %v783_v6 = vsub.f32 1.5, %v782_v1  ;;  %v752_v7 = vmul.f32 0.5, %v751_v2  ;;  %v726_v8 = vpop.f32.mrf.mxu2 }
 0x280   : > { %v1076_v9 = vpop.eup %1075  ;;  %830 = vst.msk [vmem:[%s1412_s16 + $0x10] sm:$0xf] %vm825_vm8, %v821_v3  ;;  %v818_v10 = vpack.c.bf16 %v810_v4, %v810_v4  ;;  %v727_v48 = vadd.f32 %v726_v8, %v661_v5 }
 0x281   : > { %v784_v11 = vmul.f32 %v1072_v45, %v783_v6  ;;  %v753_v12 = vsub.f32 1.5, %v752_v7  ;;  %v790_v13 = vmul.f32 %v1076_v9, %v1414_v49  ;;  %vm796_vm5 = vweird.f32 %v1076_v9 }
 0x282   : > { %v1078_v14 = vpop.eup %1077  ;;  %827 = vst.msk [vmem:[%s1412_s16 + $0x4] sm:$0xf] %vm825_vm8, %v818_v10  ;;  %1079 = vrsqrt.f32 %v727_v48  ;;  %vm797_vm9 = vmor %vm795_vm6, %vm796_vm5  ;;  %vm805_vm13 = vweird.f32 %v727_v48 }
 0x283   : > { %v788_v57 = vsel %vm787_vm2, %v1072_v45, %v784_v11  ;;  %v754_v15 = vmul.f32 %v1074_v56, %v753_v12  ;;  %v791_v16 = vmul.f32 %v1076_v9, %v790_v13  ;;  %v760_v17 = vmul.f32 %v1078_v14, %v715_v58 }
 0x284   : > { %v814_v18 = vmul.f32 %v788_v57, %v1365_v46  ;;  %vm766_vm7 = vweird.f32 %v1078_v14 }
 0x285   : > { %v758_v19 = vsel %vm757_vm4, %v1074_v56, %v754_v15  ;;  %v792_v20 = vmul.f32 0.5, %v791_v16  ;;  %v761_v21 = vmul.f32 %v1078_v14, %v760_v17  ;;  %vm767_vm11 = vmor %vm765_vm10, %vm766_vm7 }
 0x286   : > { %v822_v22 = vpack.c.bf16 %v814_v18, %v814_v18  ;;  %v811_v23 = vmul.f32 %v758_v19, %v1377_v54 }
 0x287   : > { %v793_v24 = vsub.f32 1.5, %v792_v20  ;;  %v762_v25 = vmul.f32 0.5, %v761_v21 }
 0x288   : > { %v1080_v26 = vpop.eup %1079  ;;  %831 = vst.msk [vmem:[%s1412_s16 + $0x14] sm:$0xf] %vm825_vm8, %v822_v22  ;;  %v819_v27 = vpack.c.bf16 %v811_v23, %v811_v23 }
 0x289   : > { %v794_v28 = vmul.f32 %v1076_v9, %v793_v24  ;;  %v763_v29 = vsub.f32 1.5, %v762_v25  ;;  %v800_v46 = vmul.f32 %v1080_v26, %v727_v48  ;;  %vm806_vm12 = vweird.f32 %v1080_v26 }
 0x28a   : > { %828 = vst.msk [vmem:[%s1412_s16 + $0x8] sm:$0xf] %vm825_vm8, %v819_v27  ;;  %vm807_vm14 = vmor %vm805_vm13, %vm806_vm12 }
 0x28b   : > { %v798_v30 = vsel %vm797_vm9, %v1076_v9, %v794_v28  ;;  %v764_v54 = vmul.f32 %v1078_v14, %v763_v29  ;;  %v801_v31 = vmul.f32 %v1080_v26, %v800_v46 }
 0x28c   : > { %v815_v32 = vmul.f32 %v798_v30, %v1361_v43 }
 0x28d   : > { %v768_v33 = vsel %vm767_vm11, %v1078_v14, %v764_v54  ;;  %v802_v34 = vmul.f32 0.5, %v801_v31 }
 0x28e   : > { %v823_v35 = vpack.c.bf16 %v815_v32, %v815_v32  ;;  %v812_v36 = vmul.f32 %v768_v33, %v1373_v51 }
 0x28f   : > { %v803_v37 = vsub.f32 1.5, %v802_v34 }
 0x290   : > { %832 = vst.msk [vmem:[%s1412_s16 + $0x18] sm:$0xf] %vm825_vm8, %v823_v35  ;;  %v820_v38 = vpack.c.bf16 %v812_v36, %v812_v36 }
 0x291   : > { %v804_v39 = vmul.f32 %v1080_v26, %v803_v37 }
 0x292   : > { %829 = vst.msk [vmem:[%s1412_s16 + $0xc] sm:$0xf] %vm825_vm8, %v820_v38 }
 0x293   : > { %v808_v40 = vsel %vm807_vm14, %v1080_v26, %v804_v39 }
 0x294   : > { %v816_v43 = vmul.f32 %v808_v40, %v1363_v44 }
 0x296   : > { %v824_v41 = vpack.c.bf16 %v816_v43, %v816_v43 }
 0x298   : > { %833 = vst.msk [vmem:[%s1412_s16 + $0x1c] sm:$0xf] %vm825_vm8, %v824_v41 }
 0x299 PF: > { %s18_s21 = sadd.s32 1, %s1185_s21  }
 0x29a   : > { %p15_p7 = scmp.ge.s32.totalorder %s18_s21, 4  }
 0x29c   :  { %17 = sbr.rel (!%p15_p7) target bundleno = 2 (0x2), region = 92 }
 0x2a1   :  { %855 = vsyncpa [#allocation4], 1 }
 0x2a2   :  { %857 = vsyncpa [#allocation4 + $0x1], 1 }
 0x2a3   :  { %858 = vsyncpa [#allocation6], 1 }

// kernel: _lambda_.5
= control target key start
LH: loop header
LB: loop body
LE: loop exit
PB: predicated region body
PF: predicated region fallthrough
CT: control target
= control target key end

     0   :  { %11 = vsyncpa [#allocation4], 0  ;;  %s1673_s0 = inlined_call_operand.vmem [shape: bf16[2,16,82], index: 0, kind: input, shape index: {}]   ;;  %s1674_s1 = inlined_call_operand.hbm [shape: bf16[64,144], index: 1, kind: input, shape index: {}]   ;;  %s1675_s2 = inlined_call_operand.vmem [shape: f32[2,64,1], index: 2, kind: input, shape index: {}]   ;;  %s1676_s3 = inlined_call_operand.hbm [shape: bf16[3,64], index: 3, kind: input, shape index: {}]   ;;  %s1677_s4 = inlined_call_operand.hbm [shape: f32[64,64], index: 4, kind: input, shape index: {}]   ;;  %s1678_s5 = inlined_call_operand.vmem [shape: f32[64,1], index: 5, kind: input, shape index: {}]   ;;  %s1679_s6 = inlined_call_operand.vmem [shape: bf16[2,64,64], index: 6, kind: output, shape index: {}]  }
   0x1   :  { %12 = vsyncpa [#allocation6], 0  ;;  %s1474_s21 = smov 0  }
   0x2 LB: > { %s211_s24 = sshll.u32 %s1676_s3, 4  ;;  %s1483_s25 = sadd.s32 4294967295, %s1418_s21   ;;  %s1418_s21 = sphi %s1474_s21, %s18_s21   ;;  %s212_s24 = int_to_ptr.hbm [resolvable:$true] %s211_s24 }
   0x3   : > { %p1083_p0 = scmp.ge.s32.totalorder %s1418_s21, 1  ;;  %p185_p1 = scmp.lt.s32.totalorder %s1418_s21, 3 }
   0x4   : > { %p1262_p2 = scmp.eq.s32.totalorder %s1483_s25, 0  ;;  %s1420_s27 = smov [#allocation5]  }
   0x5   : > { %p1488_p3 = pnand %p1083_p0, %p185_p1  ;;  %s213_s28 = sshll.u32 %s1420_s27, 4  ;;  %s214_s28 = int_to_ptr.vmem [resolvable:$true] %s213_s28 }
   0x6   : > { %s196_s7 = sshll.u32 %s1674_s1, 4  ;;  %s1421_s8 = smov [#allocation3]   ;;  %s197_s7 = int_to_ptr.hbm [resolvable:$true] %s196_s7 }
   0x7   : > { %p1252_p4 = pneg %p1488_p3  ;;  %s198_s9 = sshll.u32 %s1421_s8, 4  ;;  %s199_s9 = int_to_ptr.vmem [resolvable:$true] %s198_s9 }
   0x8   : > { %s222_s12 = sshll.u32 %s1677_s4, 4  ;;  %s1422_s13 = smov 128   ;;  %s223_s12 = int_to_ptr.hbm [resolvable:$true] %s222_s12 }
   0x9   : > { %p1253_p5 = pnand %p1262_p2, %p1252_p4  ;;  %s1423_s14 = smov 8  }
   0xa   : > { %s1424_s15 = smov [#allocation7]   ;;  %259 = sbr.rel (%p1488_p3) target bundleno = 704 (0x2c0), region = 44 }
   0xb   : > { %1258 = dma.hbm_to_vmem [thread:$0]  (!%p1253_p5), %s212_s24, 32, %s214_s28, [#allocation6]  }
   0xc   : > { %1255 = dma.hbm_to_vmem [thread:$0]  (!%p1253_p5), %s197_s7, 1024, %s199_s9, [#allocation4], %s1422_s13, %s1422_s13, %s1423_s14  }
   0xd   : > { %s224_s16 = sshll.u32 %s1424_s15, 4  ;;  %s225_s16 = int_to_ptr.vmem [resolvable:$true] %s224_s16 }
   0xe   : > { %1261 = dma.hbm_to_vmem [thread:$0]  (!%p1253_p5), %s223_s12, 1024, %s225_s16, [#allocation6], %s1422_s13, %s1422_s13, %s1423_s14  }
   0xf   : > { %1409 = dma.done.wait (%p1262_p2), [#allocation4], 1024  }
  0x10   : > { %1411 = vsyncadd (%p1262_p2), [#allocation4], 4294966272 }
  0x11   : > { %1413 = dma.done.wait (%p1262_p2), [#allocation6], 1056  }
  0x12   : > { %1415 = vsyncadd (%p1262_p2), [#allocation6], 4294966240  ;;  %p305_p6 = scmp.lt.s32.totalorder %s1483_s25, 1  ;;  %v448_v0 = vld [vmem:[#allocation5] sm:$0x1]  ;;  %s1425_s17 = smov 16  }
  0x13   : > { %v420_v1 = vld [vmem:[#allocation5] sm:$0x2]  ;;  %v380_v2 = vld [vmem:[#allocation5] sm:$0x1]  ;;  %v450_v3 = vpack.i.b16 %v448_v0, %v448_v0  ;;  %s1426_s18 = smov 8   ;;  %s1427_s20 = smov 18  }
  0x14   : > { %v382_v4 = vpack.i.b16 %v380_v2, %v380_v2  ;;  %v352_v5 = vld [vmem:[#allocation5] sm:$0x2]  ;;  %v422_v9 = vpack.i.b16 %v420_v1, %v420_v1  ;;  %s1682_s25 = smov (!%p305_p6, %s1483_s25), 1  ;;  %s1428_s26 = smov 10   ;;  %vm335_vm0 = vcmask 519168   ;;  %vm678_vm1 = vcmask 130048  }
  0x15   : > { %v488_v6 = vld [vmem:[#allocation5] sm:$0x2]  ;;  %v452_v8 = vperm.slane %v450_v3, 0  ;;  %v354_v11 = vpack.i.b16 %v352_v5, %v352_v5  ;;  %s1180_s19 = sshll.u32 %s1682_s25, 3  ;;  %s1429_s27 = smov 2   ;;  %vm813_vm2 = vcmask 523264  }
  0x16   : > { %v490_v7 = vpack.i.b16 %v488_v6, %v488_v6  ;;  %v384_v10 = vperm.slane %v382_v4, 0  ;;  %v424_v16 = vperm.slane %v422_v9, 1  ;;  %s1520_s24 = scalar_lea.vmem %s1673_s0, %s1180_s19  ;;  %s1430_s28 = smov 111   ;;  %v323_v62 = vld [vmem:[#allocation5] sm:$0x1] }
  0x17   : > { %v455_v13 = vunpack.c.l.bf16 %v452_v8  ;;  %v356_v17 = vperm.slane %v354_v11, 1  ;;  %v474_v20 = vld [vmem:[%s1520_s24] sm:$0xf]  ;;  %v475_v21 = vld [vmem:[%s1520_s24 + $0x4] sm:$0xf]  ;;  %s1431_s29 = smov 119   ;;  %v325_v63 = vpack.i.b16 %v323_v62, %v323_v62 }
  0x18   : > { %v492_v12 = vperm.slane %v490_v7, 1  ;;  %v387_v14 = vunpack.c.l.bf16 %v384_v10  ;;  %v427_v18 = vunpack.c.l.bf16 %v424_v16  ;;  %v406_v22 = vld [vmem:[%s1520_s24] sm:$0xf]  ;;  %v407_v23 = vld [vmem:[%s1520_s24 + $0x4] sm:$0xf]  ;;  %s1432_s30 = smov 112  }
  0x19   : > { %457 = vrot.lane.b32.xlu0 %v455_v13, %s1425_s17  ;;  %v359_v19 = vunpack.c.l.bf16 %v356_v17  ;;  %v1217_v24 = vld [vmem:[%s1520_s24] sm:$0xff]   ;;  %s1433_s7 = smov 118   ;;  %s1434_s8 = smov 120   ;;  %v327_v0 = vperm.slane %v325_v63, 0 }
  0x1a   : > { %v495_v15 = vunpack.c.l.bf16 %v492_v12  ;;  %389 = vrot.lane.b32.xlu1 %v387_v14, %s1426_s18  ;;  %v1527_v25 = vunpack.c.l.bf16 %v1217_v24  ;;  %v1529_v26 = vunpack.c.h.bf16 %v1217_v24  ;;  %s1435_s9 = smov 126   ;;  %s1436_s10 = smov 110   ;;  %v339_v54 = vld [vmem:[%s1520_s24 + $0x4] sm:$0xf]  ;;  %v338_v55 = vld [vmem:[%s1520_s24] sm:$0xf] }
  0x1b   : > { %s1437_s11 = smov 127   ;;  %v330_v2 = vunpack.c.l.bf16 %v327_v0  ;;  %s1181_s12 = sshll.u32 %s1682_s25, 6  ;;  %v1126_v62 = vld [vmem:[#allocation3 + $0x38] sm:$0xf0] }
  0x1c   : > { %497 = vrot.lane.b32.xlu2 %v495_v15, %s1427_s20  ;;  %s1562_s15 = scalar_lea.vmem %s1675_s2, %s1181_s12  ;;  %v1438_v15 = vmov 0  }
  0x1d   : > { %v331_v4 = vmul.f32 %v1527_v25, %v330_v2  ;;  %v332_v5 = vmul.f32 %v1529_v26, %v330_v2  ;;  %v546_v14 = vld [vmem:[%s1562_s15 + $0x30] sm:$0xff]  ;;  %1296 = vset.pattern.permute.xlu1 %v1438_v15  ;;  %1295 = vset.pattern.permute.xlu0 %v1438_v15  ;;  %v547_v17 = vld [vmem:[%s1562_s15 + $0x38] sm:$0xff] }
  0x1e   : > { %1297 = vset.pattern.permute.xlu2 %v1438_v15 }
  0x1f   : > { %v333_v6 = vpack.c.bf16 %v331_v4, %v331_v4  ;;  %v334_v7 = vpack.c.bf16 %v332_v5, %v332_v5 }
  0x21   : > { %429 = vrot.lane.b32.xlu0 %v427_v18, %s1428_s26  ;;  %336 = vst.msk [vmem:[#allocation2] sm:$0xf] %vm335_vm0, %v333_v6 }
  0x22   : > { %361 = vrot.lane.b32.xlu1 %v359_v19, %s1429_s27  ;;  %337 = vst.msk [vmem:[#allocation2 + $0x4] sm:$0xf] %vm335_vm0, %v334_v7 }
  0x24   : > { %478 = vrot.lane.b32.xlu2 %v474_v20, %s1430_s28 }
  0x29   : > { %480 = vrot.lane.b32.xlu0 %v475_v21, %s1430_s28  ;;  %v544_v21 = vld [vmem:[%s1562_s15 + $0x20] sm:$0xff] }
  0x2c   : > { %410 = vrot.lane.b32.xlu2 %v406_v22, %s1431_s29  ;;  %v1183_v22 = vld [vmem:[#allocation3 + $0x4] sm:$0xf] }
  0x31   : > { %412 = vrot.lane.b32.xlu0 %v407_v23, %s1431_s29  ;;  %v1102_v23 = vld [vmem:[#allocation3 + $0x8] sm:$0xf0] }
  0x76   : > { %v498_v27 = vpop.permute.xlu2 %497 }
  0x77   : > { %v500_v45 = vmul.f32 %v1527_v25, %v498_v27  ;;  %v501_v50 = vmul.f32 %v1529_v26, %v498_v27  ;;  %v542_v27 = vld [vmem:[%s1562_s15 + $0x10] sm:$0xff] }
  0x79   : > { %v502_v48 = vpack.c.bf16 %v500_v45, %v500_v45  ;;  %v503_v52 = vpack.c.bf16 %v501_v50, %v501_v50  ;;  %v765_v45 = vld [vmem:[%s1678_s5] sm:$0xff]  ;;  %v768_v50 = vld [vmem:[%s1678_s5 + $0x18] sm:$0xff] }
  0x7e   : > { %v479_v34 = vpop.permute.xlu2 %478 }
  0x7f   : > { %484 = vst.msk [vmem:[#allocation2 + $0x38] sm:$0xf] %vm335_vm0, %v479_v34  ;;  %v543_v34 = vld [vmem:[%s1562_s15 + $0x18] sm:$0xff] }
  0x86   : > { %v411_v44 = vpop.permute.xlu2 %410 }
  0x87   : > { %416 = vst.msk [vmem:[#allocation2 + $0x20] sm:$0xf] %vm335_vm0, %v411_v44  ;;  %v766_v44 = vld [vmem:[%s1678_s5 + $0x8] sm:$0xff] }
  0x8b   : > { %v458_v28 = vpop.permute.xlu0 %457 }
  0x8c   : > { %v390_v29 = vpop.permute.xlu1 %389  ;;  %v460_v30 = vmul.f32 %v1527_v25, %v458_v28  ;;  %v461_v31 = vmul.f32 %v1529_v26, %v458_v28  ;;  %v545_v28 = vld [vmem:[%s1562_s15 + $0x28] sm:$0xff] }
  0x8d   : > { %v393_v35 = vmul.f32 %v1529_v26, %v390_v29  ;;  %v392_v46 = vmul.f32 %v1527_v25, %v390_v29  ;;  %v1105_v29 = vor.u32 %v1183_v22, %v1102_v23 }
  0x8e   : > { %v462_v32 = vpack.c.bf16 %v460_v30, %v460_v30  ;;  %v463_v33 = vpack.c.bf16 %v461_v31, %v461_v31  ;;  %v541_v30 = vld [vmem:[%s1562_s15 + $0x8] sm:$0xff] }
  0x8f   : > { %v395_v39 = vpack.c.bf16 %v393_v35, %v393_v35  ;;  %v394_v49 = vpack.c.bf16 %v392_v46, %v392_v46  ;;  %v1184_v35 = vld [vmem:[#allocation3 + $0x4] sm:$0xf0] }
  0x90   : > { %468 = vrot.lane.b32.xlu2 %v463_v33, %s1432_s30  ;;  %466 = vrot.lane.b32.xlu1 %v462_v32, %s1432_s30  ;;  %v1191_v32 = vld [vmem:[#allocation2] sm:$0xff]  ;;  %v1100_v33 = vld [vmem:[#allocation3] sm:$0xf]  ;;  %v767_v46 = vld [vmem:[%s1678_s5 + $0x10] sm:$0xff] }
  0x93   : > { %v430_v36 = vpop.permute.xlu0 %429 }
  0x94   : > { %v432_v37 = vmul.f32 %v1527_v25, %v430_v36  ;;  %v433_v38 = vmul.f32 %v1529_v26, %v430_v36  ;;  %v362_v40 = vpop.permute.xlu1 %361  ;;  %v1108_v36 = vld [vmem:[#allocation3 + $0x10] sm:$0xf] }
  0x95   : > { %v364_v43 = vmul.f32 %v1527_v25, %v362_v40  ;;  %v365_v51 = vmul.f32 %v1529_v26, %v362_v40  ;;  %v1185_v40 = vld [vmem:[#allocation3 + $0x14] sm:$0xf] }
  0x96   : > { %v434_v41 = vpack.c.bf16 %v432_v37, %v432_v37  ;;  %v435_v42 = vpack.c.bf16 %v433_v38, %v433_v38  ;;  %v1186_v37 = vld [vmem:[#allocation3 + $0x14] sm:$0xf0]  ;;  %v1101_v38 = vor.u32 %v1184_v35, %v1100_v33 }
  0x97   : > { %v366_v47 = vpack.c.bf16 %v364_v43, %v364_v43  ;;  %v367_v53 = vpack.c.bf16 %v365_v51, %v365_v51 }
  0x98   : > { %438 = vrot.lane.b32.xlu0 %v434_v41, %s1433_s7  ;;  %440 = vrot.lane.b32.xlu1 %v435_v42, %s1433_s7  ;;  %v1110_v41 = vld [vmem:[#allocation3 + $0x18] sm:$0xf0] }
  0x99   : > { %400 = vrot.lane.b32.xlu2 %v395_v39, %s1434_s8  ;;  %v1109_v39 = vor.u32 %v1186_v37, %v1108_v36  ;;  %v540_v42 = vld [vmem:[%s1562_s15] sm:$0xff]  ;;  %v1113_v43 = vor.u32 %v1185_v40, %v1110_v41 }
  0x9b   : > { %v481_v56 = vpop.permute.xlu0 %480 }
  0x9c   : > { %485 = vst.msk [vmem:[#allocation2 + $0x3c] sm:$0xf] %vm335_vm0, %v481_v56  ;;  %v772_v56 = vld [vmem:[%s1678_s5 + $0x38] sm:$0xff] }
  0xa0   : > { %398 = vrot.lane.b32.xlu1 %v394_v49, %s1434_s8  ;;  %370 = vrot.lane.b32.xlu0 %v366_v47, %s1435_s9  ;;  %v1116_v47 = vld [vmem:[#allocation3 + $0x20] sm:$0xf]  ;;  %v769_v49 = vld [vmem:[%s1678_s5 + $0x20] sm:$0xff] }
  0xa1   : > { %506 = vrot.lane.b32.xlu2 %v502_v48, %s1436_s10  ;;  %v1188_v48 = vld [vmem:[#allocation3 + $0x24] sm:$0xf0] }
  0xa2   : > { %v1117_v51 = vor.u32 %v1188_v48, %v1116_v47  ;;  %v749_v48 = vld [vmem:[#allocation7] sm:$0xff] }
  0xa3   : > { %v413_v57 = vpop.permute.xlu0 %412  ;;  %v1198_v58 = vld [vmem:[#allocation2 + $0x38] sm:$0xff] }
  0xa4   : > { %417 = vst.msk [vmem:[#allocation2 + $0x24] sm:$0xf] %vm335_vm0, %v413_v57  ;;  %691 = vmatpush.bf16.msra.mxu0 %v1198_v58  ;;  %1224 = vmatpush.bf16.msra.mxu3 %v1198_v58  ;;  %v771_v57 = vld [vmem:[%s1678_s5 + $0x30] sm:$0xff]  ;;  %v1124_v58 = vld [vmem:[#allocation3 + $0x30] sm:$0xf] }
  0xa8   : > { %372 = vrot.lane.b32.xlu1 %v367_v53, %s1435_s9  ;;  %508 = vrot.lane.b32.xlu0 %v503_v52, %s1436_s10  ;;  %v1187_v52 = vld [vmem:[#allocation3 + $0x24] sm:$0xf]  ;;  %v1118_v53 = vld [vmem:[#allocation3 + $0x28] sm:$0xf0]  ;;  %s1182_s10 = sshll.u32 %s1682_s25, 5 }
  0xa9   : > { %344 = vrot.lane.b32.xlu2 %v339_v54, %s1437_s11  ;;  %v770_v54 = vld [vmem:[%s1678_s5 + $0x28] sm:$0xff]  ;;  %s1645_s13 = scalar_lea.vmem %s1679_s6, %s1182_s10 }
  0xab   : > { %v1195_v16 = vld [vmem:[#allocation2 + $0x20] sm:$0xff] }
  0xb0   : > { %342 = vrot.lane.b32.xlu1 %v338_v55, %s1437_s11  ;;  %585 = vperm.xlu0 %1295, %v547_v17   ;;  %v1121_v55 = vor.u32 %v1187_v52, %v1118_v53  ;;  %v753_v52 = vld [vmem:[#allocation7 + $0x20] sm:$0xff]  ;;  %v754_v53 = vld [vmem:[#allocation7 + $0x28] sm:$0xff] }
  0xb1   : > { %575 = vperm.xlu2 %1297, %v545_v28  }
  0xb8   : > { %580 = vperm.xlu1 %1296, %v546_v14   ;;  %560 = vperm.xlu0 %1295, %v542_v27  }
  0xb9   : > { %565 = vperm.xlu2 %1297, %v543_v34  }
  0xc0   : > { %570 = vperm.xlu1 %1296, %v544_v21   ;;  %775 = vperm.xlu0 %1295, %v765_v45  }
  0xc1   : > { %550 = vperm.xlu2 %1297, %v540_v42  }
  0xc8   : > { %555 = vperm.xlu1 %1296, %v541_v30   ;;  %790 = vperm.xlu0 %1295, %v768_v50   ;;  %v751_v50 = vld [vmem:[#allocation7 + $0x10] sm:$0xff] }
  0xc9   : > { %785 = vperm.xlu2 %1297, %v767_v46  }
  0xd0   : > { %780 = vperm.xlu1 %1296, %v766_v44   ;;  %805 = vperm.xlu0 %1295, %v771_v57  }
  0xd1   : > { %800 = vperm.xlu2 %1297, %v770_v54   ;;  %v755_v54 = vld [vmem:[#allocation7 + $0x30] sm:$0xff] }
  0xd8   : > { %795 = vperm.xlu1 %1296, %v769_v49   ;;  %v750_v49 = vld [vmem:[#allocation7 + $0x8] sm:$0xff] }
  0xe0   : > { %810 = vperm.xlu1 %1296, %v772_v56  }
  0xea   : > { %v469_v59 = vpop.permute.xlu2 %468 }
  0xeb   : > { %473 = vst.msk [vmem:[#allocation2 + $0x34] sm:$0xf] %vm335_vm0, %v469_v59  ;;  %v1190_v59 = vld [vmem:[#allocation3 + $0x34] sm:$0xf0] }
  0xf3   : > { %v401_v60 = vpop.permute.xlu2 %400 }
  0xf4   : > { %405 = vst.msk [vmem:[#allocation2 + $0x1c] sm:$0xf] %vm335_vm0, %v401_v60  ;;  %v1125_v60 = vor.u32 %v1190_v59, %v1124_v58 }
  0xfb   : > { %v507_v61 = vpop.permute.xlu2 %506 }
  0xfc   : > { %512 = vst.msk [vmem:[#allocation2 + $0x40] sm:$0xf] %vm335_vm0, %v507_v61  ;;  %v1189_v61 = vld [vmem:[#allocation3 + $0x34] sm:$0xf] }
  0xfd   : > { %v1129_v63 = vor.u32 %v1189_v61, %v1126_v62 }
 0x102   : > { %v467_v1 = vpop.permute.xlu1 %466 }
 0x103   : > { %472 = vst.msk [vmem:[#allocation2 + $0x30] sm:$0xf] %vm335_vm0, %v467_v1  ;;  %v345_v3 = vpop.permute.xlu2 %344 }
 0x104   : > { %349 = vst.msk [vmem:[#allocation2 + $0xc] sm:$0xf] %vm335_vm0, %v345_v3 }
 0x10a   : > { %v439_v8 = vpop.permute.xlu0 %438  ;;  %v441_v9 = vpop.permute.xlu1 %440  ;;  %v1197_v10 = vld [vmem:[#allocation2 + $0x30] sm:$0xff] }
 0x10b   : > { %444 = vst.msk [vmem:[#allocation2 + $0x28] sm:$0xf] %vm335_vm0, %v439_v8  ;;  %692 = vmatpush.bf16.msra.mxu0 %v1197_v10  ;;  %1225 = vmatpush.bf16.msra.mxu3 %v1197_v10 }
 0x10c   : > { %445 = vst.msk [vmem:[#allocation2 + $0x2c] sm:$0xf] %vm335_vm0, %v441_v9 }
 0x112   : > { %v399_v11 = vpop.permute.xlu1 %398  ;;  %v371_v12 = vpop.permute.xlu0 %370 }
 0x113   : > { %404 = vst.msk [vmem:[#allocation2 + $0x18] sm:$0xf] %vm335_vm0, %v399_v11  ;;  %v1196_v13 = vld [vmem:[#allocation2 + $0x28] sm:$0xff]  ;;  %v576_v11 = vpop.permute.xlu2 %575 }
 0x114   : > { %376 = vst.msk [vmem:[#allocation2 + $0x10] sm:$0xf] %vm335_vm0, %v371_v12  ;;  %693 = vmatpush.bf16.msra.mxu0 %v1196_v13  ;;  %1226 = vmatpush.bf16.msra.mxu3 %v1196_v13 }
 0x118   : > { %694 = vmatpush.bf16.msra.mxu0 %v1195_v16  ;;  %1227 = vmatpush.bf16.msra.mxu3 %v1195_v16 }
 0x11a   : > { %v373_v18 = vpop.permute.xlu1 %372  ;;  %v509_v19 = vpop.permute.xlu0 %508  ;;  %v1194_v20 = vld [vmem:[#allocation2 + $0x18] sm:$0xff] }
 0x11b   : > { %377 = vst.msk [vmem:[#allocation2 + $0x14] sm:$0xf] %vm335_vm0, %v373_v18  ;;  %v566_v17 = vpop.permute.xlu2 %565 }
 0x11c   : > { %513 = vst.msk [vmem:[#allocation2 + $0x44] sm:$0xf] %vm335_vm0, %v509_v19  ;;  %695 = vmatpush.bf16.msra.mxu0 %v1194_v20  ;;  %1228 = vmatpush.bf16.msra.mxu3 %v1194_v20 }
 0x122   : > { %v343_v24 = vpop.permute.xlu1 %342  ;;  %v1193_v25 = vld [vmem:[#allocation2 + $0x10] sm:$0xff]  ;;  %v586_v14 = vpop.permute.xlu0 %585 }
 0x123   : > { %348 = vst.msk [vmem:[#allocation2 + $0x8] sm:$0xf] %vm335_vm0, %v343_v24  ;;  %v1199_v26 = vld [vmem:[#allocation2 + $0x40] sm:$0xff]  ;;  %696 = vmatpush.bf16.msra.mxu0 %v1193_v25  ;;  %1229 = vmatpush.bf16.msra.mxu3 %v1193_v25  ;;  %v551_v35 = vpop.permute.xlu2 %550 }
 0x124   : > { %727 = vmatpush.bf16.msra.mxu1 %v1199_v26 }
 0x127   : > { %1166 = vmatmul.msk.bf16.vlgmr.msra.gmra.mxu1 %vm678_vm1, %v1105_v29 }
 0x12a   : > { %v1192_v31 = vld [vmem:[#allocation2 + $0x8] sm:$0xff]  ;;  %v581_v10 = vpop.permute.xlu1 %580  ;;  %v561_v26 = vpop.permute.xlu0 %560 }
 0x12b   : > { %697 = vmatpush.bf16.msra.mxu0 %v1192_v31  ;;  %1230 = vmatpush.bf16.msra.mxu3 %v1192_v31 }
 0x12f   : > { %698 = vmatpush.bf16.msra.mxu0 %v1191_v32  ;;  %1231 = vmatpush.bf16.msra.mxu3 %v1191_v32 }
 0x132   : > { %699 = vmatmul.bf16.vlgmr.msra.gmra.mxu0 %v1101_v38  ;;  %704 = vmatmul.bf16.vlgmr.msra.gmra.mxu3 %v1109_v39  ;;  %v571_v15 = vpop.permute.xlu1 %570  ;;  %v776_v56 = vpop.permute.xlu0 %775 }
 0x137   : > { %1167 = vmatmul.msk.bf16.gmra.mxu1 %vm678_vm1, %v1113_v43 }
 0x13a   : > { %v556_v30 = vpop.permute.xlu1 %555 }
 0x142   : > { %709 = vmatmul.bf16.gmra.mxu3 %v1117_v51  ;;  %v752_v51 = vld [vmem:[#allocation7 + $0x18] sm:$0xff]  ;;  %v781_v59 = vpop.permute.xlu1 %780 }
 0x147   : > { %1168 = vmatmul.msk.bf16.gmra.mxu1 %vm678_vm1, %v1121_v55  ;;  %v756_v55 = vld [vmem:[#allocation7 + $0x38] sm:$0xff] }
 0x152   : > { %714 = vmatmul.bf16.gmra.mxu3 %v1125_v60 }
 0x157   : > { %1169 = vmatmul.msk.bf16.gmra.mxu1 %vm678_vm1, %v1129_v63 }
 0x1a4   : > { %v729_v0 = vpop.f32.mrf.mxu1 }
 0x1ac   : > { %v731_v1 = vpop.f32.mrf.mxu1 }
 0x1af   : > { %v700_v16 = vpop.f32.mrf.mxu0 }
 0x1b0   : > { %v701_v39 = vadd.f32 %v700_v16, %v551_v35 }
 0x1b2   : > { %v730_v44 = vadd.f32 %v729_v0, %v701_v39 }
 0x1b4   : > { %v734_v2 = vpop.f32.mrf.mxu1  ;;  %v757_v47 = vmul.f32 %v730_v44, %v730_v44 }
 0x1b5   : > { %v705_v3 = vpop.f32.mrf.mxu3 }
 0x1b6   : > { %v706_v32 = vadd.f32 %v705_v3, %v561_v26 }
 0x1b7   : > { %v702_v31 = vpop.f32.mrf.mxu0 }
 0x1b8   : > { %v703_v36 = vadd.f32 %v702_v31, %v556_v30  ;;  %v1621_v40 = vadd.f32 %v734_v2, %v706_v32 }
 0x1ba   : > { %v1625_v42 = vadd.f32 %v731_v1, %v703_v36  ;;  %v759_v45 = vmul.f32 %v1621_v40, %v1621_v40  ;;  %v786_v1 = vpop.permute.xlu2 %785 }
 0x1bc   : > { %v736_v4 = vpop.f32.mrf.mxu1  ;;  %v758_v46 = vmul.f32 %v1625_v42, %v1625_v42 }
 0x1bd   : > { %v707_v5 = vpop.f32.mrf.mxu3 }
 0x1be   : > { %v708_v27 = vadd.f32 %v707_v5, %v566_v17 }
 0x1c0   : > { %v1617_v37 = vadd.f32 %v736_v4, %v708_v27 }
 0x1c2   : > { %v760_v43 = vmul.f32 %v1617_v37, %v1617_v37 }
 0x1c4   : > { %v739_v6 = vpop.f32.mrf.mxu1 }
 0x1c5   : > { %v710_v7 = vpop.f32.mrf.mxu3 }
 0x1c6   : > { %v711_v23 = vadd.f32 %v710_v7, %v571_v15 }
 0x1c8   : > { %v1613_v33 = vadd.f32 %v739_v6, %v711_v23 }
 0x1ca   : > { %v761_v41 = vmul.f32 %v1613_v33, %v1613_v33 }
 0x1cc   : > { %v741_v8 = vpop.f32.mrf.mxu1 }
 0x1cd   : > { %v712_v9 = vpop.f32.mrf.mxu3 }
 0x1ce   : > { %v713_v20 = vadd.f32 %v712_v9, %v576_v11 }
 0x1d0   : > { %v1609_v28 = vadd.f32 %v741_v8, %v713_v20 }
 0x1d2   : > { %v762_v38 = vmul.f32 %v1609_v28, %v1609_v28 }
 0x1d4   : > { %v744_v12 = vpop.f32.mrf.mxu1 }
 0x1d5   : > { %v715_v13 = vpop.f32.mrf.mxu3 }
 0x1d6   : > { %v716_v18 = vadd.f32 %v715_v13, %v581_v10  ;;  %v791_v13 = vpop.permute.xlu0 %790 }
 0x1d8   : > { %v1605_v24 = vadd.f32 %v744_v12, %v716_v18 }
 0x1da   : > { %v763_v34 = vmul.f32 %v1605_v24, %v1605_v24 }
 0x1dc   : > { %v746_v22 = vpop.f32.mrf.mxu1 }
 0x1dd   : > { %v717_v19 = vpop.f32.mrf.mxu3 }
 0x1de   : > { %v718_v21 = vadd.f32 %v717_v19, %v586_v14 }
 0x1e0   : > { %v1607_v25 = vadd.f32 %v746_v22, %v718_v21 }
 0x1e2   : > { %v764_v29 = vmul.f32 %v1607_v25, %v1607_v25 }
 0x1e4   : > { %846 = vmatpush.msrb.mxu0 %v764_v29  ;;  %1232 = vmatpush.msra.mxu2 %v764_v29  ;;  %v796_v29 = vpop.permute.xlu1 %795 }
 0x1e6   : > { %847 = vmatpush.msrb.mxu0 %v763_v34  ;;  %1233 = vmatpush.msra.mxu2 %v763_v34 }
 0x1e8   : > { %848 = vmatpush.msrb.mxu0 %v762_v38  ;;  %1234 = vmatpush.msra.mxu2 %v762_v38 }
 0x1ea   : > { %849 = vmatpush.msrb.mxu0 %v761_v41  ;;  %1235 = vmatpush.msra.mxu2 %v761_v41 }
 0x1ec   : > { %850 = vmatpush.msrb.mxu0 %v760_v43  ;;  %1236 = vmatpush.msra.mxu2 %v760_v43 }
 0x1ee   : > { %851 = vmatpush.msrb.mxu0 %v759_v45  ;;  %1237 = vmatpush.msra.mxu2 %v759_v45 }
 0x1f0   : > { %852 = vmatpush.msrb.mxu0 %v758_v46  ;;  %1238 = vmatpush.msra.mxu2 %v758_v46 }
 0x1f2   : > { %853 = vmatpush.msrb.mxu0 %v757_v47  ;;  %1239 = vmatpush.msra.mxu2 %v757_v47 }
 0x1f3   : > { %1170 = vmatmul.msk.f32.vlgmr.msrb.gmra.mxu0 %vm813_vm2, %v749_v48  ;;  %1171 = vmatmul.msk.f32.vlgmr.msra.gmra.mxu2 %vm813_vm2, %v750_v49 }
 0x1fb   : > { %1172 = vmatmul.msk.f32.gmra.mxu2 %vm813_vm2, %v751_v50 }
 0x203   : > { %1173 = vmatmul.msk.f32.gmra.mxu2 %vm813_vm2, %v752_v51 }
 0x20b   : > { %1174 = vmatmul.msk.f32.gmra.mxu2 %vm813_vm2, %v753_v52 }
 0x213   : > { %1175 = vmatmul.msk.f32.gmra.mxu2 %vm813_vm2, %v754_v53 }
 0x21b   : > { %1176 = vmatmul.msk.f32.gmra.mxu2 %vm813_vm2, %v755_v54 }
 0x223   : > { %1177 = vmatmul.msk.f32.gmra.mxu2 %vm813_vm2, %v756_v55  ;;  %v806_v55 = vpop.permute.xlu0 %805 }
 0x270   : > { %v855_v57 = vpop.f32.mrf.mxu0 }
 0x271   : > { %v856_v58 = vadd.f32 %v855_v57, %v776_v56 }
 0x273   : > { %1298 = vrsqrt.f32 %v856_v58  ;;  %vm885_vm4 = vweird.f32 %v856_v58 }
 0x276   : > { %v858_v60 = vpop.f32.mrf.mxu2 }
 0x277   : > { %v859_v61 = vadd.f32 %v858_v60, %v781_v59 }
 0x279   : > { %v1299_v62 = vpop.eup %1298  ;;  %1300 = vrsqrt.f32 %v859_v61  ;;  %vm895_vm7 = vweird.f32 %v859_v61 }
 0x27a   : > { %v880_v63 = vmul.f32 %v1299_v62, %v856_v58  ;;  %vm886_vm3 = vweird.f32 %v1299_v62 }
 0x27b   : > { %vm887_vm5 = vmor %vm885_vm4, %vm886_vm3 }
 0x27c   : > { %v881_v0 = vmul.f32 %v1299_v62, %v880_v63 }
 0x27e   : > { %v882_v2 = vmul.f32 0.5, %v881_v0  ;;  %v861_v3 = vpop.f32.mrf.mxu2 }
 0x27f   : > { %v1301_v4 = vpop.eup %1300  ;;  %v862_v5 = vadd.f32 %v861_v3, %v786_v1 }
 0x280   : > { %v883_v6 = vsub.f32 1.5, %v882_v2  ;;  %v890_v7 = vmul.f32 %v1301_v4, %v859_v61  ;;  %vm896_vm6 = vweird.f32 %v1301_v4  ;;  %v811_v2 = vpop.permute.xlu1 %810 }
 0x281   : > { %1302 = vrsqrt.f32 %v862_v5  ;;  %vm897_vm8 = vmor %vm895_vm7, %vm896_vm6  ;;  %vm905_vm10 = vweird.f32 %v862_v5 }
 0x282   : > { %v884_v8 = vmul.f32 %v1299_v62, %v883_v6  ;;  %v891_v9 = vmul.f32 %v1301_v4, %v890_v7 }
 0x284   : > { %v888_v10 = vsel %vm887_vm5, %v1299_v62, %v884_v8  ;;  %v892_v11 = vmul.f32 0.5, %v891_v9 }
 0x285   : > { %v959_v12 = vmul.f32 %v888_v10, %v730_v44  ;;  %v801_v44 = vpop.permute.xlu2 %800 }
 0x286   : > { %v893_v14 = vsub.f32 1.5, %v892_v11  ;;  %v864_v15 = vpop.f32.mrf.mxu2 }
 0x287   : > { %v1303_v16 = vpop.eup %1302  ;;  %v967_v17 = vpack.c.bf16 %v959_v12, %v959_v12  ;;  %v865_v18 = vadd.f32 %v864_v15, %v791_v13 }
 0x288   : > { %v894_v19 = vmul.f32 %v1301_v4, %v893_v14  ;;  %v900_v20 = vmul.f32 %v1303_v16, %v862_v5  ;;  %vm906_vm9 = vweird.f32 %v1303_v16 }
 0x289   : > { %975 = vst.msk [vmem:[%s1645_s13] sm:$0xf] %vm335_vm0, %v967_v17  ;;  %1304 = vrsqrt.f32 %v865_v18  ;;  %vm907_vm11 = vmor %vm905_vm10, %vm906_vm9  ;;  %vm915_vm13 = vweird.f32 %v865_v18 }
 0x28a   : > { %v898_v21 = vsel %vm897_vm8, %v1301_v4, %v894_v19  ;;  %v901_v22 = vmul.f32 %v1303_v16, %v900_v20 }
 0x28b   : > { %v960_v23 = vmul.f32 %v898_v21, %v1625_v42 }
 0x28c   : > { %v902_v26 = vmul.f32 0.5, %v901_v22 }
 0x28d   : > { %v968_v27 = vpack.c.bf16 %v960_v23, %v960_v23 }
 0x28e   : > { %v903_v30 = vsub.f32 1.5, %v902_v26  ;;  %v867_v31 = vpop.f32.mrf.mxu2 }
 0x28f   : > { %v1305_v32 = vpop.eup %1304  ;;  %976 = vst.msk [vmem:[%s1645_s13 + $0x4] sm:$0xf] %vm335_vm0, %v968_v27  ;;  %v868_v34 = vadd.f32 %v867_v31, %v796_v29 }
 0x290   : > { %v904_v35 = vmul.f32 %v1303_v16, %v903_v30  ;;  %v910_v36 = vmul.f32 %v1305_v32, %v865_v18  ;;  %vm916_vm12 = vweird.f32 %v1305_v32 }
 0x291   : > { %1306 = vrsqrt.f32 %v868_v34  ;;  %vm917_vm14 = vmor %vm915_vm13, %vm916_vm12  ;;  %vm925_vm1 = vweird.f32 %v868_v34 }
 0x292   : > { %v908_v38 = vsel %vm907_vm11, %v1303_v16, %v904_v35  ;;  %v911_v39 = vmul.f32 %v1305_v32, %v910_v36 }
 0x293   : > { %v961_v41 = vmul.f32 %v908_v38, %v1621_v40 }
 0x294   : > { %v912_v42 = vmul.f32 0.5, %v911_v39 }
 0x295   : > { %v969_v43 = vpack.c.bf16 %v961_v41, %v961_v41 }
 0x296   : > { %v913_v45 = vsub.f32 1.5, %v912_v42  ;;  %v870_v46 = vpop.f32.mrf.mxu2 }
 0x297   : > { %v1307_v47 = vpop.eup %1306  ;;  %977 = vst.msk [vmem:[%s1645_s13 + $0x8] sm:$0xf] %vm335_vm0, %v969_v43  ;;  %v871_v48 = vadd.f32 %v870_v46, %v801_v44 }
 0x298   : > { %v914_v49 = vmul.f32 %v1305_v32, %v913_v45  ;;  %v920_v50 = vmul.f32 %v1307_v47, %v868_v34  ;;  %vm926_vm15 = vweird.f32 %v1307_v47 }
 0x299   : > { %1308 = vrsqrt.f32 %v871_v48  ;;  %vm927_vm2 = vmor %vm925_vm1, %vm926_vm15  ;;  %vm935_vm4 = vweird.f32 %v871_v48 }
 0x29a   : > { %v918_v51 = vsel %vm917_vm14, %v1305_v32, %v914_v49  ;;  %v921_v52 = vmul.f32 %v1307_v47, %v920_v50 }
 0x29b   : > { %v962_v40 = vmul.f32 %v918_v51, %v1617_v37 }
 0x29c   : > { %v922_v53 = vmul.f32 0.5, %v921_v52 }
 0x29d   : > { %v970_v54 = vpack.c.bf16 %v962_v40, %v962_v40 }
 0x29e   : > { %v923_v56 = vsub.f32 1.5, %v922_v53  ;;  %v873_v57 = vpop.f32.mrf.mxu2 }
 0x29f   : > { %v1309_v58 = vpop.eup %1308  ;;  %978 = vst.msk [vmem:[%s1645_s13 + $0xc] sm:$0xf] %vm335_vm0, %v970_v54  ;;  %v874_v59 = vadd.f32 %v873_v57, %v806_v55 }
 0x2a0   : > { %v924_v60 = vmul.f32 %v1307_v47, %v923_v56  ;;  %v930_v61 = vmul.f32 %v1309_v58, %v871_v48  ;;  %vm936_vm3 = vweird.f32 %v1309_v58 }
 0x2a1   : > { %1310 = vrsqrt.f32 %v874_v59  ;;  %vm937_vm5 = vmor %vm935_vm4, %vm936_vm3  ;;  %vm945_vm7 = vweird.f32 %v874_v59 }
 0x2a2   : > { %v928_v62 = vsel %vm927_vm2, %v1307_v47, %v924_v60  ;;  %v931_v63 = vmul.f32 %v1309_v58, %v930_v61 }
 0x2a3   : > { %v963_v37 = vmul.f32 %v928_v62, %v1613_v33 }
 0x2a4   : > { %v932_v0 = vmul.f32 0.5, %v931_v63 }
 0x2a5   : > { %v971_v1 = vpack.c.bf16 %v963_v37, %v963_v37 }
 0x2a6   : > { %v933_v3 = vsub.f32 1.5, %v932_v0  ;;  %v876_v4 = vpop.f32.mrf.mxu2 }
 0x2a7   : > { %v1311_v5 = vpop.eup %1310  ;;  %979 = vst.msk [vmem:[%s1645_s13 + $0x10] sm:$0xf] %vm335_vm0, %v971_v1  ;;  %v877_v6 = vadd.f32 %v876_v4, %v811_v2 }
 0x2a8   : > { %v934_v7 = vmul.f32 %v1309_v58, %v933_v3  ;;  %v940_v8 = vmul.f32 %v1311_v5, %v874_v59  ;;  %vm946_vm6 = vweird.f32 %v1311_v5 }
 0x2a9   : > { %1312 = vrsqrt.f32 %v877_v6  ;;  %vm947_vm8 = vmor %vm945_vm7, %vm946_vm6  ;;  %vm955_vm10 = vweird.f32 %v877_v6 }
 0x2aa   : > { %v938_v9 = vsel %vm937_vm5, %v1309_v58, %v934_v7  ;;  %v941_v10 = vmul.f32 %v1311_v5, %v940_v8 }
 0x2ab   : > { %v964_v33 = vmul.f32 %v938_v9, %v1609_v28 }
 0x2ac   : > { %v942_v11 = vmul.f32 0.5, %v941_v10 }
 0x2ad   : > { %v972_v12 = vpack.c.bf16 %v964_v33, %v964_v33 }
 0x2ae   : > { %v943_v13 = vsub.f32 1.5, %v942_v11 }
 0x2af   : > { %v1313_v14 = vpop.eup %1312  ;;  %980 = vst.msk [vmem:[%s1645_s13 + $0x14] sm:$0xf] %vm335_vm0, %v972_v12 }
 0x2b0   : > { %v944_v15 = vmul.f32 %v1311_v5, %v943_v13  ;;  %v950_v16 = vmul.f32 %v1313_v14, %v877_v6  ;;  %vm956_vm9 = vweird.f32 %v1313_v14 }
 0x2b1   : > { %vm957_vm11 = vmor %vm955_vm10, %vm956_vm9 }
 0x2b2   : > { %v948_v17 = vsel %vm947_vm8, %v1311_v5, %v944_v15  ;;  %v951_v18 = vmul.f32 %v1313_v14, %v950_v16 }
 0x2b3   : > { %v965_v19 = vmul.f32 %v948_v17, %v1605_v24 }
 0x2b4   : > { %v952_v20 = vmul.f32 0.5, %v951_v18 }
 0x2b5   : > { %v973_v21 = vpack.c.bf16 %v965_v19, %v965_v19 }
 0x2b6   : > { %v953_v28 = vsub.f32 1.5, %v952_v20 }
 0x2b7   : > { %981 = vst.msk [vmem:[%s1645_s13 + $0x18] sm:$0xf] %vm335_vm0, %v973_v21 }
 0x2b8   : > { %v954_v22 = vmul.f32 %v1313_v14, %v953_v28 }
 0x2ba   : > { %v958_v23 = vsel %vm957_vm11, %v1313_v14, %v954_v22 }
 0x2bb   : > { %v966_v26 = vmul.f32 %v958_v23, %v1607_v25 }
 0x2bd   : > { %v974_v27 = vpack.c.bf16 %v966_v26, %v966_v26 }
 0x2bf   : > { %982 = vst.msk [vmem:[%s1645_s13 + $0x1c] sm:$0xf] %vm335_vm0, %v974_v27 }
 0x2c0 PF: > { %s18_s21 = sadd.s32 1, %s1418_s21  }
 0x2c1   : > { %p15_p7 = scmp.ge.s32.totalorder %s18_s21, 4  }
 0x2c3   :  { %17 = sbr.rel (!%p15_p7) target bundleno = 2 (0x2), region = 90 }
 0x2c8   :  { %1004 = vsyncpa [#allocation4], 1 }
 0x2c9   :  { %1006 = vsyncpa [#allocation4 + $0x1], 1 }
 0x2ca   :  { %1007 = vsyncpa [#allocation6], 1 }

// kernel: _lambda_.6
= control target key start
LH: loop header
LB: loop body
LE: loop exit
PB: predicated region body
PF: predicated region fallthrough
CT: control target
= control target key end

     0   :  { %11 = vsyncpa [#allocation4], 0  ;;  %s2508_s0 = inlined_call_operand.vmem [shape: bf16[2,16,290], index: 0, kind: input, shape index: {}]   ;;  %s2509_s1 = inlined_call_operand.hbm [shape: bf16[64,144], index: 1, kind: input, shape index: {}]   ;;  %s2510_s2 = inlined_call_operand.vmem [shape: f32[2,64,1], index: 2, kind: input, shape index: {}]   ;;  %s2511_s3 = inlined_call_operand.hbm [shape: bf16[3,256], index: 3, kind: input, shape index: {}]   ;;  %s2512_s4 = inlined_call_operand.hbm [shape: f32[64,64], index: 4, kind: input, shape index: {}]   ;;  %s2513_s5 = inlined_call_operand.vmem [shape: f32[64,1], index: 5, kind: input, shape index: {}]   ;;  %s2514_s6 = inlined_call_operand.vmem [shape: bf16[2,64,256], index: 6, kind: output, shape index: {}]  }
   0x1   :  { %12 = vsyncpa [#allocation6], 0  ;;  %s2030_s21 = smov 0  }
   0x2 LB: > { %s211_s24 = sshll.u32 %s2511_s3, 4  ;;  %s2039_s25 = sadd.s32 4294967295, %s1974_s21   ;;  %s1974_s21 = sphi %s2030_s21, %s18_s21   ;;  %s212_s24 = int_to_ptr.hbm [resolvable:$true] %s211_s24 }
   0x3   : > { %p1580_p0 = scmp.ge.s32.totalorder %s1974_s21, 1  ;;  %p185_p1 = scmp.lt.s32.totalorder %s1974_s21, 3 }
   0x4   : > { %p1777_p2 = scmp.eq.s32.totalorder %s2039_s25, 0  ;;  %s1976_s27 = smov [#allocation5]  }
   0x5   : > { %p2044_p3 = pnand %p1580_p0, %p185_p1  ;;  %s213_s28 = sshll.u32 %s1976_s27, 4  ;;  %s214_s28 = int_to_ptr.vmem [resolvable:$true] %s213_s28 }
   0x6   : > { %s196_s7 = sshll.u32 %s2509_s1, 4  ;;  %s1977_s8 = smov [#allocation3]   ;;  %s197_s7 = int_to_ptr.hbm [resolvable:$true] %s196_s7 }
   0x7   : > { %p1767_p4 = pneg %p2044_p3  ;;  %s198_s9 = sshll.u32 %s1977_s8, 4  ;;  %s199_s9 = int_to_ptr.vmem [resolvable:$true] %s198_s9 }
   0x8   : > { %s222_s12 = sshll.u32 %s2512_s4, 4  ;;  %s1978_s13 = smov 128   ;;  %s223_s12 = int_to_ptr.hbm [resolvable:$true] %s222_s12 }
   0x9   : > { %p1768_p5 = pnand %p1777_p2, %p1767_p4  ;;  %s1979_s14 = smov 8  }
   0xa   : > { %s1980_s15 = smov [#allocation7]   ;;  %259 = sbr.rel (%p2044_p3) target bundleno = 780 (0x30c), region = 44 }
   0xb   : > { %1773 = dma.hbm_to_vmem [thread:$0]  (!%p1768_p5), %s212_s24, 64, %s214_s28, [#allocation6]  }
   0xc   : > { %1770 = dma.hbm_to_vmem [thread:$0]  (!%p1768_p5), %s197_s7, 1024, %s199_s9, [#allocation4], %s1978_s13, %s1978_s13, %s1979_s14  }
   0xd   : > { %s224_s16 = sshll.u32 %s1980_s15, 4  ;;  %s225_s16 = int_to_ptr.vmem [resolvable:$true] %s224_s16 }
   0xe   : > { %1776 = dma.hbm_to_vmem [thread:$0]  (!%p1768_p5), %s223_s12, 1024, %s225_s16, [#allocation6], %s1978_s13, %s1978_s13, %s1979_s14  }
   0xf   : > { %1965 = dma.done.wait (%p1777_p2), [#allocation4], 1024  }
  0x10   : > { %1967 = vsyncadd (%p1777_p2), [#allocation4], 4294966272 }
  0x11   : > { %1969 = dma.done.wait (%p1777_p2), [#allocation6], 1088  }
  0x12   : > { %1971 = vsyncadd (%p1777_p2), [#allocation6], 4294966208  ;;  %p305_p6 = scmp.lt.s32.totalorder %s2039_s25, 1  ;;  %v323_v2 = vld [vmem:[#allocation5] sm:$0x5]  ;;  %s1981_s22 = smov 95  }
  0x13   : > { %325 = vst [vmem:[#allocation1] ss:$4 sm:$0xff] %v323_v2  ;;  %v382_v4 = vld [vmem:[#allocation5] sm:$0xa]  ;;  %v451_v8 = vld [vmem:[#allocation5] sm:$0x5] }
  0x14   : > { %s2525_s25 = smov (!%p305_p6, %s2039_s25), 1  ;;  %s1982_s23 = smov 111   ;;  %v549_v17 = vld [vmem:[#allocation5] sm:$0xa]  ;;  %v618_v27 = vld [vmem:[#allocation5] sm:$0x5] }
  0x15   : > { %s1754_s17 = smul.u32 24, %s2525_s25  ;;  %s1983_s24 = smov 2   ;;  %v716_v38 = vld [vmem:[#allocation5] sm:$0xa]  ;;  %vm368_vm0 = vcmask 1043456   ;;  %vm704_vm1 = vcmask 777216  }
  0x16   : > { %s1984_s26 = smov 16   ;;  %s1985_s27 = smov 18   ;;  %vm476_vm2 = vcmask 130048   ;;  %vm574_vm3 = vcmask 146432   ;;  %vm643_vm4 = vcmask 261120   ;;  %vm537_vm5 = vcmask 908288  }
  0x17   : > { %s2076_s20 = scalar_lea.vmem %s2508_s0, %s1754_s17  ;;  %s1986_s28 = smov 32   ;;  %vm407_vm6 = vcmask 15360   ;;  %vm741_vm7 = vcmask 277504   ;;  %vm508_vm8 = vcmask 916480   ;;  %vm606_vm9 = vcmask 900096  }
  0x18   : > { %v686_v0 = vld [vmem:[%s2076_s20 + $0x14] sm:$0xf]  ;;  %v2080_v1 = vld [vmem:[%s2076_s20 + $0xc] sm:$0xff]  ;;  %v2084_v3 = vld [vmem:[%s2076_s20] sm:$0xff]  ;;  %s1987_s29 = smov 34   ;;  %s1988_s30 = smov 112  }
  0x19   : > { %697 = vrot.lane.b32.xlu1 %v686_v0, %s1981_s22  ;;  %695 = vrot.lane.b32.xlu0 %v2080_v1, %s1981_s22  ;;  %v684_v5 = vld [vmem:[%s2076_s20 + $0x8] sm:$0xf]  ;;  %v519_v33 = vld [vmem:[%s2076_s20 + $0x14] sm:$0xf]  ;;  %s1989_s7 = smov 110   ;;  %s1990_s8 = smov 96  }
  0x1a   : > { %691 = vrot.lane.b32.xlu2 %v2084_v3, %s1981_s22  ;;  %v2088_v6 = vld.sshfl [vmem:[#allocation1] sm:$0xff pattern:$0x73625140]  ;;  %v2090_v7 = vld.sshfl [vmem:[#allocation1 + $0x8] sm:$0xff pattern:$0x73625140] }
  0x1b   : > { %384 = vst [vmem:[#allocation1] ss:$4 sm:$0xff] %v382_v4  ;;  %v517_v55 = vld [vmem:[%s2076_s20 + $0x8] sm:$0xf]  ;;  %s1991_s9 = smov 126   ;;  %s1992_s10 = smov 127  }
  0x1c   : > { %s1993_s11 = smov 94   ;;  %vm675_vm10 = vcmask 785408   ;;  %vm439_vm11 = vcmask 1031168   ;;  %s1724_s12 = sshll.u32 %s2525_s25, 6  ;;  %vm370_vm12 = vcmask 1039360   ;;  %vm773_vm13 = vcmask 769024  }
  0x1d   : > { %s2194_s15 = scalar_lea.vmem %s2510_s2, %s1724_s12  ;;  %vm1181_vm14 = vcmask 523264   ;;  %s2377_s13 = scalar_lea.vmem %s2514_s6, %s1724_s12 }
  0x22   : > { %693 = vrot.lane.b32.xlu2 %v684_v5, %s1981_s22  ;;  %v385_v9 = vld.sshfl [vmem:[#allocation1] sm:$0xff pattern:$0x73625140]  ;;  %v386_v10 = vld.sshfl [vmem:[#allocation1 + $0x8] sm:$0xff pattern:$0x73625140] }
  0x23   : > { %v387_v11 = vpack.i.b16 %v385_v9, %v385_v9  ;;  %v390_v12 = vpack.i.b16 %v386_v10, %v386_v10  ;;  %453 = vst [vmem:[#allocation1] ss:$4 sm:$0xff] %v451_v8 }
  0x25   : > { %v389_v13 = vperm.slane %v387_v11, 1  ;;  %v392_v14 = vperm.slane %v390_v12, 1 }
  0x27   : > { %v399_v15 = vunpack.c.l.bf16 %v389_v13  ;;  %v400_v16 = vunpack.c.l.bf16 %v392_v14 }
  0x29   : > { %v1810_v18 = vpack.i.bf16 %v400_v16, %v399_v15 }
  0x2a   : > { %524 = vrot.lane.b32.xlu2 %v2084_v3, %s1982_s23  ;;  %v454_v19 = vld.sshfl [vmem:[#allocation1] sm:$0xff pattern:$0x73625140]  ;;  %v455_v20 = vld.sshfl [vmem:[#allocation1 + $0x8] sm:$0xff pattern:$0x73625140] }
  0x2b   : > { %1811 = vrot.lane.b32.xlu1 %v1810_v18, %s1983_s24  ;;  %v456_v21 = vpack.i.b16 %v454_v19, %v454_v19  ;;  %v459_v22 = vpack.i.b16 %v455_v20, %v455_v20  ;;  %551 = vst [vmem:[#allocation1] ss:$4 sm:$0xff] %v549_v17  ;;  %v448_v18 = vld [vmem:[%s2076_s20 + $0x8] sm:$0xf] }
  0x2c   : > { %v464_v19 = vunpack.c.l.bf16 %v448_v18 }
  0x2d   : > { %v458_v23 = vperm.slane %v456_v21, 0  ;;  %v461_v24 = vperm.slane %v459_v22, 0 }
  0x2f   : > { %v468_v25 = vunpack.c.l.bf16 %v458_v23  ;;  %v469_v26 = vunpack.c.l.bf16 %v461_v24  ;;  %v2108_v23 = vunpack.c.l.bf16 %v2080_v1  ;;  %v2111_v24 = vunpack.c.l.bf16 %v2084_v3 }
  0x31   : > { %v1815_v28 = vpack.i.bf16 %v469_v26, %v468_v25  ;;  %v2114_v25 = vunpack.c.h.bf16 %v2080_v1  ;;  %v2117_v26 = vunpack.c.h.bf16 %v2084_v3 }
  0x32   : > { %v552_v29 = vld.sshfl [vmem:[#allocation1] sm:$0xff pattern:$0x73625140]  ;;  %v553_v30 = vld.sshfl [vmem:[#allocation1 + $0x8] sm:$0xff pattern:$0x73625140]  ;;  %530 = vrot.lane.b32.xlu2 %v519_v33, %s1982_s23 }
  0x33   : > { %1816 = vrot.lane.b32.xlu1 %v1815_v28, %s1984_s26  ;;  %v554_v31 = vpack.i.b16 %v552_v29, %v552_v29  ;;  %v557_v32 = vpack.i.b16 %v553_v30, %v553_v30  ;;  %620 = vst [vmem:[#allocation1] ss:$4 sm:$0xff] %v618_v27  ;;  %v548_v33 = vld [vmem:[%s2076_s20 + $0x14] sm:$0xf] }
  0x35   : > { %v556_v34 = vperm.slane %v554_v31, 1  ;;  %v559_v35 = vperm.slane %v557_v32, 1 }
  0x37   : > { %v566_v36 = vunpack.c.l.bf16 %v556_v34  ;;  %v567_v37 = vunpack.c.l.bf16 %v559_v35  ;;  %v546_v34 = vld [vmem:[%s2076_s20 + $0x8] sm:$0xf] }
  0x39   : > { %v1820_v39 = vpack.i.bf16 %v567_v37, %v566_v36 }
  0x3a   : > { %v621_v40 = vld.sshfl [vmem:[#allocation1] sm:$0xff pattern:$0x73625140]  ;;  %v622_v41 = vld.sshfl [vmem:[#allocation1 + $0x8] sm:$0xff pattern:$0x73625140] }
  0x3b   : > { %1821 = vrot.lane.b32.xlu0 %v1820_v39, %s1985_s27  ;;  %v623_v42 = vpack.i.b16 %v621_v40, %v621_v40  ;;  %v626_v43 = vpack.i.b16 %v622_v41, %v622_v41  ;;  %718 = vst [vmem:[#allocation1] ss:$4 sm:$0xff] %v716_v38  ;;  %528 = vrot.lane.b32.xlu1 %v2080_v1, %s1982_s23  ;;  %v565_v38 = vunpack.c.l.bf16 %v548_v33  ;;  %v562_v39 = vunpack.c.l.bf16 %v546_v34 }
  0x3d   : > { %v625_v44 = vperm.slane %v623_v42, 0  ;;  %v628_v45 = vperm.slane %v626_v43, 0 }
  0x3f   : > { %v635_v46 = vunpack.c.l.bf16 %v625_v44  ;;  %v636_v47 = vunpack.c.l.bf16 %v628_v45 }
  0x41   : > { %v1825_v48 = vpack.i.bf16 %v636_v47, %v635_v46 }
  0x42   : > { %v719_v49 = vld.sshfl [vmem:[#allocation1] sm:$0xff pattern:$0x73625140]  ;;  %v720_v50 = vld.sshfl [vmem:[#allocation1 + $0x8] sm:$0xff pattern:$0x73625140] }
  0x43   : > { %1826 = vrot.lane.b32.xlu0 %v1825_v48, %s1986_s28  ;;  %v721_v51 = vpack.i.b16 %v719_v49, %v719_v49  ;;  %v724_v52 = vpack.i.b16 %v720_v50, %v720_v50  ;;  %v617_v49 = vld [vmem:[%s2076_s20 + $0x14] sm:$0xf]  ;;  %v615_v50 = vld [vmem:[%s2076_s20 + $0x8] sm:$0xf] }
  0x45   : > { %v723_v53 = vperm.slane %v721_v51, 1  ;;  %v726_v54 = vperm.slane %v724_v52, 1 }
  0x47   : > { %v733_v56 = vunpack.c.l.bf16 %v723_v53  ;;  %v734_v57 = vunpack.c.l.bf16 %v726_v54  ;;  %v634_v54 = vunpack.c.l.bf16 %v617_v49 }
  0x49   : > { %v1830_v58 = vpack.i.bf16 %v734_v57, %v733_v56 }
  0x4b   : > { %526 = vrot.lane.b32.xlu0 %v517_v55, %s1982_s23  ;;  %v631_v55 = vunpack.c.l.bf16 %v615_v50 }
  0x53   : > { %1831 = vrot.lane.b32.xlu0 %v1830_v58, %s1987_s29 }
  0x74   : > { %v692_v59 = vpop.permute.xlu2 %691 }
  0x75   : > { %v699_v60 = vrot.slane %v692_v59, 4 }
  0x7c   : > { %v694_v61 = vpop.permute.xlu2 %693 }
  0x7d   : > { %v700_v62 = vrot.slane %v694_v61, 4 }
  0x7f   : > { %v703_v63 = vsel %vm368_vm0, %v699_v60, %v700_v62 }
  0x80   : > { %v705_v0 = vsel %vm704_vm1, %v692_v59, %v703_v63 }
  0x81   : > { %710 = vst [vmem:[#allocation2 + $0x70] sm:$0xff] %v705_v0 }
  0x84   : > { %v525_v41 = vpop.permute.xlu2 %524 }
  0x85   : > { %v532_v18 = vrot.slane %v525_v41, 4 }
  0x88   : > { %v1684_v11 = vld [vmem:[#allocation2 + $0x70] sm:$0xf]  ;;  %v1748_v12 = vld [vmem:[#allocation2 + $0x74] sm:$0xf] }
  0x8b   : > { %v698_v2 = vpop.permute.xlu1 %697  ;;  %v696_v4 = vpop.permute.xlu0 %695 }
  0x8c   : > { %v702_v5 = vrot.slane %v698_v2, 4  ;;  %v701_v8 = vrot.slane %v696_v4, 4  ;;  %v531_v58 = vpop.permute.xlu2 %530 }
  0x8d   : > { %v535_v62 = vrot.slane %v531_v58, 4 }
  0x8e   : > { %v706_v9 = vsel %vm368_vm0, %v701_v8, %v702_v5  ;;  %v450_v5 = vld [vmem:[%s2076_s20 + $0x14] sm:$0xf] }
  0x8f   : > { %v707_v10 = vsel %vm704_vm1, %v696_v4, %v706_v9 }
  0x90   : > { %711 = vst [vmem:[#allocation2 + $0x78] sm:$0xff] %v707_v10 }
  0x97   : > { %v1749_v13 = vld [vmem:[#allocation2 + $0x74] sm:$0xf0]  ;;  %v1686_v14 = vld [vmem:[#allocation2 + $0x78] sm:$0xf0] }
  0x98   : > { %v1685_v15 = vor.u32 %v1749_v13, %v1684_v11  ;;  %v1689_v16 = vor.u32 %v1748_v12, %v1686_v14  ;;  %v467_v14 = vunpack.c.l.bf16 %v450_v5 }
  0x9a   : > { %993 = vmatpush.bf16.msra.mxu0 %v1685_v15  ;;  %1051 = vmatpush.bf16.msra.mxu2 %v1689_v16 }
  0x9d   : > { %v2102_v17 = vpop.permute.xlu1 %1811 }
  0xa5   : > { %v1817_v20 = vpop.permute.xlu1 %1816 }
  0xa6   : > { %v2105_v21 = vunpack.i.h.bf16 %v1817_v20  ;;  %v1818_v22 = vunpack.i.l.bf16 %v1817_v20  ;;  %v1814_v20 = vunpack.i.h.bf16 %v2102_v17 }
  0xa8   : > { %v477_v27 = vsel %vm476_vm2, %v1818_v22, %v2105_v21  ;;  %v483_v28 = vmul.f32 %v2105_v21, %v464_v19  ;;  %v484_v29 = vmul.f32 %v1818_v22, %v2108_v23  ;;  %v481_v30 = vmul.f32 %v1818_v22, %v2111_v24 }
  0xa9   : > { %v485_v31 = vmul.f32 %v477_v27, %v2114_v25  ;;  %v482_v32 = vmul.f32 %v477_v27, %v2117_v26  ;;  %v1813_v27 = vunpack.i.l.bf16 %v2102_v17 }
  0xaa   : > { %v488_v35 = vpack.c.bf16 %v483_v28, %v483_v28 }
  0xab   : > { %v489_v36 = vpack.c.bf16 %v485_v31, %v484_v29  ;;  %v487_v37 = vpack.c.bf16 %v482_v32, %v481_v30  ;;  %v486_v30 = vmul.f32 %v2105_v21, %v467_v14  ;;  %v379_v32 = vld [vmem:[%s2076_s20 + $0x8] sm:$0xf]  ;;  %v412_v17 = vmul.f32 %v1813_v27, %v2111_v24 }
  0xac   : > { %497 = vrot.lane.b32.xlu1 %v488_v35, %s1988_s30  ;;  %v408_v35 = vsel %vm407_vm6, %v1813_v27, %v1814_v20 }
  0xad   : > { %v1822_v40 = vpop.permute.xlu0 %1821  ;;  %499 = vrot.lane.b32.xlu2 %v489_v36, %s1988_s30  ;;  %495 = vrot.lane.b32.xlu0 %v487_v37, %s1988_s30  ;;  %v529_v63 = vpop.permute.xlu1 %528  ;;  %v490_v37 = vpack.c.bf16 %v486_v30, %v486_v30  ;;  %v413_v21 = vmul.f32 %v2117_v26, %v408_v35  ;;  %v328_v30 = vpack.i.b16 %v2088_v6, %v2088_v6 }
  0xae   : > { %v1824_v42 = vunpack.i.h.bf16 %v1822_v40  ;;  %v1823_v43 = vunpack.i.l.bf16 %v1822_v40  ;;  %v534_v0 = vrot.slane %v529_v63, 4  ;;  %v415_v40 = vmul.f32 %v1813_v27, %v2108_v23 }
  0xb0   : > { %v575_v44 = vsel %vm574_vm3, %v1823_v43, %v1824_v42  ;;  %v584_v45 = vmul.f32 %v1824_v42, %v565_v38  ;;  %v581_v46 = vmul.f32 %v1824_v42, %v562_v39  ;;  %v582_v47 = vmul.f32 %v1823_v43, %v2108_v23 }
  0xb1   : > { %v583_v48 = vmul.f32 %v575_v44, %v2114_v25  ;;  %v579_v57 = vmul.f32 %v1823_v43, %v2111_v24  ;;  %v580_v61 = vmul.f32 %v575_v44, %v2117_v26  ;;  %v539_v9 = vsel %vm368_vm0, %v534_v0, %v535_v62  ;;  %v381_v43 = vld [vmem:[%s2076_s20 + $0x14] sm:$0xf] }
  0xb2   : > { %v588_v51 = vpack.c.bf16 %v584_v45, %v584_v45  ;;  %v586_v52 = vpack.c.bf16 %v581_v46, %v581_v46  ;;  %v540_v13 = vsel %vm537_vm5, %v529_v63, %v539_v9  ;;  %v395_v38 = vunpack.c.l.bf16 %v379_v32 }
  0xb3   : > { %v587_v53 = vpack.c.bf16 %v583_v48, %v582_v47  ;;  %v585_v10 = vpack.c.bf16 %v580_v61, %v579_v57  ;;  %544 = vst [vmem:[#allocation2 + $0x48] sm:$0xff] %v540_v13  ;;  %v416_v42 = vmul.f32 %v2114_v25, %v408_v35  ;;  %v398_v44 = vunpack.c.l.bf16 %v381_v43  ;;  %v715_v57 = vld [vmem:[%s2076_s20 + $0x14] sm:$0xf] }
  0xb4   : > { %599 = vrot.lane.b32.xlu1 %v588_v51, %s1989_s7  ;;  %v414_v39 = vmul.f32 %v1814_v20, %v395_v38  ;;  %v351_v61 = vld [vmem:[%s2076_s20 + $0x14] sm:$0xf] }
  0xb5   : > { %595 = vrot.lane.b32.xlu2 %v586_v52, %s1989_s7  ;;  %597 = vrot.lane.b32.xlu0 %v587_v53, %s1989_s7  ;;  %v1827_v56 = vpop.permute.xlu0 %1826  ;;  %v420_v46 = vpack.c.bf16 %v416_v42, %v415_v40  ;;  %v417_v48 = vmul.f32 %v1814_v20, %v398_v44  ;;  %v349_v53 = vld [vmem:[%s2076_s20 + $0x8] sm:$0xf] }
  0xb6   : > { %v1829_v59 = vunpack.i.h.bf16 %v1827_v56  ;;  %v1828_v60 = vunpack.i.l.bf16 %v1827_v56  ;;  %v419_v45 = vpack.c.bf16 %v414_v39, %v414_v39  ;;  %v713_v56 = vld [vmem:[%s2076_s20 + $0x8] sm:$0xf] }
  0xb7   : > { %v421_v51 = vpack.c.bf16 %v417_v48, %v417_v48  ;;  %v729_v58 = vunpack.c.l.bf16 %v713_v56 }
  0xb8   : > { %v653_v2 = vmul.f32 %v1829_v59, %v634_v54  ;;  %v650_v4 = vmul.f32 %v1829_v59, %v631_v55  ;;  %v644_v8 = vsel %vm643_vm4, %v1828_v60, %v1829_v59  ;;  %v651_v15 = vmul.f32 %v1828_v60, %v2108_v23 }
  0xb9   : > { %v652_v16 = vmul.f32 %v644_v8, %v2114_v25  ;;  %v648_v28 = vmul.f32 %v1828_v60, %v2111_v24  ;;  %v649_v29 = vmul.f32 %v644_v8, %v2117_v26  ;;  %v732_v60 = vunpack.c.l.bf16 %v715_v57 }
  0xba   : > { %v657_v11 = vpack.c.bf16 %v653_v2, %v653_v2  ;;  %v655_v12 = vpack.c.bf16 %v650_v4, %v650_v4 }
  0xbb   : > { %v656_v31 = vpack.c.bf16 %v652_v16, %v651_v15  ;;  %v654_v36 = vpack.c.bf16 %v649_v29, %v648_v28 }
  0xbc   : > { %593 = vrot.lane.b32.xlu1 %v585_v10, %s1989_s7 }
  0xbd   : > { %668 = vrot.lane.b32.xlu2 %v657_v11, %s1990_s8  ;;  %664 = vrot.lane.b32.xlu0 %v655_v12, %s1990_s8  ;;  %v527_v19 = vpop.permute.xlu0 %526 }
  0xbe   : > { %v533_v22 = vrot.slane %v527_v19, 4 }
  0xc0   : > { %v536_v33 = vsel %vm368_vm0, %v532_v18, %v533_v22 }
  0xc1   : > { %v538_v34 = vsel %vm537_vm5, %v525_v41, %v536_v33  ;;  %v418_v41 = vpack.c.bf16 %v413_v21, %v412_v17 }
  0xc2   : > { %543 = vst [vmem:[#allocation2 + $0x40] sm:$0xff] %v538_v34 }
  0xc4   : > { %666 = vrot.lane.b32.xlu1 %v656_v31, %s1990_s8  ;;  %v331_v31 = vpack.i.b16 %v2090_v7, %v2090_v7 }
  0xc5   : > { %662 = vrot.lane.b32.xlu2 %v654_v36, %s1990_s8  ;;  %501 = vrot.lane.b32.xlu0 %v490_v37, %s1988_s30  ;;  %v1832_v47 = vpop.permute.xlu0 %1831  ;;  %v330_v37 = vperm.slane %v328_v30, 0 }
  0xc6   : > { %v1834_v49 = vunpack.i.h.bf16 %v1832_v47  ;;  %v1833_v50 = vunpack.i.l.bf16 %v1832_v47  ;;  %v333_v38 = vperm.slane %v331_v31, 0 }
  0xc7   : > { %v338_v40 = vunpack.c.l.bf16 %v330_v37 }
  0xc8   : > { %v742_v52 = vsel %vm741_vm7, %v1833_v50, %v1834_v49  ;;  %v746_v54 = vmul.f32 %v1833_v50, %v2111_v24  ;;  %v748_v62 = vmul.f32 %v1834_v49, %v729_v58  ;;  %v751_v63 = vmul.f32 %v1834_v49, %v732_v60 }
  0xc9   : > { %v747_v55 = vmul.f32 %v742_v52, %v2117_v26  ;;  %v749_v0 = vmul.f32 %v1833_v50, %v2108_v23  ;;  %v339_v42 = vunpack.c.l.bf16 %v333_v38  ;;  %v340_v7 = vmul.f32 %v2111_v24, %v338_v40 }
  0xca   : > { %v753_v2 = vpack.c.bf16 %v748_v62, %v748_v62  ;;  %v755_v4 = vpack.c.bf16 %v751_v63, %v751_v63 }
  0xcb   : > { %v752_v59 = vpack.c.bf16 %v747_v55, %v746_v54  ;;  %v341_v43 = vmul.f32 %v2117_v26, %v339_v42  ;;  %v343_v44 = vmul.f32 %v2114_v25, %v339_v42 }
  0xcc   : > { %426 = vrot.lane.b32.xlu1 %v418_v41, %s1991_s9  ;;  %v342_v41 = vmul.f32 %v2108_v23, %v338_v40 }
  0xcd   : > { %428 = vrot.lane.b32.xlu2 %v419_v45, %s1991_s9  ;;  %430 = vrot.lane.b32.xlu0 %v420_v46, %s1991_s9  ;;  %v344_v46 = vpack.c.bf16 %v341_v43, %v340_v7 }
  0xce   : > { %v345_v47 = vpack.c.bf16 %v343_v44, %v342_v41 }
  0xcf   : > { %346 = vst [vmem:[#allocation2] sm:$0xff] %v344_v46 }
  0xd0   : > { %347 = vst [vmem:[#allocation2 + $0x8] sm:$0xff] %v345_v47 }
  0xd4   : > { %432 = vrot.lane.b32.xlu1 %v421_v51, %s1991_s9 }
  0xd5   : > { %358 = vrot.lane.b32.xlu0 %v349_v53, %s1992_s10  ;;  %356 = vrot.lane.b32.xlu2 %v2084_v3, %s1992_s10  ;;  %v750_v3 = vmul.f32 %v742_v52, %v2114_v25 }
  0xd7   : > { %v754_v5 = vpack.c.bf16 %v750_v3, %v749_v0 }
  0xdc   : > { %360 = vrot.lane.b32.xlu1 %v2080_v1, %s1992_s10 }
  0xdd   : > { %760 = vrot.lane.b32.xlu0 %v752_v59, %s1993_s11  ;;  %362 = vrot.lane.b32.xlu2 %v351_v61, %s1992_s10 }
  0xe4   : > { %762 = vrot.lane.b32.xlu1 %v753_v2, %s1993_s11 }
  0xe5   : > { %766 = vrot.lane.b32.xlu0 %v755_v4, %s1993_s11  ;;  %764 = vrot.lane.b32.xlu2 %v754_v5, %s1993_s11 }
 0x107   : > { %v500_v8 = vpop.permute.xlu2 %499 }
 0x108   : > { %v505_v51 = vrot.slane %v500_v8, 4 }
 0x10f   : > { %v596_v9 = vpop.permute.xlu2 %595 }
 0x110   : > { %v602_v32 = vrot.slane %v596_v9, 4 }
 0x117   : > { %v669_v14 = vpop.permute.xlu2 %668 }
 0x118   : > { %v673_v48 = vrot.slane %v669_v14, 4 }
 0x11e   : > { %v498_v10 = vpop.permute.xlu1 %497 }
 0x11f   : > { %v504_v11 = vrot.slane %v498_v10, 4  ;;  %v496_v1 = vpop.permute.xlu0 %495  ;;  %v663_v28 = vpop.permute.xlu2 %662 }
 0x120   : > { %v503_v12 = vrot.slane %v496_v1, 4  ;;  %v670_v35 = vrot.slane %v663_v28, 4 }
 0x122   : > { %v507_v13 = vsel %vm368_vm0, %v503_v12, %v504_v11  ;;  %v1660_v12 = vld [vmem:[#allocation2 + $0x40] sm:$0xf] }
 0x123   : > { %v509_v15 = vsel %vm508_vm8, %v496_v1, %v507_v13 }
 0x124   : > { %514 = vst [vmem:[#allocation2 + $0x30] sm:$0xff] %v509_v15 }
 0x126   : > { %v600_v16 = vpop.permute.xlu1 %599 }
 0x127   : > { %v604_v18 = vrot.slane %v600_v16, 4  ;;  %v598_v19 = vpop.permute.xlu0 %597  ;;  %v429_v53 = vpop.permute.xlu2 %428 }
 0x128   : > { %v603_v20 = vrot.slane %v598_v19, 4  ;;  %v435_v55 = vrot.slane %v429_v53, 4 }
 0x12a   : > { %v608_v22 = vsel %vm368_vm0, %v603_v20, %v604_v18  ;;  %v1743_v18 = vld [vmem:[#allocation2 + $0x44] sm:$0xf0] }
 0x12b   : > { %v609_v27 = vsel %vm606_vm9, %v598_v19, %v608_v22  ;;  %v812_v19 = vld [vmem:[%s2194_s15 + $0x28] sm:$0xff] }
 0x12c   : > { %613 = vst [vmem:[#allocation2 + $0x58] sm:$0xff] %v609_v27  ;;  %v1742_v22 = vld [vmem:[#allocation2 + $0x44] sm:$0xf]  ;;  %v1662_v27 = vld [vmem:[#allocation2 + $0x48] sm:$0xf0] }
 0x12e   : > { %v594_v29 = vpop.permute.xlu1 %593 }
 0x12f   : > { %v601_v33 = vrot.slane %v594_v29, 4  ;;  %v665_v34 = vpop.permute.xlu0 %664  ;;  %v357_v58 = vpop.permute.xlu2 %356 }
 0x130   : > { %v671_v36 = vrot.slane %v665_v34, 4  ;;  %v364_v9 = vrot.slane %v357_v58, 4  ;;  %v1665_v34 = vor.u32 %v1742_v22, %v1662_v27 }
 0x131   : > { %v605_v17 = vsel %vm368_vm0, %v601_v33, %v602_v32  ;;  %v1661_v33 = vor.u32 %v1743_v18, %v1660_v12  ;;  %v1727_v12 = vld [vmem:[#allocation3 + $0x4] sm:$0xf0] }
 0x132   : > { %v607_v21 = vsel %vm606_vm9, %v594_v29, %v605_v17  ;;  %v674_v39 = vsel %vm368_vm0, %v670_v35, %v671_v36 }
 0x133   : > { %612 = vst [vmem:[#allocation2 + $0x50] sm:$0xff] %v607_v21  ;;  %v676_v6 = vsel %vm675_vm10, %v663_v28, %v674_v39  ;;  %v1670_v1 = vld [vmem:[#allocation2 + $0x58] sm:$0xf0]  ;;  %v1994_v28 = vmov 0   ;;  %v1652_v21 = vld [vmem:[#allocation2 + $0x30] sm:$0xf] }
 0x134   : > { %681 = vst [vmem:[#allocation2 + $0x60] sm:$0xff] %v676_v6  ;;  %1837 = vset.pattern.permute.xlu0 %v1994_v28  ;;  %1835 = vset.pattern.permute.xlu1 %v1994_v28  ;;  %v1740_v39 = vld [vmem:[#allocation2 + $0x34] sm:$0xf] }
 0x135   : > { %842 = vperm.xlu0 %1837, %v812_v19   ;;  %1836 = vset.pattern.permute.xlu2 %v1994_v28  ;;  %v810_v28 = vld [vmem:[%s2194_s15 + $0x18] sm:$0xff] }
 0x136   : > { %v667_v45 = vpop.permute.xlu1 %666 }
 0x137   : > { %v672_v49 = vrot.slane %v667_v45, 4  ;;  %v502_v50 = vpop.permute.xlu0 %501  ;;  %v363_v32 = vpop.permute.xlu2 %362 }
 0x138   : > { %v506_v52 = vrot.slane %v502_v50, 4  ;;  %v367_v38 = vrot.slane %v363_v32, 4  ;;  %v807_v50 = vld [vmem:[%s2194_s15] sm:$0xff]  ;;  %v1604_v32 = vld [vmem:[#allocation3 + $0x10] sm:$0xf] }
 0x139   : > { %v677_v54 = vsel %vm368_vm0, %v672_v49, %v673_v48 }
 0x13a   : > { %v678_v24 = vsel %vm675_vm10, %v667_v45, %v677_v54  ;;  %v510_v23 = vsel %vm368_vm0, %v505_v51, %v506_v52  ;;  %v1668_v4 = vld [vmem:[#allocation2 + $0x50] sm:$0xf]  ;;  %v1744_v5 = vld [vmem:[#allocation2 + $0x54] sm:$0xf] }
 0x13b   : > { %682 = vst [vmem:[#allocation2 + $0x68] sm:$0xff] %v678_v24  ;;  %v511_v25 = vsel %vm508_vm8, %v500_v8, %v510_v23  ;;  %v1676_v60 = vld [vmem:[#allocation2 + $0x60] sm:$0xf]  ;;  %v1746_v63 = vld [vmem:[#allocation2 + $0x64] sm:$0xf]  ;;  %v1673_v16 = vor.u32 %v1744_v5, %v1670_v1  ;;  %v814_v51 = vld [vmem:[%s2194_s15 + $0x38] sm:$0xff] }
 0x13c   : > { %515 = vst [vmem:[#allocation2 + $0x38] sm:$0xff] %v511_v25  ;;  %v1745_v8 = vld [vmem:[#allocation2 + $0x54] sm:$0xf0]  ;;  %852 = vperm.xlu1 %1835, %v814_v51   ;;  %v1596_v1 = vld [vmem:[#allocation3] sm:$0xf] }
 0x13d   : > { %v1669_v11 = vor.u32 %v1745_v8, %v1668_v4  ;;  %817 = vperm.xlu0 %1837, %v807_v50   ;;  %v1140_v50 = vld [vmem:[%s2513_s5 + $0x38] sm:$0xff] }
 0x13e   : > { %v427_v26 = vpop.permute.xlu1 %426  ;;  %v1726_v51 = vld [vmem:[#allocation3 + $0x4] sm:$0xf] }
 0x13f   : > { %v434_v56 = vrot.slane %v427_v26, 4  ;;  %v431_v57 = vpop.permute.xlu0 %430  ;;  %v765_v52 = vpop.permute.xlu2 %764 }
 0x140   : > { %v436_v13 = vrot.slane %v431_v57, 4  ;;  %v770_v25 = vrot.slane %v765_v52, 4 }
 0x141   : > { %v438_v59 = vsel %vm368_vm0, %v434_v56, %v435_v55  ;;  %v1628_v55 = vld [vmem:[#allocation2] sm:$0xf]  ;;  %v1735_v56 = vld [vmem:[#allocation2 + $0x4] sm:$0xf0] }
 0x142   : > { %v440_v61 = vsel %vm439_vm11, %v427_v26, %v438_v59  ;;  %v1747_v62 = vld [vmem:[#allocation2 + $0x64] sm:$0xf0]  ;;  %v1678_v0 = vld [vmem:[#allocation2 + $0x68] sm:$0xf0] }
 0x143   : > { %445 = vst [vmem:[#allocation2 + $0x20] sm:$0xff] %v440_v61  ;;  %v1677_v3 = vor.u32 %v1747_v62, %v1676_v60  ;;  %v1681_v2 = vor.u32 %v1746_v63, %v1678_v0  ;;  %v1741_v36 = vld [vmem:[#allocation2 + $0x34] sm:$0xf0]  ;;  %v1654_v37 = vld [vmem:[#allocation2 + $0x38] sm:$0xf0] }
 0x144   : > { %v1653_v6 = vor.u32 %v1741_v36, %v1652_v21  ;;  %v1657_v7 = vor.u32 %v1740_v39, %v1654_v37  ;;  %v1630_v61 = vld [vmem:[#allocation2 + $0x8] sm:$0xf0]  ;;  %v1614_v36 = vld [vmem:[#allocation3 + $0x28] sm:$0xf0]  ;;  %v1731_v21 = vld [vmem:[#allocation3 + $0x24] sm:$0xf0] }
 0x145   : > { %994 = vmatpush.bf16.msra.mxu0 %v1677_v3  ;;  %1052 = vmatpush.bf16.msra.mxu2 %v1681_v2  ;;  %v813_v2 = vld [vmem:[%s2194_s15 + $0x30] sm:$0xff]  ;;  %v1133_v37 = vld [vmem:[%s2513_s5] sm:$0xff] }
 0x146   : > { %v433_v10 = vpop.permute.xlu1 %432  ;;  %847 = vperm.xlu2 %1836, %v813_v2  }
 0x147   : > { %v437_v14 = vrot.slane %v433_v10, 4  ;;  %v359_v15 = vpop.permute.xlu0 %358  ;;  %v1629_v10 = vor.u32 %v1735_v56, %v1628_v55 }
 0x148   : > { %v365_v20 = vrot.slane %v359_v15, 4 }
 0x149   : > { %v441_v29 = vsel %vm368_vm0, %v436_v13, %v437_v14  ;;  %995 = vmatpush.bf16.msra.mxu0 %v1669_v11  ;;  %1053 = vmatpush.bf16.msra.mxu2 %v1673_v16  ;;  %v1597_v13 = vor.u32 %v1727_v12, %v1596_v1  ;;  %v1728_v16 = vld [vmem:[#allocation3 + $0x14] sm:$0xf] }
 0x14a   : > { %v442_v30 = vsel %vm439_vm11, %v431_v57, %v441_v29  ;;  %v369_v31 = vsel %vm368_vm0, %v364_v9, %v365_v20  ;;  %v1644_v41 = vld [vmem:[#allocation2 + $0x20] sm:$0xf]  ;;  %v1738_v46 = vld [vmem:[#allocation2 + $0x24] sm:$0xf]  ;;  %v811_v9 = vld [vmem:[%s2194_s15 + $0x20] sm:$0xff] }
 0x14b   : > { %446 = vst [vmem:[#allocation2 + $0x28] sm:$0xff] %v442_v30  ;;  %v371_v35 = vsel %vm370_vm12, %v357_v58, %v369_v31  ;;  %v1734_v57 = vld [vmem:[#allocation2 + $0x4] sm:$0xf]  ;;  %837 = vperm.xlu1 %1835, %v811_v9   ;;  %v1606_v20 = vld [vmem:[#allocation3 + $0x18] sm:$0xf0] }
 0x14c   : > { %376 = vst [vmem:[#allocation2 + $0x10] sm:$0xff] %v371_v35  ;;  %v1633_v11 = vor.u32 %v1734_v57, %v1630_v61  ;;  %v809_v29 = vld [vmem:[%s2194_s15 + $0x10] sm:$0xff]  ;;  %v1609_v30 = vor.u32 %v1728_v16, %v1606_v20  ;;  %v808_v31 = vld [vmem:[%s2194_s15 + $0x8] sm:$0xff]  ;;  %v1730_v35 = vld [vmem:[#allocation3 + $0x24] sm:$0xf] }
 0x14d   : > { %996 = vmatpush.bf16.msra.mxu0 %v1661_v33  ;;  %1054 = vmatpush.bf16.msra.mxu2 %v1665_v34  ;;  %v1729_v33 = vld [vmem:[#allocation3 + $0x14] sm:$0xf0] }
 0x14e   : > { %v361_v17 = vpop.permute.xlu1 %360  ;;  %832 = vperm.xlu2 %1836, %v810_v28   ;;  %v1605_v34 = vor.u32 %v1729_v33, %v1604_v32 }
 0x14f   : > { %v366_v40 = vrot.slane %v361_v17, 4  ;;  %v761_v42 = vpop.permute.xlu0 %760 }
 0x150   : > { %v768_v53 = vrot.slane %v761_v42, 4 }
 0x151   : > { %v372_v43 = vsel %vm368_vm0, %v366_v40, %v367_v38  ;;  %997 = vmatpush.bf16.msra.mxu0 %v1653_v6  ;;  %1055 = vmatpush.bf16.msra.mxu2 %v1657_v7  ;;  %v1617_v38 = vor.u32 %v1730_v35, %v1614_v36  ;;  %v1136_v40 = vld [vmem:[%s2513_s5 + $0x18] sm:$0xff]  ;;  %v1622_v6 = vld [vmem:[#allocation3 + $0x38] sm:$0xf0] }
 0x152   : > { %v373_v44 = vsel %vm370_vm12, %v361_v17, %v372_v43  ;;  %v1739_v45 = vld [vmem:[#allocation2 + $0x24] sm:$0xf0]  ;;  %v1646_v47 = vld [vmem:[#allocation2 + $0x28] sm:$0xf0]  ;;  %v1612_v17 = vld [vmem:[#allocation3 + $0x20] sm:$0xf] }
 0x153   : > { %377 = vst [vmem:[#allocation2 + $0x18] sm:$0xff] %v373_v44  ;;  %v1645_v48 = vor.u32 %v1739_v45, %v1644_v41  ;;  %v1649_v49 = vor.u32 %v1738_v46, %v1646_v47  ;;  %v1636_v59 = vld [vmem:[#allocation2 + $0x10] sm:$0xf]  ;;  %v1736_v60 = vld [vmem:[#allocation2 + $0x14] sm:$0xf]  ;;  %827 = vperm.xlu1 %1835, %v809_v29   ;;  %v1613_v39 = vor.u32 %v1731_v21, %v1612_v17  ;;  %v1135_v7 = vld [vmem:[%s2513_s5 + $0x10] sm:$0xff] }
 0x154   : > { %1153 = vperm.xlu0 %1837, %v1135_v7   ;;  %v1134_v43 = vld [vmem:[%s2513_s5 + $0x8] sm:$0xff]  ;;  %v1139_v44 = vld [vmem:[%s2513_s5 + $0x30] sm:$0xff]  ;;  %v1137_v46 = vld [vmem:[%s2513_s5 + $0x20] sm:$0xff] }
 0x155   : > { %998 = vmatpush.bf16.msra.mxu0 %v1645_v48  ;;  %1056 = vmatpush.bf16.msra.mxu2 %v1649_v49  ;;  %v1138_v45 = vld [vmem:[%s2513_s5 + $0x28] sm:$0xff]  ;;  %v1733_v48 = vld [vmem:[#allocation3 + $0x34] sm:$0xf0] }
 0x156   : > { %v763_v54 = vpop.permute.xlu1 %762  ;;  %822 = vperm.xlu2 %1836, %v808_v31   ;;  %v1620_v47 = vld [vmem:[#allocation3 + $0x30] sm:$0xf] }
 0x157   : > { %v767_v24 = vpop.permute.xlu0 %766  ;;  %v769_v23 = vrot.slane %v763_v54, 4  ;;  %v1621_v49 = vor.u32 %v1733_v48, %v1620_v47 }
 0x158   : > { %v771_v26 = vrot.slane %v767_v24, 4 }
 0x159   : > { %v772_v58 = vsel %vm368_vm0, %v768_v53, %v769_v23 }
 0x15a   : > { %v775_v62 = vsel %vm368_vm0, %v770_v25, %v771_v26  ;;  %v774_v63 = vsel %vm773_vm13, %v761_v42, %v772_v58  ;;  %v1737_v0 = vld [vmem:[#allocation2 + $0x14] sm:$0xf0]  ;;  %v1638_v3 = vld [vmem:[#allocation2 + $0x18] sm:$0xf0]  ;;  %v1732_v42 = vld [vmem:[#allocation3 + $0x34] sm:$0xf] }
 0x15b   : > { %v776_v4 = vsel %vm773_vm13, %v765_v52, %v775_v62  ;;  %779 = vst [vmem:[#allocation2 + $0x80] sm:$0xff] %v774_v63  ;;  %v1637_v5 = vor.u32 %v1737_v0, %v1636_v59  ;;  %v1641_v8 = vor.u32 %v1736_v60, %v1638_v3  ;;  %1143 = vperm.xlu1 %1835, %v1133_v37   ;;  %v1598_v52 = vld [vmem:[#allocation3 + $0x8] sm:$0xf0] }
 0x15c   : > { %780 = vst [vmem:[#allocation2 + $0x88] sm:$0xff] %v776_v4  ;;  %v1625_v41 = vor.u32 %v1732_v42, %v1622_v6  ;;  %1168 = vperm.xlu0 %1837, %v1138_v45   ;;  %v1601_v53 = vor.u32 %v1726_v51, %v1598_v52 }
 0x15d   : > { %999 = vmatpush.bf16.msra.mxu0 %v1637_v5  ;;  %1057 = vmatpush.bf16.msra.mxu2 %v1641_v8 }
 0x15e   : > { %1148 = vperm.xlu2 %1836, %v1134_v43  }
 0x161   : > { %1000 = vmatpush.bf16.msra.mxu0 %v1629_v10  ;;  %1058 = vmatpush.bf16.msra.mxu2 %v1633_v11 }
 0x162   : > { %v1692_v14 = vld [vmem:[#allocation2 + $0x80] sm:$0xf]  ;;  %v1750_v15 = vld [vmem:[#allocation2 + $0x84] sm:$0xf] }
 0x163   : > { %v1751_v18 = vld [vmem:[#allocation2 + $0x84] sm:$0xf0]  ;;  %v1694_v19 = vld [vmem:[#allocation2 + $0x88] sm:$0xf0]  ;;  %1158 = vperm.xlu1 %1835, %v1136_v40  }
 0x164   : > { %1001 = vmatmul.bf16.vlgmr.msra.gmra.mxu0 %v1597_v13  ;;  %1059 = vmatmul.bf16.vlgmr.msra.gmra.mxu2 %v1597_v13  ;;  %v1693_v22 = vor.u32 %v1751_v18, %v1692_v14  ;;  %v1697_v27 = vor.u32 %v1750_v15, %v1694_v19 }
 0x166   : > { %1029 = vmatpush.bf16.msrb.mxu0 %v1693_v22  ;;  %1752 = vmatpush.bf16.msra.mxu1 %v1693_v22 }
 0x167   : > { %1087 = vmatpush.bf16.msrb.mxu2 %v1697_v27  ;;  %1753 = vmatpush.bf16.msra.mxu3 %v1697_v27 }
 0x168   : > { %1163 = vperm.xlu2 %1836, %v1137_v46  }
 0x169   : > { %1699 = vmatmul.msk.bf16.vlgmr.msra.gmra.mxu1 %vm476_vm2, %v1609_v30 }
 0x16a   : > { %1703 = vmatmul.msk.bf16.vlgmr.msra.gmra.mxu3 %vm476_vm2, %v1609_v30 }
 0x16b   : > { %1173 = vperm.xlu1 %1835, %v1139_v44  }
 0x170   : > { %1178 = vperm.xlu2 %1836, %v1140_v50  }
 0x174   : > { %1006 = vmatmul.bf16.gmra.mxu0 %v1605_v34  ;;  %1064 = vmatmul.bf16.gmra.mxu2 %v1605_v34 }
 0x179   : > { %1700 = vmatmul.msk.bf16.gmra.mxu1 %vm476_vm2, %v1617_v38 }
 0x17a   : > { %1704 = vmatmul.msk.bf16.gmra.mxu3 %vm476_vm2, %v1617_v38 }
 0x184   : > { %1011 = vmatmul.bf16.gmra.mxu0 %v1613_v39  ;;  %1069 = vmatmul.bf16.gmra.mxu2 %v1613_v39 }
 0x189   : > { %1701 = vmatmul.msk.bf16.gmra.mxu1 %vm476_vm2, %v1625_v41 }
 0x18a   : > { %1705 = vmatmul.msk.bf16.gmra.mxu3 %vm476_vm2, %v1625_v41 }
 0x194   : > { %1016 = vmatmul.bf16.gmra.mxu0 %v1621_v49  ;;  %1074 = vmatmul.bf16.gmra.mxu2 %v1621_v49 }
 0x1a0   : > { %v848_v11 = vpop.permute.xlu2 %847 }
 0x1a4   : > { %1698 = vmatmul.msk.bf16.vlgmr.msrb.gmra.mxu0 %vm476_vm2, %v1601_v53  ;;  %1702 = vmatmul.msk.bf16.vlgmr.msrb.gmra.mxu2 %vm476_vm2, %v1601_v53 }
 0x1a7   : > { %v843_v16 = vpop.permute.xlu0 %842 }
 0x1a8   : > { %v833_v20 = vpop.permute.xlu2 %832 }
 0x1ae   : > { %v853_v5 = vpop.permute.xlu1 %852 }
 0x1af   : > { %v818_v52 = vpop.permute.xlu0 %817 }
 0x1b0   : > { %v823_v46 = vpop.permute.xlu2 %822 }
 0x1bd   : > { %v838_v12 = vpop.permute.xlu1 %837 }
 0x1c5   : > { %v828_v32 = vpop.permute.xlu1 %827 }
 0x1e1   : > { %v2246_v54 = vpop.f32.mrf.mxu0 }
 0x1e6   : > { %v1036_v23 = vpop.f32.mrf.mxu1 }
 0x1e7   : > { %v2248_v24 = vpop.f32.mrf.mxu2 }
 0x1e9   : > { %v2250_v25 = vpop.f32.mrf.mxu0 }
 0x1ed   : > { %v2254_v55 = vpop.f32.mrf.mxu3 }
 0x1ee   : > { %v1038_v57 = vpop.f32.mrf.mxu1 }
 0x1ef   : > { %v2252_v26 = vpop.f32.mrf.mxu2 }
 0x1f1   : > { %v1007_v56 = vpop.f32.mrf.mxu0 }
 0x1f2   : > { %v1008_v37 = vadd.f32 %v1007_v56, %v828_v32 }
 0x1f4   : > { %v2278_v45 = vadd.f32 %v1036_v23, %v1008_v37 }
 0x1f5   : > { %v2256_v60 = vpop.f32.mrf.mxu3 }
 0x1f6   : > { %v1041_v61 = vpop.f32.mrf.mxu1 }
 0x1f7   : > { %v1065_v58 = vpop.f32.mrf.mxu2 }
 0x1f8   : > { %v1066_v51 = vadd.f32 %v1065_v58, %v828_v32  ;;  %v1121_v58 = vmul.f32 %v2278_v45, %v2278_v45 }
 0x1f9   : > { %v1009_v59 = vpop.f32.mrf.mxu0 }
 0x1fa   : > { %v1010_v31 = vadd.f32 %v1009_v59, %v833_v20  ;;  %v1005_v59 = vadd.f32 %v2250_v25, %v823_v46 }
 0x1fc   : > { %v2270_v40 = vadd.f32 %v1038_v57, %v1010_v31  ;;  %v1003_v57 = vadd.f32 %v2246_v54, %v818_v52  ;;  %v1149_v31 = vpop.permute.xlu2 %1148 }
 0x1fd   : > { %v1099_v0 = vpop.f32.mrf.mxu3 }
 0x1fe   : > { %v1043_v3 = vpop.f32.mrf.mxu1  ;;  %v1123_v23 = vmul.f32 %v2270_v40, %v2270_v40 }
 0x1ff   : > { %v1067_v62 = vpop.f32.mrf.mxu2 }
 0x200   : > { %v1068_v47 = vadd.f32 %v1067_v62, %v833_v20  ;;  %v1116_v20 = vld [vmem:[#allocation7 + $0x38] sm:$0xff] }
 0x201   : > { %v1012_v63 = vpop.f32.mrf.mxu0 }
 0x202   : > { %v1013_v29 = vadd.f32 %v1012_v63, %v838_v12  ;;  %v2295_v62 = vadd.f32 %v2256_v60, %v1068_v47 }
 0x204   : > { %v2268_v17 = vadd.f32 %v1041_v61, %v1013_v29 }
 0x205   : > { %v1101_v8 = vpop.f32.mrf.mxu3 }
 0x206   : > { %v1046_v10 = vpop.f32.mrf.mxu1  ;;  %v1125_v49 = vmul.f32 %v2268_v17, %v2268_v17 }
 0x207   : > { %v1070_v2 = vpop.f32.mrf.mxu2 }
 0x208   : > { %v1071_v7 = vadd.f32 %v1070_v2, %v838_v12 }
 0x209   : > { %v1014_v4 = vpop.f32.mrf.mxu0 }
 0x20a   : > { %v1015_v22 = vadd.f32 %v1014_v4, %v843_v16  ;;  %v2286_v53 = vadd.f32 %v1099_v0, %v1071_v7  ;;  %v2302_v0 = vadd.f32 %v2254_v55, %v1066_v51  ;;  %v1124_v4 = vmul.f32 %v2295_v62, %v2295_v62 }
 0x20b   : > { %v1061_v55 = vadd.f32 %v2248_v24, %v818_v52 }
 0x20c   : > { %v2262_v33 = vadd.f32 %v1043_v3, %v1015_v22  ;;  %v1126_v25 = vmul.f32 %v2286_v53, %v2286_v53  ;;  %v1144_v22 = vpop.permute.xlu1 %1143 }
 0x20d   : > { %v1104_v14 = vpop.f32.mrf.mxu3 }
 0x20e   : > { %v1048_v19 = vpop.f32.mrf.mxu1  ;;  %v1127_v44 = vmul.f32 %v2262_v33, %v2262_v33 }
 0x20f   : > { %v1072_v9 = vpop.f32.mrf.mxu2 }
 0x210   : > { %v1073_v21 = vadd.f32 %v1072_v9, %v843_v16  ;;  %v1122_v9 = vmul.f32 %v2302_v0, %v2302_v0  ;;  %v1113_v16 = vld [vmem:[#allocation7 + $0x20] sm:$0xff] }
 0x211   : > { %v1017_v1 = vpop.f32.mrf.mxu0 }
 0x212   : > { %v1018_v13 = vadd.f32 %v1017_v1, %v848_v11  ;;  %v2280_v48 = vadd.f32 %v1101_v8, %v1073_v21 }
 0x214   : > { %v2258_v27 = vadd.f32 %v1046_v10, %v1018_v13  ;;  %v1128_v63 = vmul.f32 %v2280_v48, %v2280_v48  ;;  %v1109_v10 = vld [vmem:[#allocation7] sm:$0xff]  ;;  %v1110_v13 = vld [vmem:[#allocation7 + $0x8] sm:$0xff] }
 0x215   : > { %v1106_v42 = vpop.f32.mrf.mxu3 }
 0x216   : > { %v1129_v36 = vmul.f32 %v2258_v27, %v2258_v27 }
 0x217   : > { %v1075_v15 = vpop.f32.mrf.mxu2 }
 0x218   : > { %v1076_v34 = vadd.f32 %v1075_v15, %v848_v11  ;;  %v1112_v15 = vld [vmem:[#allocation7 + $0x18] sm:$0xff] }
 0x219   : > { %v1019_v18 = vpop.f32.mrf.mxu0 }
 0x21a   : > { %v1020_v28 = vadd.f32 %v1019_v18, %v853_v5  ;;  %v2272_v43 = vadd.f32 %v1104_v14, %v1076_v34  ;;  %v1111_v14 = vld [vmem:[#allocation7 + $0x10] sm:$0xff]  ;;  %v1114_v18 = vld [vmem:[#allocation7 + $0x28] sm:$0xff] }
 0x21c   : > { %v2260_v30 = vadd.f32 %v1048_v19, %v1020_v28  ;;  %v1130_v56 = vmul.f32 %v2272_v43, %v2272_v43  ;;  %v1115_v19 = vld [vmem:[#allocation7 + $0x30] sm:$0xff] }
 0x21e   : > { %v1131_v35 = vmul.f32 %v2260_v30, %v2260_v30 }
 0x21f   : > { %v1077_v38 = vpop.f32.mrf.mxu2 }
 0x220   : > { %v1078_v39 = vadd.f32 %v1077_v38, %v853_v5  ;;  %1214 = vmatpush.msrb.mxu1 %v1131_v35  ;;  %v1063_v5 = vadd.f32 %v2252_v26, %v823_v46 }
 0x221   : > { %v1031_v6 = vpop.f32.mrf.mxu0 }
 0x222   : > { %v2274_v41 = vadd.f32 %v1106_v42, %v1078_v39  ;;  %1215 = vmatpush.msrb.mxu1 %v1129_v36  ;;  %v2304_v2 = vadd.f32 %v1031_v6, %v1003_v57  ;;  %v1154_v39 = vpop.permute.xlu0 %1153 }
 0x224   : > { %1216 = vmatpush.msrb.mxu1 %v1127_v44  ;;  %v1132_v50 = vmul.f32 %v2274_v41, %v2274_v41  ;;  %v1117_v8 = vmul.f32 %v2304_v2, %v2304_v2 }
 0x226   : > { %1217 = vmatpush.msrb.mxu1 %v1125_v49  ;;  %1255 = vmatpush.msrb.mxu3 %v1132_v50 }
 0x227   : > { %v1089_v61 = vpop.f32.mrf.mxu2 }
 0x228   : > { %1218 = vmatpush.msrb.mxu1 %v1123_v23  ;;  %1256 = vmatpush.msrb.mxu3 %v1130_v56  ;;  %v2320_v1 = vadd.f32 %v1089_v61, %v1061_v55  ;;  %v1159_v56 = vpop.permute.xlu1 %1158 }
 0x229   : > { %v1033_v3 = vpop.f32.mrf.mxu0 }
 0x22a   : > { %v2306_v54 = vadd.f32 %v1033_v3, %v1005_v59  ;;  %1219 = vmatpush.msrb.mxu1 %v1121_v58  ;;  %1257 = vmatpush.msrb.mxu3 %v1128_v63  ;;  %v1118_v26 = vmul.f32 %v2320_v1, %v2320_v1 }
 0x22c   : > { %1258 = vmatpush.msrb.mxu3 %v1126_v25  ;;  %v1119_v60 = vmul.f32 %v2306_v54, %v2306_v54 }
 0x22e   : > { %1220 = vmatpush.msrb.mxu1 %v1119_v60  ;;  %1259 = vmatpush.msrb.mxu3 %v1124_v4 }
 0x22f   : > { %v1091_v11 = vpop.f32.mrf.mxu2 }
 0x230   : > { %v2322_v12 = vadd.f32 %v1091_v11, %v1063_v5  ;;  %1221 = vmatpush.msrb.mxu1 %v1117_v8  ;;  %1260 = vmatpush.msrb.mxu3 %v1122_v9 }
 0x231   : > { %1706 = vmatmul.msk.f32.vlgmr.msrb.gmra.mxu1 %vm1181_vm14, %v1109_v10 }
 0x232   : > { %v1120_v24 = vmul.f32 %v2322_v12, %v2322_v12 }
 0x234   : > { %1261 = vmatpush.msrb.mxu3 %v1120_v24 }
 0x236   : > { %1262 = vmatpush.msrb.mxu3 %v1118_v26 }
 0x237   : > { %1714 = vmatmul.msk.f32.vlgmr.msrb.gmra.mxu3 %vm1181_vm14, %v1109_v10 }
 0x239   : > { %1707 = vmatmul.msk.f32.gmra.mxu1 %vm1181_vm14, %v1110_v13 }
 0x23f   : > { %1715 = vmatmul.msk.f32.gmra.mxu3 %vm1181_vm14, %v1110_v13  ;;  %v1164_v13 = vpop.permute.xlu2 %1163 }
 0x241   : > { %1708 = vmatmul.msk.f32.gmra.mxu1 %vm1181_vm14, %v1111_v14 }
 0x247   : > { %1716 = vmatmul.msk.f32.gmra.mxu3 %vm1181_vm14, %v1111_v14 }
 0x249   : > { %1709 = vmatmul.msk.f32.gmra.mxu1 %vm1181_vm14, %v1112_v15 }
 0x24f   : > { %1717 = vmatmul.msk.f32.gmra.mxu3 %vm1181_vm14, %v1112_v15 }
 0x251   : > { %1710 = vmatmul.msk.f32.gmra.mxu1 %vm1181_vm14, %v1113_v16 }
 0x257   : > { %1718 = vmatmul.msk.f32.gmra.mxu3 %vm1181_vm14, %v1113_v16 }
 0x259   : > { %1711 = vmatmul.msk.f32.gmra.mxu1 %vm1181_vm14, %v1114_v18 }
 0x25f   : > { %1719 = vmatmul.msk.f32.gmra.mxu3 %vm1181_vm14, %v1114_v18 }
 0x261   : > { %1712 = vmatmul.msk.f32.gmra.mxu1 %vm1181_vm14, %v1115_v19 }
 0x267   : > { %1720 = vmatmul.msk.f32.gmra.mxu3 %vm1181_vm14, %v1115_v19 }
 0x269   : > { %1713 = vmatmul.msk.f32.gmra.mxu1 %vm1181_vm14, %v1116_v20 }
 0x26f   : > { %1721 = vmatmul.msk.f32.gmra.mxu3 %vm1181_vm14, %v1116_v20 }
 0x2ae   : > { %v1223_v28 = vpop.f32.mrf.mxu1 }
 0x2af   : > { %v1224_v29 = vadd.f32 %v1223_v28, %v1144_v22 }
 0x2b1   : > { %1838 = vrsqrt.f32 %v1224_v29  ;;  %vm1294_vm0 = vweird.f32 %v1224_v29 }
 0x2b6   : > { %v1226_v32 = vpop.f32.mrf.mxu1 }
 0x2b7   : > { %v1839_v34 = vpop.eup %1838  ;;  %v2344_v35 = vadd.f32 %v1226_v32, %v1149_v31 }
 0x2b8   : > { %v1289_v36 = vmul.f32 %v1839_v34, %v1224_v29  ;;  %vm1295_vm15 = vweird.f32 %v1839_v34 }
 0x2b9   : > { %1840 = vrsqrt.f32 %v2344_v35  ;;  %vm1296_vm2 = vmor %vm1294_vm0, %vm1295_vm15  ;;  %vm1314_vm6 = vweird.f32 %v2344_v35 }
 0x2ba   : > { %v1264_v37 = vpop.f32.mrf.mxu3  ;;  %v1290_v21 = vmul.f32 %v1839_v34, %v1289_v36 }
 0x2bb   : > { %v1265_v38 = vadd.f32 %v1264_v37, %v1144_v22 }
 0x2bc   : > { %v1291_v44 = vmul.f32 0.5, %v1290_v21 }
 0x2bd   : > { %1842 = vrsqrt.f32 %v1265_v38  ;;  %vm1304_vm3 = vweird.f32 %v1265_v38 }
 0x2be   : > { %v1229_v42 = vpop.f32.mrf.mxu1  ;;  %v1292_v51 = vsub.f32 1.5, %v1291_v44 }
 0x2bf   : > { %v2347_v6 = vpop.eup %1840  ;;  %v2349_v7 = vadd.f32 %v1229_v42, %v1154_v39 }
 0x2c0   : > { %v1309_v46 = vmul.f32 %v2347_v6, %v2344_v35  ;;  %v1293_v63 = vmul.f32 %v1839_v34, %v1292_v51  ;;  %vm1315_vm5 = vweird.f32 %v2347_v6 }
 0x2c1   : > { %1844 = vrsqrt.f32 %v2349_v7  ;;  %vm2385_vm8 = vmor %vm1314_vm6, %vm1315_vm5  ;;  %vm1334_vm12 = vweird.f32 %v2349_v7 }
 0x2c2   : > { %v1267_v47 = vpop.f32.mrf.mxu3  ;;  %v1310_v52 = vmul.f32 %v2347_v6, %v1309_v46  ;;  %v1297_v10 = vsel %vm1296_vm2, %v1839_v34, %v1293_v63  ;;  %v1169_v46 = vpop.permute.xlu0 %1168 }
 0x2c3   : > { %v1843_v49 = vpop.eup %1842  ;;  %v1268_v50 = vadd.f32 %v1267_v47, %v1149_v31  ;;  %v1448_v19 = vmul.f32 %v1297_v10, %v2304_v2 }
 0x2c4   : > { %v1299_v23 = vmul.f32 %v1843_v49, %v1265_v38  ;;  %v1311_v3 = vmul.f32 0.5, %v1310_v52  ;;  %vm1305_vm1 = vweird.f32 %v1843_v49 }
 0x2c5   : > { %1846 = vrsqrt.f32 %v1268_v50  ;;  %vm1306_vm4 = vmor %vm1304_vm3, %vm1305_vm1  ;;  %vm1324_vm9 = vweird.f32 %v1268_v50 }
 0x2c6   : > { %v1300_v57 = vmul.f32 %v1843_v49, %v1299_v23  ;;  %v1232_v59 = vpop.f32.mrf.mxu1  ;;  %v1312_v11 = vsub.f32 1.5, %v1311_v3 }
 0x2c7   : > { %v2355_v61 = vpop.eup %1844  ;;  %v2357_v58 = vadd.f32 %v1232_v59, %v1159_v56 }
 0x2c8   : > { %v1301_v25 = vmul.f32 0.5, %v1300_v57  ;;  %v1329_v60 = vmul.f32 %v2355_v61, %v2349_v7  ;;  %v1313_v29 = vmul.f32 %v2347_v6, %v1312_v11  ;;  %vm1335_vm11 = vweird.f32 %v2355_v61  ;;  %v1174_v11 = vpop.permute.xlu1 %1173 }
 0x2c9   : > { %1848 = vrsqrt.f32 %v2357_v58  ;;  %vm2412_vm13 = vmor %vm1334_vm12, %vm1335_vm11  ;;  %vm1354_vm2 = vweird.f32 %v2357_v58 }
 0x2ca   : > { %v1302_v4 = vsub.f32 1.5, %v1301_v25  ;;  %v1270_v55 = vpop.f32.mrf.mxu3  ;;  %v1330_v8 = vmul.f32 %v2355_v61, %v1329_v60 }
 0x2cb   : > { %v1847_v5 = vpop.eup %1846  ;;  %v2363_v9 = vadd.f32 %v1270_v55, %v1154_v39  ;;  %v1317_v39 = vsel %vm2385_vm8, %v2347_v6, %v1313_v29 }
 0x2cc   : > { %v1303_v24 = vmul.f32 %v1843_v49, %v1302_v4  ;;  %v1319_v26 = vmul.f32 %v1847_v5, %v1268_v50  ;;  %v1331_v22 = vmul.f32 0.5, %v1330_v8  ;;  %vm1325_vm7 = vweird.f32 %v1847_v5 }
 0x2cd   : > { %1850 = vrsqrt.f32 %v2363_v9  ;;  %vm1326_vm10 = vmor %vm1324_vm9, %vm1325_vm7  ;;  %v1450_v52 = vmul.f32 %v1317_v39, %v2306_v54  ;;  %vm1344_vm15 = vweird.f32 %v2363_v9 }
 0x2ce   : > { %v1307_v14 = vsel %vm1306_vm4, %v1843_v49, %v1303_v24  ;;  %v1320_v15 = vmul.f32 %v1847_v5, %v1319_v26  ;;  %v1235_v16 = vpop.f32.mrf.mxu1  ;;  %v1332_v38 = vsub.f32 1.5, %v1331_v22 }
 0x2cf   : > { %v2366_v18 = vpop.eup %1848  ;;  %v1449_v20 = vmul.f32 %v1307_v14, %v2320_v1  ;;  %v2370_v28 = vadd.f32 %v1235_v16, %v1164_v13 }
 0x2d0   : > { %v1321_v31 = vmul.f32 0.5, %v1320_v15  ;;  %v1349_v2 = vmul.f32 %v2366_v18, %v2357_v58  ;;  %v1333_v6 = vmul.f32 %v2355_v61, %v1332_v38  ;;  %vm1355_vm1 = vweird.f32 %v2366_v18  ;;  %v1179_v38 = vpop.permute.xlu2 %1178 }
 0x2d1   : > { %v1464_v32 = vpack.c.bf16 %v1449_v20, %v1448_v19  ;;  %1852 = vrsqrt.f32 %v2370_v28  ;;  %vm2438_vm4 = vmor %vm1354_vm2, %vm1355_vm1  ;;  %vm1374_vm8 = vweird.f32 %v2370_v28 }
 0x2d2   : > { %v1322_v1 = vsub.f32 1.5, %v1321_v31  ;;  %v1273_v34 = vpop.f32.mrf.mxu3  ;;  %v1350_v35 = vmul.f32 %v2366_v18, %v1349_v2  ;;  %v1337_v4 = vsel %vm2412_vm13, %v2355_v61, %v1333_v6 }
 0x2d3   : > { %v1851_v36 = vpop.eup %1850  ;;  %1472 = vst [vmem:[%s2377_s13] sm:$0xff] %v1464_v32  ;;  %v2390_v21 = vadd.f32 %v1273_v34, %v1159_v56  ;;  %v1452_v61 = vmul.f32 %v1337_v4, %v2278_v45 }
 0x2d4   : > { %v1323_v42 = vmul.f32 %v1847_v5, %v1322_v1  ;;  %v1339_v44 = vmul.f32 %v1851_v36, %v2363_v9  ;;  %v1351_v57 = vmul.f32 0.5, %v1350_v35  ;;  %vm1345_vm14 = vweird.f32 %v1851_v36 }
 0x2d5   : > { %1854 = vrsqrt.f32 %v2390_v21  ;;  %vm1346_vm0 = vmor %vm1344_vm15, %vm1345_vm14  ;;  %vm1364_vm5 = vweird.f32 %v2390_v21 }
 0x2d6   : > { %v1327_v47 = vsel %vm1326_vm10, %v1847_v5, %v1323_v42  ;;  %v1340_v49 = vmul.f32 %v1851_v36, %v1339_v44  ;;  %v1238_v50 = vpop.f32.mrf.mxu1  ;;  %v1352_v55 = vsub.f32 1.5, %v1351_v57 }
 0x2d7   : > { %v2399_v51 = vpop.eup %1852  ;;  %v1451_v23 = vmul.f32 %v1327_v47, %v2322_v12  ;;  %v2404_v56 = vadd.f32 %v1238_v50, %v1169_v46 }
 0x2d8   : > { %v1341_v59 = vmul.f32 0.5, %v1340_v49  ;;  %v1369_v63 = vmul.f32 %v2399_v51, %v2370_v28  ;;  %v1353_v16 = vmul.f32 %v2366_v18, %v1352_v55  ;;  %vm1375_vm7 = vweird.f32 %v2399_v51 }
 0x2d9   : > { %v1465_v3 = vpack.c.bf16 %v1451_v23, %v1450_v52  ;;  %1856 = vrsqrt.f32 %v2404_v56  ;;  %vm1376_vm10 = vmor %vm1374_vm8, %vm1375_vm7  ;;  %vm1394_vm14 = vweird.f32 %v2404_v56 }
 0x2da   : > { %v1342_v25 = vsub.f32 1.5, %v1341_v59  ;;  %v1276_v12 = vpop.f32.mrf.mxu3  ;;  %v1370_v8 = vmul.f32 %v2399_v51, %v1369_v63  ;;  %v1357_v34 = vsel %vm2438_vm4, %v2366_v18, %v1353_v16 }
 0x2db   : > { %v1855_v60 = vpop.eup %1854  ;;  %1473 = vst [vmem:[%s2377_s13 + $0x8] sm:$0xff] %v1465_v3  ;;  %v2421_v7 = vadd.f32 %v1276_v12, %v1164_v13  ;;  %v1454_v44 = vmul.f32 %v1357_v34, %v2270_v40 }
 0x2dc   : > { %v1343_v5 = vmul.f32 %v1851_v36, %v1342_v25  ;;  %v1359_v10 = vmul.f32 %v1855_v60, %v2390_v21  ;;  %v1371_v19 = vmul.f32 0.5, %v1370_v8  ;;  %vm1365_vm3 = vweird.f32 %v1855_v60 }
 0x2dd   : > { %1858 = vrsqrt.f32 %v2421_v7  ;;  %vm1366_vm6 = vmor %vm1364_vm5, %vm1365_vm3  ;;  %vm1384_vm11 = vweird.f32 %v2421_v7 }
 0x2de   : > { %v1347_v24 = vsel %vm1346_vm0, %v1851_v36, %v1343_v5  ;;  %v1360_v26 = vmul.f32 %v1855_v60, %v1359_v10  ;;  %v1241_v14 = vpop.f32.mrf.mxu1  ;;  %v1372_v58 = vsub.f32 1.5, %v1371_v19 }
 0x2df   : > { %v2426_v15 = vpop.eup %1856  ;;  %v1453_v9 = vmul.f32 %v1347_v24, %v2302_v0  ;;  %v2431_v13 = vadd.f32 %v1241_v14, %v1174_v11 }
 0x2e0   : > { %v1361_v20 = vmul.f32 0.5, %v1360_v26  ;;  %v1389_v22 = vmul.f32 %v2426_v15, %v2404_v56  ;;  %v1373_v49 = vmul.f32 %v2399_v51, %v1372_v58  ;;  %vm1395_vm13 = vweird.f32 %v2426_v15 }
 0x2e1   : > { %v1466_v29 = vpack.c.bf16 %v1453_v9, %v1452_v61  ;;  %1860 = vrsqrt.f32 %v2431_v13  ;;  %vm2478_vm15 = vmor %vm1394_vm14, %vm1395_vm13  ;;  %vm1414_vm4 = vweird.f32 %v2431_v13 }
 0x2e2   : > { %v1362_v45 = vsub.f32 1.5, %v1361_v20  ;;  %v1279_v31 = vpop.f32.mrf.mxu3  ;;  %v1390_v32 = vmul.f32 %v2426_v15, %v1389_v22  ;;  %v1377_v63 = vsel %vm1376_vm10, %v2399_v51, %v1373_v49 }
 0x2e3   : > { %v1859_v2 = vpop.eup %1858  ;;  %1474 = vst [vmem:[%s2377_s13 + $0x10] sm:$0xff] %v1466_v29  ;;  %v2445_v1 = vadd.f32 %v1279_v31, %v1169_v46  ;;  %v1456_v4 = vmul.f32 %v1377_v63, %v2268_v17 }
 0x2e4   : > { %v1363_v36 = vmul.f32 %v1855_v60, %v1362_v45  ;;  %v1379_v37 = vmul.f32 %v1859_v2, %v2421_v7  ;;  %v1391_v47 = vmul.f32 0.5, %v1390_v32  ;;  %vm1385_vm9 = vweird.f32 %v1859_v2 }
 0x2e5   : > { %1862 = vrsqrt.f32 %v2445_v1  ;;  %vm1386_vm12 = vmor %vm1384_vm11, %vm1385_vm9  ;;  %vm1404_vm1 = vweird.f32 %v2445_v1 }
 0x2e6   : > { %v1367_v39 = vsel %vm1366_vm6, %v1855_v60, %v1363_v36  ;;  %v1380_v42 = vmul.f32 %v1859_v2, %v1379_v37  ;;  %v1244_v35 = vpop.f32.mrf.mxu1  ;;  %v1392_v57 = vsub.f32 1.5, %v1391_v47 }
 0x2e7   : > { %v2452_v21 = vpop.eup %1860  ;;  %v1455_v46 = vmul.f32 %v1367_v39, %v2295_v62  ;;  %v2456_v18 = vadd.f32 %v1244_v35, %v1179_v38 }
 0x2e8   : > { %v1381_v50 = vmul.f32 0.5, %v1380_v42  ;;  %v1409_v52 = vmul.f32 %v2452_v21, %v2431_v13  ;;  %v1393_v55 = vmul.f32 %v2426_v15, %v1392_v57  ;;  %vm1415_vm3 = vweird.f32 %v2452_v21 }
 0x2e9   : > { %v1467_v6 = vpack.c.bf16 %v1455_v46, %v1454_v44  ;;  %1864 = vrsqrt.f32 %v2456_v18  ;;  %vm1416_vm6 = vmor %vm1414_vm4, %vm1415_vm3  ;;  %vm1434_vm10 = vweird.f32 %v2456_v18 }
 0x2ea   : > { %v1382_v40 = vsub.f32 1.5, %v1381_v50  ;;  %v1282_v23 = vpop.f32.mrf.mxu3  ;;  %v1410_v54 = vmul.f32 %v2452_v21, %v1409_v52 }
 0x2eb   : > { %v1863_v62 = vpop.eup %1862  ;;  %1475 = vst [vmem:[%s2377_s13 + $0x18] sm:$0xff] %v1467_v6  ;;  %v1283_v59 = vadd.f32 %v1282_v23, %v1174_v11 }
 0x2ec   : > { %v1383_v3 = vmul.f32 %v1859_v2, %v1382_v40  ;;  %v1399_v25 = vmul.f32 %v1863_v62, %v2445_v1  ;;  %v1411_v7 = vmul.f32 0.5, %v1410_v54  ;;  %vm1405_vm0 = vweird.f32 %v1863_v62 }
 0x2ed   : > { %1866 = vrsqrt.f32 %v1283_v59  ;;  %vm1406_vm2 = vmor %vm1404_vm1, %vm1405_vm0  ;;  %vm1424_vm7 = vweird.f32 %v1283_v59 }
 0x2ee   : > { %v1387_v28 = vsel %vm1386_vm12, %v1859_v2, %v1383_v3  ;;  %v1400_v12 = vmul.f32 %v1863_v62, %v1399_v25  ;;  %v1412_v61 = vsub.f32 1.5, %v1411_v7 }
 0x2ef   : > { %v2469_v60 = vpop.eup %1864  ;;  %v1457_v51 = vmul.f32 %v1387_v28, %v2286_v53  ;;  %v1397_v53 = vsel %vm2478_vm15, %v2426_v15, %v1393_v55 }
 0x2f0   : > { %v1401_v5 = vmul.f32 0.5, %v1400_v12  ;;  %v1429_v8 = vmul.f32 %v2469_v60, %v2456_v18  ;;  %v1458_v22 = vmul.f32 %v1397_v53, %v2262_v33  ;;  %v1413_v15 = vmul.f32 %v2452_v21, %v1412_v61 }
 0x2f1   : > { %v1468_v10 = vpack.c.bf16 %v1457_v51, %v1456_v4  ;;  %vm1435_vm9 = vweird.f32 %v2469_v60 }
 0x2f2   : > { %v1402_v24 = vsub.f32 1.5, %v1401_v5  ;;  %v1285_v17 = vpop.f32.mrf.mxu3  ;;  %v1430_v56 = vmul.f32 %v2469_v60, %v1429_v8  ;;  %v1417_v1 = vsel %vm1416_vm6, %v2452_v21, %v1413_v15  ;;  %vm1436_vm12 = vmor %vm1434_vm10, %vm1435_vm9 }
 0x2f3   : > { %v1867_v26 = vpop.eup %1866  ;;  %1476 = vst [vmem:[%s2377_s13 + $0x20] sm:$0xff] %v1468_v10  ;;  %v1286_v14 = vadd.f32 %v1285_v17, %v1179_v38  ;;  %v1460_v37 = vmul.f32 %v1417_v1, %v2258_v27 }
 0x2f4   : > { %v1403_v9 = vmul.f32 %v1863_v62, %v1402_v24  ;;  %v1419_v16 = vmul.f32 %v1867_v26, %v1283_v59  ;;  %v1431_v45 = vmul.f32 0.5, %v1430_v56  ;;  %vm1425_vm5 = vweird.f32 %v1867_v26 }
 0x2f5   : > { %1868 = vrsqrt.f32 %v1286_v14  ;;  %vm1426_vm8 = vmor %vm1424_vm7, %vm1425_vm5  ;;  %vm1444_vm13 = vweird.f32 %v1286_v14 }
 0x2f6   : > { %v1407_v19 = vsel %vm1406_vm2, %v1863_v62, %v1403_v9  ;;  %v1420_v20 = vmul.f32 %v1867_v26, %v1419_v16  ;;  %v1432_v33 = vsub.f32 1.5, %v1431_v45 }
 0x2f7   : > { %v1459_v29 = vmul.f32 %v1407_v19, %v2280_v48 }
 0x2f8   : > { %v1421_v31 = vmul.f32 0.5, %v1420_v20  ;;  %v1433_v13 = vmul.f32 %v2469_v60, %v1432_v33 }
 0x2f9   : > { %v1469_v2 = vpack.c.bf16 %v1459_v29, %v1458_v22 }
 0x2fa   : > { %v1422_v0 = vsub.f32 1.5, %v1421_v31  ;;  %v1437_v21 = vsel %vm1436_vm12, %v2469_v60, %v1433_v13 }
 0x2fb   : > { %v1869_v32 = vpop.eup %1868  ;;  %1477 = vst [vmem:[%s2377_s13 + $0x28] sm:$0xff] %v1469_v2 }
 0x2fc   : > { %v1423_v48 = vmul.f32 %v1867_v26, %v1422_v0  ;;  %v1439_v34 = vmul.f32 %v1869_v32, %v1286_v14  ;;  %vm1445_vm11 = vweird.f32 %v1869_v32 }
 0x2fd   : > { %vm1446_vm14 = vmor %vm1444_vm13, %vm1445_vm11 }
 0x2fe   : > { %v1427_v58 = vsel %vm1426_vm8, %v1867_v26, %v1423_v48  ;;  %v1440_v36 = vmul.f32 %v1869_v32, %v1439_v34 }
 0x2ff   : > { %v1461_v38 = vmul.f32 %v1427_v58, %v2272_v43  ;;  %v1462_v43 = vmul.f32 %v1437_v21, %v2260_v30 }
 0x300   : > { %v1441_v39 = vmul.f32 0.5, %v1440_v36 }
 0x301   : > { %v1470_v42 = vpack.c.bf16 %v1461_v38, %v1460_v37 }
 0x302   : > { %v1442_v35 = vsub.f32 1.5, %v1441_v39 }
 0x303   : > { %1478 = vst [vmem:[%s2377_s13 + $0x30] sm:$0xff] %v1470_v42 }
 0x304   : > { %v1443_v44 = vmul.f32 %v1869_v32, %v1442_v35 }
 0x306   : > { %v1447_v27 = vsel %vm1446_vm14, %v1869_v32, %v1443_v44 }
 0x307   : > { %v1463_v46 = vmul.f32 %v1447_v27, %v2274_v41 }
 0x309   : > { %v1471_v47 = vpack.c.bf16 %v1463_v46, %v1462_v43 }
 0x30b   : > { %1479 = vst [vmem:[%s2377_s13 + $0x38] sm:$0xff] %v1471_v47 }
 0x30c PF: > { %s18_s21 = sadd.s32 1, %s1974_s21  }
 0x30d   : > { %p15_p7 = scmp.ge.s32.totalorder %s18_s21, 4  }
 0x30f   :  { %17 = sbr.rel (!%p15_p7) target bundleno = 2 (0x2), region = 90 }
 0x314   :  { %1501 = vsyncpa [#allocation4], 1 }
 0x315   :  { %1503 = vsyncpa [#allocation4 + $0x1], 1 }
 0x316   :  { %1504 = vsyncpa [#allocation6], 1 }

// kernel: _lambda_.7
= control target key start
LH: loop header
LB: loop body
LE: loop exit
PB: predicated region body
PF: predicated region fallthrough
CT: control target
= control target key end

     0   :  { %9 = vsyncpa [#allocation4], 0  ;;  %s4441_s0 = inlined_call_operand.vmem [shape: bf16[2,16,1090], index: 0, kind: input, shape index: {}]   ;;  %s4442_s1 = inlined_call_operand.hbm [shape: bf16[32,144], index: 1, kind: input, shape index: {}]   ;;  %s4443_s2 = inlined_call_operand.vmem [shape: f32[1,32,1], index: 2, kind: input, shape index: {}]   ;;  %s4444_s3 = inlined_call_operand.hbm [shape: bf16[3,1024], index: 3, kind: input, shape index: {}]   ;;  %s4445_s4 = inlined_call_operand.vmem [shape: f32[2,32,1024], index: 4, kind: output, shape index: {}]  }
   0x1   :  { %10 = vsyncpa [#allocation6], 0  ;;  %s3253_s15 = smov 0  }
   0x2 LB: > { %s147_s18 = sshll.u32 %s4442_s1, 4  ;;  %s2567_s19 = sadd.s32 4294967295, %s3209_s15   ;;  %s3209_s15 = sphi %s3253_s15, %s16_s15   ;;  %s148_s18 = int_to_ptr.hbm [resolvable:$true] %s147_s18 }
   0x3   : > { %p2569_p0 = scmp.ge.s32.totalorder %s3209_s15, 1  ;;  %p136_p1 = scmp.lt.s32.totalorder %s3209_s15, 3 }
   0x4   : > { %p3003_p2 = scmp.eq.s32.totalorder %s2567_s19, 0  ;;  %s3211_s21 = smov [#allocation3]  }
   0x5   : > { %p3264_p3 = pnand %p2569_p0, %p136_p1  ;;  %s149_s22 = sshll.u32 %s3211_s21, 4  ;;  %s150_s22 = int_to_ptr.vmem [resolvable:$true] %s149_s22 }
   0x6   : > { %s165_s25 = sshll.u32 %s4444_s3, 4  ;;  %s3212_s26 = smov [#allocation5]   ;;  %s166_s25 = int_to_ptr.hbm [resolvable:$true] %s165_s25 }
   0x7   : > { %p2996_p4 = pneg %p3264_p3  ;;  %s167_s27 = sshll.u32 %s3212_s26, 4  ;;  %s168_s27 = int_to_ptr.vmem [resolvable:$true] %s167_s27 }
   0x8   : > { %s3213_s28 = smov 128   ;;  %s3214_s29 = smov 8  }
   0x9   : > { %p2997_p5 = pnand %p3003_p2, %p2996_p4  ;;  %188 = sbr.rel (%p3264_p3) target bundleno = 715 (0x2cb), region = 36 }
   0xb   : > { %2999 = dma.hbm_to_vmem [thread:$0]  (!%p2997_p5), %s148_s18, 512, %s150_s22, [#allocation4], %s3213_s28, %s3213_s28, %s3214_s29  }
   0xc   : > { %3002 = dma.hbm_to_vmem [thread:$0]  (!%p2997_p5), %s166_s25, 256, %s168_s27, [#allocation6]  }
   0xe   : > { %3200 = dma.done.wait (%p3003_p2), [#allocation4], 512  }
   0xf   : > { %3202 = vsyncadd (%p3003_p2), [#allocation4], 4294966784 }
  0x10   : > { %3204 = dma.done.wait (%p3003_p2), [#allocation6], 256  }
  0x11   : > { %3206 = vsyncadd (%p3003_p2), [#allocation6], 4294967040  ;;  %p220_p6 = scmp.lt.s32.totalorder %s2567_s19, 1  ;;  %s3215_s8 = smov 127   ;;  %v239_v2 = vld [vmem:[#allocation5] sm:$0x55] }
  0x12   : > { %242 = vst [vmem:[#allocation1] ss:$4 sm:$0xff] %v239_v2  ;;  %v240_v4 = vld [vmem:[#allocation5 + $0x8] sm:$0x55]  ;;  %v428_v7 = vld [vmem:[#allocation5] sm:$0xaa] }
  0x13   : > { %s4505_s19 = smov (!%p220_p6, %s2567_s19), 1  ;;  %245 = vst [vmem:[#allocation1 + $0x20] ss:$4 sm:$0xff] %v240_v4  ;;  %v429_v10 = vld [vmem:[#allocation5 + $0x8] sm:$0xaa]  ;;  %s3216_s9 = smov 63  }
  0x14   : > { %s2987_s30 = smul.u32 72, %s4505_s19  ;;  %v645_v17 = vld [vmem:[#allocation5] sm:$0x55]  ;;  %v646_v26 = vld [vmem:[#allocation5 + $0x8] sm:$0x55]  ;;  %s3217_s10 = smov 2  }
  0x15   : > { %v945_v45 = vld [vmem:[#allocation5] sm:$0xaa]  ;;  %v946_v58 = vld [vmem:[#allocation5 + $0x8] sm:$0xaa]  ;;  %s3218_s11 = smov 32   ;;  %s3219_s12 = smov 34  }
  0x16   : > { %s3286_s7 = scalar_lea.vmem %s4441_s0, %s2987_s30  ;;  %s3220_s13 = smov 64   ;;  %vm384_vm0 = vcmask 1043456   ;;  %vm386_vm1 = vcmask 1039360   ;;  %vm517_vm2 = vcmask 15360   ;;  %vm734_vm3 = vcmask 261120  }
  0x17   : > { %v3289_v0 = vld [vmem:[%s3286_s7 + $0x10] sm:$0xff]  ;;  %v3292_v1 = vld [vmem:[%s3286_s7] sm:$0xff]  ;;  %v337_v5 = vld [vmem:[%s3286_s7 + $0x18] sm:$0xff]  ;;  %s3221_s14 = smov 66   ;;  %s3222_s16 = smov 95   ;;  %vm1034_vm4 = vcmask 277504  }
  0x18   : > { %358 = vrot.lane.b32.xlu1 %v3289_v0, %s3215_s8  ;;  %354 = vrot.lane.b32.xlu0 %v3292_v1, %s3215_s8  ;;  %v338_v3 = vld [vmem:[%s3286_s7 + $0x20] sm:$0xf]  ;;  %v3302_v6 = vld [vmem:[%s3286_s7 + $0x8] sm:$0xff]  ;;  %s3223_s17 = smov 126   ;;  %s3224_s18 = smov 96   ;;  %vm1251_vm5 = vcmask 523264  }
  0x19   : > { %362 = vrot.lane.b32.xlu2 %v338_v3, %s3215_s8  ;;  %v3307_v8 = vld.sshfl [vmem:[#allocation1] sm:$0xff pattern:$0x73625140]  ;;  %v3309_v9 = vld.sshfl [vmem:[#allocation1 + $0x8] sm:$0xff pattern:$0x73625140] }
  0x1a   : > { %4459 = vst [vmem:[#allocation9_spill] sm:$0xff] %v3309_v9  ;;  %v3311_v11 = vld.sshfl [vmem:[#allocation1 + $0x10] sm:$0xff pattern:$0x73625140]  ;;  %vm1420_vm6 = vcmask 515072   ;;  %s3225_s20 = smov 94  }
  0x1b   : > { %4460 = vst [vmem:[#allocation10_spill] sm:$0xff] %v3311_v11  ;;  %v3313_v12 = vld.sshfl [vmem:[#allocation1 + $0x18] sm:$0xff pattern:$0x73625140]  ;;  %vm1551_vm7 = vcmask 539648   ;;  %vm903_vm8 = vcmask 777216  }
  0x1c   : > { %4461 = vst [vmem:[#allocation11_spill] sm:$0xff] %v3313_v12  ;;  %v3315_v13 = vld.sshfl [vmem:[#allocation1 + $0x20] sm:$0xff pattern:$0x73625140]  ;;  %s3226_s21 = smov 62   ;;  %vm603_vm9 = vcmask 1031168  }
  0x1d   : > { %431 = vst [vmem:[#allocation1] ss:$4 sm:$0xff] %v428_v7  ;;  %v3319_v14 = vld.sshfl [vmem:[#allocation1 + $0x28] sm:$0xff pattern:$0x73625140]  ;;  %vm820_vm10 = vcmask 785408  }
  0x1e   : > { %4462 = vst [vmem:[#allocation12_spill] sm:$0xff] %v3315_v13  ;;  %v3321_v15 = vld.sshfl [vmem:[#allocation1 + $0x30] sm:$0xff pattern:$0x73625140]  ;;  %vm1120_vm11 = vcmask 769024   ;;  %vm1637_vm12 = vcmask 506880  }
  0x1f   : > { %4463 = vst [vmem:[#allocation13_spill] sm:$0xff] %v3319_v14  ;;  %v3323_v16 = vld.sshfl [vmem:[#allocation1 + $0x38] sm:$0xff pattern:$0x73625140]  ;;  %vm2147_vm13 = vcmask 130048   ;;  %s2901_s30 = sshll.u32 %s4505_s19, 8 }
  0x20   : > { %360 = vrot.lane.b32.xlu1 %v337_v5, %s3215_s8  ;;  %356 = vrot.lane.b32.xlu0 %v3302_v6, %s3215_s8  ;;  %4464 = vst [vmem:[#allocation14_spill] sm:$0xff] %v3321_v15 }
  0x21   : > { %1389 = vrot.lane.b32.xlu2 %v3292_v1, %s3216_s9  ;;  %4465 = vst [vmem:[#allocation15_spill] sm:$0xff] %v3323_v16 }
  0x22   : > { %434 = vst [vmem:[#allocation1 + $0x20] ss:$4 sm:$0xff] %v429_v10 }
  0x24   : > { %v437_v18 = vld.sshfl [vmem:[#allocation1 + $0x10] sm:$0xff pattern:$0x73625140]  ;;  %v438_v19 = vld.sshfl [vmem:[#allocation1 + $0x18] sm:$0xff pattern:$0x73625140] }
  0x25   : > { %v449_v20 = vpack.i.b16 %v437_v18, %v437_v18  ;;  %v452_v21 = vpack.i.b16 %v438_v19, %v438_v19  ;;  %v435_v22 = vld.sshfl [vmem:[#allocation1] sm:$0xff pattern:$0x73625140]  ;;  %v436_v23 = vld.sshfl [vmem:[#allocation1 + $0x8] sm:$0xff pattern:$0x73625140] }
  0x26   : > { %v443_v24 = vpack.i.b16 %v435_v22, %v435_v22  ;;  %v446_v25 = vpack.i.b16 %v436_v23, %v436_v23  ;;  %648 = vst [vmem:[#allocation1] ss:$4 sm:$0xff] %v645_v17  ;;  %v1162_v22 = vld [vmem:[#allocation5] sm:$0x55] }
  0x27   : > { %v451_v27 = vperm.slane %v449_v20, 1  ;;  %v454_v28 = vperm.slane %v452_v21, 1 }
  0x28   : > { %v445_v30 = vperm.slane %v443_v24, 1  ;;  %v448_v31 = vperm.slane %v446_v25, 1 }
  0x29   : > { %v439_v29 = vld.sshfl [vmem:[#allocation1 + $0x20] sm:$0xff pattern:$0x73625140]  ;;  %v440_v32 = vld.sshfl [vmem:[#allocation1 + $0x28] sm:$0xff pattern:$0x73625140]  ;;  %v487_v34 = vunpack.c.l.bf16 %v451_v27  ;;  %v488_v35 = vunpack.c.l.bf16 %v454_v28 }
  0x2a   : > { %v455_v33 = vpack.i.b16 %v439_v29, %v439_v29  ;;  %v3325_v36 = vld.sshfl [vmem:[#allocation1 + $0x30] sm:$0xff pattern:$0x73625140]  ;;  %v3327_v37 = vld.sshfl [vmem:[#allocation1 + $0x38] sm:$0xff pattern:$0x73625140]  ;;  %v458_v38 = vpack.i.b16 %v440_v32, %v440_v32  ;;  %v485_v39 = vunpack.c.l.bf16 %v445_v30  ;;  %v486_v40 = vunpack.c.l.bf16 %v448_v31 }
  0x2b   : > { %651 = vst [vmem:[#allocation1 + $0x20] ss:$4 sm:$0xff] %v646_v26  ;;  %v3037_v42 = vpack.i.bf16 %v488_v35, %v487_v34  ;;  %v1163_v34 = vld [vmem:[#allocation5 + $0x8] sm:$0x55] }
  0x2c   : > { %v457_v41 = vperm.slane %v455_v33, 1  ;;  %v460_v43 = vperm.slane %v458_v38, 1  ;;  %v3032_v44 = vpack.i.bf16 %v486_v40, %v485_v39 }
  0x2d   : > { %3038 = vrot.lane.b32.xlu1 %v3037_v42, %s3217_s10  ;;  %v652_v46 = vld.sshfl [vmem:[#allocation1] sm:$0xff pattern:$0x73625140]  ;;  %v653_v47 = vld.sshfl [vmem:[#allocation1 + $0x8] sm:$0xff pattern:$0x73625140] }
  0x2e   : > { %v489_v48 = vunpack.c.l.bf16 %v457_v41  ;;  %v490_v49 = vunpack.c.l.bf16 %v460_v43  ;;  %3033 = vrot.lane.b32.xlu0 %v3032_v44, %s3217_s10  ;;  %v654_v50 = vld.sshfl [vmem:[#allocation1 + $0x10] sm:$0xff pattern:$0x73625140]  ;;  %v655_v51 = vld.sshfl [vmem:[#allocation1 + $0x18] sm:$0xff pattern:$0x73625140]  ;;  %v660_v52 = vpack.i.b16 %v652_v46, %v652_v46  ;;  %v663_v53 = vpack.i.b16 %v653_v47, %v653_v47 }
  0x2f   : > { %948 = vst [vmem:[#allocation1] ss:$4 sm:$0xff] %v945_v45  ;;  %v666_v54 = vpack.i.b16 %v654_v50, %v654_v50  ;;  %v669_v55 = vpack.i.b16 %v655_v51, %v655_v51 }
  0x30   : > { %v662_v56 = vperm.slane %v660_v52, 0  ;;  %v665_v57 = vperm.slane %v663_v53, 0  ;;  %v3042_v61 = vpack.i.bf16 %v490_v49, %v489_v48 }
  0x31   : > { %v668_v7 = vperm.slane %v666_v54, 0  ;;  %v671_v10 = vperm.slane %v669_v55, 0 }
  0x32   : > { %v656_v59 = vld.sshfl [vmem:[#allocation1 + $0x20] sm:$0xff pattern:$0x73625140]  ;;  %v657_v60 = vld.sshfl [vmem:[#allocation1 + $0x28] sm:$0xff pattern:$0x73625140]  ;;  %v702_v62 = vunpack.c.l.bf16 %v662_v56  ;;  %v703_v63 = vunpack.c.l.bf16 %v665_v57 }
  0x33   : > { %v3331_v2 = vld.sshfl [vmem:[#allocation1 + $0x30] sm:$0xff pattern:$0x73625140]  ;;  %v3333_v3 = vld.sshfl [vmem:[#allocation1 + $0x38] sm:$0xff pattern:$0x73625140]  ;;  %v672_v4 = vpack.i.b16 %v656_v59, %v656_v59  ;;  %v675_v5 = vpack.i.b16 %v657_v60, %v657_v60  ;;  %v704_v18 = vunpack.c.l.bf16 %v668_v7  ;;  %v705_v19 = vunpack.c.l.bf16 %v671_v10 }
  0x34   : > { %951 = vst [vmem:[#allocation1 + $0x20] ss:$4 sm:$0xff] %v946_v58  ;;  %v3047_v17 = vpack.i.bf16 %v703_v63, %v702_v62  ;;  %v1462_v62 = vld [vmem:[#allocation5] sm:$0xaa] }
  0x35   : > { %v674_v20 = vperm.slane %v672_v4, 0  ;;  %v677_v21 = vperm.slane %v675_v5, 0  ;;  %v3052_v29 = vpack.i.bf16 %v705_v19, %v704_v18 }
  0x36   : > { %3048 = vrot.lane.b32.xlu1 %v3047_v17, %s3218_s11  ;;  %3043 = vrot.lane.b32.xlu0 %v3042_v61, %s3217_s10  ;;  %v954_v23 = vld.sshfl [vmem:[#allocation1 + $0x10] sm:$0xff pattern:$0x73625140]  ;;  %v955_v24 = vld.sshfl [vmem:[#allocation1 + $0x18] sm:$0xff pattern:$0x73625140] }
  0x37   : > { %v966_v25 = vpack.i.b16 %v954_v23, %v954_v23  ;;  %v969_v26 = vpack.i.b16 %v955_v24, %v955_v24  ;;  %v952_v27 = vld.sshfl [vmem:[#allocation1] sm:$0xff pattern:$0x73625140]  ;;  %v953_v28 = vld.sshfl [vmem:[#allocation1 + $0x8] sm:$0xff pattern:$0x73625140]  ;;  %3053 = vrot.lane.b32.xlu2 %v3052_v29, %s3218_s11  ;;  %v706_v35 = vunpack.c.l.bf16 %v674_v20  ;;  %v707_v38 = vunpack.c.l.bf16 %v677_v21 }
  0x38   : > { %v960_v30 = vpack.i.b16 %v952_v27, %v952_v27  ;;  %v963_v31 = vpack.i.b16 %v953_v28, %v953_v28  ;;  %1165 = vst [vmem:[#allocation1] ss:$4 sm:$0xff] %v1162_v22 }
  0x39   : > { %v968_v32 = vperm.slane %v966_v25, 1  ;;  %v971_v33 = vperm.slane %v969_v26, 1  ;;  %v3057_v55 = vpack.i.bf16 %v707_v38, %v706_v35  ;;  %v1463_v26 = vld [vmem:[#allocation5 + $0x8] sm:$0xaa] }
  0x3a   : > { %v962_v39 = vperm.slane %v960_v30, 1  ;;  %v965_v40 = vperm.slane %v963_v31, 1 }
  0x3b   : > { %v958_v41 = vld.sshfl [vmem:[#allocation1 + $0x30] sm:$0xff pattern:$0x73625140]  ;;  %v1004_v42 = vunpack.c.l.bf16 %v968_v32  ;;  %v1005_v43 = vunpack.c.l.bf16 %v971_v33  ;;  %v959_v44 = vld.sshfl [vmem:[#allocation1 + $0x38] sm:$0xff pattern:$0x73625140] }
  0x3c   : > { %v978_v45 = vpack.i.b16 %v958_v41, %v958_v41  ;;  %v956_v46 = vld.sshfl [vmem:[#allocation1 + $0x20] sm:$0xff pattern:$0x73625140]  ;;  %v1002_v47 = vunpack.c.l.bf16 %v962_v39  ;;  %v1003_v48 = vunpack.c.l.bf16 %v965_v40  ;;  %v981_v49 = vpack.i.b16 %v959_v44, %v959_v44  ;;  %v957_v50 = vld.sshfl [vmem:[#allocation1 + $0x28] sm:$0xff pattern:$0x73625140] }
  0x3d   : > { %v972_v51 = vpack.i.b16 %v956_v46, %v956_v46  ;;  %v3067_v52 = vpack.i.bf16 %v1005_v43, %v1004_v42  ;;  %v975_v54 = vpack.i.b16 %v957_v50, %v957_v50  ;;  %1168 = vst [vmem:[#allocation1 + $0x20] ss:$4 sm:$0xff] %v1163_v34 }
  0x3e   : > { %v980_v53 = vperm.slane %v978_v45, 1  ;;  %v3062_v56 = vpack.i.bf16 %v1003_v48, %v1002_v47  ;;  %v983_v57 = vperm.slane %v981_v49, 1 }
  0x3f   : > { %v974_v58 = vperm.slane %v972_v51, 1  ;;  %3068 = vrot.lane.b32.xlu1 %v3067_v52, %s3219_s12  ;;  %v977_v60 = vperm.slane %v975_v54, 1  ;;  %v1169_v61 = vld.sshfl [vmem:[#allocation1] sm:$0xff pattern:$0x73625140]  ;;  %3058 = vrot.lane.b32.xlu2 %v3057_v55, %s3218_s11 }
  0x40   : > { %v1008_v59 = vunpack.c.l.bf16 %v980_v53  ;;  %3063 = vrot.lane.b32.xlu0 %v3062_v56, %s3219_s12  ;;  %v1009_v63 = vunpack.c.l.bf16 %v983_v57  ;;  %v1170_v5 = vld.sshfl [vmem:[#allocation1 + $0x8] sm:$0xff pattern:$0x73625140]  ;;  %v1177_v7 = vpack.i.b16 %v1169_v61, %v1169_v61  ;;  %v1171_v10 = vld.sshfl [vmem:[#allocation1 + $0x10] sm:$0xff pattern:$0x73625140]  ;;  %v681_v61 = vpack.i.b16 %v3333_v3, %v3333_v3 }
  0x41   : > { %v1006_v4 = vunpack.c.l.bf16 %v974_v58  ;;  %v1007_v17 = vunpack.c.l.bf16 %v977_v60  ;;  %v1180_v18 = vpack.i.b16 %v1170_v5, %v1170_v5  ;;  %v1172_v19 = vld.sshfl [vmem:[#allocation1 + $0x18] sm:$0xff pattern:$0x73625140]  ;;  %v1183_v20 = vpack.i.b16 %v1171_v10, %v1171_v10 }
  0x42   : > { %v1186_v21 = vpack.i.b16 %v1172_v19, %v1172_v19  ;;  %1465 = vst [vmem:[#allocation1] ss:$4 sm:$0xff] %v1462_v62  ;;  %v3077_v22 = vpack.i.bf16 %v1009_v63, %v1008_v59  ;;  %v1179_v23 = vperm.slane %v1177_v7, 0  ;;  %v678_v59 = vpack.i.b16 %v3331_v2, %v3331_v2 }
  0x43   : > { %v1182_v24 = vperm.slane %v1180_v18, 0  ;;  %v1185_v25 = vperm.slane %v1183_v20, 0  ;;  %v3072_v29 = vpack.i.bf16 %v1007_v17, %v1006_v4 }
  0x44   : > { %v1173_v27 = vld.sshfl [vmem:[#allocation1 + $0x20] sm:$0xff pattern:$0x73625140]  ;;  %v1174_v28 = vld.sshfl [vmem:[#allocation1 + $0x28] sm:$0xff pattern:$0x73625140]  ;;  %v1219_v38 = vunpack.c.l.bf16 %v1179_v23 }
  0x45   : > { %v1175_v30 = vld.sshfl [vmem:[#allocation1 + $0x30] sm:$0xff pattern:$0x73625140]  ;;  %v1176_v31 = vld.sshfl [vmem:[#allocation1 + $0x38] sm:$0xff pattern:$0x73625140]  ;;  %v1189_v32 = vpack.i.b16 %v1173_v27, %v1173_v27  ;;  %v1192_v33 = vpack.i.b16 %v1174_v28, %v1174_v28  ;;  %v1221_v35 = vunpack.c.l.bf16 %v1185_v25  ;;  %v1220_v39 = vunpack.c.l.bf16 %v1182_v24 }
  0x46   : > { %v1188_v34 = vperm.slane %v1186_v21, 0  ;;  %1468 = vst [vmem:[#allocation1 + $0x20] ss:$4 sm:$0xff] %v1463_v26  ;;  %v1195_v48 = vpack.i.b16 %v1175_v30, %v1175_v30  ;;  %v1198_v52 = vpack.i.b16 %v1176_v31, %v1176_v31  ;;  %v680_v2 = vperm.slane %v678_v59, 0 }
  0x47   : > { %3078 = vrot.lane.b32.xlu1 %v3077_v22, %s3219_s12  ;;  %v1191_v40 = vperm.slane %v1189_v32, 0  ;;  %v1194_v41 = vperm.slane %v1192_v33, 0  ;;  %v3082_v49 = vpack.i.bf16 %v1220_v39, %v1219_v38  ;;  %v683_v21 = vperm.slane %v681_v61, 0  ;;  %v3355_v32 = vld [vmem:[%s3286_s7 + $0x24] sm:$0xff] }
  0x48   : > { %3073 = vrot.lane.b32.xlu0 %v3072_v29, %s3219_s12  ;;  %v1222_v42 = vunpack.c.l.bf16 %v1188_v34  ;;  %v1197_v62 = vperm.slane %v1195_v48, 0  ;;  %v1200_v63 = vperm.slane %v1198_v52, 0  ;;  %v708_v27 = vunpack.c.l.bf16 %v680_v2 }
  0x49   : > { %v1471_v43 = vld.sshfl [vmem:[#allocation1 + $0x10] sm:$0xff pattern:$0x73625140]  ;;  %v1472_v44 = vld.sshfl [vmem:[#allocation1 + $0x18] sm:$0xff pattern:$0x73625140]  ;;  %v1223_v50 = vunpack.c.l.bf16 %v1191_v40  ;;  %v1224_v51 = vunpack.c.l.bf16 %v1194_v41  ;;  %v709_v28 = vunpack.c.l.bf16 %v683_v21  ;;  %v461_v38 = vpack.i.b16 %v3325_v36, %v3325_v36 }
  0x4a   : > { %v3087_v45 = vpack.i.bf16 %v1222_v42, %v1221_v35  ;;  %v1483_v46 = vpack.i.b16 %v1471_v43, %v1471_v43  ;;  %v1486_v47 = vpack.i.b16 %v1472_v44, %v1472_v44  ;;  %v1469_v17 = vld.sshfl [vmem:[#allocation1] sm:$0xff pattern:$0x73625140]  ;;  %v1470_v18 = vld.sshfl [vmem:[#allocation1 + $0x8] sm:$0xff pattern:$0x73625140]  ;;  %v1225_v22 = vunpack.c.l.bf16 %v1197_v62 }
  0x4b   : > { %v3092_v60 = vpack.i.bf16 %v1224_v51, %v1223_v50  ;;  %v1226_v23 = vunpack.c.l.bf16 %v1200_v63  ;;  %v1477_v25 = vpack.i.b16 %v1469_v17, %v1469_v17  ;;  %v1480_v26 = vpack.i.b16 %v1470_v18, %v1470_v18  ;;  %v3371_v36 = vld [vmem:[%s3286_s7 + $0x2c] sm:$0xff] }
  0x4c   : > { %3088 = vrot.lane.b32.xlu2 %v3087_v45, %s3220_s13  ;;  %v1485_v53 = vperm.slane %v1483_v46, 1  ;;  %v1488_v54 = vperm.slane %v1486_v47, 1  ;;  %v3117_v33 = vpack.i.bf16 %v709_v28, %v708_v27  ;;  %v464_v39 = vpack.i.b16 %v3327_v37, %v3327_v37  ;;  %v3379_v45 = vld [vmem:[%s3286_s7 + $0x34] sm:$0xff] }
  0x4d   : > { %v1473_v55 = vld.sshfl [vmem:[#allocation1 + $0x20] sm:$0xff pattern:$0x73625140]  ;;  %v1474_v56 = vld.sshfl [vmem:[#allocation1 + $0x28] sm:$0xff pattern:$0x73625140]  ;;  %v3097_v29 = vpack.i.bf16 %v1226_v23, %v1225_v22  ;;  %v3408_v17 = vunpack.c.l.bf16 %v3302_v6  ;;  %v3411_v18 = vunpack.c.h.bf16 %v3302_v6  ;;  %v3422_v23 = vunpack.c.h.bf16 %v3355_v32 }
  0x4e   : > { %v1489_v57 = vpack.i.b16 %v1473_v55, %v1473_v55  ;;  %v1492_v58 = vpack.i.b16 %v1474_v56, %v1474_v56  ;;  %v1521_v7 = vunpack.c.l.bf16 %v1485_v53  ;;  %v1522_v10 = vunpack.c.l.bf16 %v1488_v54 }
  0x4f   : > { %3083 = vrot.lane.b32.xlu1 %v3082_v49, %s3220_s13  ;;  %v1479_v30 = vperm.slane %v1477_v25, 1  ;;  %v1482_v31 = vperm.slane %v1480_v26, 1  ;;  %v463_v41 = vperm.slane %v461_v38, 1  ;;  %v466_v42 = vperm.slane %v464_v39, 1 }
  0x50   : > { %1391 = vrot.lane.b32.xlu0 %v3302_v6, %s3216_s9  ;;  %v1491_v4 = vperm.slane %v1489_v57, 1  ;;  %v1494_v5 = vperm.slane %v1492_v58, 1  ;;  %v3107_v3 = vpack.i.bf16 %v1522_v10, %v1521_v7 }
  0x51   : > { %v1519_v34 = vunpack.c.l.bf16 %v1479_v30  ;;  %v1520_v35 = vunpack.c.l.bf16 %v1482_v31  ;;  %v491_v43 = vunpack.c.l.bf16 %v463_v41  ;;  %v492_v44 = vunpack.c.l.bf16 %v466_v42 }
  0x52   : > { %v1523_v19 = vunpack.c.l.bf16 %v1491_v4  ;;  %v1524_v20 = vunpack.c.l.bf16 %v1494_v5 }
  0x53   : > { %v3102_v40 = vpack.i.bf16 %v1520_v35, %v1519_v34  ;;  %v3122_v37 = vpack.i.bf16 %v492_v44, %v491_v43  ;;  %v3444_v43 = vunpack.c.l.bf16 %v3371_v36  ;;  %v3447_v44 = vunpack.c.h.bf16 %v3371_v36 }
  0x54   : > { %v3112_v24 = vpack.i.bf16 %v1524_v20, %v1523_v19  ;;  %3093 = vrot.lane.b32.xlu2 %v3092_v60, %s3220_s13  ;;  %v3414_v19 = vunpack.c.l.bf16 %v3355_v32  ;;  %v3417_v20 = vunpack.c.l.bf16 %v3292_v1 }
  0x57   : > { %3113 = vrot.lane.b32.xlu1 %v3112_v24, %s3221_s14  ;;  %v3425_v24 = vunpack.c.h.bf16 %v3292_v1 }
  0x58   : > { %3108 = vrot.lane.b32.xlu0 %v3107_v3, %s3221_s14 }
  0x5c   : > { %3098 = vrot.lane.b32.xlu2 %v3097_v29, %s3220_s13 }
  0x5f   : > { %1399 = vrot.lane.b32.xlu1 %v3355_v32, %s3216_s9 }
  0x60   : > { %3118 = vrot.lane.b32.xlu0 %v3117_v33, %s3218_s11 }
  0x64   : > { %3103 = vrot.lane.b32.xlu2 %v3102_v40, %s3221_s14 }
  0x67   : > { %1393 = vrot.lane.b32.xlu1 %v3289_v0, %s3216_s9 }
  0x68   : > { %874 = vrot.lane.b32.xlu0 %v3302_v6, %s3222_s16 }
  0x6c   : > { %1401 = vrot.lane.b32.xlu2 %v3371_v36, %s3216_s9 }
  0x6f   : > { %3123 = vrot.lane.b32.xlu1 %v3122_v37, %s3217_s10 }
  0x70   : > { %876 = vrot.lane.b32.xlu0 %v3289_v0, %s3222_s16 }
  0x73   : > { %v363_v46 = vpop.permute.xlu2 %362 }
  0x74   : > { %1403 = vrot.lane.b32.xlu2 %v3379_v45, %s3216_s9  ;;  %v378_v52 = vrot.slane %v363_v46, 4 }
  0x77   : > { %882 = vrot.lane.b32.xlu1 %v3355_v32, %s3222_s16 }
  0x7b   : > { %v3391_v49 = vpop.permute.xlu2 %1389 }
  0x7c   : > { %872 = vrot.lane.b32.xlu2 %v3292_v1, %s3222_s16 }
  0x7f   : > { %886 = vrot.lane.b32.xlu1 %v3379_v45, %s3222_s16 }
  0x84   : > { %884 = vrot.lane.b32.xlu2 %v3371_v36, %s3222_s16 }
  0x8a   : > { %v359_v47 = vpop.permute.xlu1 %358  ;;  %v355_v48 = vpop.permute.xlu0 %354 }
  0x8b   : > { %v376_v50 = vrot.slane %v359_v47, 4  ;;  %v374_v51 = vrot.slane %v355_v48, 4 }
  0x91   : > { %v3401_v5 = vpop.permute.xlu2 %3053 }
  0x92   : > { %v361_v53 = vpop.permute.xlu1 %360  ;;  %v357_v54 = vpop.permute.xlu0 %356  ;;  %v3056_v26 = vunpack.i.h.bf16 %v3401_v5  ;;  %v3055_v27 = vunpack.i.l.bf16 %v3401_v5  ;;  %v3469_v5 = vunpack.c.l.bf16 %v3379_v45 }
  0x93   : > { %v377_v55 = vrot.slane %v361_v53, 4  ;;  %v375_v56 = vrot.slane %v357_v54, 4 }
  0x94   : > { %v737_v42 = vsel %vm734_vm3, %v3055_v27, %v3056_v26 }
  0x95   : > { %v390_v57 = vsel %vm384_vm0, %v376_v50, %v377_v55  ;;  %v392_v58 = vsel %vm384_vm0, %v377_v55, %v378_v52  ;;  %v385_v59 = vsel %vm384_vm0, %v374_v51, %v375_v56  ;;  %v388_v60 = vsel %vm384_vm0, %v375_v56, %v376_v50 }
  0x96   : > { %v391_v61 = vsel %vm386_vm1, %v359_v47, %v390_v57  ;;  %v393_v62 = vsel %vm386_vm1, %v361_v53, %v392_v58  ;;  %v387_v63 = vsel %vm386_vm1, %v355_v48, %v385_v59  ;;  %v389_v4 = vsel %vm386_vm1, %v357_v54, %v388_v60 }
  0x97   : > { %412 = vst [vmem:[#allocation2 + $0x50] sm:$0xff] %v391_v61  ;;  %v754_v52 = vmul.f32 %v737_v42, %v3411_v18  ;;  %v688_v60 = vunpack.c.l.bf16 %v3289_v0  ;;  %v689_v61 = vunpack.c.h.bf16 %v3289_v0 }
  0x98   : > { %413 = vst [vmem:[#allocation2 + $0x58] sm:$0xff] %v393_v62 }
  0x99   : > { %410 = vst [vmem:[#allocation2 + $0x40] sm:$0xff] %v387_v63  ;;  %v3403_v7 = vpop.permute.xlu2 %3058 }
  0x9a   : > { %411 = vst [vmem:[#allocation2 + $0x48] sm:$0xff] %v389_v4  ;;  %v4448_v50 = vunpack.i.h.bf16 %v3403_v7  ;;  %v3060_v51 = vunpack.i.l.bf16 %v3403_v7  ;;  %v4471_v13 = vunpack.i.h.bf16 %v3403_v7 }
  0x9f   : > { %v3405_v10 = vpop.permute.xlu1 %3038 }
  0xa0   : > { %v4446_v2 = vunpack.i.h.bf16 %v3405_v10  ;;  %v3040_v21 = vunpack.i.l.bf16 %v3405_v10  ;;  %v3034_v22 = vpop.permute.xlu0 %3033 }
  0xa1   : > { %v3036_v3 = vunpack.i.h.bf16 %v3034_v22  ;;  %v3035_v6 = vunpack.i.l.bf16 %v3034_v22  ;;  %v738_v22 = vsel %vm734_vm3, %v3056_v26, %v3060_v51 }
  0xa2   : > { %v520_v25 = vsel %vm517_vm2, %v3040_v21, %v4446_v2 }
  0xa3   : > { %v519_v28 = vsel %vm517_vm2, %v3036_v3, %v3040_v21  ;;  %v518_v29 = vsel %vm517_vm2, %v3035_v6, %v3036_v3  ;;  %v537_v30 = vmul.f32 %v520_v25, %v3411_v18  ;;  %v543_v1 = vmul.f32 %v3035_v6, %v3414_v19 }
  0xa4   : > { %v536_v31 = vmul.f32 %v519_v28, %v3408_v17  ;;  %v544_v33 = vmul.f32 %v518_v29, %v3422_v23  ;;  %v534_v34 = vmul.f32 %v3035_v6, %v3417_v20  ;;  %v535_v35 = vmul.f32 %v518_v29, %v3425_v24 }
  0xa5   : > { %v545_v55 = vmul.f32 %v519_v28, %v3444_v43  ;;  %v546_v56 = vmul.f32 %v520_v25, %v3447_v44  ;;  %v3472_v21 = vunpack.c.h.bf16 %v3379_v45  ;;  %v739_v3 = vsel %vm734_vm3, %v3060_v51, %v4448_v50 }
  0xa6   : > { %v553_v38 = vpack.c.bf16 %v537_v30, %v536_v31  ;;  %v557_v39 = vpack.c.bf16 %v544_v33, %v543_v1  ;;  %v552_v40 = vpack.c.bf16 %v535_v35, %v534_v34  ;;  %v3440_v41 = vpop.permute.xlu2 %3088  ;;  %v755_v28 = vmul.f32 %v738_v22, %v688_v60 }
  0xa7   : > { %v558_v6 = vpack.c.bf16 %v546_v56, %v545_v55  ;;  %v756_v26 = vmul.f32 %v739_v3, %v689_v61  ;;  %v764_v29 = vmul.f32 %v738_v22, %v3469_v5  ;;  %v765_v30 = vmul.f32 %v739_v3, %v3472_v21 }
  0xa8   : > { %v3049_v37 = vpop.permute.xlu1 %3048  ;;  %v3449_v46 = vpop.permute.xlu0 %3043  ;;  %574 = vrot.lane.b32.xlu0 %v553_v38, %s3223_s17  ;;  %582 = vrot.lane.b32.xlu1 %v557_v39, %s3223_s17  ;;  %v763_v56 = vmul.f32 %v737_v42, %v3447_v44 }
  0xa9   : > { %v3051_v47 = vunpack.i.h.bf16 %v3049_v37  ;;  %v3050_v48 = vunpack.i.l.bf16 %v3049_v37  ;;  %572 = vrot.lane.b32.xlu2 %v552_v40, %s3223_s17  ;;  %v771_v38 = vpack.c.bf16 %v756_v26, %v755_v28  ;;  %v776_v39 = vpack.c.bf16 %v765_v30, %v764_v29  ;;  %v3493_v37 = vld [vmem:[%s3286_s7 + $0x18] sm:$0xff] }
  0xaa   : > { %v3513_v26 = vunpack.c.l.bf16 %v3493_v37 }
  0xab   : > { %v736_v53 = vsel %vm734_vm3, %v3051_v47, %v3055_v27  ;;  %v735_v54 = vsel %vm734_vm3, %v3050_v48, %v3051_v47  ;;  %v760_v58 = vmul.f32 %v3050_v48, %v3414_v19  ;;  %v751_v33 = vmul.f32 %v3050_v48, %v3417_v20 }
  0xac   : > { %v753_v57 = vmul.f32 %v736_v53, %v3408_v17  ;;  %v761_v59 = vmul.f32 %v735_v54, %v3422_v23  ;;  %v752_v34 = vmul.f32 %v735_v54, %v3425_v24  ;;  %v762_v28 = vmul.f32 %v736_v53, %v3444_v43 }
  0xae   : > { %v770_v62 = vpack.c.bf16 %v754_v52, %v753_v57  ;;  %v774_v63 = vpack.c.bf16 %v761_v59, %v760_v58  ;;  %v3466_v4 = vpop.permute.xlu2 %3093  ;;  %v769_v47 = vpack.c.bf16 %v752_v34, %v751_v33  ;;  %v3504_v57 = vld [vmem:[%s3286_s7 + $0x3c] sm:$0xff]  ;;  %v3507_v58 = vunpack.c.h.bf16 %v3493_v37 }
  0xaf   : > { %v3522_v33 = vunpack.c.h.bf16 %v3504_v57 }
  0xb0   : > { %791 = vrot.lane.b32.xlu0 %v770_v62, %s3224_s18  ;;  %799 = vrot.lane.b32.xlu1 %v774_v63, %s3224_s18 }
  0xb1   : > { %v3069_v25 = vpop.permute.xlu1 %3068  ;;  %584 = vrot.lane.b32.xlu2 %v558_v6, %s3223_s17 }
  0xb2   : > { %v3064_v27 = vpop.permute.xlu0 %3063  ;;  %v3071_v59 = vunpack.i.h.bf16 %v3069_v25  ;;  %v3070_v62 = vunpack.i.l.bf16 %v3069_v25 }
  0xb3   : > { %v3066_v1 = vunpack.i.h.bf16 %v3064_v27  ;;  %v3065_v31 = vunpack.i.l.bf16 %v3064_v27 }
  0xb4   : > { %v1037_v53 = vsel %vm1034_vm4, %v3070_v62, %v3071_v59 }
  0xb5   : > { %v1035_v35 = vsel %vm1034_vm4, %v3065_v31, %v3066_v1  ;;  %v1060_v51 = vmul.f32 %v3065_v31, %v3414_v19  ;;  %v1051_v52 = vmul.f32 %v3065_v31, %v3417_v20  ;;  %v3518_v31 = vunpack.c.l.bf16 %v3504_v57 }
  0xb6   : > { %v3490_v40 = vpop.permute.xlu2 %3098  ;;  %v1061_v48 = vmul.f32 %v1035_v35, %v3422_v23  ;;  %v1052_v54 = vmul.f32 %v1035_v35, %v3425_v24  ;;  %v1036_v35 = vsel %vm1034_vm4, %v3066_v1, %v3070_v62 }
  0xb8   : > { %793 = vrot.lane.b32.xlu0 %v771_v38, %s3224_s18  ;;  %803 = vrot.lane.b32.xlu1 %v776_v39, %s3224_s18  ;;  %v1074_v29 = vpack.c.bf16 %v1061_v48, %v1060_v51  ;;  %v1069_v30 = vpack.c.bf16 %v1052_v54, %v1051_v52  ;;  %v775_v51 = vpack.c.bf16 %v763_v56, %v762_v28  ;;  %v1409_v52 = vrot.slane %v3391_v49, 4 }
  0xb9   : > { %v3079_v55 = vpop.permute.xlu1 %3078  ;;  %789 = vrot.lane.b32.xlu2 %v769_v47, %s3224_s18  ;;  %v1063_v56 = vmul.f32 %v1037_v53, %v3447_v44 }
  0xba   : > { %v3509_v63 = vunpack.i.h.bf16 %v3079_v55  ;;  %v3080_v22 = vunpack.i.l.bf16 %v3079_v55  ;;  %v3074_v3 = vpop.permute.xlu0 %3073  ;;  %v1062_v55 = vmul.f32 %v1036_v35, %v3444_v43 }
  0xbb   : > { %v3076_v6 = vunpack.i.h.bf16 %v3074_v3  ;;  %v3075_v27 = vunpack.i.l.bf16 %v3074_v3 }
  0xbc   : > { %v1041_v42 = vsel %vm1034_vm4, %v3080_v22, %v3509_v63 }
  0xbd   : > { %v1040_v25 = vsel %vm1034_vm4, %v3076_v6, %v3080_v22  ;;  %v3525_v34 = vmul.f32 %v1041_v42, %v3507_v58  ;;  %v1038_v39 = vsel %vm1034_vm4, %v3071_v59, %v3075_v27  ;;  %v1039_v47 = vsel %vm1034_vm4, %v3075_v27, %v3076_v6 }
  0xbe   : > { %v3529_v38 = vpop.permute.xlu2 %3103  ;;  %v3534_v48 = vmul.f32 %v1040_v25, %v3513_v26  ;;  %v3540_v1 = vmul.f32 %v3518_v31, %v1040_v25  ;;  %v3548_v62 = vmul.f32 %v3522_v33, %v1041_v42  ;;  %v1055_v27 = vmul.f32 %v1038_v39, %v688_v60  ;;  %v1154_v60 = vld [vmem:[%s3286_s7 + $0x10] sm:$0xff]  ;;  %v3573_v42 = vld [vmem:[%s3286_s7 + $0x8] sm:$0xff] }
  0xbf   : > { %v1056_v28 = vmul.f32 %v1039_v47, %v689_v61  ;;  %v1054_v25 = vmul.f32 %v1037_v53, %v3411_v18  ;;  %v3579_v2 = vunpack.c.l.bf16 %v1154_v60  ;;  %v1204_v50 = vunpack.c.h.bf16 %v3573_v42 }
  0xc0   : > { %1099 = vrot.lane.b32.xlu0 %v1074_v29, %s3225_s20  ;;  %1089 = vrot.lane.b32.xlu1 %v1069_v30, %s3225_s20  ;;  %v1053_v30 = vmul.f32 %v1036_v35, %v3408_v17  ;;  %v1075_v35 = vpack.c.bf16 %v1063_v56, %v1062_v55 }
  0xc1   : > { %v3084_v54 = vpop.permute.xlu1 %3083  ;;  %801 = vrot.lane.b32.xlu2 %v775_v51, %s3224_s18  ;;  %v3091_v51 = vunpack.i.h.bf16 %v3440_v41  ;;  %v1071_v17 = vpack.c.bf16 %v1056_v28, %v1055_v27 }
  0xc2   : > { %v3086_v22 = vunpack.i.h.bf16 %v3084_v54  ;;  %v3085_v3 = vunpack.i.l.bf16 %v3084_v54  ;;  %v3550_v6 = vpop.permute.xlu0 %1391  ;;  %v3090_v54 = vunpack.i.l.bf16 %v3440_v41  ;;  %v1070_v53 = vpack.c.bf16 %v1054_v25, %v1053_v30 }
  0xc3   : > { %v4447_v29 = vrot.slane %v3550_v6, 4  ;;  %v3095_v30 = vunpack.i.l.bf16 %v3466_v4 }
  0xc4   : > { %v1252_v59 = vsel %vm1251_vm5, %v3085_v3, %v3086_v22  ;;  %v1268_v41 = vmul.f32 %v3085_v3, %v3417_v20  ;;  %v1277_v27 = vmul.f32 %v3085_v3, %v3414_v19  ;;  %v1064_v20 = vmul.f32 %v1038_v39, %v3469_v5 }
  0xc5   : > { %v1419_v0 = vsel %vm384_vm0, %v1409_v52, %v4447_v29  ;;  %v1269_v52 = vmul.f32 %v1252_v59, %v3425_v24  ;;  %v1278_v28 = vmul.f32 %v1252_v59, %v3422_v23  ;;  %v1065_v24 = vmul.f32 %v1039_v47, %v3472_v21 }
  0xc6   : > { %v1421_v61 = vsel %vm1420_vm6, %v3391_v49, %v1419_v0  ;;  %v3570_v18 = vpop.permute.xlu2 %1401  ;;  %v1254_v49 = vsel %vm1251_vm5, %v3090_v54, %v3091_v51  ;;  %v1253_v55 = vsel %vm1251_vm5, %v3086_v22, %v3090_v54  ;;  %v4467_v39 = vunpack.i.h.bf16 %v3529_v38 }
  0xc7   : > { %1444 = vst [vmem:[#allocation2 + $0x1c0] sm:$0xff] %v1421_v61  ;;  %v1286_v3 = vpack.c.bf16 %v1269_v52, %v1268_v41  ;;  %v1280_v59 = vmul.f32 %v1254_v49, %v3447_v44  ;;  %v1291_v61 = vpack.c.bf16 %v1278_v28, %v1277_v27  ;;  %v1255_v16 = vsel %vm1251_vm5, %v3091_v51, %v3095_v30 }
  0xc8   : > { %1093 = vrot.lane.b32.xlu0 %v1071_v17, %s3225_s20  ;;  %1101 = vrot.lane.b32.xlu1 %v1075_v35, %s3225_s20  ;;  %v1076_v15 = vpack.c.bf16 %v1065_v24, %v1064_v20  ;;  %v3627_v28 = vunpack.c.h.bf16 %v1154_v60 }
  0xc9   : > { %v3583_v56 = vpop.permute.xlu1 %3113  ;;  %1091 = vrot.lane.b32.xlu2 %v1070_v53, %s3225_s20  ;;  %v4449_v53 = vunpack.i.h.bf16 %v3466_v4 }
  0xca   : > { %4466 = vst [vmem:[#allocation16_spill] sm:$0xff] %v3583_v56  ;;  %v3109_v25 = vpop.permute.xlu0 %3108  ;;  %v3115_v17 = vunpack.i.l.bf16 %v3583_v56  ;;  %v4469_v22 = vunpack.i.h.bf16 %v3583_v56 }
  0xcb   : > { %v3111_v35 = vunpack.i.h.bf16 %v3109_v25  ;;  %v3110_v29 = vunpack.i.l.bf16 %v3109_v25  ;;  %v1256_v27 = vsel %vm1251_vm5, %v3095_v30, %v4449_v53  ;;  %v1272_v30 = vmul.f32 %v1255_v16, %v3579_v2 }
  0xcc   : > { %v3614_v54 = vsel %vm1551_vm7, %v3115_v17, %v4469_v22  ;;  %v1271_v22 = vmul.f32 %v1254_v49, %v1204_v50  ;;  %v3649_v49 = vunpack.i.l.bf16 %v3529_v38 }
  0xcd   : > { %v1553_v47 = vsel %vm1551_vm7, %v4467_v39, %v3110_v29  ;;  %v1554_v0 = vsel %vm1551_vm7, %v3110_v29, %v3111_v35  ;;  %v3617_v39 = vsel %vm1551_vm7, %v3111_v35, %v3115_v17  ;;  %v1415_v29 = vrot.slane %v3570_v18, 4 }
  0xce   : > { %v3603_v25 = vpop.permute.xlu2 %1403  ;;  %v3606_v41 = vmul.f32 %v1553_v47, %v3444_v43  ;;  %v3609_v52 = vmul.f32 %v1554_v0, %v3447_v44  ;;  %v1279_v44 = vmul.f32 %v1253_v55, %v3444_v43  ;;  %v4470_v17 = vunpack.c.l.bf16 %v3573_v42 }
  0xcf   : > { %4468 = vst [vmem:[#allocation17_spill] sm:$0xff] %v3603_v25  ;;  %v4450_v51 = vrot.slane %v3603_v25, 4  ;;  %v3642_v53 = vmul.f32 %v3617_v39, %v3469_v5 }
  0xd0   : > { %1306 = vrot.lane.b32.xlu0 %v1286_v3, %s3220_s13  ;;  %1103 = vrot.lane.b32.xlu1 %v1076_v15, %s3225_s20  ;;  %v1270_v35 = vmul.f32 %v1253_v55, %v4470_v17 }
  0xd1   : > { %v1400_v24 = vpop.permute.xlu1 %1399  ;;  %1316 = vrot.lane.b32.xlu2 %v1291_v61, %s3220_s13  ;;  %v1430_v15 = vsel %vm384_vm0, %v1415_v29, %v4450_v51  ;;  %v3646_v61 = vmul.f32 %v3614_v54, %v3472_v21  ;;  %v1273_v51 = vmul.f32 %v1256_v27, %v3627_v28 }
  0xd2   : > { %v1414_v3 = vrot.slane %v1400_v24, 4  ;;  %v3119_v43 = vpop.permute.xlu0 %3118  ;;  %v1431_v60 = vsel %vm1420_vm6, %v3570_v18, %v1430_v15  ;;  %v1292_v18 = vpack.c.bf16 %v1280_v59, %v1279_v44  ;;  %v1287_v11 = vpack.c.bf16 %v1271_v22, %v1270_v35 }
  0xd3   : > { %v3651_v55 = vunpack.i.h.bf16 %v3119_v43  ;;  %v3120_v17 = vunpack.i.l.bf16 %v3119_v43  ;;  %1449 = vst [vmem:[#allocation2 + $0x1e8] sm:$0xff] %v1431_v60  ;;  %v1571_v22 = vmul.f32 %v1554_v0, %v1204_v50  ;;  %v3045_v50 = vunpack.i.l.bf16 %v3449_v46 }
  0xd4   : > { %v1428_v20 = vsel %vm384_vm0, %v1414_v3, %v1415_v29  ;;  %v1577_v3 = vmul.f32 %v3649_v49, %v3414_v19  ;;  %v4475_v0 = vrot.slane %v3550_v6, 4  ;;  %v2962_v19 = vld [vmem:[#allocation2 + $0x1c4] sm:$0xf] }
  0xd5   : > { %v1429_v14 = vsel %vm1420_vm6, %v1400_v24, %v1428_v20  ;;  %v740_v56 = vsel %vm734_vm3, %v4471_v13, %v3120_v17  ;;  %v741_v12 = vsel %vm734_vm3, %v3120_v17, %v3651_v55  ;;  %v4472_v13 = vunpack.i.h.bf16 %v3529_v38 }
  0xd6   : > { %1448 = vst [vmem:[#allocation2 + $0x1e0] sm:$0xff] %v1429_v14  ;;  %v3664_v43 = vmul.f32 %v3518_v31, %v740_v56  ;;  %v3667_v59 = vmul.f32 %v3522_v33, %v741_v12  ;;  %v3670_v29 = vmul.f32 %v3513_v26, %v740_v56  ;;  %v3673_v44 = vmul.f32 %v3507_v58, %v741_v12  ;;  %v873_v14 = vpop.permute.xlu2 %872 }
  0xd7   : > { %v1552_v7 = vsel %vm1551_vm7, %v3649_v49, %v4472_v13  ;;  %v1288_v20 = vpack.c.bf16 %v1273_v51, %v1272_v30  ;;  %v4474_v12 = vunpack.c.l.bf16 %v3573_v42  ;;  %v3691_v51 = vld [vmem:[%s3286_s7] sm:$0xff]  ;;  %v892_v30 = vrot.slane %v873_v14, 4 }
  0xd8   : > { %1318 = vrot.lane.b32.xlu0 %v1292_v18, %s3220_s13  ;;  %1308 = vrot.lane.b32.xlu1 %v1287_v11, %s3220_s13  ;;  %v1578_v60 = vmul.f32 %v1552_v7, %v3422_v23  ;;  %v1281_v13 = vmul.f32 %v1255_v16, %v3469_v5  ;;  %v4476_v23 = vunpack.i.h.bf16 %v3405_v10  ;;  %v4479_v10 = vunpack.c.h.bf16 %v3691_v51 }
  0xd9   : > { %v3685_v35 = vpop.permute.xlu1 %1393  ;;  %1310 = vrot.lane.b32.xlu2 %v1288_v20, %s3220_s13  ;;  %v1570_v38 = vmul.f32 %v1553_v47, %v4474_v12  ;;  %v1282_v20 = vmul.f32 %v1256_v27, %v3472_v21  ;;  %v2821_v12 = vld [vmem:[#allocation2 + $0x1c0] sm:$0xf] }
  0xda   : > { %4473 = vst [vmem:[#allocation18_spill] sm:$0xff] %v3685_v35  ;;  %v4456_v11 = vrot.slane %v3685_v35, 4  ;;  %v875_v17 = vpop.permute.xlu0 %874  ;;  %v1591_v9 = vpack.c.bf16 %v1578_v60, %v1577_v3  ;;  %v521_v56 = vsel %vm517_vm2, %v4476_v23, %v3045_v50  ;;  %v1476_v23 = vld.sshfl [vmem:[#allocation1 + $0x38] sm:$0xff pattern:$0x73625140] }
  0xdb   : > { %v893_v42 = vrot.slane %v875_v17, 4  ;;  %v1587_v15 = vpack.c.bf16 %v1571_v22, %v1570_v38  ;;  %v1569_v22 = vmul.f32 %v1552_v7, %v4479_v10  ;;  %v1573_v7 = vmul.f32 %v3614_v54, %v3627_v28 }
  0xdc   : > { %v1422_v47 = vsel %vm384_vm0, %v4475_v0, %v4456_v11  ;;  %v1293_v11 = vpack.c.bf16 %v1282_v20, %v1281_v13  ;;  %v4480_v54 = vpack.c.bf16 %v3609_v52, %v3606_v41  ;;  %v1475_v52 = vld.sshfl [vmem:[#allocation1 + $0x30] sm:$0xff pattern:$0x73625140] }
  0xdd   : > { %v1423_v16 = vsel %vm1420_vm6, %v3550_v6, %v1422_v47  ;;  %v2966_v24 = vld [vmem:[#allocation2 + $0x1dc] sm:$0xf0]  ;;  %v2823_v27 = vld [vmem:[#allocation2 + $0x1e0] sm:$0xf0]  ;;  %v902_v18 = vsel %vm384_vm0, %v892_v30, %v893_v42  ;;  %v4477_v6 = vunpack.i.h.bf16 %v3449_v46  ;;  %v538_v30 = vmul.f32 %v3579_v2, %v521_v56 }
  0xde   : > { %1445 = vst [vmem:[#allocation2 + $0x1c8] sm:$0xff] %v1423_v16  ;;  %v2822_v35 = vor.u32 %v2966_v24, %v2821_v12  ;;  %v2826_v25 = vor.u32 %v2962_v19, %v2823_v27  ;;  %v904_v0 = vsel %vm903_vm8, %v873_v14, %v902_v18  ;;  %v4478_v14 = vunpack.c.l.bf16 %v3691_v51  ;;  %v885_v18 = vpop.permute.xlu2 %884 }
  0xdf   : > { %927 = vst [vmem:[#allocation2 + $0x100] sm:$0xff] %v904_v0  ;;  %v522_v47 = vsel %vm517_vm2, %v3045_v50, %v4477_v6  ;;  %v898_v20 = vrot.slane %v885_v18, 4  ;;  %v4481_v16 = vunpack.i.h.bf16 %v3466_v4  ;;  %v1498_v6 = vpack.i.b16 %v1476_v23, %v1476_v23 }
  0xe0   : > { %2154 = vmatpush.bf16.msra.mxu0 %v2822_v35  ;;  %2192 = vmatpush.bf16.msra.mxu2 %v2826_v25  ;;  %v1568_v24 = vmul.f32 %v3649_v49, %v4478_v14  ;;  %v539_v25 = vmul.f32 %v3627_v28, %v522_v47  ;;  %v548_v50 = vmul.f32 %v3472_v21, %v522_v47  ;;  %v3759_v21 = vunpack.i.h.bf16 %v3490_v40 }
  0xe1   : > { %v3718_v38 = vpop.permute.xlu1 %3123  ;;  %1320 = vrot.lane.b32.xlu0 %v1293_v11, %s3220_s13  ;;  %1608 = vrot.lane.b32.xlu1 %v1587_v15, %s3226_s21  ;;  %v3100_v28 = vunpack.i.l.bf16 %v3490_v40  ;;  %v1495_v40 = vpack.i.b16 %v1475_v52, %v1475_v52  ;;  %v4482_v47 = vpack.c.bf16 %v3646_v61, %v3642_v53  ;;  %v1500_v10 = vperm.slane %v1498_v6, 1 }
  0xe2   : > { %1616 = vrot.lane.b32.xlu2 %v1591_v9, %s3226_s21  ;;  %v3730_v35 = vpop.permute.xlu0 %876  ;;  %v1586_v3 = vpack.c.bf16 %v1569_v22, %v1568_v24  ;;  %v554_v60 = vpack.c.bf16 %v539_v25, %v538_v30  ;;  %v1572_v9 = vmul.f32 %v3617_v39, %v3579_v2  ;;  %v4483_v61 = vpack.c.bf16 %v3525_v34, %v3534_v48 }
  0xe3   : > { %v894_v11 = vrot.slane %v3730_v35, 4  ;;  %v1257_v27 = vsel %vm1251_vm5, %v4481_v16, %v3100_v28  ;;  %v1258_v0 = vsel %vm1251_vm5, %v3100_v28, %v3759_v21  ;;  %v1497_v24 = vperm.slane %v1495_v40, 1  ;;  %v1161_v28 = vld [vmem:[%s3286_s7 + $0x44] sm:$0xf]  ;;  %v1373_v16 = vld [vmem:[%s3286_s7 + $0x20] sm:$0xf] }
  0xe4   : > { %v1588_v19 = vpack.c.bf16 %v1573_v7, %v1572_v9  ;;  %v1283_v4 = vmul.f32 %v1257_v27, %v3518_v31  ;;  %v1284_v14 = vmul.f32 %v1258_v0, %v3522_v33  ;;  %v1526_v30 = vunpack.c.l.bf16 %v1500_v10 }
  0xe5   : > { %v905_v15 = vsel %vm384_vm0, %v893_v42, %v894_v11  ;;  %v4484_v7 = vunpack.i.h.bf16 %v3449_v46  ;;  %v4485_v48 = vpack.c.bf16 %v3667_v59, %v3664_v43 }
  0xe6   : > { %v906_v49 = vsel %vm903_vm8, %v875_v17, %v905_v15  ;;  %v547_v17 = vmul.f32 %v3469_v5, %v521_v56  ;;  %v1294_v22 = vpack.c.bf16 %v1284_v14, %v1283_v4  ;;  %v3798_v15 = vunpack.i.h.bf16 %v3718_v38 }
  0xe7   : > { %928 = vst [vmem:[#allocation2 + $0x108] sm:$0xff] %v906_v49  ;;  %v3125_v49 = vunpack.i.l.bf16 %v3718_v38  ;;  %v1156_v38 = vld [vmem:[%s3286_s7 + $0x20] sm:$0xf] }
  0xe8   : > { %v559_v39 = vpack.c.bf16 %v548_v50, %v547_v17  ;;  %v4486_v17 = vpack.c.bf16 %v3548_v62, %v3540_v1 }
  0xe9   : > { %1606 = vrot.lane.b32.xlu0 %v1586_v3, %s3226_s21  ;;  %576 = vrot.lane.b32.xlu1 %v554_v60, %s3223_s17  ;;  %v883_v13 = vpop.permute.xlu1 %882  ;;  %v1274_v3 = vmul.f32 %v1257_v27, %v3513_v26  ;;  %v1275_v60 = vmul.f32 %v1258_v0, %v3507_v58  ;;  %v524_v34 = vsel %vm517_vm2, %v3125_v49, %v3798_v15  ;;  %v1218_v27 = vunpack.c.l.bf16 %v1161_v28 }
  0xea   : > { %364 = vrot.lane.b32.xlu2 %v3355_v32, %s3215_s8  ;;  %v897_v42 = vrot.slane %v883_v13, 4  ;;  %v541_v46 = vmul.f32 %v3507_v58, %v524_v34  ;;  %v4487_v0 = vpack.c.bf16 %v3673_v44, %v3670_v29  ;;  %v550_v4 = vmul.f32 %v3522_v33, %v524_v34 }
  0xeb   : > { %v1289_v9 = vpack.c.bf16 %v1275_v60, %v1274_v3  ;;  %v1285_v29 = vmul.f32 %v3759_v21, %v1218_v27 }
  0xec   : > { %v911_v12 = vsel %vm384_vm0, %v897_v42, %v898_v20 }
  0xed   : > { %v912_v2 = vsel %vm903_vm8, %v883_v13, %v911_v12 }
  0xee   : > { %931 = vst [vmem:[#allocation2 + $0x120] sm:$0xff] %v912_v2 }
  0xf1   : > { %1618 = vrot.lane.b32.xlu0 %v4480_v54, %s3226_s21  ;;  %1610 = vrot.lane.b32.xlu1 %v1588_v19, %s3226_s21  ;;  %v3754_v32 = vpop.permute.xlu1 %886 }
  0xf2   : > { %586 = vrot.lane.b32.xlu2 %v559_v39, %s3223_s17  ;;  %v899_v5 = vrot.slane %v3754_v32, 4  ;;  %v944_v39 = vld [vmem:[%s3286_s7 + $0x44] sm:$0xf] }
  0xf3   : > { %v1001_v52 = vunpack.c.l.bf16 %v944_v39 }
  0xf4   : > { %v913_v56 = vsel %vm384_vm0, %v898_v20, %v899_v5  ;;  %v1209_v20 = vunpack.c.l.bf16 %v1156_v38 }
  0xf5   : > { %v914_v41 = vsel %vm903_vm8, %v885_v18, %v913_v56  ;;  %v1068_v14 = vmul.f32 %v3509_v63, %v1001_v52 }
  0xf6   : > { %932 = vst [vmem:[#allocation2 + $0x128] sm:$0xff] %v914_v41  ;;  %v1276_v50 = vmul.f32 %v3759_v21, %v1209_v20 }
  0xf7   : > { %v1078_v60 = vpack.c.bf16 %v1068_v14, %v1068_v14 }
  0xf8   : > { %v1290_v23 = vpack.c.bf16 %v1276_v50, %v1276_v50 }
  0xf9   : > { %366 = vrot.lane.b32.xlu0 %v3371_v36, %s3215_s8  ;;  %1395 = vrot.lane.b32.xlu1 %v3493_v37, %s3216_s9  ;;  %v1525_v36 = vunpack.c.l.bf16 %v1497_v24 }
  0xfa   : > { %1620 = vrot.lane.b32.xlu2 %v4482_v47, %s3226_s21 }
  0xfb   : > { %v3127_v53 = vpack.i.bf16 %v1526_v30, %v1525_v36 }
 0x101   : > { %368 = vrot.lane.b32.xlu0 %v3379_v45, %s3215_s8  ;;  %1322 = vrot.lane.b32.xlu1 %v1294_v22, %s3220_s13 }
 0x102   : > { %1405 = vrot.lane.b32.xlu2 %v3504_v57, %s3216_s9 }
 0x103   : > { %v573_v25 = vpop.permute.xlu2 %572 }
 0x104   : > { %v592_v12 = vrot.slane %v573_v25, 4 }
 0x109   : > { %3128 = vrot.lane.b32.xlu0 %v3127_v53, %s3221_s14  ;;  %878 = vrot.lane.b32.xlu1 %v3493_v37, %s3222_s16  ;;  %v523_v37 = vsel %vm517_vm2, %v4484_v7, %v3125_v49  ;;  %v1295_v49 = vpack.c.bf16 %v1285_v29, %v1285_v29 }
 0x10a   : > { %1095 = vrot.lane.b32.xlu2 %v4483_v61, %s3225_s20  ;;  %v540_v13 = vmul.f32 %v3513_v26, %v523_v37  ;;  %v549_v47 = vmul.f32 %v3518_v31, %v523_v37 }
 0x10b   : > { %v3793_v45 = vpop.permute.xlu2 %584 }
 0x10c   : > { %v555_v42 = vpack.c.bf16 %v541_v46, %v540_v13  ;;  %v598_v19 = vrot.slane %v3793_v45, 4  ;;  %v560_v3 = vpack.c.bf16 %v550_v4, %v549_v47 }
 0x111   : > { %1312 = vrot.lane.b32.xlu0 %v1289_v9, %s3220_s13  ;;  %805 = vrot.lane.b32.xlu1 %v4485_v48, %s3224_s18  ;;  %v939_v48 = vld [vmem:[%s3286_s7 + $0x20] sm:$0xf] }
 0x112   : > { %888 = vrot.lane.b32.xlu2 %v3504_v57, %s3222_s16 }
 0x113   : > { %v790_v18 = vpop.permute.xlu2 %789 }
 0x114   : > { %v809_v24 = vrot.slane %v790_v18, 4 }
 0x119   : > { %1105 = vrot.lane.b32.xlu0 %v4486_v17, %s3225_s20  ;;  %370 = vrot.lane.b32.xlu1 %v3504_v57, %s3215_s8  ;;  %v856_v17 = vld [vmem:[%s3286_s7 + $0x20] sm:$0xf] }
 0x11a   : > { %578 = vrot.lane.b32.xlu2 %v555_v42, %s3223_s17  ;;  %v3823_v43 = vpop.permute.xlu0 %574  ;;  %v583_v59 = vpop.permute.xlu1 %582  ;;  %v1378_v42 = vld [vmem:[%s3286_s7 + $0x44] sm:$0xf] }
 0x11b   : > { %v593_v2 = vrot.slane %v3823_v43, 4  ;;  %v597_v1 = vrot.slane %v583_v59, 4  ;;  %v802_v62 = vpop.permute.xlu2 %801 }
 0x11c   : > { %v815_v10 = vrot.slane %v802_v62, 4 }
 0x11d   : > { %v602_v57 = vsel %vm384_vm0, %v592_v12, %v593_v2  ;;  %v611_v54 = vsel %vm384_vm0, %v597_v1, %v598_v19 }
 0x11e   : > { %v604_v56 = vsel %vm603_vm9, %v573_v25, %v602_v57  ;;  %v612_v41 = vsel %vm603_vm9, %v583_v59, %v611_v54  ;;  %v992_v59 = vunpack.c.l.bf16 %v939_v48 }
 0x11f   : > { %627 = vst [vmem:[#allocation2 + $0x80] sm:$0xff] %v604_v56 }
 0x120   : > { %631 = vst [vmem:[#allocation2 + $0xa0] sm:$0xff] %v612_v41  ;;  %v1059_v39 = vmul.f32 %v3509_v63, %v992_v59 }
 0x121   : > { %795 = vrot.lane.b32.xlu0 %v4487_v0, %s3224_s18  ;;  %1314 = vrot.lane.b32.xlu1 %v1290_v23, %s3220_s13 }
 0x122   : > { %1397 = vrot.lane.b32.xlu2 %v1373_v16, %s3216_s9  ;;  %v792_v40 = vpop.permute.xlu0 %791  ;;  %v800_v6 = vpop.permute.xlu1 %799  ;;  %v1073_v52 = vpack.c.bf16 %v1059_v39, %v1059_v39  ;;  %v4488_v39 = vld [vmem:[#allocation9_spill] sm:$0xff] }
 0x123   : > { %v810_v22 = vrot.slane %v792_v40, 4  ;;  %v814_v36 = vrot.slane %v800_v6, 4  ;;  %v1092_v30 = vpop.permute.xlu2 %1091 }
 0x124   : > { %v1110_v57 = vrot.slane %v1092_v30, 4 }
 0x125   : > { %v819_v44 = vsel %vm384_vm0, %v809_v24, %v810_v22  ;;  %v828_v25 = vsel %vm384_vm0, %v814_v36, %v815_v10 }
 0x126   : > { %v821_v53 = vsel %vm820_vm10, %v790_v18, %v819_v44  ;;  %v829_v61 = vsel %vm820_vm10, %v800_v6, %v828_v25  ;;  %v644_v18 = vld [vmem:[%s3286_s7 + $0x44] sm:$0xf] }
 0x127   : > { %844 = vst [vmem:[#allocation2 + $0xc0] sm:$0xff] %v821_v53  ;;  %v701_v50 = vunpack.c.l.bf16 %v644_v18 }
 0x128   : > { %848 = vst [vmem:[#allocation2 + $0xe0] sm:$0xff] %v829_v61 }
 0x129   : > { %588 = vrot.lane.b32.xlu0 %v560_v3, %s3223_s17  ;;  %1107 = vrot.lane.b32.xlu1 %v1078_v60, %s3225_s20 }
 0x12a   : > { %1324 = vrot.lane.b32.xlu2 %v1295_v49, %s3220_s13  ;;  %v3856_v21 = vpop.permute.xlu0 %793  ;;  %v3858_v9 = vpop.permute.xlu1 %803 }
 0x12b   : > { %v811_v7 = vrot.slane %v3856_v21, 4  ;;  %v816_v37 = vrot.slane %v3858_v9, 4  ;;  %v3862_v34 = vpop.permute.xlu2 %1316 }
 0x12c   : > { %v1331_v53 = vrot.slane %v3862_v34, 4 }
 0x12d   : > { %v822_v38 = vsel %vm384_vm0, %v810_v22, %v811_v7  ;;  %v830_v13 = vsel %vm384_vm0, %v815_v10, %v816_v37  ;;  %v343_v10 = vld [vmem:[%s3286_s7 + $0x44] sm:$0xf] }
 0x12e   : > { %v823_v46 = vsel %vm820_vm10, %v792_v40, %v822_v38  ;;  %v831_v20 = vsel %vm820_vm10, %v802_v62, %v830_v13  ;;  %v768_v62 = vmul.f32 %v3651_v55, %v701_v50 }
 0x12f   : > { %845 = vst [vmem:[#allocation2 + $0xc8] sm:$0xff] %v823_v46 }
 0x130   : > { %849 = vst [vmem:[#allocation2 + $0xe8] sm:$0xff] %v831_v20  ;;  %v778_v23 = vpack.c.bf16 %v768_v62, %v768_v62 }
 0x131   : > { %1407 = vrot.lane.b32.xlu0 %v1378_v42, %s3216_s9  ;;  %880 = vrot.lane.b32.xlu1 %v856_v17, %s3222_s16 }
 0x132   : > { %v1100_v12 = vpop.permute.xlu0 %1099  ;;  %v1090_v1 = vpop.permute.xlu1 %1089 }
 0x133   : > { %v1109_v54 = vrot.slane %v1090_v1, 4  ;;  %v3879_v28 = vpop.permute.xlu2 %1310  ;;  %v1114_v27 = vrot.slane %v1100_v12, 4 }
 0x134   : > { %v1328_v60 = vrot.slane %v3879_v28, 4 }
 0x135   : > { %v1119_v56 = vsel %vm384_vm0, %v1109_v54, %v1110_v57 }
 0x136   : > { %v1121_v41 = vsel %vm1120_vm11, %v1090_v1, %v1119_v56  ;;  %v254_v1 = vpack.i.b16 %v3307_v8, %v3307_v8  ;;  %v235_v56 = vld [vmem:[%s3286_s7 + $0x24] sm:$0xff] }
 0x137   : > { %1144 = vst [vmem:[#allocation2 + $0x140] sm:$0xff] %v1121_v41 }
 0x138   : > { %v256_v54 = vperm.slane %v254_v1, 0 }
 0x139   : > { %1097 = vrot.lane.b32.xlu0 %v1073_v52, %s3225_s20  ;;  %807 = vrot.lane.b32.xlu1 %v778_v23, %s3224_s18  ;;  %v287_v23 = vunpack.c.h.bf16 %v235_v56 }
 0x13a   : > { %v3886_v63 = vpop.permute.xlu0 %1093  ;;  %v1102_v16 = vpop.permute.xlu1 %1101 }
 0x13b   : > { %v1111_v0 = vrot.slane %v3886_v63, 4  ;;  %v1115_v40 = vrot.slane %v1102_v16, 4 }
 0x13c   : > { %v3889_v6 = vpop.permute.xlu2 %1616 }
 0x13d   : > { %v1122_v47 = vsel %vm384_vm0, %v1110_v57, %v1111_v0  ;;  %v1128_v4 = vsel %vm384_vm0, %v1114_v27, %v1115_v40  ;;  %v257_v57 = vpack.i.b16 %v4488_v39, %v4488_v39 }
 0x13e   : > { %v1123_v14 = vsel %vm1120_vm11, %v1092_v30, %v1122_v47  ;;  %v1129_v24 = vsel %vm1120_vm11, %v1100_v12, %v1128_v4  ;;  %v4489_v47 = vunpack.c.l.bf16 %v3691_v51  ;;  %v4490_v4 = vunpack.c.h.bf16 %v3691_v51 }
 0x13f   : > { %1145 = vst [vmem:[#allocation2 + $0x148] sm:$0xff] %v1123_v14  ;;  %v259_v62 = vperm.slane %v257_v57, 0 }
 0x140   : > { %1148 = vst [vmem:[#allocation2 + $0x160] sm:$0xff] %v1129_v24 }
 0x141   : > { %372 = vrot.lane.b32.xlu1 %v343_v10, %s3215_s8  ;;  %v295_v8 = vunpack.c.l.bf16 %v259_v62  ;;  %v2725_v62 = vld [vmem:[#allocation2 + $0x100] sm:$0xf] }
 0x142   : > { %v1307_v22 = vpop.permute.xlu0 %1306  ;;  %v3899_v36 = vpop.permute.xlu1 %1103 }
 0x143   : > { %v1116_v29 = vrot.slane %v3899_v36, 4  ;;  %v1326_v49 = vrot.slane %v1307_v22, 4  ;;  %v303_v14 = vmul.f32 %v4490_v4, %v295_v8  ;;  %v2926_v4 = vld [vmem:[#allocation2 + $0x9c] sm:$0xf0] }
 0x144   : > { %v3902_v44 = vpop.permute.xlu2 %364 }
 0x145   : > { %v1130_v25 = vsel %vm384_vm0, %v1115_v40, %v1116_v29 }
 0x146   : > { %v1131_v30 = vsel %vm1120_vm11, %v1102_v16, %v1130_v25  ;;  %v294_v16 = vunpack.c.l.bf16 %v256_v54 }
 0x147   : > { %1149 = vst [vmem:[#allocation2 + $0x168] sm:$0xff] %v1131_v30  ;;  %v311_v30 = vmul.f32 %v295_v8, %v287_v23  ;;  %v2759_v51 = vld [vmem:[#allocation2 + $0x160] sm:$0xf0] }
 0x148   : > { %v2938_v23 = vld [vmem:[#allocation2 + $0x104] sm:$0xf] }
 0x14a   : > { %v1319_v61 = vpop.permute.xlu0 %1318  ;;  %v1309_v3 = vpop.permute.xlu1 %1308 }
 0x14b   : > { %v1332_v48 = vrot.slane %v1319_v61, 4  ;;  %v1327_v18 = vrot.slane %v1309_v3, 4 }
 0x14c   : > { %v3910_v38 = vpop.permute.xlu2 %586 }
 0x14d   : > { %v1345_v13 = vsel %vm384_vm0, %v1331_v53, %v1332_v48  ;;  %v1336_v46 = vsel %vm384_vm0, %v1326_v49, %v1327_v18  ;;  %v1339_v20 = vsel %vm384_vm0, %v1327_v18, %v1328_v60  ;;  %v599_v42 = vrot.slane %v3910_v38, 4 }
 0x14e   : > { %v1346_v17 = vsel %vm1251_vm5, %v3862_v34, %v1345_v13  ;;  %v1338_v59 = vsel %vm1251_vm5, %v1307_v22, %v1336_v46  ;;  %v1340_v50 = vsel %vm1251_vm5, %v1309_v3, %v1339_v20 }
 0x14f   : > { %1365 = vst [vmem:[#allocation2 + $0x1a0] sm:$0xff] %v1346_v17  ;;  %v613_v12 = vsel %vm384_vm0, %v598_v19, %v599_v42  ;;  %v286_v19 = vunpack.c.l.bf16 %v235_v56  ;;  %v2950_v17 = vld [vmem:[#allocation2 + $0x15c] sm:$0xf0] }
 0x150   : > { %1361 = vst [vmem:[#allocation2 + $0x180] sm:$0xff] %v1338_v59  ;;  %v614_v34 = vsel %vm603_vm9, %v3793_v45, %v613_v12  ;;  %v302_v45 = vmul.f32 %v4489_v47, %v294_v16  ;;  %v2946_v12 = vld [vmem:[#allocation2 + $0x144] sm:$0xf]  ;;  %v2942_v56 = vld [vmem:[#allocation2 + $0x11c] sm:$0xf0] }
 0x151   : > { %1362 = vst [vmem:[#allocation2 + $0x188] sm:$0xff] %v1340_v50  ;;  %v310_v24 = vmul.f32 %v294_v16, %v286_v19  ;;  %v2762_v54 = vor.u32 %v2946_v12, %v2759_v51  ;;  %v2727_v16 = vld [vmem:[#allocation2 + $0x120] sm:$0xf0] }
 0x152   : > { %632 = vst [vmem:[#allocation2 + $0xa8] sm:$0xff] %v614_v34  ;;  %v318_v18 = vpack.c.bf16 %v303_v14, %v302_v45  ;;  %v2661_v45 = vld [vmem:[#allocation2 + $0x80] sm:$0xf]  ;;  %v2922_v14 = vld [vmem:[#allocation2 + $0x84] sm:$0xf] }
 0x153   : > { %v3934_v41 = vpop.permute.xlu0 %1320  ;;  %v3936_v52 = vpop.permute.xlu1 %1608  ;;  %v322_v20 = vpack.c.bf16 %v311_v30, %v310_v24  ;;  %v2662_v51 = vor.u32 %v2926_v4, %v2661_v45 }
 0x154   : > { %v1333_v27 = vrot.slane %v3934_v41, 4  ;;  %v3939_v40 = vpop.permute.xlu2 %1620  ;;  %326 = vst [vmem:[#allocation2] sm:$0xff] %v318_v18  ;;  %v1627_v59 = vrot.slane %v3936_v52, 4  ;;  %v2726_v18 = vor.u32 %v2942_v56, %v2725_v62 }
 0x155   : > { %330 = vst [vmem:[#allocation2 + $0x20] sm:$0xff] %v322_v20  ;;  %v2695_v20 = vld [vmem:[#allocation2 + $0xe0] sm:$0xf0]  ;;  %v4457_v62 = vrot.slane %v3939_v40, 4 }
 0x156   : > { %v1347_v10 = vsel %vm384_vm0, %v1332_v48, %v1333_v27  ;;  %v2958_v22 = vld [vmem:[#allocation2 + $0x19c] sm:$0xf0]  ;;  %v2791_v25 = vld [vmem:[#allocation2 + $0x1a0] sm:$0xf0] }
 0x157   : > { %v1348_v53 = vsel %vm1251_vm5, %v1319_v61, %v1347_v10  ;;  %v2789_v3 = vld [vmem:[#allocation2 + $0x180] sm:$0xf]  ;;  %v2954_v49 = vld [vmem:[#allocation2 + $0x184] sm:$0xf] }
 0x158   : > { %1366 = vst [vmem:[#allocation2 + $0x1a8] sm:$0xff] %v1348_v53  ;;  %v2790_v13 = vor.u32 %v2958_v22, %v2789_v3  ;;  %v2794_v46 = vor.u32 %v2954_v49, %v2791_v25  ;;  %v2757_v61 = vld [vmem:[#allocation2 + $0x140] sm:$0xf]  ;;  %v4491_v22 = vld [vmem:[#allocation17_spill] sm:$0xff]  ;;  %v2663_v49 = vld [vmem:[#allocation2 + $0xa0] sm:$0xf0] }
 0x159   : > { %v2758_v34 = vor.u32 %v2950_v17, %v2757_v61  ;;  %v4492_v25 = vrot.slane %v4491_v22, 4  ;;  %v2693_v53 = vld [vmem:[#allocation2 + $0xc0] sm:$0xf]  ;;  %v4493_v17 = vld [vmem:[#allocation10_spill] sm:$0xff] }
 0x15a   : > { %2155 = vmatpush.bf16.msra.mxu0 %v2790_v13  ;;  %2193 = vmatpush.bf16.msra.mxu2 %v2794_v46  ;;  %v2934_v3 = vld [vmem:[#allocation2 + $0xdc] sm:$0xf0]  ;;  %v2730_v13 = vor.u32 %v2938_v23, %v2727_v16  ;;  %v2930_v46 = vld [vmem:[#allocation2 + $0xc4] sm:$0xf] }
 0x15b   : > { %v1607_v48 = vpop.permute.xlu0 %1606  ;;  %v3950_v50 = vpop.permute.xlu1 %576  ;;  %v2694_v12 = vor.u32 %v2934_v3, %v2693_v53  ;;  %v2698_v16 = vor.u32 %v2930_v46, %v2695_v20 }
 0x15c   : > { %v1626_v1 = vrot.slane %v1607_v48, 4  ;;  %v594_v39 = vrot.slane %v3950_v50, 4  ;;  %v3953_v57 = vpop.permute.xlu2 %1405 }
 0x15d   : > { %v1417_v19 = vrot.slane %v3953_v57, 4 }
 0x15e   : > { %v1636_v8 = vsel %vm384_vm0, %v1626_v1, %v1627_v59  ;;  %v605_v47 = vsel %vm384_vm0, %v593_v2, %v594_v39  ;;  %2156 = vmatpush.bf16.msra.mxu0 %v2758_v34  ;;  %2194 = vmatpush.bf16.msra.mxu2 %v2762_v54  ;;  %v2666_v1 = vor.u32 %v2922_v14, %v2663_v49  ;;  %v1631_v54 = vrot.slane %v3889_v6, 4 }
 0x15f   : > { %v1638_v24 = vsel %vm1637_vm12, %v1607_v48, %v1636_v8  ;;  %v606_v10 = vsel %vm603_vm9, %v3823_v43, %v605_v47  ;;  %v1432_v30 = vsel %vm384_vm0, %v4492_v25, %v1417_v19  ;;  %v260_v43 = vpack.i.b16 %v4493_v17, %v4493_v17  ;;  %v4494_v48 = vld [vmem:[#allocation11_spill] sm:$0xff] }
 0x160   : > { %1661 = vst [vmem:[#allocation2 + $0x200] sm:$0xff] %v1638_v24  ;;  %v1433_v2 = vsel %vm1420_vm6, %v4491_v22, %v1432_v30  ;;  %v263_v61 = vpack.i.b16 %v4494_v48, %v4494_v48  ;;  %v232_v8 = vld [vmem:[%s3286_s7 + $0x8] sm:$0xff] }
 0x161   : > { %628 = vst [vmem:[#allocation2 + $0x88] sm:$0xff] %v606_v10  ;;  %v262_v34 = vperm.slane %v260_v43, 0  ;;  %v236_v47 = vld [vmem:[%s3286_s7 + $0x2c] sm:$0xff]  ;;  %v280_v22 = vunpack.c.l.bf16 %v232_v8  ;;  %v281_v25 = vunpack.c.h.bf16 %v232_v8 }
 0x162   : > { %1450 = vst [vmem:[#allocation2 + $0x1f0] sm:$0xff] %v1433_v2  ;;  %2157 = vmatpush.bf16.msra.mxu0 %v2726_v18  ;;  %2195 = vmatpush.bf16.msra.mxu2 %v2730_v13  ;;  %v265_v45 = vperm.slane %v263_v61, 0  ;;  %v288_v30 = vunpack.c.l.bf16 %v236_v47  ;;  %v289_v53 = vunpack.c.h.bf16 %v236_v47 }
 0x163   : > { %v1619_v56 = vpop.permute.xlu0 %1618  ;;  %v3980_v23 = vpop.permute.xlu1 %1610  ;;  %v296_v3 = vunpack.c.l.bf16 %v262_v34  ;;  %v379_v34 = vrot.slane %v3902_v44, 4 }
 0x164   : > { %v1632_v4 = vrot.slane %v1619_v56, 4  ;;  %v1628_v24 = vrot.slane %v3980_v23, 4  ;;  %v3985_v10 = vpop.permute.xlu2 %1095  ;;  %v297_v13 = vunpack.c.l.bf16 %v265_v45  ;;  %v2829_v45 = vld [vmem:[#allocation2 + $0x1c8] sm:$0xf] }
 0x165   : > { %v1112_v14 = vrot.slane %v3985_v10, 4  ;;  %v304_v48 = vmul.f32 %v296_v3, %v280_v22 }
 0x166   : > { %v1645_v49 = vsel %vm384_vm0, %v1631_v54, %v1632_v4  ;;  %v1647_v2 = vsel %vm384_vm0, %v1632_v4, %v4457_v62  ;;  %v1639_v18 = vsel %vm384_vm0, %v1627_v59, %v1628_v24  ;;  %2158 = vmatpush.bf16.msra.mxu0 %v2694_v12  ;;  %2196 = vmatpush.bf16.msra.mxu2 %v2698_v16  ;;  %v2967_v4 = vld [vmem:[#allocation2 + $0x1e4] sm:$0xf0] }
 0x167   : > { %v1646_v46 = vsel %vm1637_vm12, %v3889_v6, %v1645_v49  ;;  %v1648_v20 = vsel %vm1637_vm12, %v1619_v56, %v1647_v2  ;;  %v1640_v17 = vsel %vm1637_vm12, %v3936_v52, %v1639_v18  ;;  %v1124_v43 = vsel %vm384_vm0, %v1111_v0, %v1112_v14 }
 0x168   : > { %1665 = vst [vmem:[#allocation2 + $0x220] sm:$0xff] %v1646_v46  ;;  %v1125_v59 = vsel %vm1120_vm11, %v3886_v63, %v1124_v43  ;;  %v305_v61 = vmul.f32 %v297_v13, %v281_v25  ;;  %v312_v12 = vmul.f32 %v296_v3, %v288_v30  ;;  %v313_v6 = vmul.f32 %v297_v13, %v289_v53  ;;  %v2853_v30 = vld [vmem:[#allocation2 + $0x200] sm:$0xf]  ;;  %v2902_v53 = vld [vmem:[#allocation3 + $0x4] sm:$0xf] }
 0x169   : > { %1666 = vst [vmem:[#allocation2 + $0x228] sm:$0xff] %v1648_v20  ;;  %v2583_v3 = vld [vmem:[#allocation3 + $0x8] sm:$0xf0]  ;;  %v2970_v46 = vld [vmem:[#allocation2 + $0x204] sm:$0xf] }
 0x16a   : > { %1662 = vst [vmem:[#allocation2 + $0x208] sm:$0xff] %v1640_v17  ;;  %2159 = vmatpush.bf16.msra.mxu0 %v2662_v51  ;;  %2197 = vmatpush.bf16.msra.mxu2 %v2666_v1  ;;  %v319_v52 = vpack.c.bf16 %v305_v61, %v304_v48  ;;  %v323_v0 = vpack.c.bf16 %v313_v6, %v312_v12  ;;  %v4495_v1 = vld [vmem:[#allocation18_spill] sm:$0xff] }
 0x16b   : > { %1146 = vst [vmem:[#allocation2 + $0x150] sm:$0xff] %v1125_v59  ;;  %v367_v54 = vpop.permute.xlu0 %366  ;;  %v4010_v56 = vpop.permute.xlu1 %1395  ;;  %v4496_v22 = vrot.slane %v4495_v1, 4  ;;  %v2830_v61 = vor.u32 %v2967_v4, %v2829_v45  ;;  %v4033_v6 = vor.u32 %v2902_v53, %v2583_v3  ;;  %v2629_v53 = vld [vmem:[#allocation2 + $0x40] sm:$0xf]  ;;  %v2914_v3 = vld [vmem:[#allocation2 + $0x44] sm:$0xf] }
 0x16c   : > { %v380_v16 = vrot.slane %v367_v54, 4  ;;  %v1412_v8 = vrot.slane %v4010_v56, 4  ;;  %v4013_v63 = vpop.permute.xlu2 %888  ;;  %327 = vst [vmem:[#allocation2 + $0x8] sm:$0xff] %v319_v52  ;;  %v2959_v52 = vld [vmem:[#allocation2 + $0x1a4] sm:$0xf0] }
 0x16d   : > { %v900_v47 = vrot.slane %v4013_v63, 4  ;;  %331 = vst [vmem:[#allocation2 + $0x28] sm:$0xff] %v323_v0 }
 0x16e   : > { %v394_v51 = vsel %vm384_vm0, %v379_v34, %v380_v16  ;;  %v1424_v25 = vsel %vm384_vm0, %v4496_v22, %v1412_v8  ;;  %v2797_v22 = vld [vmem:[#allocation2 + $0x188] sm:$0xf] }
 0x16f   : > { %v395_v49 = vsel %vm386_vm1, %v3902_v44, %v394_v51  ;;  %v1425_v2 = vsel %vm1420_vm6, %v4495_v1, %v1424_v25  ;;  %v915_v18 = vsel %vm384_vm0, %v899_v5, %v900_v47  ;;  %v2974_v13 = vld [vmem:[#allocation2 + $0x21c] sm:$0xf0]  ;;  %v2855_v20 = vld [vmem:[#allocation2 + $0x220] sm:$0xf0] }
 0x170   : > { %414 = vst [vmem:[#allocation2 + $0x60] sm:$0xff] %v395_v49  ;;  %v916_v17 = vsel %vm903_vm8, %v3754_v32, %v915_v18  ;;  %v2854_v43 = vor.u32 %v2974_v13, %v2853_v30  ;;  %v2858_v59 = vor.u32 %v2970_v46, %v2855_v20  ;;  %v2975_v48 = vld [vmem:[#allocation2 + $0x224] sm:$0xf0]  ;;  %v2863_v44 = vld [vmem:[#allocation2 + $0x228] sm:$0xf0]  ;;  %v2798_v30 = vor.u32 %v2959_v52, %v2797_v22 }
 0x171   : > { %1446 = vst [vmem:[#allocation2 + $0x1d0] sm:$0xff] %v1425_v2  ;;  %v2861_v12 = vld [vmem:[#allocation2 + $0x208] sm:$0xf]  ;;  %v2971_v34 = vld [vmem:[#allocation2 + $0x20c] sm:$0xf] }
 0x172   : > { %933 = vst [vmem:[#allocation2 + $0x130] sm:$0xff] %v916_v17  ;;  %2180 = vmatpush.bf16.msra.mxu1 %v2854_v43  ;;  %2218 = vmatpush.bf16.msra.mxu3 %v2858_v59  ;;  %v2862_v5 = vor.u32 %v2975_v48, %v2861_v12  ;;  %v4043_v4 = vor.u32 %v2971_v34, %v2863_v44  ;;  %v2951_v49 = vld [vmem:[#allocation2 + $0x164] sm:$0xf0]  ;;  %v2597_v13 = vld [vmem:[#allocation2] sm:$0xf] }
 0x173   : > { %v4035_v0 = vpop.permute.xlu0 %368  ;;  %v4037_v51 = vpop.permute.xlu1 %1322  ;;  %v2910_v46 = vld [vmem:[#allocation2 + $0x1c] sm:$0xf0]  ;;  %v2906_v20 = vld [vmem:[#allocation2 + $0x4] sm:$0xf]  ;;  %v2963_v34 = vld [vmem:[#allocation2 + $0x1cc] sm:$0xf] }
 0x174   : > { %v381_v32 = vrot.slane %v4035_v0, 4  ;;  %v1334_v1 = vrot.slane %v4037_v51, 4  ;;  %v4041_v45 = vpop.permute.xlu2 %578  ;;  %v2733_v52 = vld [vmem:[#allocation2 + $0x108] sm:$0xf] }
 0x175   : > { %v595_v25 = vrot.slane %v4041_v45, 4  ;;  %2885 = vmatmul.msk.bf16.vlgmr.msra.gmra.mxu3 %vm2147_vm13, %v4033_v6  ;;  %2883 = vmatmul.msk.bf16.vlgmr.msra.gmra.mxu1 %vm2147_vm13, %v4033_v6  ;;  %v2943_v22 = vld [vmem:[#allocation2 + $0x124] sm:$0xf0] }
 0x176   : > { %2230 = vmatpush.bf16.msrb.mxu1 %v2830_v61  ;;  %2256 = vmatpush.bf16.msrb.mxu3 %v2862_v5  ;;  %v396_v2 = vsel %vm384_vm0, %v380_v16, %v381_v32  ;;  %v1349_v18 = vsel %vm384_vm0, %v1333_v27, %v1334_v1  ;;  %v2599_v27 = vld [vmem:[#allocation2 + $0x20] sm:$0xf0]  ;;  %v2831_v5 = vld [vmem:[#allocation2 + $0x1e8] sm:$0xf0] }
 0x177   : > { %v397_v17 = vsel %vm386_vm1, %v367_v54, %v396_v2  ;;  %v1350_v43 = vsel %vm1251_vm5, %v3934_v41, %v1349_v18  ;;  %v607_v16 = vsel %vm384_vm0, %v594_v39, %v595_v25  ;;  %v2918_v59 = vld [vmem:[#allocation2 + $0x5c] sm:$0xf0]  ;;  %v2631_v48 = vld [vmem:[#allocation2 + $0x60] sm:$0xf0]  ;;  %v2765_v54 = vld [vmem:[#allocation2 + $0x148] sm:$0xf]  ;;  %v2598_v39 = vor.u32 %v2910_v46, %v2597_v13 }
 0x178   : > { %415 = vst [vmem:[#allocation2 + $0x68] sm:$0xff] %v397_v17  ;;  %v608_v44 = vsel %vm603_vm9, %v3950_v50, %v607_v16  ;;  %v2630_v61 = vor.u32 %v2918_v59, %v2629_v53  ;;  %v2634_v12 = vor.u32 %v2914_v3, %v2631_v48  ;;  %v2766_v41 = vor.u32 %v2951_v49, %v2765_v54  ;;  %v2581_v2 = vld [vmem:[#allocation3] sm:$0xf]  ;;  %v2903_v18 = vld [vmem:[#allocation3 + $0x4] sm:$0xf0] }
 0x179   : > { %1367 = vst [vmem:[#allocation2 + $0x1b0] sm:$0xff] %v1350_v43  ;;  %v2734_v16 = vor.u32 %v2943_v22, %v2733_v52  ;;  %v2834_v59 = vor.u32 %v2963_v34, %v2831_v5  ;;  %v639_v48 = vld [vmem:[%s3286_s7 + $0x20] sm:$0xf]  ;;  %v4497_v13 = vld [vmem:[#allocation16_spill] sm:$0xff] }
 0x17a   : > { %2978 = vmatpush.bf16.msra.mxu3 %v4043_v4  ;;  %2231 = vmatpush.bf16.msrb.mxu1 %v2798_v30  ;;  %629 = vst [vmem:[#allocation2 + $0x90] sm:$0xff] %v608_v44  ;;  %v2602_v30 = vor.u32 %v2906_v20, %v2599_v27  ;;  %v4075_v44 = vor.u32 %v2903_v18, %v2581_v2  ;;  %v4498_v46 = vunpack.i.h.bf16 %v4497_v13  ;;  %v2935_v54 = vld [vmem:[#allocation2 + $0xe4] sm:$0xf0]  ;;  %v2799_v34 = vld [vmem:[#allocation2 + $0x1a8] sm:$0xf0] }
 0x17b   : > { %2160 = vmatpush.bf16.msra.mxu0 %v2630_v61  ;;  %2198 = vmatpush.bf16.msra.mxu2 %v2634_v12  ;;  %v3129_v17 = vpop.permute.xlu0 %3128  ;;  %v4069_v62 = vpop.permute.xlu1 %878  ;;  %v2701_v12 = vld [vmem:[#allocation2 + $0xc8] sm:$0xf] }
 0x17c   : > { %v4071_v50 = vunpack.i.h.bf16 %v3129_v17  ;;  %v3130_v53 = vunpack.i.l.bf16 %v3129_v17  ;;  %v895_v3 = vrot.slane %v4069_v62, 4  ;;  %v1398_v49 = vpop.permute.xlu2 %1397  ;;  %v4099_v17 = vld [vmem:[#allocation2 + $0x10c] sm:$0xf] }
 0x17d   : > { %v1413_v43 = vrot.slane %v1398_v49, 4 }
 0x17e   : > { %2232 = vmatpush.bf16.msrb.mxu1 %v2766_v41  ;;  %v1557_v20 = vsel %vm1551_vm7, %v4498_v46, %v3130_v53  ;;  %v1558_v27 = vsel %vm1551_vm7, %v3130_v53, %v4071_v50  ;;  %v907_v61 = vsel %vm384_vm0, %v894_v11, %v895_v3 }
 0x17f   : > { %2161 = vmatpush.bf16.msra.mxu0 %v2598_v39  ;;  %2199 = vmatpush.bf16.msra.mxu2 %v2602_v30  ;;  %v908_v5 = vsel %vm903_vm8, %v3730_v35, %v907_v61  ;;  %v1426_v41 = vsel %vm384_vm0, %v1412_v8, %v1413_v43  ;;  %v1583_v52 = vmul.f32 %v1557_v20, %v3518_v31  ;;  %v2955_v30 = vld [vmem:[#allocation2 + $0x18c] sm:$0xf]  ;;  %v692_v35 = vunpack.c.l.bf16 %v639_v48  ;;  %v4110_v43 = vld [vmem:[%s3286_s7 + $0x44] sm:$0xf]  ;;  %v4500_v48 = vld [vmem:[#allocation13_spill] sm:$0xff] }
 0x180   : > { %929 = vst [vmem:[#allocation2 + $0x110] sm:$0xff] %v908_v5  ;;  %v1427_v11 = vsel %vm1420_vm6, %v4010_v56, %v1426_v41  ;;  %v1584_v22 = vmul.f32 %v1558_v27, %v3522_v33  ;;  %v1574_v39 = vmul.f32 %v1557_v20, %v3513_v26  ;;  %v1575_v2 = vmul.f32 %v1558_v27, %v3507_v58  ;;  %v4101_v31 = vld [vmem:[#allocation2 + $0x128] sm:$0xf0]  ;;  %v2669_v33 = vld [vmem:[#allocation2 + $0x88] sm:$0xf] }
 0x181   : > { %1447 = vst [vmem:[#allocation2 + $0x1d8] sm:$0xff] %v1427_v11  ;;  %v2702_v8 = vor.u32 %v2935_v54, %v2701_v12  ;;  %v2802_v18 = vor.u32 %v2955_v30, %v2799_v34  ;;  %v2947_v58 = vld [vmem:[#allocation2 + $0x14c] sm:$0xf]  ;;  %v269_v13 = vpack.i.b16 %v4500_v48, %v4500_v48  ;;  %v2927_v61 = vld [vmem:[#allocation2 + $0xa4] sm:$0xf0]  ;;  %v759_v12 = vmul.f32 %v3651_v55, %v692_v35 }
 0x182   : > { %2233 = vmatpush.bf16.msrb.mxu1 %v2734_v16  ;;  %2162 = vmatmul.bf16.vlgmr.msra.gmra.mxu0 %v4075_v44  ;;  %v1594_v56 = vpack.c.bf16 %v1584_v22, %v1583_v52  ;;  %v1589_v49 = vpack.c.bf16 %v1575_v2, %v1574_v39  ;;  %v4499_v16 = vld [vmem:[#allocation12_spill] sm:$0xff]  ;;  %v2738_v34 = vor.u32 %v4099_v17, %v4101_v31  ;;  %v2904_v11 = vld [vmem:[#allocation3 + $0x14] sm:$0xf]  ;;  %v2591_v22 = vld [vmem:[#allocation3 + $0x18] sm:$0xf0] }
 0x183   : > { %2268 = vmatpush.bf16.msrb.mxu0 %v2834_v59  ;;  %2294 = vmatpush.bf16.msrb.mxu2 %v4043_v4  ;;  %v2767_v4 = vld [vmem:[#allocation2 + $0x168] sm:$0xf0]  ;;  %v4105_v26 = vpop.permute.xlu0 %1312  ;;  %v4107_v53 = vpop.permute.xlu1 %805  ;;  %v266_v59 = vpack.i.b16 %v4499_v16, %v4499_v16  ;;  %v2919_v54 = vld [vmem:[#allocation2 + $0x64] sm:$0xf0]  ;;  %v2670_v41 = vor.u32 %v2927_v61, %v2669_v33  ;;  %v4133_v35 = vor.u32 %v2904_v11, %v2591_v22  ;;  %v484_v16 = vunpack.c.l.bf16 %v4110_v43  ;;  %v2905_v43 = vld [vmem:[#allocation3 + $0x14] sm:$0xf0] }
 0x184   : > { %2200 = vmatmul.bf16.vlgmr.msra.gmra.mxu2 %v4075_v44  ;;  %v1329_v46 = vrot.slane %v4105_v26, 4  ;;  %1622 = vrot.lane.b32.xlu0 %v1594_v56, %s3226_s21  ;;  %v817_v20 = vrot.slane %v4107_v53, 4  ;;  %v1325_v27 = vpop.permute.xlu2 %1324  ;;  %v2770_v52 = vor.u32 %v2947_v58, %v2767_v4  ;;  %v233_v2 = vld [vmem:[%s3286_s7 + $0x10] sm:$0xff]  ;;  %v2837_v22 = vld [vmem:[#allocation2 + $0x1d0] sm:$0xf] }
 0x185   : > { %1612 = vrot.lane.b32.xlu2 %v1589_v49, %s3226_s21  ;;  %v1335_v5 = vrot.slane %v1325_v27, 4  ;;  %v268_v39 = vperm.slane %v266_v59, 0  ;;  %v2605_v56 = vld [vmem:[#allocation2 + $0x8] sm:$0xf]  ;;  %v282_v4 = vunpack.c.l.bf16 %v233_v2  ;;  %2884 = vmatmul.msk.bf16.gmra.mxu1 %vm2147_vm13, %v4133_v35  ;;  %v861_v59 = vld [vmem:[%s3286_s7 + $0x44] sm:$0xf] }
 0x186   : > { %2234 = vmatpush.bf16.msrb.mxu1 %v2702_v8  ;;  %v1341_v30 = vsel %vm384_vm0, %v1328_v60, %v1329_v46  ;;  %v832_v55 = vsel %vm384_vm0, %v816_v37, %v817_v20  ;;  %v237_v8 = vld [vmem:[%s3286_s7 + $0x34] sm:$0xff]  ;;  %v2637_v37 = vld [vmem:[#allocation2 + $0x48] sm:$0xf]  ;;  %2886 = vmatmul.msk.bf16.gmra.mxu3 %vm2147_vm13, %v4133_v35 }
 0x187   : > { %2269 = vmatpush.bf16.msrb.mxu0 %v2802_v18  ;;  %v271_v18 = vperm.slane %v269_v13, 0  ;;  %v1342_v17 = vsel %vm1251_vm5, %v3879_v28, %v1341_v30  ;;  %v833_v31 = vsel %vm820_vm10, %v3858_v9, %v832_v55  ;;  %v1351_v60 = vsel %vm384_vm0, %v1334_v1, %v1335_v5  ;;  %v2911_v33 = vld [vmem:[#allocation2 + $0x24] sm:$0xf0]  ;;  %v2931_v28 = vld [vmem:[#allocation2 + $0xcc] sm:$0xf] }
 0x188   : > { %1363 = vst [vmem:[#allocation2 + $0x190] sm:$0xff] %v1342_v17  ;;  %v1352_v49 = vsel %vm1251_vm5, %v4037_v51, %v1351_v60  ;;  %v2638_v58 = vor.u32 %v2919_v54, %v2637_v37  ;;  %v422_v9 = vld [vmem:[%s3286_s7 + $0x20] sm:$0xf]  ;;  %v283_v1 = vunpack.c.h.bf16 %v233_v2  ;;  %v2703_v48 = vld [vmem:[#allocation2 + $0xe8] sm:$0xf0]  ;;  %v290_v13 = vunpack.c.l.bf16 %v237_v8 }
 0x189   : > { %850 = vst [vmem:[#allocation2 + $0xf0] sm:$0xff] %v833_v31  ;;  %v291_v27 = vunpack.c.h.bf16 %v237_v8  ;;  %v298_v61 = vunpack.c.l.bf16 %v268_v39  ;;  %v299_v5 = vunpack.c.l.bf16 %v271_v18  ;;  %v773_v51 = vpack.c.bf16 %v759_v12, %v759_v12  ;;  %v2968_v31 = vld [vmem:[#allocation2 + $0x1ec] sm:$0xf0] }
 0x18a   : > { %2235 = vmatpush.bf16.msrb.mxu1 %v2670_v41  ;;  %1368 = vst [vmem:[#allocation2 + $0x1b8] sm:$0xff] %v1352_v49  ;;  %v2606_v54 = vor.u32 %v2911_v33, %v2605_v56  ;;  %v2589_v41 = vld [vmem:[#allocation3 + $0x10] sm:$0xf]  ;;  %v475_v30 = vunpack.c.l.bf16 %v422_v9  ;;  %v2706_v17 = vor.u32 %v2931_v28, %v2703_v48  ;;  %v551_v60 = vmul.f32 %v3798_v15, %v484_v16  ;;  %v2923_v49 = vld [vmem:[#allocation2 + $0x8c] sm:$0xf] }
 0x18b   : > { %2270 = vmatpush.bf16.msrb.mxu0 %v2770_v52  ;;  %v4153_v52 = vpop.permute.xlu0 %1105  ;;  %v4155_v11 = vpop.permute.xlu1 %370  ;;  %v306_v55 = vmul.f32 %v298_v61, %v282_v4  ;;  %v307_v2 = vmul.f32 %v299_v5, %v283_v1  ;;  %v314_v39 = vmul.f32 %v298_v61, %v290_v13  ;;  %v315_v18 = vmul.f32 %v299_v5, %v291_v27  ;;  %v1461_v1 = vld [vmem:[%s3286_s7 + $0x44] sm:$0xf]  ;;  %v2960_v13 = vld [vmem:[#allocation2 + $0x1ac] sm:$0xf0]  ;;  %v2639_v27 = vld [vmem:[#allocation2 + $0x68] sm:$0xf0] }
 0x18c   : > { %v1117_v8 = vrot.slane %v4153_v52, 4  ;;  %797 = vrot.lane.b32.xlu0 %v773_v51, %s3224_s18  ;;  %v382_v12 = vrot.slane %v4155_v11, 4  ;;  %v2838_v4 = vor.u32 %v2968_v31, %v2837_v22  ;;  %v1518_v61 = vunpack.c.l.bf16 %v1461_v1 }
 0x18d   : > { %890 = vrot.lane.b32.xlu2 %v861_v59, %s3222_s16  ;;  %v320_v37 = vpack.c.bf16 %v307_v2, %v306_v55  ;;  %v2671_v59 = vld [vmem:[#allocation2 + $0xa8] sm:$0xf0] }
 0x18e   : > { %2236 = vmatpush.bf16.msrb.mxu1 %v2638_v58  ;;  %v1132_v56 = vsel %vm384_vm0, %v1116_v29, %v1117_v8  ;;  %v398_v33 = vsel %vm384_vm0, %v381_v32, %v382_v12  ;;  %v324_v58 = vpack.c.bf16 %v315_v18, %v314_v39  ;;  %v542_v29 = vmul.f32 %v3798_v15, %v475_v30  ;;  %v1456_v32 = vld [vmem:[%s3286_s7 + $0x20] sm:$0xf]  ;;  %v2907_v30 = vld [vmem:[#allocation2 + $0xc] sm:$0xf] }
 0x18f   : > { %2271 = vmatpush.bf16.msrb.mxu0 %v2738_v34  ;;  %v4162_v34 = vor.u32 %v2905_v43, %v2589_v41  ;;  %v1133_v28 = vsel %vm1120_vm11, %v3899_v36, %v1132_v56  ;;  %v399_v16 = vsel %vm386_vm1, %v4035_v0, %v398_v33  ;;  %v2805_v9 = vld [vmem:[#allocation2 + $0x190] sm:$0xf]  ;;  %328 = vst [vmem:[#allocation2 + $0x10] sm:$0xff] %v320_v37  ;;  %v1509_v41 = vunpack.c.l.bf16 %v1456_v32  ;;  %v2607_v55 = vld [vmem:[#allocation2 + $0x28] sm:$0xf0] }
 0x190   : > { %1150 = vst [vmem:[#allocation2 + $0x170] sm:$0xff] %v1133_v28  ;;  %v2674_v48 = vor.u32 %v2923_v49, %v2671_v59  ;;  %v561_v36 = vpack.c.bf16 %v551_v60, %v551_v60  ;;  %v2806_v0 = vor.u32 %v2960_v13, %v2805_v9  ;;  %v556_v51 = vpack.c.bf16 %v542_v29, %v542_v29  ;;  %v2773_v37 = vld [vmem:[#allocation2 + $0x150] sm:$0xf]  ;;  %v2964_v49 = vld [vmem:[#allocation2 + $0x1d4] sm:$0xf] }
 0x191   : > { %416 = vst [vmem:[#allocation2 + $0x70] sm:$0xff] %v399_v16  ;;  %v1576_v33 = vmul.f32 %v4071_v50, %v1509_v41  ;;  %v2956_v9 = vld [vmem:[#allocation2 + $0x194] sm:$0xf] }
 0x192   : > { %2237 = vmatpush.bf16.msrb.mxu1 %v2606_v54  ;;  %2167 = vmatmul.bf16.gmra.mxu0 %v4162_v34  ;;  %332 = vst [vmem:[#allocation2 + $0x30] sm:$0xff] %v324_v58  ;;  %v2915_v54 = vld [vmem:[#allocation2 + $0x4c] sm:$0xf]  ;;  %v2741_v58 = vld [vmem:[#allocation2 + $0x110] sm:$0xf] }
 0x193   : > { %2272 = vmatpush.bf16.msrb.mxu0 %v2706_v17  ;;  %v4183_v15 = vpop.permute.xlu0 %795  ;;  %v1315_v5 = vpop.permute.xlu1 %1314  ;;  %v2642_v2 = vor.u32 %v2915_v54, %v2639_v27  ;;  %v1585_v17 = vmul.f32 %v4071_v50, %v1518_v61  ;;  %v1590_v29 = vpack.c.bf16 %v1576_v33, %v1576_v33  ;;  %v2944_v50 = vld [vmem:[#allocation2 + $0x12c] sm:$0xf0] }
 0x194   : > { %2205 = vmatmul.bf16.gmra.mxu2 %v4162_v34  ;;  %v812_v43 = vrot.slane %v4183_v15, 4  ;;  %590 = vrot.lane.b32.xlu0 %v561_v36, %s3223_s17  ;;  %v1330_v22 = vrot.slane %v1315_v5, 4  ;;  %v2742_v32 = vor.u32 %v2944_v50, %v2741_v58  ;;  %v2677_v33 = vld [vmem:[#allocation2 + $0x90] sm:$0xf] }
 0x195   : > { %580 = vrot.lane.b32.xlu2 %v556_v51, %s3223_s17  ;;  %2238 = vmatmul.bf16.vlgmr.msrb.gmra.mxu1 %v4075_v44  ;;  %v2936_v51 = vld [vmem:[#allocation2 + $0xec] sm:$0xf0] }
 0x196   : > { %2306 = vmatpush.bf16.msra.mxu1 %v2838_v4  ;;  %v824_v39 = vsel %vm384_vm0, %v811_v7, %v812_v43  ;;  %v1343_v18 = vsel %vm384_vm0, %v1329_v46, %v1330_v22  ;;  %v2610_v4 = vor.u32 %v2907_v30, %v2607_v55  ;;  %v2839_v46 = vld [vmem:[#allocation2 + $0x1f0] sm:$0xf0]  ;;  %2887 = vmatmul.msk.bf16.vlgmr.msrb.gmra.mxu3 %vm2147_vm13, %v4033_v6 }
 0x197   : > { %2273 = vmatpush.bf16.msrb.mxu0 %v2674_v48  ;;  %v825_v31 = vsel %vm820_vm10, %v3856_v21, %v824_v39  ;;  %v1344_v60 = vsel %vm1251_vm5, %v4105_v26, %v1343_v18  ;;  %v2952_v56 = vld [vmem:[#allocation2 + $0x16c] sm:$0xf0]  ;;  %v1595_v21 = vpack.c.bf16 %v1585_v17, %v1585_v17  ;;  %v2842_v26 = vor.u32 %v2964_v49, %v2839_v46  ;;  %v2807_v48 = vld [vmem:[#allocation2 + $0x1b0] sm:$0xf0] }
 0x198   : > { %846 = vst [vmem:[#allocation2 + $0xd0] sm:$0xff] %v825_v31  ;;  %v2774_v7 = vor.u32 %v2952_v56, %v2773_v37  ;;  %v2775_v54 = vld [vmem:[#allocation2 + $0x170] sm:$0xf0]  ;;  %v2920_v46 = vld [vmem:[#allocation2 + $0x6c] sm:$0xf0] }
 0x199   : > { %1364 = vst [vmem:[#allocation2 + $0x198] sm:$0xff] %v1344_v60  ;;  %v2940_v55 = vld [vmem:[#allocation2 + $0x114] sm:$0xf] }
 0x19a   : > { %2307 = vmatpush.bf16.msra.mxu1 %v2806_v0  ;;  %v2810_v0 = vor.u32 %v2956_v9, %v2807_v48  ;;  %v2743_v18 = vld [vmem:[#allocation2 + $0x130] sm:$0xf0] }
 0x19b   : > { %2274 = vmatpush.bf16.msrb.mxu0 %v2642_v2  ;;  %v4205_v28 = vpop.permute.xlu0 %588  ;;  %v1108_v16 = vpop.permute.xlu1 %1107  ;;  %v2746_v60 = vor.u32 %v2940_v55, %v2743_v18 }
 0x19c   : > { %v600_v1 = vrot.slane %v4205_v28, 4  ;;  %1624 = vrot.lane.b32.xlu0 %v1595_v21, %s3226_s21  ;;  %v1118_v59 = vrot.slane %v1108_v16, 4  ;;  %v2912_v16 = vld [vmem:[#allocation2 + $0x2c] sm:$0xf0] }
 0x19d   : > { %1614 = vrot.lane.b32.xlu2 %v1590_v29, %s3226_s21 }
 0x19e   : > { %2308 = vmatpush.bf16.msra.mxu1 %v2774_v7  ;;  %v615_v13 = vsel %vm384_vm0, %v599_v42, %v600_v1  ;;  %v1134_v36 = vsel %vm384_vm0, %v1117_v8, %v1118_v59  ;;  %v2948_v42 = vld [vmem:[#allocation2 + $0x154] sm:$0xf]  ;;  %v1745_v8 = vld [vmem:[%s4443_s2] sm:$0xff] }
 0x19f   : > { %2275 = vmatpush.bf16.msrb.mxu0 %v2610_v4  ;;  %v616_v27 = vsel %vm603_vm9, %v3910_v38, %v615_v13  ;;  %v1135_v61 = vsel %vm1120_vm11, %v4153_v52, %v1134_v36  ;;  %v2709_v5 = vld [vmem:[#allocation2 + $0xd0] sm:$0xf]  ;;  %v2778_v38 = vor.u32 %v2948_v42, %v2775_v54  ;;  %v3227_v52 = vmov 0   ;;  %v2932_v49 = vld [vmem:[#allocation2 + $0xd4] sm:$0xf] }
 0x1a0   : > { %633 = vst [vmem:[#allocation2 + $0xb0] sm:$0xff] %v616_v27  ;;  %v2710_v41 = vor.u32 %v2936_v51, %v2709_v5  ;;  %3132 = vset.pattern.permute.xlu1 %v3227_v52  ;;  %3134 = vset.pattern.permute.xlu0 %v3227_v52  ;;  %v2924_v59 = vld [vmem:[#allocation2 + $0x94] sm:$0xf] }
 0x1a1   : > { %1151 = vst [vmem:[#allocation2 + $0x178] sm:$0xff] %v1135_v61  ;;  %1751 = vperm.xlu1 %3132, %v1745_v8   ;;  %3133 = vset.pattern.permute.xlu2 %v3227_v52  ;;  %v2647_v51 = vld [vmem:[#allocation2 + $0x70] sm:$0xf0]  ;;  %v2813_v8 = vld [vmem:[#allocation2 + $0x198] sm:$0xf] }
 0x1a2   : > { %2309 = vmatpush.bf16.msra.mxu1 %v2742_v32  ;;  %2276 = vmatmul.bf16.vlgmr.msrb.gmra.mxu0 %v4075_v44  ;;  %v2845_v32 = vld [vmem:[#allocation2 + $0x1d8] sm:$0xf]  ;;  %v2615_v42 = vld [vmem:[#allocation2 + $0x30] sm:$0xf0] }
 0x1a3   : > { %2344 = vmatpush.bf16.msra.mxu0 %v2842_v26  ;;  %v1408_v22 = vpop.permute.xlu0 %1407  ;;  %v881_v30 = vpop.permute.xlu1 %880  ;;  %v2613_v26 = vld [vmem:[#allocation2 + $0x10] sm:$0xf] }
 0x1a4   : > { %2889 = vmatmul.msk.bf16.vlgmr.msrb.gmra.mxu2 %vm2147_vm13, %v4033_v6  ;;  %v1418_v2 = vrot.slane %v1408_v22, 4  ;;  %v896_v39 = vrot.slane %v881_v30, 4 }
 0x1a5   : > { %2243 = vmatmul.bf16.gmra.mxu1 %v4162_v34 }
 0x1a6   : > { %2310 = vmatpush.bf16.msra.mxu1 %v2710_v41  ;;  %v1434_v17 = vsel %vm384_vm0, %v1417_v19, %v1418_v2  ;;  %v909_v31 = vsel %vm384_vm0, %v895_v3, %v896_v39  ;;  %v2711_v19 = vld [vmem:[#allocation2 + $0xf0] sm:$0xf0]  ;;  %2888 = vmatmul.msk.bf16.gmra.mxu3 %vm2147_vm13, %v4133_v35 }
 0x1a7   : > { %2345 = vmatpush.bf16.msra.mxu0 %v2810_v0  ;;  %v1435_v37 = vsel %vm1420_vm6, %v3953_v57, %v1434_v17  ;;  %v910_v56 = vsel %vm903_vm8, %v4069_v62, %v909_v31  ;;  %v2928_v4 = vld [vmem:[#allocation2 + $0xac] sm:$0xf0]  ;;  %v2714_v3 = vor.u32 %v2932_v49, %v2711_v19  ;;  %v2679_v62 = vld [vmem:[#allocation2 + $0xb0] sm:$0xf0]  ;;  %v2614_v0 = vor.u32 %v2912_v16, %v2613_v26  ;;  %v1746_v19 = vld [vmem:[%s4443_s2 + $0x8] sm:$0xff] }
 0x1a8   : > { %1451 = vst [vmem:[#allocation2 + $0x1f8] sm:$0xff] %v1435_v37  ;;  %v2678_v7 = vor.u32 %v2928_v4, %v2677_v33  ;;  %v2645_v57 = vld [vmem:[#allocation2 + $0x50] sm:$0xf]  ;;  %v2682_v36 = vor.u32 %v2924_v59, %v2679_v62  ;;  %v2916_v41 = vld [vmem:[#allocation2 + $0x54] sm:$0xf]  ;;  %1756 = vperm.xlu2 %3133, %v1746_v19  }
 0x1a9   : > { %930 = vst [vmem:[#allocation2 + $0x118] sm:$0xff] %v910_v56  ;;  %v2646_v9 = vor.u32 %v2920_v46, %v2645_v57  ;;  %v2953_v31 = vld [vmem:[#allocation2 + $0x174] sm:$0xf0]  ;;  %v2957_v37 = vld [vmem:[#allocation2 + $0x19c] sm:$0xf]  ;;  %v1748_v4 = vld [vmem:[%s4443_s2 + $0x18] sm:$0xff] }
 0x1aa   : > { %2311 = vmatpush.bf16.msra.mxu1 %v2678_v7  ;;  %v2815_v56 = vld [vmem:[#allocation2 + $0x1b8] sm:$0xf0]  ;;  %1766 = vperm.xlu1 %3132, %v1748_v4  }
 0x1ab   : > { %2346 = vmatpush.bf16.msra.mxu0 %v2778_v38  ;;  %v1098_v58 = vpop.permute.xlu0 %1097  ;;  %v808_v21 = vpop.permute.xlu1 %807  ;;  %v2965_v38 = vld [vmem:[#allocation2 + $0x1dc] sm:$0xf] }
 0x1ac   : > { %v1113_v29 = vrot.slane %v1098_v58, 4  ;;  %v818_v50 = vrot.slane %v808_v21, 4  ;;  %v2783_v49 = vld [vmem:[#allocation2 + $0x178] sm:$0xf0] }
 0x1ae   : > { %v1126_v48 = vsel %vm384_vm0, %v1112_v14, %v1113_v29  ;;  %v834_v13 = vsel %vm384_vm0, %v817_v20, %v818_v50  ;;  %2312 = vmatpush.bf16.msra.mxu1 %v2646_v9  ;;  %v2908_v14 = vld [vmem:[#allocation2 + $0x14] sm:$0xf]  ;;  %v2650_v20 = vor.u32 %v2916_v41, %v2647_v51  ;;  %v4501_v29 = vld [vmem:[#allocation14_spill] sm:$0xff]  ;;  %v4502_v9 = vld [vmem:[#allocation15_spill] sm:$0xff] }
 0x1af   : > { %2347 = vmatpush.bf16.msra.mxu0 %v2746_v60  ;;  %v1127_v27 = vsel %vm1120_vm11, %v3985_v10, %v1126_v48  ;;  %v835_v61 = vsel %vm820_vm10, %v4107_v53, %v834_v13  ;;  %v2969_v5 = vld [vmem:[#allocation2 + $0x1f4] sm:$0xf0]  ;;  %v2847_v52 = vld [vmem:[#allocation2 + $0x1f8] sm:$0xf0]  ;;  %v2618_v30 = vor.u32 %v2908_v14, %v2615_v42  ;;  %v272_v50 = vpack.i.b16 %v4501_v29, %v4501_v29  ;;  %v234_v13 = vld [vmem:[%s3286_s7 + $0x18] sm:$0xff] }
 0x1b0   : > { %1147 = vst [vmem:[#allocation2 + $0x158] sm:$0xff] %v1127_v27  ;;  %v2846_v54 = vor.u32 %v2969_v5, %v2845_v32  ;;  %v2961_v53 = vld [vmem:[#allocation2 + $0x1b4] sm:$0xf0]  ;;  %v4252_v2 = vor.u32 %v2965_v38, %v2847_v52  ;;  %v285_v27 = vunpack.c.h.bf16 %v234_v13  ;;  %v2941_v42 = vld [vmem:[#allocation2 + $0x11c] sm:$0xf] }
 0x1b1   : > { %851 = vst [vmem:[#allocation2 + $0xf8] sm:$0xff] %v835_v61  ;;  %v2814_v55 = vor.u32 %v2961_v53, %v2813_v8  ;;  %v274_v32 = vperm.slane %v272_v50, 0  ;;  %v2749_v5 = vld [vmem:[#allocation2 + $0x118] sm:$0xf] }
 0x1b2   : > { %2281 = vmatmul.bf16.gmra.mxu0 %v4162_v34  ;;  %2313 = vmatpush.bf16.msra.mxu1 %v2614_v0  ;;  %v284_v0 = vunpack.c.l.bf16 %v234_v13 }
 0x1b3   : > { %2348 = vmatpush.bf16.msra.mxu0 %v2714_v3  ;;  %v373_v10 = vpop.permute.xlu1 %372  ;;  %v300_v51 = vunpack.c.l.bf16 %v274_v32 }
 0x1b4   : > { %v383_v22 = vrot.slane %v373_v10, 4 }
 0x1b5   : > { %2314 = vmatmul.bf16.vlgmr.msra.gmra.mxu1 %v4075_v44  ;;  %v308_v52 = vmul.f32 %v300_v51, %v284_v0 }
 0x1b6   : > { %2382 = vmatpush.bf16.msrb.mxu1 %v2846_v54  ;;  %v400_v39 = vsel %vm384_vm0, %v382_v12, %v383_v22  ;;  %2890 = vmatmul.msk.bf16.vlgmr.msra.gmra.mxu3 %vm2147_vm13, %v4133_v35  ;;  %v4263_v12 = vor.u32 %v2957_v37, %v2815_v56 }
 0x1b7   : > { %2349 = vmatpush.bf16.msra.mxu0 %v2682_v36  ;;  %v401_v18 = vsel %vm386_vm1, %v4155_v11, %v400_v39  ;;  %v2781_v17 = vld [vmem:[#allocation2 + $0x158] sm:$0xf]  ;;  %v2949_v33 = vld [vmem:[#allocation2 + $0x15c] sm:$0xf]  ;;  %v1747_v11 = vld [vmem:[%s4443_s2 + $0x10] sm:$0xff] }
 0x1b8   : > { %417 = vst [vmem:[#allocation2 + $0x78] sm:$0xff] %v401_v18  ;;  %v2782_v60 = vor.u32 %v2953_v31, %v2781_v17  ;;  %1761 = vperm.xlu0 %3134, %v1747_v11   ;;  %v4272_v7 = vor.u32 %v2949_v33, %v2783_v49  ;;  %v238_v36 = vld [vmem:[%s3286_s7 + $0x3c] sm:$0xff]  ;;  %v4503_v17 = vrot.slane %v3939_v40, 4  ;;  %v2719_v50 = vld [vmem:[#allocation2 + $0xf8] sm:$0xf0]  ;;  %s4353_s7 = scalar_lea.vmem %s4445_s4, %s2901_s30 }
 0x1b9   : > { %v292_v61 = vunpack.c.l.bf16 %v238_v36 }
 0x1ba   : > { %2383 = vmatpush.bf16.msrb.mxu1 %v2814_v55 }
 0x1bb   : > { %2350 = vmatpush.bf16.msra.mxu0 %v2650_v20  ;;  %v316_v22 = vmul.f32 %v300_v51, %v292_v61 }
 0x1be   : > { %2384 = vmatpush.bf16.msrb.mxu1 %v2782_v60 }
 0x1bf   : > { %2351 = vmatpush.bf16.msra.mxu0 %v2618_v30  ;;  %v2921_v61 = vld [vmem:[#allocation2 + $0x74] sm:$0xf0] }
 0x1c2   : > { %2352 = vmatmul.bf16.vlgmr.msra.gmra.mxu0 %v4075_v44 }
 0x1c3   : > { %2420 = vmatpush.bf16.msrb.mxu0 %v4252_v2 }
 0x1c5   : > { %2319 = vmatmul.bf16.gmra.mxu1 %v4162_v34 }
 0x1c7   : > { %2421 = vmatpush.bf16.msrb.mxu0 %v4263_v12 }
 0x1cb   : > { %2422 = vmatpush.bf16.msrb.mxu0 %v4272_v7 }
 0x1d2   : > { %2357 = vmatmul.bf16.gmra.mxu0 %v4162_v34 }
 0x1df   : > { %v1613_v46 = vpop.permute.xlu2 %1612 }
 0x1e0   : > { %v1629_v3 = vrot.slane %v1613_v46, 4 }
 0x1e2   : > { %v1641_v57 = vsel %vm384_vm0, %v1628_v24, %v1629_v3  ;;  %v275_v24 = vpack.i.b16 %v4502_v9, %v4502_v9 }
 0x1e3   : > { %v1642_v58 = vsel %vm1637_vm12, %v3980_v23, %v1641_v57 }
 0x1e4   : > { %1663 = vst [vmem:[#allocation2 + $0x210] sm:$0xff] %v1642_v58  ;;  %v277_v23 = vperm.slane %v275_v24, 0 }
 0x1e6   : > { %v301_v54 = vunpack.c.l.bf16 %v277_v23 }
 0x1e7   : > { %v891_v21 = vpop.permute.xlu2 %890 }
 0x1e8   : > { %v901_v62 = vrot.slane %v891_v21, 4  ;;  %v309_v10 = vmul.f32 %v301_v54, %v285_v27 }
 0x1ea   : > { %v917_v26 = vsel %vm384_vm0, %v900_v47, %v901_v62  ;;  %v293_v47 = vunpack.c.h.bf16 %v238_v36  ;;  %v321_v30 = vpack.c.bf16 %v309_v10, %v308_v52 }
 0x1eb   : > { %v918_v16 = vsel %vm903_vm8, %v4013_v63, %v917_v26  ;;  %v2869_v49 = vld [vmem:[#allocation2 + $0x210] sm:$0xf]  ;;  %v2972_v58 = vld [vmem:[#allocation2 + $0x214] sm:$0xf] }
 0x1ec   : > { %934 = vst [vmem:[#allocation2 + $0x138] sm:$0xff] %v918_v16  ;;  %v317_v53 = vmul.f32 %v301_v54, %v293_v47  ;;  %v2655_v47 = vld [vmem:[#allocation2 + $0x78] sm:$0xf0] }
 0x1ed   : > { %329 = vst [vmem:[#allocation2 + $0x18] sm:$0xff] %v321_v30 }
 0x1ee   : > { %v325_v18 = vpack.c.bf16 %v317_v53, %v316_v22 }
 0x1ef   : > { %v581_v59 = vpop.permute.xlu2 %580 }
 0x1f0   : > { %v596_v48 = vrot.slane %v581_v59, 4  ;;  %333 = vst [vmem:[#allocation2 + $0x38] sm:$0xff] %v325_v18 }
 0x1f2   : > { %v609_v63 = vsel %vm384_vm0, %v595_v25, %v596_v48  ;;  %v2182_v10 = vpop.f32.mrf.mxu1 }
 0x1f3   : > { %v610_v41 = vsel %vm603_vm9, %v4041_v45, %v609_v63  ;;  %v2945_v14 = vld [vmem:[#allocation2 + $0x134] sm:$0xf0]  ;;  %v2751_v20 = vld [vmem:[#allocation2 + $0x138] sm:$0xf0] }
 0x1f4   : > { %630 = vst [vmem:[#allocation2 + $0x98] sm:$0xff] %v610_v41  ;;  %v2750_v8 = vor.u32 %v2945_v14, %v2749_v5  ;;  %v4302_v38 = vor.u32 %v2941_v42, %v2751_v20  ;;  %v2653_v63 = vld [vmem:[#allocation2 + $0x58] sm:$0xf]  ;;  %v2917_v5 = vld [vmem:[#allocation2 + $0x5c] sm:$0xf] }
 0x1f5   : > { %v2621_v51 = vld [vmem:[#allocation2 + $0x18] sm:$0xf]  ;;  %v2654_v41 = vor.u32 %v2921_v61, %v2653_v63  ;;  %v4334_v14 = vor.u32 %v2917_v5, %v2655_v47  ;;  %v2909_v20 = vld [vmem:[#allocation2 + $0x1c] sm:$0xf] }
 0x1f6   : > { %2385 = vmatpush.bf16.msrb.mxu1 %v2750_v8  ;;  %2423 = vmatpush.bf16.msrb.mxu0 %v4302_v38  ;;  %v1623_v25 = vpop.permute.xlu0 %1622 }
 0x1f7   : > { %v1634_v55 = vrot.slane %v1623_v25, 4  ;;  %v1615_v39 = vpop.permute.xlu2 %1614  ;;  %v2913_v54 = vld [vmem:[#allocation2 + $0x34] sm:$0xf0]  ;;  %v2623_v8 = vld [vmem:[#allocation2 + $0x38] sm:$0xf0] }
 0x1f8   : > { %v1630_v45 = vrot.slane %v1615_v39, 4  ;;  %v2220_v52 = vpop.f32.mrf.mxu3  ;;  %v2622_v22 = vor.u32 %v2913_v54, %v2621_v51 }
 0x1f9   : > { %v1649_v31 = vsel %vm384_vm0, %v4503_v17, %v1634_v55  ;;  %v2626_v17 = vor.u32 %v2909_v20, %v2623_v8 }
 0x1fa   : > { %v1650_v60 = vsel %vm1637_vm12, %v3939_v40, %v1649_v31  ;;  %v1643_v37 = vsel %vm384_vm0, %v1629_v3, %v1630_v45 }
 0x1fb   : > { %1667 = vst [vmem:[#allocation2 + $0x230] sm:$0xff] %v1650_v60  ;;  %v1644_v56 = vsel %vm1637_vm12, %v1613_v46, %v1643_v37  ;;  %v2685_v48 = vld [vmem:[#allocation2 + $0x98] sm:$0xf]  ;;  %v2925_v36 = vld [vmem:[#allocation2 + $0x9c] sm:$0xf] }
 0x1fc   : > { %1664 = vst [vmem:[#allocation2 + $0x218] sm:$0xff] %v1644_v56 }
 0x1fe   : > { %v798_v33 = vpop.permute.xlu0 %797 }
 0x1ff   : > { %v813_v11 = vrot.slane %v798_v33, 4  ;;  %v2163_v42 = vpop.f32.mrf.mxu0 }
 0x200   : > { %v2222_v37 = vpop.f32.mrf.mxu3 }
 0x201   : > { %v826_v4 = vsel %vm384_vm0, %v812_v43, %v813_v11  ;;  %v2937_v43 = vld [vmem:[#allocation2 + $0xf4] sm:$0xf0] }
 0x202   : > { %v827_v19 = vsel %vm820_vm10, %v4183_v15, %v826_v4  ;;  %v2976_v57 = vld [vmem:[#allocation2 + $0x22c] sm:$0xf0]  ;;  %v2871_v21 = vld [vmem:[#allocation2 + $0x230] sm:$0xf0]  ;;  %v4345_v60 = vpop.permute.xlu2 %1756  ;;  %v2184_v4 = vpop.f32.mrf.mxu1 }
 0x203   : > { %847 = vst [vmem:[#allocation2 + $0xd8] sm:$0xff] %v827_v19  ;;  %v2870_v40 = vor.u32 %v2976_v57, %v2869_v49  ;;  %v2874_v3 = vor.u32 %v2972_v58, %v2871_v21  ;;  %v2877_v53 = vld [vmem:[#allocation2 + $0x218] sm:$0xf] }
 0x205   : > { %2332 = vmatpush.bf16.msrb.mxu3 %v2870_v40  ;;  %2370 = vmatpush.bf16.msra.mxu2 %v2874_v3 }
 0x206   : > { %v591_v46 = vpop.permute.xlu0 %590 }
 0x207   : > { %v601_v62 = vrot.slane %v591_v46, 4  ;;  %v2165_v11 = vpop.f32.mrf.mxu0 }
 0x208   : > { %2891 = vmatmul.msk.bf16.vlgmr.msrb.gmra.mxu3 %vm2147_vm13, %v4033_v6  ;;  %2893 = vmatmul.msk.bf16.vlgmr.msra.gmra.mxu2 %vm2147_vm13, %v4033_v6 }
 0x209   : > { %v617_v15 = vsel %vm384_vm0, %v600_v1, %v601_v62 }
 0x20a   : > { %v618_v26 = vsel %vm603_vm9, %v4205_v28, %v617_v15  ;;  %v2717_v16 = vld [vmem:[#allocation2 + $0xd8] sm:$0xf]  ;;  %v2933_v29 = vld [vmem:[#allocation2 + $0xdc] sm:$0xf]  ;;  %v2187_v3 = vpop.f32.mrf.mxu1 }
 0x20b   : > { %634 = vst [vmem:[#allocation2 + $0xb8] sm:$0xff] %v618_v26  ;;  %v2718_v9 = vor.u32 %v2937_v43, %v2717_v16  ;;  %v4326_v24 = vor.u32 %v2933_v29, %v2719_v50 }
 0x20d   : > { %2386 = vmatpush.bf16.msrb.mxu1 %v2718_v9  ;;  %2424 = vmatpush.bf16.msrb.mxu0 %v4326_v24 }
 0x20e   : > { %v1625_v59 = vpop.permute.xlu0 %1624 }
 0x20f   : > { %v1635_v32 = vrot.slane %v1625_v59, 4 }
 0x211   : > { %v1651_v23 = vsel %vm384_vm0, %v1634_v55, %v1635_v32  ;;  %v2973_v55 = vld [vmem:[#allocation2 + $0x21c] sm:$0xf] }
 0x212   : > { %v1652_v1 = vsel %vm1637_vm12, %v1623_v25, %v1651_v23  ;;  %v2929_v13 = vld [vmem:[#allocation2 + $0xb4] sm:$0xf0]  ;;  %v2687_v28 = vld [vmem:[#allocation2 + $0xb8] sm:$0xf0]  ;;  %v2201_v25 = vpop.f32.mrf.mxu2  ;;  %v2189_v16 = vpop.f32.mrf.mxu1 }
 0x213   : > { %1668 = vst [vmem:[#allocation2 + $0x238] sm:$0xff] %v1652_v1  ;;  %v2686_v0 = vor.u32 %v2929_v13, %v2685_v48  ;;  %v4331_v27 = vor.u32 %v2925_v36, %v2687_v28  ;;  %v4343_v31 = vpop.permute.xlu1 %1751 }
 0x214   : > { %v2164_v56 = vadd.f32 %v2163_v42, %v4343_v31  ;;  %v2202_v33 = vadd.f32 %v2201_v25, %v4343_v31 }
 0x215   : > { %2387 = vmatpush.bf16.msrb.mxu1 %v2686_v0  ;;  %2425 = vmatpush.bf16.msrb.mxu0 %v4331_v27 }
 0x216   : > { %v2183_v19 = vadd.f32 %v2182_v10, %v2164_v56  ;;  %v2221_v57 = vadd.f32 %v2220_v52, %v2202_v33 }
 0x218   : > { %2892 = vmatmul.msk.bf16.gmra.mxu3 %vm2147_vm13, %v4133_v35  ;;  %2894 = vmatmul.msk.bf16.gmra.mxu2 %vm2147_vm13, %v4133_v35  ;;  %2458 = vst [vmem:[%s4353_s7] sm:$0xff] %v2183_v19 }
 0x219   : > { %2388 = vmatpush.bf16.msrb.mxu1 %v2654_v41  ;;  %2426 = vmatpush.bf16.msrb.mxu0 %v4334_v14  ;;  %2459 = vst [vmem:[%s4353_s7 + $0x8] sm:$0xff] %v2221_v57 }
 0x21a   : > { %v2977_v30 = vld [vmem:[#allocation2 + $0x234] sm:$0xf0]  ;;  %v2879_v39 = vld [vmem:[#allocation2 + $0x238] sm:$0xf0]  ;;  %v2203_v49 = vpop.f32.mrf.mxu2  ;;  %v2239_v48 = vpop.f32.mrf.mxu1 }
 0x21b   : > { %v2878_v18 = vor.u32 %v2977_v30, %v2877_v53  ;;  %v2882_v45 = vor.u32 %v2973_v55, %v2879_v39  ;;  %v2204_v58 = vadd.f32 %v2203_v49, %v4345_v60  ;;  %v2240_v1 = vadd.f32 %v2239_v48, %v4343_v31 }
 0x21c   : > { %v4375_v43 = vpop.permute.xlu1 %1766 }
 0x21d   : > { %2389 = vmatpush.bf16.msrb.mxu1 %v2622_v22  ;;  %2408 = vmatpush.bf16.msra.mxu3 %v2878_v18  ;;  %v2223_v40 = vadd.f32 %v2222_v37, %v2204_v58 }
 0x21e   : > { %2446 = vmatpush.bf16.msrb.mxu2 %v2882_v45  ;;  %2427 = vmatpush.bf16.msrb.mxu0 %v2626_v17 }
 0x21f   : > { %2467 = vst [vmem:[%s4353_s7 + $0x48] sm:$0xff] %v2223_v40 }
 0x220   : > { %2390 = vmatmul.bf16.vlgmr.msrb.gmra.mxu1 %v4075_v44 }
 0x221   : > { %2979 = vmatpush.bf16.msra.mxu1 %v4252_v2  ;;  %v2166_v2 = vadd.f32 %v2165_v11, %v4345_v60  ;;  %2428 = vmatmul.bf16.vlgmr.msrb.gmra.mxu0 %v4075_v44  ;;  %v2168_v44 = vpop.f32.mrf.mxu0 }
 0x222   : > { %v2206_v46 = vpop.f32.mrf.mxu2  ;;  %v2241_v61 = vpop.f32.mrf.mxu1 }
 0x223   : > { %v2185_v21 = vadd.f32 %v2184_v4, %v2166_v2 }
 0x225   : > { %2980 = vmatpush.bf16.msra.mxu1 %v4263_v12  ;;  %2466 = vst [vmem:[%s4353_s7 + $0x40] sm:$0xff] %v2185_v21  ;;  %v2225_v12 = vpop.f32.mrf.mxu3 }
 0x228   : > { %2895 = vmatmul.msk.bf16.vlgmr.msra.gmra.mxu3 %vm2147_vm13, %v4033_v6  ;;  %2897 = vmatmul.msk.bf16.vlgmr.msrb.gmra.mxu2 %vm2147_vm13, %v4033_v6 }
 0x229   : > { %2981 = vmatpush.bf16.msra.mxu1 %v4272_v7  ;;  %v2170_v26 = vpop.f32.mrf.mxu0 }
 0x22a   : > { %v4370_v62 = vpop.permute.xlu0 %1761  ;;  %v2171_v50 = vadd.f32 %v2170_v26, %v4375_v43  ;;  %v2208_v9 = vpop.f32.mrf.mxu2 }
 0x22b   : > { %v2169_v15 = vadd.f32 %v2168_v44, %v4370_v62  ;;  %v2207_v6 = vadd.f32 %v2206_v46, %v4370_v62  ;;  %v2244_v51 = vpop.f32.mrf.mxu1 }
 0x22c   : > { %v2190_v59 = vadd.f32 %v2189_v16, %v2171_v50  ;;  %v2245_v54 = vadd.f32 %v2244_v51, %v4370_v62 }
 0x22d   : > { %2982 = vmatpush.bf16.msra.mxu1 %v4302_v38  ;;  %v2227_v7 = vpop.f32.mrf.mxu3  ;;  %v2188_v38 = vadd.f32 %v2187_v3, %v2169_v15  ;;  %v2226_v29 = vadd.f32 %v2225_v12, %v2207_v6 }
 0x22e   : > { %2482 = vst [vmem:[%s4353_s7 + $0xc0] sm:$0xff] %v2190_v59 }
 0x22f   : > { %2474 = vst [vmem:[%s4353_s7 + $0x80] sm:$0xff] %v2188_v38 }
 0x230   : > { %2395 = vmatmul.bf16.gmra.mxu1 %v4162_v34  ;;  %2475 = vst [vmem:[%s4353_s7 + $0x88] sm:$0xff] %v2226_v29 }
 0x231   : > { %2983 = vmatpush.bf16.msra.mxu1 %v4326_v24  ;;  %v2209_v24 = vadd.f32 %v2208_v9, %v4375_v43  ;;  %v2277_v36 = vpop.f32.mrf.mxu0 }
 0x232   : > { %v2278_v28 = vadd.f32 %v2277_v36, %v4343_v31 }
 0x233   : > { %v2228_v32 = vadd.f32 %v2227_v7, %v2209_v24 }
 0x235   : > { %2984 = vmatpush.bf16.msra.mxu1 %v4331_v27  ;;  %2483 = vst [vmem:[%s4353_s7 + $0xc8] sm:$0xff] %v2228_v32  ;;  %v2258_v23 = vpop.f32.mrf.mxu3  ;;  %v2296_v27 = vpop.f32.mrf.mxu2 }
 0x236   : > { %v2259_v13 = vadd.f32 %v2258_v23, %v2240_v1  ;;  %v2297_v47 = vadd.f32 %v2296_v27, %v2278_v28 }
 0x238   : > { %2896 = vmatmul.msk.bf16.gmra.mxu3 %vm2147_vm13, %v4133_v35  ;;  %2898 = vmatmul.msk.bf16.gmra.mxu2 %vm2147_vm13, %v4133_v35  ;;  %2460 = vst [vmem:[%s4353_s7 + $0x10] sm:$0xff] %v2259_v13  ;;  %v2242_v35 = vadd.f32 %v2241_v61, %v4345_v60 }
 0x239   : > { %2985 = vmatpush.bf16.msra.mxu1 %v4334_v14  ;;  %2461 = vst [vmem:[%s4353_s7 + $0x18] sm:$0xff] %v2297_v47  ;;  %v2279_v41 = vpop.f32.mrf.mxu0 }
 0x23a   : > { %v2280_v25 = vadd.f32 %v2279_v41, %v4345_v60 }
 0x23d   : > { %2986 = vmatpush.bf16.msra.mxu1 %v2626_v17  ;;  %v2260_v0 = vpop.f32.mrf.mxu3  ;;  %v2298_v18 = vpop.f32.mrf.mxu2 }
 0x23e   : > { %v2261_v63 = vadd.f32 %v2260_v0, %v2242_v35  ;;  %v2299_v17 = vadd.f32 %v2298_v18, %v2280_v25 }
 0x240   : > { %2433 = vmatmul.bf16.vlgmr.msra.gmra.mxu1 %v4162_v34  ;;  %2468 = vst [vmem:[%s4353_s7 + $0x50] sm:$0xff] %v2261_v63  ;;  %v2246_v34 = vpop.f32.mrf.mxu1 }
 0x241   : > { %v2247_v20 = vadd.f32 %v2246_v34, %v4375_v43  ;;  %v2282_v52 = vpop.f32.mrf.mxu0  ;;  %2469 = vst [vmem:[%s4353_s7 + $0x58] sm:$0xff] %v2299_v17 }
 0x242   : > { %v2283_v10 = vadd.f32 %v2282_v52, %v4370_v62 }
 0x245   : > { %v2263_v5 = vpop.f32.mrf.mxu3 }
 0x246   : > { %v2264_v14 = vadd.f32 %v2263_v5, %v2245_v54 }
 0x248   : > { %2476 = vst [vmem:[%s4353_s7 + $0x90] sm:$0xff] %v2264_v14  ;;  %v2315_v37 = vpop.f32.mrf.mxu1 }
 0x249   : > { %v2284_v55 = vpop.f32.mrf.mxu0  ;;  %v2316_v4 = vadd.f32 %v2315_v37, %v4343_v31 }
 0x24a   : > { %v2285_v39 = vadd.f32 %v2284_v55, %v4375_v43 }
 0x24d   : > { %v2265_v42 = vpop.f32.mrf.mxu3 }
 0x24e   : > { %v2266_v8 = vadd.f32 %v2265_v42, %v2247_v20 }
 0x250   : > { %2484 = vst [vmem:[%s4353_s7 + $0xd0] sm:$0xff] %v2266_v8  ;;  %v2317_v33 = vpop.f32.mrf.mxu1 }
 0x251   : > { %v2353_v56 = vpop.f32.mrf.mxu0  ;;  %v2318_v44 = vadd.f32 %v2317_v33, %v4345_v60 }
 0x252   : > { %v2354_v2 = vadd.f32 %v2353_v56, %v4343_v31 }
 0x255   : > { %v2301_v22 = vpop.f32.mrf.mxu3 }
 0x256   : > { %v2302_v53 = vadd.f32 %v2301_v22, %v2283_v10 }
 0x258   : > { %2477 = vst [vmem:[%s4353_s7 + $0x98] sm:$0xff] %v2302_v53  ;;  %v2320_v49 = vpop.f32.mrf.mxu1 }
 0x259   : > { %v2355_v11 = vpop.f32.mrf.mxu0  ;;  %v2321_v38 = vadd.f32 %v2320_v49, %v4370_v62 }
 0x25a   : > { %v2356_v12 = vadd.f32 %v2355_v11, %v4345_v60 }
 0x25d   : > { %v2303_v30 = vpop.f32.mrf.mxu3 }
 0x25e   : > { %v2304_v45 = vadd.f32 %v2303_v30, %v2285_v39 }
 0x260   : > { %2485 = vst [vmem:[%s4353_s7 + $0xd8] sm:$0xff] %v2304_v45  ;;  %v2322_v6 = vpop.f32.mrf.mxu1 }
 0x261   : > { %v2358_v40 = vpop.f32.mrf.mxu0  ;;  %v2323_v23 = vadd.f32 %v2322_v6, %v4375_v43 }
 0x262   : > { %v2359_v26 = vadd.f32 %v2358_v40, %v4370_v62 }
 0x269   : > { %v2360_v16 = vpop.f32.mrf.mxu0 }
 0x26a   : > { %v2361_v32 = vadd.f32 %v2360_v16, %v4375_v43 }
 0x28b   : > { %v2334_v19 = vpop.f32.mrf.mxu3  ;;  %v2372_v57 = vpop.f32.mrf.mxu2 }
 0x28c   : > { %v2335_v58 = vadd.f32 %v2334_v19, %v2316_v4  ;;  %v2373_v21 = vadd.f32 %v2372_v57, %v2354_v2 }
 0x28e   : > { %2462 = vst [vmem:[%s4353_s7 + $0x20] sm:$0xff] %v2335_v58 }
 0x28f   : > { %2463 = vst [vmem:[%s4353_s7 + $0x28] sm:$0xff] %v2373_v21 }
 0x293   : > { %v2336_v3 = vpop.f32.mrf.mxu3  ;;  %v2374_v46 = vpop.f32.mrf.mxu2 }
 0x294   : > { %v2337_v7 = vadd.f32 %v2336_v3, %v2318_v44  ;;  %v2375_v15 = vadd.f32 %v2374_v46, %v2356_v12 }
 0x296   : > { %2470 = vst [vmem:[%s4353_s7 + $0x60] sm:$0xff] %v2337_v7 }
 0x297   : > { %2471 = vst [vmem:[%s4353_s7 + $0x68] sm:$0xff] %v2375_v15 }
 0x29b   : > { %v2339_v29 = vpop.f32.mrf.mxu3  ;;  %v2377_v50 = vpop.f32.mrf.mxu2 }
 0x29c   : > { %v2340_v9 = vadd.f32 %v2339_v29, %v2321_v38  ;;  %v2378_v24 = vadd.f32 %v2377_v50, %v2359_v26 }
 0x29d   : > { %v2391_v59 = vpop.f32.mrf.mxu1 }
 0x29e   : > { %2478 = vst [vmem:[%s4353_s7 + $0xa0] sm:$0xff] %v2340_v9  ;;  %v2429_v48 = vpop.f32.mrf.mxu0  ;;  %v2392_v61 = vadd.f32 %v2391_v59, %v4343_v31 }
 0x29f   : > { %2479 = vst [vmem:[%s4353_s7 + $0xa8] sm:$0xff] %v2378_v24  ;;  %v2430_v27 = vadd.f32 %v2429_v48, %v4343_v31 }
 0x2a3   : > { %v2341_v1 = vpop.f32.mrf.mxu3  ;;  %v2379_v13 = vpop.f32.mrf.mxu2 }
 0x2a4   : > { %v2342_v36 = vadd.f32 %v2341_v1, %v2323_v23  ;;  %v2380_v28 = vadd.f32 %v2379_v13, %v2361_v32 }
 0x2a5   : > { %v2393_v0 = vpop.f32.mrf.mxu1 }
 0x2a6   : > { %2486 = vst [vmem:[%s4353_s7 + $0xe0] sm:$0xff] %v2342_v36  ;;  %v2431_v54 = vpop.f32.mrf.mxu0  ;;  %v2394_v14 = vadd.f32 %v2393_v0, %v4345_v60 }
 0x2a7   : > { %2487 = vst [vmem:[%s4353_s7 + $0xe8] sm:$0xff] %v2380_v28  ;;  %v2432_v41 = vadd.f32 %v2431_v54, %v4345_v60 }
 0x2ab   : > { %v2410_v47 = vpop.f32.mrf.mxu3  ;;  %v2448_v35 = vpop.f32.mrf.mxu2 }
 0x2ac   : > { %v2411_v63 = vadd.f32 %v2410_v47, %v2392_v61  ;;  %v2449_v5 = vadd.f32 %v2448_v35, %v2430_v27 }
 0x2ad   : > { %v2396_v51 = vpop.f32.mrf.mxu1 }
 0x2ae   : > { %2464 = vst [vmem:[%s4353_s7 + $0x30] sm:$0xff] %v2411_v63  ;;  %v2397_v52 = vadd.f32 %v2396_v51, %v4370_v62 }
 0x2af   : > { %2465 = vst [vmem:[%s4353_s7 + $0x38] sm:$0xff] %v2449_v5 }
 0x2b3   : > { %v2412_v42 = vpop.f32.mrf.mxu3  ;;  %v2450_v34 = vpop.f32.mrf.mxu2 }
 0x2b4   : > { %v2413_v20 = vadd.f32 %v2412_v42, %v2394_v14  ;;  %v2451_v31 = vadd.f32 %v2450_v34, %v2432_v41 }
 0x2b5   : > { %v2398_v8 = vpop.f32.mrf.mxu1 }
 0x2b6   : > { %2472 = vst [vmem:[%s4353_s7 + $0x70] sm:$0xff] %v2413_v20  ;;  %v2399_v55 = vadd.f32 %v2398_v8, %v4375_v43 }
 0x2b7   : > { %2473 = vst [vmem:[%s4353_s7 + $0x78] sm:$0xff] %v2451_v31 }
 0x2bb   : > { %v2415_v10 = vpop.f32.mrf.mxu3  ;;  %v2453_v25 = vpop.f32.mrf.mxu2 }
 0x2bc   : > { %v2416_v22 = vadd.f32 %v2415_v10, %v2397_v52 }
 0x2bd   : > { %v2434_v53 = vpop.f32.mrf.mxu1 }
 0x2be   : > { %2480 = vst [vmem:[%s4353_s7 + $0xb0] sm:$0xff] %v2416_v22  ;;  %v2435_v30 = vadd.f32 %v2434_v53, %v4370_v62 }
 0x2c0   : > { %v2454_v60 = vadd.f32 %v2453_v25, %v2435_v30 }
 0x2c2   : > { %2481 = vst [vmem:[%s4353_s7 + $0xb8] sm:$0xff] %v2454_v60 }
 0x2c3   : > { %v2417_v39 = vpop.f32.mrf.mxu3  ;;  %v2455_v37 = vpop.f32.mrf.mxu2 }
 0x2c4   : > { %v2418_v18 = vadd.f32 %v2417_v39, %v2399_v55 }
 0x2c5   : > { %v2436_v45 = vpop.f32.mrf.mxu1 }
 0x2c6   : > { %2488 = vst [vmem:[%s4353_s7 + $0xf0] sm:$0xff] %v2418_v18  ;;  %v2437_v17 = vadd.f32 %v2436_v45, %v4375_v43 }
 0x2c8   : > { %v2456_v56 = vadd.f32 %v2455_v37, %v2437_v17 }
 0x2ca   : > { %2489 = vst [vmem:[%s4353_s7 + $0xf8] sm:$0xff] %v2456_v56 }
 0x2cb PF: > { %s16_s15 = sadd.s32 1, %s3209_s15  }
 0x2cc   : > { %p13_p7 = scmp.ge.s32.totalorder %s16_s15, 4  }
 0x2ce   :  { %15 = sbr.rel (!%p13_p7) target bundleno = 2 (0x2), region = 81 }
 0x2d3   :  { %2511 = vsyncpa [#allocation4], 1 }
 0x2d4   :  { %2513 = vsyncpa [#allocation4 + $0x1], 1 }
 0x2d5   :  { %2514 = vsyncpa [#allocation6], 1 }

</bundles_post_ra>
